<compile_context>
chip_gen: v7x
topology: tpu7x:2x2x1
jax: 0.10.0
libtpu: 0.0.40
codegen_flags: <defaults>
</compile_context>

<pallas_src>
import functools
import math

import numpy as np
import jax
import jax.numpy as jnp
from jax.experimental import pallas as pl
from jax.experimental.pallas import tpu as pltpu

# ----------------------- model hyper-parameters ("opt") ----------------------
SCALE       = [2]          # opt.scale
FLOAT_SCALE = 0.5          # opt.float_scale
N_BLOCKS    = 1            # opt.n_blocks
N_FEATS     = 16           # opt.n_feats  -> final feature channels == 32 == P2W.inC
N_COLORS    = 3
RGB_RANGE   = 1.0
NEGVAL      = 0.2          # LeakyReLU slope used by common.DownBlock
PHASE       = len(SCALE)
INT_SCALE   = max(SCALE)
SCALE_INT   = math.ceil((INT_SCALE + FLOAT_SCALE) / INT_SCALE)   # ceil(res_scale) = 2
SF          = 2            # scale[0] % 2 == 0
RGB_MEAN    = np.array([0.4488, 0.4371, 0.4040], np.float32)

# --------------------------- kernel tuning knobs ------------------------------
COMPUTE_DTYPE     = jnp.bfloat16        # MXU operand dtype, f32 accumulation
VMEM_LIMIT_BYTES  = 32 * 1024 * 1024    # explicit scoped-VMEM limit (v7x-safe)
TILE_BUDGET_BYTES = 20 * 1024 * 1024    # per-step tile budget (double-buffer aware)
META_L_TILE       = 512                 # pixel (lane) tile for the fused Meta-SR kernel


# ------------------------------- Pallas kernels ------------------------------
def _matmul_kernel(x_ref, w_ref, b_ref, o_ref, *, act):
    acc = jnp.dot(x_ref[...], w_ref[...], preferred_element_type=jnp.float32)
    acc = acc + b_ref[...]
    if act == "relu":
        acc = jnp.maximum(acc, 0.0)
    elif act == "lrelu":
        acc = jnp.where(acc >= 0.0, acc, acc * NEGVAL)
    o_ref[...] = acc.astype(o_ref.dtype)


def _choose_tile_m(M, K, N):
    """Largest M tile (multiple of 8) whose double-buffered tiles fit the budget."""
    in_b, out_b = 2, 4                                    # bf16 inputs, f32 outputs
    resident = K * N * in_b + N * out_b                   # weight + bias stay in VMEM
    per_row = 2 * (K * in_b + N * out_b)                  # double-buffered x / out rows
    tm = (TILE_BUDGET_BYTES - resident) // max(per_row, 1)
    tm = max(8, min(int(tm), 2048))
    tm = min(tm, -(-M // 8) * 8)                          # never exceed padded M
    return max(8, (tm // 8) * 8)


def pallas_matmul(x, w, b=None, act="none"):
    """(M, K) @ (K, N) + bias (+ fused activation).  M is tiled and pipelined;
    the (K, N) weight and (1, N) bias stay resident in VMEM."""
    M, K = x.shape
    N = w.shape[1]
    x = x.astype(COMPUTE_DTYPE)
    w = w.astype(COMPUTE_DTYPE)
    if b is None:
        b = jnp.zeros((1, N), jnp.float32)
    else:
        b = b.reshape(1, N).astype(jnp.float32)
    tm = _choose_tile_m(M, K, N)
    kern = functools.partial(_matmul_kernel, act=act)
    return pl.pallas_call(
        kern,
        out_shape=jax.ShapeDtypeStruct((M, N), jnp.float32),
        grid=(pl.cdiv(M, tm),),
        in_specs=[
            pl.BlockSpec((tm, K), lambda i: (i, 0)),
            pl.BlockSpec((K, N), lambda i: (0, 0)),       # resident weight
            pl.BlockSpec((1, N), lambda i: (0, 0)),       # resident bias
        ],
        out_specs=pl.BlockSpec((tm, N), lambda i: (i, 0)),
        compiler_params=pltpu.CompilerParams(
            dimension_semantics=("parallel",),
            vmem_limit_bytes=VMEM_LIMIT_BYTES,
        ),
    )(x, w, b)


def _metasr_kernel(pos_ref, cols_ref, w1t_ref, b1_ref, w2t_ref, b2_ref, o_ref):
    """Fused Pos2Weight MLP + Meta-SR per-pixel weight application.

    pos_ref  : (1, 3, Lt)        sub-pixel positions for this (s, pixel-tile)
    cols_ref : (1, KC, Lt)       shared unfold features (KC = 9*C), pixels on lanes
    w1t_ref  : (HID, 3)  f32     P2W layer-1 weight (transposed)
    b1_ref   : (HID, 1)  f32
    w2t_ref  : (3*KC, HID) bf16  P2W layer-2 weight, columns reordered channel-major
    b2_ref   : (3*KC, 1) f32
    o_ref    : (1, 1, 3, Lt)     lane-dense output block
    """
    kc = cols_ref.shape[1]
    pos = pos_ref[0].astype(jnp.float32)                      # (3, Lt)
    w1t = w1t_ref[...].astype(jnp.float32)                    # (HID, 3)

    # P2W layer 1 (K = 3): explicit outer-product accumulation on the VPU.
    h1 = b1_ref[...] + w1t[:, 0:1] * pos[0:1, :]
    h1 = h1 + w1t[:, 1:2] * pos[1:2, :]
    h1 = h1 + w1t[:, 2:3] * pos[2:3, :]
    h1 = jnp.maximum(h1, 0.0).astype(COMPUTE_DTYPE)           # (HID, Lt)

    cols = cols_ref[0].astype(jnp.float32)                    # (KC, Lt)
    chans = []
    for c in range(3):                                        # unrolled at trace time
        w2c = w2t_ref[c * kc:(c + 1) * kc, :]                 # (KC, HID) bf16
        lw = jnp.dot(w2c, h1, preferred_element_type=jnp.float32)
        lw = lw + b2_ref[c * kc:(c + 1) * kc, :]              # (KC, Lt)
        chans.append(jnp.sum(lw * cols, axis=0, keepdims=True))   # (1, Lt)
    o_ref[0, 0] = jnp.concatenate(chans, axis=0).astype(o_ref.dtype)


def metasr_head(x_feat, pos_mat, params, si):
    """Meta-SR head: unfold + Pos2Weight MLP + per-pixel weight application."""
    Nb, H, W, C = x_feat.shape
    L = H * W
    KC = C * 9
    S = si * si

    # unfold(k=3, padding=1), channel-major then (kh, kw), pixels on the lane axis.
    # TODO(synk): fuse the unfold (halo DMA) into the kernel to avoid the 9x cols
    #             materialization in HBM.
    xp = jnp.pad(x_feat, ((0, 0), (1, 1), (1, 1), (0, 0)))
    patches = [xp[:, i:i + H, j:j + W, :] for i in range(3) for j in range(3)]
    cols = jnp.stack(patches, axis=0)                          # (9, N, H, W, C)
    cols = cols.transpose(1, 4, 0, 2, 3).reshape(Nb, KC, L).astype(COMPUTE_DTYPE)

    # re-order pos_mat by sub-pixel position: (S, 3, L)
    pos = pos_mat.reshape(H, si, W, si, 3).transpose(1, 3, 4, 0, 2)
    pos = pos.reshape(S, 3, L).astype(jnp.float32)

    # P2W weights, pre-transposed / channel-major column order for the fused kernel.
    w1t = params["p2w_w1"].T.astype(jnp.float32)               # (256, 3)
    b1 = params["p2w_b1"].reshape(-1, 1).astype(jnp.float32)   # (256, 1)
    hid = w1t.shape[0]
    w2t = params["p2w_w2"].reshape(hid, KC, 3).transpose(2, 1, 0)
    w2t = w2t.reshape(3 * KC, hid).astype(COMPUTE_DTYPE)       # (3*KC, 256)
    b2 = params["p2w_b2"].reshape(KC, 3).T.reshape(3 * KC, 1).astype(jnp.float32)

    tl = L if L <= META_L_TILE else META_L_TILE                # multiple of 128 or == L
    out = pl.pallas_call(
        _metasr_kernel,
        out_shape=jax.ShapeDtypeStruct((Nb, S, 3, L), jnp.float32),
        grid=(Nb, S, pl.cdiv(L, tl)),
        in_specs=[
            pl.BlockSpec((1, 3, tl), lambda n, s, l: (s, 0, l)),
            pl.BlockSpec((1, KC, tl), lambda n, s, l: (n, 0, l)),
            pl.BlockSpec((hid, 3), lambda n, s, l: (0, 0)),
            pl.BlockSpec((hid, 1), lambda n, s, l: (0, 0)),
            pl.BlockSpec((3 * KC, hid), lambda n, s, l: (0, 0)),
            pl.BlockSpec((3 * KC, 1), lambda n, s, l: (0, 0)),
        ],
        out_specs=pl.BlockSpec((1, 1, 3, tl), lambda n, s, l: (n, s, 0, l)),
        compiler_params=pltpu.CompilerParams(
            dimension_semantics=("parallel", "parallel", "arbitrary"),
            vmem_limit_bytes=VMEM_LIMIT_BYTES,
        ),
    )(pos, cols, w1t, b1, w2t, b2)

    # (N, S, 3, L) -> (N, 3, H*si, W*si): interleave sub-pixel positions.
    out = out.reshape(Nb, si, si, 3, H, W).transpose(0, 3, 4, 1, 5, 2)
    return out.reshape(Nb, 3, H * si, W * si)


# -------------------------------- building blocks ----------------------------
def conv2d(x, w, b=None, stride=1, padding=None, act="none"):
    """NCHW-semantics Conv2d on NHWC data via im2col + M-tiled Pallas matmul.
    w has PyTorch layout (Cout, Cin, kh, kw)."""
    Cout, Cin, kh, kw = w.shape
    if padding is None:
        padding = kh // 2
    N, H, W, C = x.shape
    xp = jnp.pad(x, ((0, 0), (padding, padding), (padding, padding), (0, 0)))
    Ho = (H + 2 * padding - kh) // stride + 1
    Wo = (W + 2 * padding - kw) // stride + 1
    patches = [
        xp[:, i:i + stride * Ho:stride, j:j + stride * Wo:stride, :]
        for i in range(kh) for j in range(kw)
    ]
    p = jnp.stack(patches, axis=-1)                       # (N,Ho,Wo,Cin,kh*kw)
    cols = p.reshape(N * Ho * Wo, Cin * kh * kw)          # (ci, kh, kw) minor order
    wmat = w.reshape(Cout, Cin * kh * kw).T               # same ordering
    out = pallas_matmul(cols, wmat, b, act=act)
    return out.reshape(N, Ho, Wo, Cout)


def pixel_shuffle(x, r):
    """PyTorch nn.PixelShuffle semantics, NHWC layout."""
    N, H, W, C = x.shape
    Co = C // (r * r)
    x = x.reshape(N, H, W, Co, r, r)
    x = x.transpose(0, 1, 4, 2, 5, 3)
    return x.reshape(N, H * r, W * r, Co)


def mean_shift(x, sign):
    """common.MeanShift with rgb_std = 1: plain broadcast bias add (VPU, no kernel)."""
    return x + sign * RGB_RANGE * jnp.asarray(RGB_MEAN)


def rcab(x, p):
    """common.RCAB: conv-relu-conv + channel attention + residual.
    The CA squeeze-excite MLP (M = batch) is left in plain JAX — too tiny for a
    pallas_call to pay off."""
    res = conv2d(x, p["w1"], p["b1"], act="relu")
    res = conv2d(res, p["w2"], p["b2"])
    y = jnp.mean(res, axis=(1, 2))                         # (N, C) global avg pool
    y = jax.nn.relu(y @ p["ca_w1"] + p["ca_b1"])
    y = jax.nn.sigmoid(y @ p["ca_w2"] + p["ca_b2"])
    return x + res * y[:, None, None, :]


def _cubic_weight(x, a=-0.75):
    x = abs(float(x))
    if x <= 1.0:
        return (a + 2.0) * x ** 3 - (a + 3.0) * x ** 2 + 1.0
    if x < 2.0:
        return a * x ** 3 - 5.0 * a * x ** 2 + 8.0 * a * x - 4.0 * a
    return 0.0


def _bicubic_matrix(in_size, scale):
    """Interpolation matrix matching nn.Upsample(bicubic, align_corners=False)."""
    out_size = in_size * scale
    m = np.zeros((out_size, in_size), np.float32)
    for o in range(out_size):
        src = (o + 0.5) / scale - 0.5
        i0 = math.floor(src)
        for k in range(-1, 3):
            idx = min(max(i0 + k, 0), in_size - 1)   # replicate border (clamped)
            m[o, idx] += _cubic_weight(src - (i0 + k))
    return jnp.asarray(m)


def bicubic_upsample(x, scale):
    """Separable bicubic x`scale`.  Pixels are the tiled row axis of the matmul and
    the small interpolation matrix is the resident weight."""
    N, H, W, C = x.shape
    mh = _bicubic_matrix(H, scale)                               # (Hs, H)
    mw = _bicubic_matrix(W, scale)                               # (Ws, W)
    Hs, Ws = H * scale, W * scale
    # along H
    xm = jnp.transpose(x, (0, 2, 3, 1)).reshape(N * W * C, H)
    yh = pallas_matmul(xm, mh.T)                                 # (N*W*C, Hs)
    yh = yh.reshape(N, W, C, Hs).transpose(0, 3, 1, 2)           # (N, Hs, W, C)
    # along W
    xm2 = jnp.transpose(yh, (0, 1, 3, 2)).reshape(N * Hs * C, W)
    yw = pallas_matmul(xm2, mw.T)                                # (N*Hs*C, Ws)
    return yw.reshape(N, Hs, C, Ws).transpose(0, 1, 3, 2)        # (N, Hs, Ws, C)


# --------------------------------- parameters --------------------------------
def init_params(key):
    ks = iter(jax.random.split(key, 64))

    def w(shape, scale=0.05):
        return jax.random.normal(next(ks), shape, jnp.float32) * scale

    nf, c32 = N_FEATS, N_FEATS * 2 ** PHASE            # 16, 32
    p = {}
    p["head_w"] = w((nf, N_COLORS, 3, 3));  p["head_b"] = w((nf,), 0.01)
    # DownBlock(sf=2, 16, 16, 32): stride-2 conv (no bias) + LeakyReLU, conv (no bias)
    p["down_w0"] = w((nf, nf, 3, 3))
    p["down_w1"] = w((c32, nf, 3, 3))
    # RCAB x N_BLOCKS on 32 channels (reduction = 16 -> squeeze to 2)
    p["rcab"] = []
    for _ in range(N_BLOCKS):
        p["rcab"].append(dict(
            w1=w((c32, c32, 3, 3)), b1=w((c32,), 0.01),
            w2=w((c32, c32, 3, 3)), b2=w((c32,), 0.01),
            ca_w1=w((c32, c32 // 16)), ca_b1=w((c32 // 16,), 0.01),
            ca_w2=w((c32 // 16, c32)), ca_b2=w((c32,), 0.01)))
    # Upsampler(scale=2, 32): conv 32->128 + PixelShuffle(2); then 1x1 conv 32->16
    p["ups_w"] = w((4 * c32, c32, 3, 3)); p["ups_b"] = w((4 * c32,), 0.01)
    p["up1x1_w"] = w((nf, c32, 1, 1));    p["up1x1_b"] = w((nf,), 0.01)
    # tail convs (32 -> 3)
    p["tail0_w"] = w((N_COLORS, c32, 3, 3)); p["tail0_b"] = w((N_COLORS,), 0.01)
    p["tail1_w"] = w((N_COLORS, c32, 3, 3)); p["tail1_b"] = w((N_COLORS,), 0.01)
    # Pos2Weight: Linear(3,256) -> ReLU -> Linear(256, 864)
    p["p2w_w1"] = w((3, 256));   p["p2w_b1"] = w((256,), 0.01)
    p["p2w_w2"] = w((256, 864)); p["p2w_b2"] = w((864,), 0.01)
    return p


# ---------------------------------- forward ----------------------------------
def drn_forward(params, x_nchw, pos_mat):
    x = jnp.transpose(x_nchw, (0, 2, 3, 1)).astype(jnp.float32)   # -> NHWC
    # 1) bicubic upsample by the integer scale (align_corners=False)
    x = bicubic_upsample(x, INT_SCALE)
    # 2) sub_mean, 3) head conv
    x = mean_shift(x, sign=-1)
    x = conv2d(x, params["head_w"], params["head_b"])
    skip = x
    # 4) down path (phase == 1): stride-2 conv + LeakyReLU, conv
    x = conv2d(x, params["down_w0"], None, stride=2, act="lrelu")
    x = conv2d(x, params["down_w1"], None)
    # 5) lowest-resolution SR branch
    sr0 = mean_shift(conv2d(x, params["tail0_w"], params["tail0_b"]), sign=+1)
    results = [sr0]
    # 6) up block: RCABs -> Upsampler -> 1x1 conv, skip concat, tail conv
    for blk in params["rcab"]:
        x = rcab(x, blk)
    x = conv2d(x, params["ups_w"], params["ups_b"])
    x = pixel_shuffle(x, SF)
    x = conv2d(x, params["up1x1_w"], params["up1x1_b"])
    x = jnp.concatenate([x, skip], axis=-1)                   # channel concat
    sr1 = mean_shift(conv2d(x, params["tail1_w"], params["tail1_b"]), sign=+1)
    results.append(sr1)

    # 7) Meta-SR head: fused P2W MLP + per-pixel weight application (Pallas kernel)
    out = metasr_head(x, pos_mat, params, SCALE_INT)          # (N, 3, H*si, W*si)
    out = out + RGB_RANGE * jnp.asarray(RGB_MEAN).reshape(1, 3, 1, 1)

    # return NCHW like the PyTorch module
    results = [jnp.transpose(r, (0, 3, 1, 2)) for r in results]
    results.append(out)
    return tuple(results)


# ------------------------------------ main ------------------------------------
if __name__ == "__main__":
    key = jax.random.PRNGKey(0)
    pkey, xkey, poskey = jax.random.split(key, 3)

    params = init_params(pkey)

    h = w = 8
    x = jax.random.uniform(xkey, (1, N_COLORS, h, w), jnp.float32)   # NCHW input
    out_h = h * INT_SCALE * SCALE_INT
    out_w = w * INT_SCALE * SCALE_INT
    pos_mat = jax.random.normal(poskey, (1, out_h * out_w, 3), jnp.float32)

    fwd = jax.jit(drn_forward)
    results = fwd(params, x, pos_mat)
    results = jax.block_until_ready(results)

    assert results[0].shape == (1, 3, h, w)
    assert results[1].shape == (1, 3, h * INT_SCALE, w * INT_SCALE)
    assert results[2].shape == (1, 3, out_h, out_w)
    assert all(bool(jnp.isfinite(r).all()) for r in results)

    print("KERNEL_OK")
</pallas_src>

<mosaic_0001>
module attributes {stable_mosaic.version = 11 : i64} {
  func.func @_matmul_kernel(%arg0: i32, %arg1: memref<24x8xbf16, #tpu.memory_space<vmem>>, %arg2: memref<8x16xbf16, #tpu.memory_space<vmem>>, %arg3: memref<1x16xf32, #tpu.memory_space<vmem>>, %arg4: memref<24x16xf32, #tpu.memory_space<vmem>>) attributes {dimension_semantics = [#tpu.dimension_semantics<parallel>], iteration_bounds = array<i64: 1>, scalar_prefetch = 0 : i64, scratch_operands = 0 : i64, tpu.core_type = #tpu.core_type<tc>, window_params = [{transform_indices = @transform_0, window_bounds = array<i64: 24, 8>}, {pipeline_mode = #tpu.pipeline_mode<synchronous>, transform_indices = @transform_1, window_bounds = array<i64: 8, 16>}, {pipeline_mode = #tpu.pipeline_mode<synchronous>, transform_indices = @transform_2, window_bounds = array<i64: 1, 16>}, {transform_indices = @transform_3, window_bounds = array<i64: 24, 16>}]} {
    %c0 = arith.constant 0 : index
    %c0_0 = arith.constant 0 : index
    %0 = vector.load %arg1[%c0, %c0_0] : memref<24x8xbf16, #tpu.memory_space<vmem>>, vector<24x8xbf16>
    %c0_1 = arith.constant 0 : index
    %c0_2 = arith.constant 0 : index
    %1 = vector.load %arg2[%c0_1, %c0_2] : memref<8x16xbf16, #tpu.memory_space<vmem>>, vector<8x16xbf16>
    %cst = arith.constant dense<0.000000e+00> : vector<24x16xf32>
    %2 = tpu.matmul %0, %1, %cst {dimension_numbers = #tpu.dot_dimension_numbers<[1], [0], [0], [1], [0, 0, 1, 1], [], []>} : vector<24x8xbf16>, vector<8x16xbf16>, vector<24x16xf32> -> vector<24x16xf32>
    %c0_3 = arith.constant 0 : index
    %c0_4 = arith.constant 0 : index
    %3 = vector.load %arg3[%c0_3, %c0_4] : memref<1x16xf32, #tpu.memory_space<vmem>>, vector<1x16xf32>
    %4 = vector.broadcast %3 : vector<1x16xf32> to vector<24x16xf32>
    %5 = arith.addf %2, %4 : vector<24x16xf32>
    %c0_5 = arith.constant 0 : index
    %c0_6 = arith.constant 0 : index
    %6 = vector.load %arg4[%c0_5, %c0_6] : memref<24x16xf32, #tpu.memory_space<vmem>>, vector<24x16xf32>
    tpu.vector_store %arg4[%c0_5, %c0_6], %5 {strides = array<i32>} : memref<24x16xf32, #tpu.memory_space<vmem>>, vector<24x16xf32>,
    return
  }
  func.func @transform_0(%arg0: i32) -> (i32, i32) {
    %c0_i32 = arith.constant 0 : i32
    %c0_i32_0 = arith.constant 0 : i32
    return %arg0, %c0_i32 : i32, i32
  }
  func.func @transform_1(%arg0: i32) -> (i32, i32) {
    %c0_i32 = arith.constant 0 : i32
    %c0_i32_0 = arith.constant 0 : i32
    %c0_i32_1 = arith.constant 0 : i32
    return %c0_i32, %c0_i32_0 : i32, i32
  }
  func.func @transform_2(%arg0: i32) -> (i32, i32) {
    %c0_i32 = arith.constant 0 : i32
    %c0_i32_0 = arith.constant 0 : i32
    %c0_i32_1 = arith.constant 0 : i32
    return %c0_i32, %c0_i32_0 : i32, i32
  }
  func.func @transform_3(%arg0: i32) -> (i32, i32) {
    %c0_i32 = arith.constant 0 : i32
    %c0_i32_0 = arith.constant 0 : i32
    return %arg0, %c0_i32 : i32, i32
  }
}

module attributes {stable_mosaic.version = 11 : i64} {
  func.func @_matmul_kernel(%arg0: i32, %arg1: memref<48x8xbf16, #tpu.memory_space<vmem>>, %arg2: memref<8x16xbf16, #tpu.memory_space<vmem>>, %arg3: memref<1x16xf32, #tpu.memory_space<vmem>>, %arg4: memref<48x16xf32, #tpu.memory_space<vmem>>) attributes {dimension_semantics = [#tpu.dimension_semantics<parallel>], iteration_bounds = array<i64: 1>, scalar_prefetch = 0 : i64, scratch_operands = 0 : i64, tpu.core_type = #tpu.core_type<tc>, window_params = [{transform_indices = @transform_0, window_bounds = array<i64: 48, 8>}, {pipeline_mode = #tpu.pipeline_mode<synchronous>, transform_indices = @transform_1, window_bounds = array<i64: 8, 16>}, {pipeline_mode = #tpu.pipeline_mode<synchronous>, transform_indices = @transform_2, window_bounds = array<i64: 1, 16>}, {transform_indices = @transform_3, window_bounds = array<i64: 48, 16>}]} {
    %c0 = arith.constant 0 : index
    %c0_0 = arith.constant 0 : index
    %0 = vector.load %arg1[%c0, %c0_0] : memref<48x8xbf16, #tpu.memory_space<vmem>>, vector<48x8xbf16>
    %c0_1 = arith.constant 0 : index
    %c0_2 = arith.constant 0 : index
    %1 = vector.load %arg2[%c0_1, %c0_2] : memref<8x16xbf16, #tpu.memory_space<vmem>>, vector<8x16xbf16>
    %cst = arith.constant dense<0.000000e+00> : vector<48x16xf32>
    %2 = tpu.matmul %0, %1, %cst {dimension_numbers = #tpu.dot_dimension_numbers<[1], [0], [0], [1], [0, 0, 1, 1], [], []>} : vector<48x8xbf16>, vector<8x16xbf16>, vector<48x16xf32> -> vector<48x16xf32>
    %c0_3 = arith.constant 0 : index
    %c0_4 = arith.constant 0 : index
    %3 = vector.load %arg3[%c0_3, %c0_4] : memref<1x16xf32, #tpu.memory_space<vmem>>, vector<1x16xf32>
    %4 = vector.broadcast %3 : vector<1x16xf32> to vector<48x16xf32>
    %5 = arith.addf %2, %4 : vector<48x16xf32>
    %c0_5 = arith.constant 0 : index
    %c0_6 = arith.constant 0 : index
    %6 = vector.load %arg4[%c0_5, %c0_6] : memref<48x16xf32, #tpu.memory_space<vmem>>, vector<48x16xf32>
    tpu.vector_store %arg4[%c0_5, %c0_6], %5 {strides = array<i32>} : memref<48x16xf32, #tpu.memory_space<vmem>>, vector<48x16xf32>,
    return
  }
  func.func @transform_0(%arg0: i32) -> (i32, i32) {
    %c0_i32 = arith.constant 0 : i32
    %c0_i32_0 = arith.constant 0 : i32
    return %arg0, %c0_i32 : i32, i32
  }
  func.func @transform_1(%arg0: i32) -> (i32, i32) {
    %c0_i32 = arith.constant 0 : i32
    %c0_i32_0 = arith.constant 0 : i32
    %c0_i32_1 = arith.constant 0 : i32
    return %c0_i32, %c0_i32_0 : i32, i32
  }
  func.func @transform_2(%arg0: i32) -> (i32, i32) {
    %c0_i32 = arith.constant 0 : i32
    %c0_i32_0 = arith.constant 0 : i32
    %c0_i32_1 = arith.constant 0 : i32
    return %c0_i32, %c0_i32_0 : i32, i32
  }
  func.func @transform_3(%arg0: i32) -> (i32, i32) {
    %c0_i32 = arith.constant 0 : i32
    %c0_i32_0 = arith.constant 0 : i32
    return %arg0, %c0_i32 : i32, i32
  }
}

module attributes {stable_mosaic.version = 11 : i64} {
  func.func @_matmul_kernel(%arg0: i32, %arg1: memref<256x27xbf16, #tpu.memory_space<vmem>>, %arg2: memref<27x16xbf16, #tpu.memory_space<vmem>>, %arg3: memref<1x16xf32, #tpu.memory_space<vmem>>, %arg4: memref<256x16xf32, #tpu.memory_space<vmem>>) attributes {dimension_semantics = [#tpu.dimension_semantics<parallel>], iteration_bounds = array<i64: 1>, scalar_prefetch = 0 : i64, scratch_operands = 0 : i64, tpu.core_type = #tpu.core_type<tc>, window_params = [{transform_indices = @transform_0, window_bounds = array<i64: 256, 27>}, {pipeline_mode = #tpu.pipeline_mode<synchronous>, transform_indices = @transform_1, window_bounds = array<i64: 27, 16>}, {pipeline_mode = #tpu.pipeline_mode<synchronous>, transform_indices = @transform_2, window_bounds = array<i64: 1, 16>}, {transform_indices = @transform_3, window_bounds = array<i64: 256, 16>}]} {
    %c0 = arith.constant 0 : index
    %c0_0 = arith.constant 0 : index
    %0 = vector.load %arg1[%c0, %c0_0] : memref<256x27xbf16, #tpu.memory_space<vmem>>, vector<256x27xbf16>
    %c0_1 = arith.constant 0 : index
    %c0_2 = arith.constant 0 : index
    %1 = vector.load %arg2[%c0_1, %c0_2] : memref<27x16xbf16, #tpu.memory_space<vmem>>, vector<27x16xbf16>
    %cst = arith.constant dense<0.000000e+00> : vector<256x16xf32>
    %2 = tpu.matmul %0, %1, %cst {dimension_numbers = #tpu.dot_dimension_numbers<[1], [0], [0], [1], [0, 0, 1, 1], [], []>} : vector<256x27xbf16>, vector<27x16xbf16>, vector<256x16xf32> -> vector<256x16xf32>
    %c0_3 = arith.constant 0 : index
    %c0_4 = arith.constant 0 : index
    %3 = vector.load %arg3[%c0_3, %c0_4] : memref<1x16xf32, #tpu.memory_space<vmem>>, vector<1x16xf32>
    %4 = vector.broadcast %3 : vector<1x16xf32> to vector<256x16xf32>
    %5 = arith.addf %2, %4 : vector<256x16xf32>
    %c0_5 = arith.constant 0 : index
    %c0_6 = arith.constant 0 : index
    %6 = vector.load %arg4[%c0_5, %c0_6] : memref<256x16xf32, #tpu.memory_space<vmem>>, vector<256x16xf32>
    tpu.vector_store %arg4[%c0_5, %c0_6], %5 {strides = array<i32>} : memref<256x16xf32, #tpu.memory_space<vmem>>, vector<256x16xf32>,
    return
  }
  func.func @transform_0(%arg0: i32) -> (i32, i32) {
    %c0_i32 = arith.constant 0 : i32
    %c0_i32_0 = arith.constant 0 : i32
    return %arg0, %c0_i32 : i32, i32
  }
  func.func @transform_1(%arg0: i32) -> (i32, i32) {
    %c0_i32 = arith.constant 0 : i32
    %c0_i32_0 = arith.constant 0 : i32
    %c0_i32_1 = arith.constant 0 : i32
    return %c0_i32, %c0_i32_0 : i32, i32
  }
  func.func @transform_2(%arg0: i32) -> (i32, i32) {
    %c0_i32 = arith.constant 0 : i32
    %c0_i32_0 = arith.constant 0 : i32
    %c0_i32_1 = arith.constant 0 : i32
    return %c0_i32, %c0_i32_0 : i32, i32
  }
  func.func @transform_3(%arg0: i32) -> (i32, i32) {
    %c0_i32 = arith.constant 0 : i32
    %c0_i32_0 = arith.constant 0 : i32
    return %arg0, %c0_i32 : i32, i32
  }
}

module attributes {stable_mosaic.version = 11 : i64} {
  func.func @_matmul_kernel(%arg0: i32, %arg1: memref<64x144xbf16, #tpu.memory_space<vmem>>, %arg2: memref<144x16xbf16, #tpu.memory_space<vmem>>, %arg3: memref<1x16xf32, #tpu.memory_space<vmem>>, %arg4: memref<64x16xf32, #tpu.memory_space<vmem>>) attributes {dimension_semantics = [#tpu.dimension_semantics<parallel>], iteration_bounds = array<i64: 1>, scalar_prefetch = 0 : i64, scratch_operands = 0 : i64, tpu.core_type = #tpu.core_type<tc>, window_params = [{transform_indices = @transform_0, window_bounds = array<i64: 64, 144>}, {pipeline_mode = #tpu.pipeline_mode<synchronous>, transform_indices = @transform_1, window_bounds = array<i64: 144, 16>}, {pipeline_mode = #tpu.pipeline_mode<synchronous>, transform_indices = @transform_2, window_bounds = array<i64: 1, 16>}, {transform_indices = @transform_3, window_bounds = array<i64: 64, 16>}]} {
    %c0 = arith.constant 0 : index
    %c0_0 = arith.constant 0 : index
    %0 = vector.load %arg1[%c0, %c0_0] : memref<64x144xbf16, #tpu.memory_space<vmem>>, vector<64x144xbf16>
    %c0_1 = arith.constant 0 : index
    %c0_2 = arith.constant 0 : index
    %1 = vector.load %arg2[%c0_1, %c0_2] : memref<144x16xbf16, #tpu.memory_space<vmem>>, vector<144x16xbf16>
    %cst = arith.constant dense<0.000000e+00> : vector<64x16xf32>
    %2 = tpu.matmul %0, %1, %cst {dimension_numbers = #tpu.dot_dimension_numbers<[1], [0], [0], [1], [0, 0, 1, 1], [], []>} : vector<64x144xbf16>, vector<144x16xbf16>, vector<64x16xf32> -> vector<64x16xf32>
    %c0_3 = arith.constant 0 : index
    %c0_4 = arith.constant 0 : index
    %3 = vector.load %arg3[%c0_3, %c0_4] : memref<1x16xf32, #tpu.memory_space<vmem>>, vector<1x16xf32>
    %4 = vector.broadcast %3 : vector<1x16xf32> to vector<64x16xf32>
    %5 = arith.addf %2, %4 : vector<64x16xf32>
    %cst_5 = arith.constant 0.000000e+00 : f32
    %6 = vector.broadcast %cst_5 : f32 to vector<64x16xf32>
    %7 = arith.cmpf oge, %5, %6 : vector<64x16xf32>
    %cst_6 = arith.constant 2.000000e-01 : f32
    %8 = vector.broadcast %cst_6 : f32 to vector<64x16xf32>
    %9 = arith.mulf %5, %8 : vector<64x16xf32>
    %10 = arith.select %7, %5, %9 : vector<64x16xi1>, vector<64x16xf32>
    %c0_7 = arith.constant 0 : index
    %c0_8 = arith.constant 0 : index
    %11 = vector.load %arg4[%c0_7, %c0_8] : memref<64x16xf32, #tpu.memory_space<vmem>>, vector<64x16xf32>
    tpu.vector_store %arg4[%c0_7, %c0_8], %10 {strides = array<i32>} : memref<64x16xf32, #tpu.memory_space<vmem>>, vector<64x16xf32>,
    return
  }
  func.func @transform_0(%arg0: i32) -> (i32, i32) {
    %c0_i32 = arith.constant 0 : i32
    %c0_i32_0 = arith.constant 0 : i32
    return %arg0, %c0_i32 : i32, i32
  }
  func.func @transform_1(%arg0: i32) -> (i32, i32) {
    %c0_i32 = arith.constant 0 : i32
    %c0_i32_0 = arith.constant 0 : i32
    %c0_i32_1 = arith.constant 0 : i32
    return %c0_i32, %c0_i32_0 : i32, i32
  }
  func.func @transform_2(%arg0: i32) -> (i32, i32) {
    %c0_i32 = arith.constant 0 : i32
    %c0_i32_0 = arith.constant 0 : i32
    %c0_i32_1 = arith.constant 0 : i32
    return %c0_i32, %c0_i32_0 : i32, i32
  }
  func.func @transform_3(%arg0: i32) -> (i32, i32) {
    %c0_i32 = arith.constant 0 : i32
    %c0_i32_0 = arith.constant 0 : i32
    return %arg0, %c0_i32 : i32, i32
  }
}

module attributes {stable_mosaic.version = 11 : i64} {
  func.func @_matmul_kernel(%arg0: i32, %arg1: memref<64x144xbf16, #tpu.memory_space<vmem>>, %arg2: memref<144x32xbf16, #tpu.memory_space<vmem>>, %arg3: memref<1x32xf32, #tpu.memory_space<vmem>>, %arg4: memref<64x32xf32, #tpu.memory_space<vmem>>) attributes {dimension_semantics = [#tpu.dimension_semantics<parallel>], iteration_bounds = array<i64: 1>, scalar_prefetch = 0 : i64, scratch_operands = 0 : i64, tpu.core_type = #tpu.core_type<tc>, window_params = [{transform_indices = @transform_0, window_bounds = array<i64: 64, 144>}, {pipeline_mode = #tpu.pipeline_mode<synchronous>, transform_indices = @transform_1, window_bounds = array<i64: 144, 32>}, {pipeline_mode = #tpu.pipeline_mode<synchronous>, transform_indices = @transform_2, window_bounds = array<i64: 1, 32>}, {transform_indices = @transform_3, window_bounds = array<i64: 64, 32>}]} {
    %c0 = arith.constant 0 : index
    %c0_0 = arith.constant 0 : index
    %0 = vector.load %arg1[%c0, %c0_0] : memref<64x144xbf16, #tpu.memory_space<vmem>>, vector<64x144xbf16>
    %c0_1 = arith.constant 0 : index
    %c0_2 = arith.constant 0 : index
    %1 = vector.load %arg2[%c0_1, %c0_2] : memref<144x32xbf16, #tpu.memory_space<vmem>>, vector<144x32xbf16>
    %cst = arith.constant dense<0.000000e+00> : vector<64x32xf32>
    %2 = tpu.matmul %0, %1, %cst {dimension_numbers = #tpu.dot_dimension_numbers<[1], [0], [0], [1], [0, 0, 1, 1], [], []>} : vector<64x144xbf16>, vector<144x32xbf16>, vector<64x32xf32> -> vector<64x32xf32>
    %c0_3 = arith.constant 0 : index
    %c0_4 = arith.constant 0 : index
    %3 = vector.load %arg3[%c0_3, %c0_4] : memref<1x32xf32, #tpu.memory_space<vmem>>, vector<1x32xf32>
    %4 = vector.broadcast %3 : vector<1x32xf32> to vector<64x32xf32>
    %5 = arith.addf %2, %4 : vector<64x32xf32>
    %c0_5 = arith.constant 0 : index
    %c0_6 = arith.constant 0 : index
    %6 = vector.load %arg4[%c0_5, %c0_6] : memref<64x32xf32, #tpu.memory_space<vmem>>, vector<64x32xf32>
    tpu.vector_store %arg4[%c0_5, %c0_6], %5 {strides = array<i32>} : memref<64x32xf32, #tpu.memory_space<vmem>>, vector<64x32xf32>,
    return
  }
  func.func @transform_0(%arg0: i32) -> (i32, i32) {
    %c0_i32 = arith.constant 0 : i32
    %c0_i32_0 = arith.constant 0 : i32
    return %arg0, %c0_i32 : i32, i32
  }
  func.func @transform_1(%arg0: i32) -> (i32, i32) {
    %c0_i32 = arith.constant 0 : i32
    %c0_i32_0 = arith.constant 0 : i32
    %c0_i32_1 = arith.constant 0 : i32
    return %c0_i32, %c0_i32_0 : i32, i32
  }
  func.func @transform_2(%arg0: i32) -> (i32, i32) {
    %c0_i32 = arith.constant 0 : i32
    %c0_i32_0 = arith.constant 0 : i32
    %c0_i32_1 = arith.constant 0 : i32
    return %c0_i32, %c0_i32_0 : i32, i32
  }
  func.func @transform_3(%arg0: i32) -> (i32, i32) {
    %c0_i32 = arith.constant 0 : i32
    %c0_i32_0 = arith.constant 0 : i32
    return %arg0, %c0_i32 : i32, i32
  }
}

module attributes {stable_mosaic.version = 11 : i64} {
  func.func @_matmul_kernel(%arg0: i32, %arg1: memref<64x288xbf16, #tpu.memory_space<vmem>>, %arg2: memref<288x3xbf16, #tpu.memory_space<vmem>>, %arg3: memref<1x3xf32, #tpu.memory_space<vmem>>, %arg4: memref<64x3xf32, #tpu.memory_space<vmem>>) attributes {dimension_semantics = [#tpu.dimension_semantics<parallel>], iteration_bounds = array<i64: 1>, scalar_prefetch = 0 : i64, scratch_operands = 0 : i64, tpu.core_type = #tpu.core_type<tc>, window_params = [{transform_indices = @transform_0, window_bounds = array<i64: 64, 288>}, {pipeline_mode = #tpu.pipeline_mode<synchronous>, transform_indices = @transform_1, window_bounds = array<i64: 288, 3>}, {pipeline_mode = #tpu.pipeline_mode<synchronous>, transform_indices = @transform_2, window_bounds = array<i64: 1, 3>}, {transform_indices = @transform_3, window_bounds = array<i64: 64, 3>}]} {
    %c0 = arith.constant 0 : index
    %c0_0 = arith.constant 0 : index
    %0 = vector.load %arg1[%c0, %c0_0] : memref<64x288xbf16, #tpu.memory_space<vmem>>, vector<64x288xbf16>
    %c0_1 = arith.constant 0 : index
    %c0_2 = arith.constant 0 : index
    %1 = vector.load %arg2[%c0_1, %c0_2] : memref<288x3xbf16, #tpu.memory_space<vmem>>, vector<288x3xbf16>
    %cst = arith.constant dense<0.000000e+00> : vector<64x3xf32>
    %2 = tpu.matmul %0, %1, %cst {dimension_numbers = #tpu.dot_dimension_numbers<[1], [0], [0], [1], [0, 0, 1, 1], [], []>} : vector<64x288xbf16>, vector<288x3xbf16>, vector<64x3xf32> -> vector<64x3xf32>
    %c0_3 = arith.constant 0 : index
    %c0_4 = arith.constant 0 : index
    %3 = vector.load %arg3[%c0_3, %c0_4] : memref<1x3xf32, #tpu.memory_space<vmem>>, vector<1x3xf32>
    %4 = vector.broadcast %3 : vector<1x3xf32> to vector<64x3xf32>
    %5 = arith.addf %2, %4 : vector<64x3xf32>
    %c0_5 = arith.constant 0 : index
    %c0_6 = arith.constant 0 : index
    %6 = vector.load %arg4[%c0_5, %c0_6] : memref<64x3xf32, #tpu.memory_space<vmem>>, vector<64x3xf32>
    tpu.vector_store %arg4[%c0_5, %c0_6], %5 {strides = array<i32>} : memref<64x3xf32, #tpu.memory_space<vmem>>, vector<64x3xf32>,
    return
  }
  func.func @transform_0(%arg0: i32) -> (i32, i32) {
    %c0_i32 = arith.constant 0 : i32
    %c0_i32_0 = arith.constant 0 : i32
    return %arg0, %c0_i32 : i32, i32
  }
  func.func @transform_1(%arg0: i32) -> (i32, i32) {
    %c0_i32 = arith.constant 0 : i32
    %c0_i32_0 = arith.constant 0 : i32
    %c0_i32_1 = arith.constant 0 : i32
    return %c0_i32, %c0_i32_0 : i32, i32
  }
  func.func @transform_2(%arg0: i32) -> (i32, i32) {
    %c0_i32 = arith.constant 0 : i32
    %c0_i32_0 = arith.constant 0 : i32
    %c0_i32_1 = arith.constant 0 : i32
    return %c0_i32, %c0_i32_0 : i32, i32
  }
  func.func @transform_3(%arg0: i32) -> (i32, i32) {
    %c0_i32 = arith.constant 0 : i32
    %c0_i32_0 = arith.constant 0 : i32
    return %arg0, %c0_i32 : i32, i32
  }
}

module attributes {stable_mosaic.version = 11 : i64} {
  func.func @_matmul_kernel(%arg0: i32, %arg1: memref<64x288xbf16, #tpu.memory_space<vmem>>, %arg2: memref<288x32xbf16, #tpu.memory_space<vmem>>, %arg3: memref<1x32xf32, #tpu.memory_space<vmem>>, %arg4: memref<64x32xf32, #tpu.memory_space<vmem>>) attributes {dimension_semantics = [#tpu.dimension_semantics<parallel>], iteration_bounds = array<i64: 1>, scalar_prefetch = 0 : i64, scratch_operands = 0 : i64, tpu.core_type = #tpu.core_type<tc>, window_params = [{transform_indices = @transform_0, window_bounds = array<i64: 64, 288>}, {pipeline_mode = #tpu.pipeline_mode<synchronous>, transform_indices = @transform_1, window_bounds = array<i64: 288, 32>}, {pipeline_mode = #tpu.pipeline_mode<synchronous>, transform_indices = @transform_2, window_bounds = array<i64: 1, 32>}, {transform_indices = @transform_3, window_bounds = array<i64: 64, 32>}]} {
    %c0 = arith.constant 0 : index
    %c0_0 = arith.constant 0 : index
    %0 = vector.load %arg1[%c0, %c0_0] : memref<64x288xbf16, #tpu.memory_space<vmem>>, vector<64x288xbf16>
    %c0_1 = arith.constant 0 : index
    %c0_2 = arith.constant 0 : index
    %1 = vector.load %arg2[%c0_1, %c0_2] : memref<288x32xbf16, #tpu.memory_space<vmem>>, vector<288x32xbf16>
    %cst = arith.constant dense<0.000000e+00> : vector<64x32xf32>
    %2 = tpu.matmul %0, %1, %cst {dimension_numbers = #tpu.dot_dimension_numbers<[1], [0], [0], [1], [0, 0, 1, 1], [], []>} : vector<64x288xbf16>, vector<288x32xbf16>, vector<64x32xf32> -> vector<64x32xf32>
    %c0_3 = arith.constant 0 : index
    %c0_4 = arith.constant 0 : index
    %3 = vector.load %arg3[%c0_3, %c0_4] : memref<1x32xf32, #tpu.memory_space<vmem>>, vector<1x32xf32>
    %4 = vector.broadcast %3 : vector<1x32xf32> to vector<64x32xf32>
    %5 = arith.addf %2, %4 : vector<64x32xf32>
    %cst_5 = arith.constant 0.000000e+00 : f32
    %6 = vector.broadcast %cst_5 : f32 to vector<64x32xf32>
    %7 = arith.maximumf %5, %6 : vector<64x32xf32>
    %c0_6 = arith.constant 0 : index
    %c0_7 = arith.constant 0 : index
    %8 = vector.load %arg4[%c0_6, %c0_7] : memref<64x32xf32, #tpu.memory_space<vmem>>, vector<64x32xf32>
    tpu.vector_store %arg4[%c0_6, %c0_7], %7 {strides = array<i32>} : memref<64x32xf32, #tpu.memory_space<vmem>>, vector<64x32xf32>,
    return
  }
  func.func @transform_0(%arg0: i32) -> (i32, i32) {
    %c0_i32 = arith.constant 0 : i32
    %c0_i32_0 = arith.constant 0 : i32
    return %arg0, %c0_i32 : i32, i32
  }
  func.func @transform_1(%arg0: i32) -> (i32, i32) {
    %c0_i32 = arith.constant 0 : i32
    %c0_i32_0 = arith.constant 0 : i32
    %c0_i32_1 = arith.constant 0 : i32
    return %c0_i32, %c0_i32_0 : i32, i32
  }
  func.func @transform_2(%arg0: i32) -> (i32, i32) {
    %c0_i32 = arith.constant 0 : i32
    %c0_i32_0 = arith.constant 0 : i32
    %c0_i32_1 = arith.constant 0 : i32
    return %c0_i32, %c0_i32_0 : i32, i32
  }
  func.func @transform_3(%arg0: i32) -> (i32, i32) {
    %c0_i32 = arith.constant 0 : i32
    %c0_i32_0 = arith.constant 0 : i32
    return %arg0, %c0_i32 : i32, i32
  }
}

module attributes {stable_mosaic.version = 11 : i64} {
  func.func @_matmul_kernel(%arg0: i32, %arg1: memref<64x288xbf16, #tpu.memory_space<vmem>>, %arg2: memref<288x32xbf16, #tpu.memory_space<vmem>>, %arg3: memref<1x32xf32, #tpu.memory_space<vmem>>, %arg4: memref<64x32xf32, #tpu.memory_space<vmem>>) attributes {dimension_semantics = [#tpu.dimension_semantics<parallel>], iteration_bounds = array<i64: 1>, scalar_prefetch = 0 : i64, scratch_operands = 0 : i64, tpu.core_type = #tpu.core_type<tc>, window_params = [{transform_indices = @transform_0, window_bounds = array<i64: 64, 288>}, {pipeline_mode = #tpu.pipeline_mode<synchronous>, transform_indices = @transform_1, window_bounds = array<i64: 288, 32>}, {pipeline_mode = #tpu.pipeline_mode<synchronous>, transform_indices = @transform_2, window_bounds = array<i64: 1, 32>}, {transform_indices = @transform_3, window_bounds = array<i64: 64, 32>}]} {
    %c0 = arith.constant 0 : index
    %c0_0 = arith.constant 0 : index
    %0 = vector.load %arg1[%c0, %c0_0] : memref<64x288xbf16, #tpu.memory_space<vmem>>, vector<64x288xbf16>
    %c0_1 = arith.constant 0 : index
    %c0_2 = arith.constant 0 : index
    %1 = vector.load %arg2[%c0_1, %c0_2] : memref<288x32xbf16, #tpu.memory_space<vmem>>, vector<288x32xbf16>
    %cst = arith.constant dense<0.000000e+00> : vector<64x32xf32>
    %2 = tpu.matmul %0, %1, %cst {dimension_numbers = #tpu.dot_dimension_numbers<[1], [0], [0], [1], [0, 0, 1, 1], [], []>} : vector<64x288xbf16>, vector<288x32xbf16>, vector<64x32xf32> -> vector<64x32xf32>
    %c0_3 = arith.constant 0 : index
    %c0_4 = arith.constant 0 : index
    %3 = vector.load %arg3[%c0_3, %c0_4] : memref<1x32xf32, #tpu.memory_space<vmem>>, vector<1x32xf32>
    %4 = vector.broadcast %3 : vector<1x32xf32> to vector<64x32xf32>
    %5 = arith.addf %2, %4 : vector<64x32xf32>
    %c0_5 = arith.constant 0 : index
    %c0_6 = arith.constant 0 : index
    %6 = vector.load %arg4[%c0_5, %c0_6] : memref<64x32xf32, #tpu.memory_space<vmem>>, vector<64x32xf32>
    tpu.vector_store %arg4[%c0_5, %c0_6], %5 {strides = array<i32>} : memref<64x32xf32, #tpu.memory_space<vmem>>, vector<64x32xf32>,
    return
  }
  func.func @transform_0(%arg0: i32) -> (i32, i32) {
    %c0_i32 = arith.constant 0 : i32
    %c0_i32_0 = arith.constant 0 : i32
    return %arg0, %c0_i32 : i32, i32
  }
  func.func @transform_1(%arg0: i32) -> (i32, i32) {
    %c0_i32 = arith.constant 0 : i32
    %c0_i32_0 = arith.constant 0 : i32
    %c0_i32_1 = arith.constant 0 : i32
    return %c0_i32, %c0_i32_0 : i32, i32
  }
  func.func @transform_2(%arg0: i32) -> (i32, i32) {
    %c0_i32 = arith.constant 0 : i32
    %c0_i32_0 = arith.constant 0 : i32
    %c0_i32_1 = arith.constant 0 : i32
    return %c0_i32, %c0_i32_0 : i32, i32
  }
  func.func @transform_3(%arg0: i32) -> (i32, i32) {
    %c0_i32 = arith.constant 0 : i32
    %c0_i32_0 = arith.constant 0 : i32
    return %arg0, %c0_i32 : i32, i32
  }
}

module attributes {stable_mosaic.version = 11 : i64} {
  func.func @_matmul_kernel(%arg0: i32, %arg1: memref<64x288xbf16, #tpu.memory_space<vmem>>, %arg2: memref<288x128xbf16, #tpu.memory_space<vmem>>, %arg3: memref<1x128xf32, #tpu.memory_space<vmem>>, %arg4: memref<64x128xf32, #tpu.memory_space<vmem>>) attributes {dimension_semantics = [#tpu.dimension_semantics<parallel>], iteration_bounds = array<i64: 1>, scalar_prefetch = 0 : i64, scratch_operands = 0 : i64, tpu.core_type = #tpu.core_type<tc>, window_params = [{transform_indices = @transform_0, window_bounds = array<i64: 64, 288>}, {pipeline_mode = #tpu.pipeline_mode<synchronous>, transform_indices = @transform_1, window_bounds = array<i64: 288, 128>}, {pipeline_mode = #tpu.pipeline_mode<synchronous>, transform_indices = @transform_2, window_bounds = array<i64: 1, 128>}, {transform_indices = @transform_3, window_bounds = array<i64: 64, 128>}]} {
    %c0 = arith.constant 0 : index
    %c0_0 = arith.constant 0 : index
    %0 = vector.load %arg1[%c0, %c0_0] : memref<64x288xbf16, #tpu.memory_space<vmem>>, vector<64x288xbf16>
    %c0_1 = arith.constant 0 : index
    %c0_2 = arith.constant 0 : index
    %1 = vector.load %arg2[%c0_1, %c0_2] : memref<288x128xbf16, #tpu.memory_space<vmem>>, vector<288x128xbf16>
    %cst = arith.constant dense<0.000000e+00> : vector<64x128xf32>
    %2 = tpu.matmul %0, %1, %cst {dimension_numbers = #tpu.dot_dimension_numbers<[1], [0], [0], [1], [0, 0, 1, 1], [], []>} : vector<64x288xbf16>, vector<288x128xbf16>, vector<64x128xf32> -> vector<64x128xf32>
    %c0_3 = arith.constant 0 : index
    %c0_4 = arith.constant 0 : index
    %3 = vector.load %arg3[%c0_3, %c0_4] : memref<1x128xf32, #tpu.memory_space<vmem>>, vector<1x128xf32>
    %4 = vector.broadcast %3 : vector<1x128xf32> to vector<64x128xf32>
    %5 = arith.addf %2, %4 : vector<64x128xf32>
    %c0_5 = arith.constant 0 : index
    %c0_6 = arith.constant 0 : index
    %6 = vector.load %arg4[%c0_5, %c0_6] : memref<64x128xf32, #tpu.memory_space<vmem>>, vector<64x128xf32>
    tpu.vector_store %arg4[%c0_5, %c0_6], %5 {strides = array<i32>} : memref<64x128xf32, #tpu.memory_space<vmem>>, vector<64x128xf32>,
    return
  }
  func.func @transform_0(%arg0: i32) -> (i32, i32) {
    %c0_i32 = arith.constant 0 : i32
    %c0_i32_0 = arith.constant 0 : i32
    return %arg0, %c0_i32 : i32, i32
  }
  func.func @transform_1(%arg0: i32) -> (i32, i32) {
    %c0_i32 = arith.constant 0 : i32
    %c0_i32_0 = arith.constant 0 : i32
    %c0_i32_1 = arith.constant 0 : i32
    return %c0_i32, %c0_i32_0 : i32, i32
  }
  func.func @transform_2(%arg0: i32) -> (i32, i32) {
    %c0_i32 = arith.constant 0 : i32
    %c0_i32_0 = arith.constant 0 : i32
    %c0_i32_1 = arith.constant 0 : i32
    return %c0_i32, %c0_i32_0 : i32, i32
  }
  func.func @transform_3(%arg0: i32) -> (i32, i32) {
    %c0_i32 = arith.constant 0 : i32
    %c0_i32_0 = arith.constant 0 : i32
    return %arg0, %c0_i32 : i32, i32
  }
}

module attributes {stable_mosaic.version = 11 : i64} {
  func.func @_matmul_kernel(%arg0: i32, %arg1: memref<256x32xbf16, #tpu.memory_space<vmem>>, %arg2: memref<32x16xbf16, #tpu.memory_space<vmem>>, %arg3: memref<1x16xf32, #tpu.memory_space<vmem>>, %arg4: memref<256x16xf32, #tpu.memory_space<vmem>>) attributes {dimension_semantics = [#tpu.dimension_semantics<parallel>], iteration_bounds = array<i64: 1>, scalar_prefetch = 0 : i64, scratch_operands = 0 : i64, tpu.core_type = #tpu.core_type<tc>, window_params = [{transform_indices = @transform_0, window_bounds = array<i64: 256, 32>}, {pipeline_mode = #tpu.pipeline_mode<synchronous>, transform_indices = @transform_1, window_bounds = array<i64: 32, 16>}, {pipeline_mode = #tpu.pipeline_mode<synchronous>, transform_indices = @transform_2, window_bounds = array<i64: 1, 16>}, {transform_indices = @transform_3, window_bounds = array<i64: 256, 16>}]} {
    %c0 = arith.constant 0 : index
    %c0_0 = arith.constant 0 : index
    %0 = vector.load %arg1[%c0, %c0_0] : memref<256x32xbf16, #tpu.memory_space<vmem>>, vector<256x32xbf16>
    %c0_1 = arith.constant 0 : index
    %c0_2 = arith.constant 0 : index
    %1 = vector.load %arg2[%c0_1, %c0_2] : memref<32x16xbf16, #tpu.memory_space<vmem>>, vector<32x16xbf16>
    %cst = arith.constant dense<0.000000e+00> : vector<256x16xf32>
    %2 = tpu.matmul %0, %1, %cst {dimension_numbers = #tpu.dot_dimension_numbers<[1], [0], [0], [1], [0, 0, 1, 1], [], []>} : vector<256x32xbf16>, vector<32x16xbf16>, vector<256x16xf32> -> vector<256x16xf32>
    %c0_3 = arith.constant 0 : index
    %c0_4 = arith.constant 0 : index
    %3 = vector.load %arg3[%c0_3, %c0_4] : memref<1x16xf32, #tpu.memory_space<vmem>>, vector<1x16xf32>
    %4 = vector.broadcast %3 : vector<1x16xf32> to vector<256x16xf32>
    %5 = arith.addf %2, %4 : vector<256x16xf32>
    %c0_5 = arith.constant 0 : index
    %c0_6 = arith.constant 0 : index
    %6 = vector.load %arg4[%c0_5, %c0_6] : memref<256x16xf32, #tpu.memory_space<vmem>>, vector<256x16xf32>
    tpu.vector_store %arg4[%c0_5, %c0_6], %5 {strides = array<i32>} : memref<256x16xf32, #tpu.memory_space<vmem>>, vector<256x16xf32>,
    return
  }
  func.func @transform_0(%arg0: i32) -> (i32, i32) {
    %c0_i32 = arith.constant 0 : i32
    %c0_i32_0 = arith.constant 0 : i32
    return %arg0, %c0_i32 : i32, i32
  }
  func.func @transform_1(%arg0: i32) -> (i32, i32) {
    %c0_i32 = arith.constant 0 : i32
    %c0_i32_0 = arith.constant 0 : i32
    %c0_i32_1 = arith.constant 0 : i32
    return %c0_i32, %c0_i32_0 : i32, i32
  }
  func.func @transform_2(%arg0: i32) -> (i32, i32) {
    %c0_i32 = arith.constant 0 : i32
    %c0_i32_0 = arith.constant 0 : i32
    %c0_i32_1 = arith.constant 0 : i32
    return %c0_i32, %c0_i32_0 : i32, i32
  }
  func.func @transform_3(%arg0: i32) -> (i32, i32) {
    %c0_i32 = arith.constant 0 : i32
    %c0_i32_0 = arith.constant 0 : i32
    return %arg0, %c0_i32 : i32, i32
  }
}

module attributes {stable_mosaic.version = 11 : i64} {
  func.func @_matmul_kernel(%arg0: i32, %arg1: memref<256x288xbf16, #tpu.memory_space<vmem>>, %arg2: memref<288x3xbf16, #tpu.memory_space<vmem>>, %arg3: memref<1x3xf32, #tpu.memory_space<vmem>>, %arg4: memref<256x3xf32, #tpu.memory_space<vmem>>) attributes {dimension_semantics = [#tpu.dimension_semantics<parallel>], iteration_bounds = array<i64: 1>, scalar_prefetch = 0 : i64, scratch_operands = 0 : i64, tpu.core_type = #tpu.core_type<tc>, window_params = [{transform_indices = @transform_0, window_bounds = array<i64: 256, 288>}, {pipeline_mode = #tpu.pipeline_mode<synchronous>, transform_indices = @transform_1, window_bounds = array<i64: 288, 3>}, {pipeline_mode = #tpu.pipeline_mode<synchronous>, transform_indices = @transform_2, window_bounds = array<i64: 1, 3>}, {transform_indices = @transform_3, window_bounds = array<i64: 256, 3>}]} {
    %c0 = arith.constant 0 : index
    %c0_0 = arith.constant 0 : index
    %0 = vector.load %arg1[%c0, %c0_0] : memref<256x288xbf16, #tpu.memory_space<vmem>>, vector<256x288xbf16>
    %c0_1 = arith.constant 0 : index
    %c0_2 = arith.constant 0 : index
    %1 = vector.load %arg2[%c0_1, %c0_2] : memref<288x3xbf16, #tpu.memory_space<vmem>>, vector<288x3xbf16>
    %cst = arith.constant dense<0.000000e+00> : vector<256x3xf32>
    %2 = tpu.matmul %0, %1, %cst {dimension_numbers = #tpu.dot_dimension_numbers<[1], [0], [0], [1], [0, 0, 1, 1], [], []>} : vector<256x288xbf16>, vector<288x3xbf16>, vector<256x3xf32> -> vector<256x3xf32>
    %c0_3 = arith.constant 0 : index
    %c0_4 = arith.constant 0 : index
    %3 = vector.load %arg3[%c0_3, %c0_4] : memref<1x3xf32, #tpu.memory_space<vmem>>, vector<1x3xf32>
    %4 = vector.broadcast %3 : vector<1x3xf32> to vector<256x3xf32>
    %5 = arith.addf %2, %4 : vector<256x3xf32>
    %c0_5 = arith.constant 0 : index
    %c0_6 = arith.constant 0 : index
    %6 = vector.load %arg4[%c0_5, %c0_6] : memref<256x3xf32, #tpu.memory_space<vmem>>, vector<256x3xf32>
    tpu.vector_store %arg4[%c0_5, %c0_6], %5 {strides = array<i32>} : memref<256x3xf32, #tpu.memory_space<vmem>>, vector<256x3xf32>,
    return
  }
  func.func @transform_0(%arg0: i32) -> (i32, i32) {
    %c0_i32 = arith.constant 0 : i32
    %c0_i32_0 = arith.constant 0 : i32
    return %arg0, %c0_i32 : i32, i32
  }
  func.func @transform_1(%arg0: i32) -> (i32, i32) {
    %c0_i32 = arith.constant 0 : i32
    %c0_i32_0 = arith.constant 0 : i32
    %c0_i32_1 = arith.constant 0 : i32
    return %c0_i32, %c0_i32_0 : i32, i32
  }
  func.func @transform_2(%arg0: i32) -> (i32, i32) {
    %c0_i32 = arith.constant 0 : i32
    %c0_i32_0 = arith.constant 0 : i32
    %c0_i32_1 = arith.constant 0 : i32
    return %c0_i32, %c0_i32_0 : i32, i32
  }
  func.func @transform_3(%arg0: i32) -> (i32, i32) {
    %c0_i32 = arith.constant 0 : i32
    %c0_i32_0 = arith.constant 0 : i32
    return %arg0, %c0_i32 : i32, i32
  }
}

module attributes {stable_mosaic.version = 11 : i64} {
  func.func @_metasr_kernel(%arg0: i32, %arg1: i32, %arg2: i32, %arg3: memref<1x3x256xf32, #tpu.memory_space<vmem>>, %arg4: memref<1x288x256xbf16, #tpu.memory_space<vmem>>, %arg5: memref<256x3xf32, #tpu.memory_space<vmem>>, %arg6: memref<256x1xf32, #tpu.memory_space<vmem>>, %arg7: memref<864x256xbf16, #tpu.memory_space<vmem>>, %arg8: memref<864x1xf32, #tpu.memory_space<vmem>>, %arg9: memref<1x1x3x256xf32, #tpu.memory_space<vmem>>) attributes {dimension_semantics = [#tpu.dimension_semantics<parallel>, #tpu.dimension_semantics<parallel>, #tpu.dimension_semantics<arbitrary>], iteration_bounds = array<i64: 1, 4, 1>, scalar_prefetch = 0 : i64, scratch_operands = 0 : i64, tpu.core_type = #tpu.core_type<tc>, window_params = [{transform_indices = @transform_0, window_bounds = array<i64: 1, 3, 256>}, {transform_indices = @transform_1, window_bounds = array<i64: 1, 288, 256>}, {pipeline_mode = #tpu.pipeline_mode<synchronous>, transform_indices = @transform_2, window_bounds = array<i64: 256, 3>}, {pipeline_mode = #tpu.pipeline_mode<synchronous>, transform_indices = @transform_3, window_bounds = array<i64: 256, 1>}, {pipeline_mode = #tpu.pipeline_mode<synchronous>, transform_indices = @transform_4, window_bounds = array<i64: 864, 256>}, {pipeline_mode = #tpu.pipeline_mode<synchronous>, transform_indices = @transform_5, window_bounds = array<i64: 864, 1>}, {transform_indices = @transform_6, window_bounds = array<i64: 1, 1, 3, 256>}]} {
    %c0 = arith.constant 0 : index
    %c0_0 = arith.constant 0 : index
    %c0_1 = arith.constant 0 : index
    %0 = vector.load %arg3[%c0, %c0_0, %c0_1] : memref<1x3x256xf32, #tpu.memory_space<vmem>>, vector<1x3x256xf32>
    %1 = vector.shape_cast %0 : vector<1x3x256xf32> to vector<3x256xf32>
    %c0_2 = arith.constant 0 : index
    %c0_3 = arith.constant 0 : index
    %2 = vector.load %arg5[%c0_2, %c0_3] : memref<256x3xf32, #tpu.memory_space<vmem>>, vector<256x3xf32>
    %c0_4 = arith.constant 0 : index
    %c0_5 = arith.constant 0 : index
    %3 = vector.load %arg6[%c0_4, %c0_5] : memref<256x1xf32, #tpu.memory_space<vmem>>, vector<256x1xf32>
    %4 = vector.extract_strided_slice %2 {offsets = [0, 0], sizes = [256, 1], strides = [1, 1]} : vector<256x3xf32> to vector<256x1xf32>
    %5 = vector.extract_strided_slice %1 {offsets = [0, 0], sizes = [1, 256], strides = [1, 1]} : vector<3x256xf32> to vector<1x256xf32>
    %6 = vector.broadcast %4 : vector<256x1xf32> to vector<256x256xf32>
    %7 = vector.broadcast %5 : vector<1x256xf32> to vector<256x256xf32>
    %8 = arith.mulf %6, %7 : vector<256x256xf32>
    %9 = vector.broadcast %3 : vector<256x1xf32> to vector<256x256xf32>
    %10 = arith.addf %9, %8 : vector<256x256xf32>
    %11 = vector.extract_strided_slice %2 {offsets = [0, 1], sizes = [256, 1], strides = [1, 1]} : vector<256x3xf32> to vector<256x1xf32>
    %12 = vector.extract_strided_slice %1 {offsets = [1, 0], sizes = [1, 256], strides = [1, 1]} : vector<3x256xf32> to vector<1x256xf32>
    %13 = vector.broadcast %11 : vector<256x1xf32> to vector<256x256xf32>
    %14 = vector.broadcast %12 : vector<1x256xf32> to vector<256x256xf32>
    %15 = arith.mulf %13, %14 : vector<256x256xf32>
    %16 = arith.addf %10, %15 : vector<256x256xf32>
    %17 = vector.extract_strided_slice %2 {offsets = [0, 2], sizes = [256, 1], strides = [1, 1]} : vector<256x3xf32> to vector<256x1xf32>
    %18 = vector.extract_strided_slice %1 {offsets = [2, 0], sizes = [1, 256], strides = [1, 1]} : vector<3x256xf32> to vector<1x256xf32>
    %19 = vector.broadcast %17 : vector<256x1xf32> to vector<256x256xf32>
    %20 = vector.broadcast %18 : vector<1x256xf32> to vector<256x256xf32>
    %21 = arith.mulf %19, %20 : vector<256x256xf32>
    %22 = arith.addf %16, %21 : vector<256x256xf32>
    %cst = arith.constant 0.000000e+00 : f32
    %23 = vector.broadcast %cst : f32 to vector<256x256xf32>
    %24 = arith.maximumf %22, %23 : vector<256x256xf32>
    %25 = arith.truncf %24 : vector<256x256xf32> to vector<256x256xbf16>
    %c0_6 = arith.constant 0 : index
    %c0_7 = arith.constant 0 : index
    %c0_8 = arith.constant 0 : index
    %26 = vector.load %arg4[%c0_6, %c0_7, %c0_8] : memref<1x288x256xbf16, #tpu.memory_space<vmem>>, vector<1x288x256xbf16>
    %27 = vector.shape_cast %26 : vector<1x288x256xbf16> to vector<288x256xbf16>
    %28 = arith.extf %27 : vector<288x256xbf16> to vector<288x256xf32>
    %c0_9 = arith.constant 0 : index
    %c0_10 = arith.constant 0 : index
    %29 = vector.load %arg7[%c0_9, %c0_10] : memref<864x256xbf16, #tpu.memory_space<vmem>>, vector<288x256xbf16>
    %cst_11 = arith.constant dense<0.000000e+00> : vector<288x256xf32>
    %30 = tpu.matmul %29, %25, %cst_11 {dimension_numbers = #tpu.dot_dimension_numbers<[1], [0], [0], [1], [0, 0, 1, 1], [], []>} : vector<288x256xbf16>, vector<256x256xbf16>, vector<288x256xf32> -> vector<288x256xf32>
    %c0_12 = arith.constant 0 : index
    %c0_13 = arith.constant 0 : index
    %31 = vector.load %arg8[%c0_12, %c0_13] : memref<864x1xf32, #tpu.memory_space<vmem>>, vector<288x1xf32>
    %32 = vector.broadcast %31 : vector<288x1xf32> to vector<288x256xf32>
    %33 = arith.addf %30, %32 : vector<288x256xf32>
    %34 = arith.mulf %33, %28 : vector<288x256xf32>
    %cst_14 = arith.constant dense<0.000000e+00> : vector<256xf32>
    %35 = vector.multi_reduction <add>, %34, %cst_14 [0] : vector<288x256xf32> to vector<256xf32>
    %36 = vector.shape_cast %35 : vector<256xf32> to vector<1x256xf32>
    %c288 = arith.constant 288 : index
    %c0_15 = arith.constant 0 : index
    %37 = vector.load %arg7[%c288, %c0_15] : memref<864x256xbf16, #tpu.memory_space<vmem>>, vector<288x256xbf16>
    %cst_16 = arith.constant dense<0.000000e+00> : vector<288x256xf32>
    %38 = tpu.matmul %37, %25, %cst_16 {dimension_numbers = #tpu.dot_dimension_numbers<[1], [0], [0], [1], [0, 0, 1, 1], [], []>} : vector<288x256xbf16>, vector<256x256xbf16>, vector<288x256xf32> -> vector<288x256xf32>
    %c288_17 = arith.constant 288 : index
    %c0_18 = arith.constant 0 : index
    %39 = vector.load %arg8[%c288_17, %c0_18] : memref<864x1xf32, #tpu.memory_space<vmem>>, vector<288x1xf32>
    %40 = vector.broadcast %39 : vector<288x1xf32> to vector<288x256xf32>
    %41 = arith.addf %38, %40 : vector<288x256xf32>
    %42 = arith.mulf %41, %28 : vector<288x256xf32>
    %cst_19 = arith.constant dense<0.000000e+00> : vector<256xf32>
    %43 = vector.multi_reduction <add>, %42, %cst_19 [0] : vector<288x256xf32> to vector<256xf32>
    %44 = vector.shape_cast %43 : vector<256xf32> to vector<1x256xf32>
    %c576 = arith.constant 576 : index
    %c0_20 = arith.constant 0 : index
    %45 = vector.load %arg7[%c576, %c0_20] : memref<864x256xbf16, #tpu.memory_space<vmem>>, vector<288x256xbf16>
    %cst_21 = arith.constant dense<0.000000e+00> : vector<288x256xf32>
    %46 = tpu.matmul %45, %25, %cst_21 {dimension_numbers = #tpu.dot_dimension_numbers<[1], [0], [0], [1], [0, 0, 1, 1], [], []>} : vector<288x256xbf16>, vector<256x256xbf16>, vector<288x256xf32> -> vector<288x256xf32>
    %c576_22 = arith.constant 576 : index
    %c0_23 = arith.constant 0 : index
    %47 = vector.load %arg8[%c576_22, %c0_23] : memref<864x1xf32, #tpu.memory_space<vmem>>, vector<288x1xf32>
    %48 = vector.broadcast %47 : vector<288x1xf32> to vector<288x256xf32>
    %49 = arith.addf %46, %48 : vector<288x256xf32>
    %50 = arith.mulf %49, %28 : vector<288x256xf32>
    %cst_24 = arith.constant dense<0.000000e+00> : vector<256xf32>
    %51 = vector.multi_reduction <add>, %50, %cst_24 [0] : vector<288x256xf32> to vector<256xf32>
    %52 = vector.shape_cast %51 : vector<256xf32> to vector<1x256xf32>
    %53 = tpu.concatenate %36, %44, %52 in 0 : vector<1x256xf32>, vector<1x256xf32>, vector<1x256xf32> -> vector<3x256xf32>
    %c0_25 = arith.constant 0 : index
    %c0_26 = arith.constant 0 : index
    %c0_27 = arith.constant 0 : index
    %c0_28 = arith.constant 0 : index
    %54 = vector.load %arg9[%c0_25, %c0_26, %c0_27, %c0_28] : memref<1x1x3x256xf32, #tpu.memory_space<vmem>>, vector<1x1x3x256xf32>
    %55 = vector.shape_cast %54 : vector<1x1x3x256xf32> to vector<3x256xf32>
    %56 = vector.shape_cast %53 : vector<3x256xf32> to vector<1x1x3x256xf32>
    tpu.vector_store %arg9[%c0_25, %c0_26, %c0_27, %c0_28], %56 {strides = array<i32>} : memref<1x1x3x256xf32, #tpu.memory_space<vmem>>, vector<1x1x3x256xf32>,
    return
  }
  func.func @transform_0(%arg0: i32, %arg1: i32, %arg2: i32) -> (i32, i32, i32) {
    %c0_i32 = arith.constant 0 : i32
    %c0_i32_0 = arith.constant 0 : i32
    return %arg1, %c0_i32, %arg2 : i32, i32, i32
  }
  func.func @transform_1(%arg0: i32, %arg1: i32, %arg2: i32) -> (i32, i32, i32) {
    %c0_i32 = arith.constant 0 : i32
    %c0_i32_0 = arith.constant 0 : i32
    return %arg0, %c0_i32, %arg2 : i32, i32, i32
  }
  func.func @transform_2(%arg0: i32, %arg1: i32, %arg2: i32) -> (i32, i32) {
    %c0_i32 = arith.constant 0 : i32
    %c0_i32_0 = arith.constant 0 : i32
    %c0_i32_1 = arith.constant 0 : i32
    return %c0_i32, %c0_i32_0 : i32, i32
  }
  func.func @transform_3(%arg0: i32, %arg1: i32, %arg2: i32) -> (i32, i32) {
    %c0_i32 = arith.constant 0 : i32
    %c0_i32_0 = arith.constant 0 : i32
    %c0_i32_1 = arith.constant 0 : i32
    return %c0_i32, %c0_i32_0 : i32, i32
  }
  func.func @transform_4(%arg0: i32, %arg1: i32, %arg2: i32) -> (i32, i32) {
    %c0_i32 = arith.constant 0 : i32
    %c0_i32_0 = arith.constant 0 : i32
    %c0_i32_1 = arith.constant 0 : i32
    return %c0_i32, %c0_i32_0 : i32, i32
  }
  func.func @transform_5(%arg0: i32, %arg1: i32, %arg2: i32) -> (i32, i32) {
    %c0_i32 = arith.constant 0 : i32
    %c0_i32_0 = arith.constant 0 : i32
    %c0_i32_1 = arith.constant 0 : i32
    return %c0_i32, %c0_i32_0 : i32, i32
  }
  func.func @transform_6(%arg0: i32, %arg1: i32, %arg2: i32) -> (i32, i32, i32, i32) {
    %c0_i32 = arith.constant 0 : i32
    %c0_i32_0 = arith.constant 0 : i32
    return %arg0, %arg1, %c0_i32, %arg2 : i32, i32, i32, i32
  }
}

</mosaic_0001>

<bundles_post_ra>
// kernel: drn_forward.12
= control target key start
LH: loop header
LB: loop body
LE: loop exit
PB: predicated region body
PF: predicated region fallthrough
CT: control target
= control target key end

     0   :  { %8 = vsyncpa [#allocation3], 0  ;;  %s156_s12 = smov [#allocation2]   ;;  %s207_s0 = inlined_call_operand.vmem [shape: bf16[24,8], index: 0, kind: input, shape index: {}]   ;;  %s208_s1 = inlined_call_operand.hbm [shape: bf16[8,16], index: 1, kind: input, shape index: {}]   ;;  %s209_s2 = inlined_call_operand.vmem [shape: f32[1,16], index: 2, kind: input, shape index: {}]   ;;  %s210_s3 = inlined_call_operand.vmem [shape: f32[24,16], index: 3, kind: output, shape index: {}]  }
   0x1   :  { %s17_s13 = sshll.u32 %s156_s12, 4  ;;  %s132_s16 = scalar_lea.hbm %s208_s1, 64  ;;  %s18_s13 = int_to_ptr.vmem [resolvable:$true] %s17_s13 }
   0x2   :  { %p133_p0 = scmp.ne.s32.totalorder %s208_s1, %s132_s16  ;;  %p136_p1 = scmp.lt.u32.totalorder %s132_s16, %s208_s1 }
   0x4   :  { %p138_p2 = pnand %p136_p1, %p133_p0 }
   0x6   :  { %141 = shalt.err (!%p138_p2)
}
   0x7   :  { %s142_s21 = scalar_lea.vmem %s18_s13, 64  ;;  %p147_p4 = scmp.lt.s32.totalorder %s18_s13, %s18_s13 }
   0x8   :  { %p143_p3 = scmp.ne.s32.totalorder %s18_s13, %s142_s21  ;;  %p148_p5 = scmp.lt.s32.totalorder %s142_s21, %s142_s21 }
   0xa   :  { %p149_p6 = por %p148_p5, %p147_p4 }
   0xc   :  { %p150_p7 = pnand %p149_p6, %p143_p3 }
   0xe   :  { %153 = shalt.err (!%p150_p7)
}
   0xf   :  { %20 = dma.hbm_to_vmem [thread:$0]  %s208_s1, 64, %s18_s13, [#allocation3]  }
  0x10   :  { %154 = dma.done.wait [#allocation3], 64  }
  0x11   :  { %155 = vsyncadd [#allocation3], 4294967232  ;;  %vm53_vm0 = vcmask 1043456   ;;  %vm46_vm1 = vcmask 64512   ;;  %v30_v0 = vld [vmem:[#allocation2] sm:$0xf] }
  0x12   :  { %128 = vmatprep.subr.msk.bf16.mxu0 %vm53_vm0, %v30_v0  ;;  %v55_v1 = vsel %vm53_vm0, %v30_v0, 0  ;;  %v130_v2 = vld [vmem:[%s207_s0] sm:$0xff]   ;;  %v131_v3 = vld [vmem:[%s207_s0 + $0x8] ss:$0 sps:$4 sm:$0xff]   ;;  %vm105_vm2 = vcmask 130048  }
  0x13   :  { %123 = vmatpush3.bf16.msra.mxu0 %v55_v1  ;;  %124 = vmatprep.mubr.msk.bf16.mxu0 %vm46_vm1, %v130_v2  ;;  %v114_v4 = vld [vmem:[%s209_s2] ss:$0 sm:$0xff] }
  0x16   :  { %125 = vmatmul.mubr.msk.bf16.vlgmr.msra.gmra.mrb[0].mxu0 %vm46_vm1, %v131_v3 }
  0xe9   :  { %v126_v5 = vpop.f32.mrb[0].mxu0 }
  0xea   :  { %v100_v6 = vadd.f32 %v126_v5, %v114_v4  ;;  %v91_v7 = vpop.f32.mrb[1].mxu0 }
  0xeb   :  { %v92_v8 = vadd.f32 %v114_v4, %v91_v7  ;;  %v127_v9 = vpop.f32.mrb[2].mxu0 }
  0xec   :  { %108 = vst.msk [vmem:[%s210_s3 + $0x10] sm:$0xff] %vm105_vm2, %v100_v6  ;;  %v94_v10 = vpop.f32.mrb[3].mxu0 }
  0xed   :  { %106 = vst.msk [vmem:[%s210_s3] sm:$0xff] %vm105_vm2, %v92_v8  ;;  %v95_v11 = vadd.f32 %v114_v4, %v94_v10 }
  0xef   :  { %107 = vst.msk [vmem:[%s210_s3 + $0x8] sm:$0xff] %vm105_vm2, %v95_v11 }
  0xf0   :  { %113 = vsyncpa [#allocation3], 1 }

// kernel: drn_forward.13
= control target key start
LH: loop header
LB: loop body
LE: loop exit
PB: predicated region body
PF: predicated region fallthrough
CT: control target
= control target key end

     0   :  { %8 = vsyncpa [#allocation3], 0  ;;  %s196_s12 = smov [#allocation2]   ;;  %s267_s0 = inlined_call_operand.vmem [shape: bf16[48,8], index: 0, kind: input, shape index: {}]   ;;  %s268_s1 = inlined_call_operand.hbm [shape: bf16[8,16], index: 1, kind: input, shape index: {}]   ;;  %s269_s2 = inlined_call_operand.vmem [shape: f32[1,16], index: 2, kind: input, shape index: {}]   ;;  %s270_s3 = inlined_call_operand.vmem [shape: f32[48,16], index: 3, kind: output, shape index: {}]  }
   0x1   :  { %s17_s13 = sshll.u32 %s196_s12, 4  ;;  %s172_s16 = scalar_lea.hbm %s268_s1, 64  ;;  %s18_s13 = int_to_ptr.vmem [resolvable:$true] %s17_s13 }
   0x2   :  { %p173_p0 = scmp.ne.s32.totalorder %s268_s1, %s172_s16  ;;  %p176_p1 = scmp.lt.u32.totalorder %s172_s16, %s268_s1 }
   0x4   :  { %p178_p2 = pnand %p176_p1, %p173_p0 }
   0x6   :  { %181 = shalt.err (!%p178_p2)
}
   0x7   :  { %s182_s21 = scalar_lea.vmem %s18_s13, 64  ;;  %p187_p4 = scmp.lt.s32.totalorder %s18_s13, %s18_s13 }
   0x8   :  { %p183_p3 = scmp.ne.s32.totalorder %s18_s13, %s182_s21  ;;  %p188_p5 = scmp.lt.s32.totalorder %s182_s21, %s182_s21 }
   0xa   :  { %p189_p6 = por %p188_p5, %p187_p4 }
   0xc   :  { %p190_p7 = pnand %p189_p6, %p183_p3 }
   0xe   :  { %193 = shalt.err (!%p190_p7)
}
   0xf   :  { %20 = dma.hbm_to_vmem [thread:$0]  %s268_s1, 64, %s18_s13, [#allocation3]  }
  0x10   :  { %194 = dma.done.wait [#allocation3], 64  }
  0x11   :  { %195 = vsyncadd [#allocation3], 4294967232  ;;  %v197_v0 = vmov 0.0   ;;  %vm198_vm0 = vmmov 0   ;;  %vm66_vm1 = vcmask 1043456   ;;  %v169_v3 = vld [vmem:[%s267_s0 + $0x8] sm:$0xff]  }
  0x12   :  { %164 = vmatprep.subr.bf16.mxu1 %v197_v0  ;;  %156 = vmatprep.mubr.msk.bf16.mxu1 %vm198_vm0, %v197_v0  ;;  %v33_v1 = vld [vmem:[#allocation2] sm:$0xf]  ;;  %vm56_vm2 = vcmask 64512   ;;  %v171_v5 = vld [vmem:[%s267_s0 + $0x10] sm:$0xff]   ;;  %vm127_vm3 = vcmask 130048  }
  0x13   :  { %150 = vmatprep.subr.bf16.mxu0 %v197_v0  ;;  %152 = vmatprep.mubr.msk.bf16.mxu0 %vm198_vm0, %v197_v0  ;;  %v68_v2 = vsel %vm66_vm1, %v33_v1, 0  ;;  %v170_v4 = vld [vmem:[%s267_s0] sm:$0xff]  }
  0x14   :  { %165 = vmatpush3.bf16.msra.mxu1 %v68_v2  ;;  %151 = vmatpush3.bf16.msra.mxu0 %v68_v2  ;;  %v139_v6 = vld [vmem:[%s269_s2] ss:$0 sm:$0xff] }
  0x17   :  { %157 = vmatmul.mubr.msk.bf16.vlgmr.msra.gmra.mrb[0].mxu1 %vm56_vm2, %v169_v3  ;;  %153 = vmatmul.mubr.msk.bf16.vlgmr.msra.gmra.mrb[0].mxu0 %vm56_vm2, %v170_v4 }
  0x18   :  { %160 = vmatprep.mubr.msk.bf16.mxu1 %vm198_vm0, %v197_v0 }
  0x1f   :  { %161 = vmatmul.mubr.msk.bf16.gmra.mrb[4].mxu1 %vm56_vm2, %v171_v5 }
  0xea   :  { %v112_v7 = vpop.f32.mrb[0].mxu1  ;;  %v104_v8 = vpop.f32.mrb[0].mxu0 }
  0xeb   :  { %v113_v9 = vadd.f32 %v139_v6, %v112_v7  ;;  %v158_v10 = vpop.f32.mrb[1].mxu1  ;;  %v105_v11 = vadd.f32 %v139_v6, %v104_v8  ;;  %v154_v12 = vpop.f32.mrb[1].mxu0 }
  0xec   :  { %v115_v13 = vpop.f32.mrb[2].mxu1  ;;  %v107_v14 = vpop.f32.mrb[2].mxu0 }
  0xed   :  { %130 = vst.msk [vmem:[%s270_s3 + $0x10] sm:$0xff] %vm127_vm3, %v113_v9  ;;  %v116_v15 = vadd.f32 %v139_v6, %v115_v13  ;;  %v159_v16 = vpop.f32.mrb[3].mxu1  ;;  %128 = vst.msk [vmem:[%s270_s3] sm:$0xff] %vm127_vm3, %v105_v11  ;;  %v108_v17 = vadd.f32 %v139_v6, %v107_v14  ;;  %v155_v18 = vpop.f32.mrb[3].mxu0 }
  0xef   :  { %131 = vst.msk [vmem:[%s270_s3 + $0x18] sm:$0xff] %vm127_vm3, %v116_v15  ;;  %129 = vst.msk [vmem:[%s270_s3 + $0x8] sm:$0xff] %vm127_vm3, %v108_v17 }
  0xf2   :  { %v120_v19 = vpop.f32.mrb[4].mxu1 }
  0xf3   :  { %v121_v20 = vadd.f32 %v139_v6, %v120_v19  ;;  %v162_v21 = vpop.f32.mrb[5].mxu1 }
  0xf4   :  { %v123_v22 = vpop.f32.mrb[6].mxu1 }
  0xf5   :  { %132 = vst.msk [vmem:[%s270_s3 + $0x20] sm:$0xff] %vm127_vm3, %v121_v20  ;;  %v124_v23 = vadd.f32 %v139_v6, %v123_v22  ;;  %v163_v24 = vpop.f32.mrb[7].mxu1 }
  0xf7   :  { %133 = vst.msk [vmem:[%s270_s3 + $0x28] sm:$0xff] %vm127_vm3, %v124_v23 }
  0xf8   :  { %138 = vsyncpa [#allocation3], 1 }

// kernel: drn_forward.14
= control target key start
LH: loop header
LB: loop body
LE: loop exit
PB: predicated region body
PF: predicated region fallthrough
CT: control target
= control target key end

     0   :  { %vm198_vm0 = vcmask 1044480   ;;  %vm199_vm1 = vcmask 1045504   ;;  %vm149_vm2 = vcmask 220160   ;;  %v515_v1 = vmov 65535   ;;  %s771_s1 = inlined_call_operand.vmem [shape: bf16[27,16], index: 1, kind: input, shape index: {}]   ;;  %s772_s0 = inlined_call_operand.vmem [shape: bf16[256,27], index: 0, kind: input, shape index: {}]   ;;  %s773_s2 = inlined_call_operand.vmem [shape: f32[1,16], index: 2, kind: input, shape index: {}]   ;;  %s774_s3 = inlined_call_operand.vmem [shape: f32[256,16], index: 3, kind: output, shape index: {}]  }
   0x1   :  { %v497_v0 = vld [vmem:[%s771_s1] sm:$0xff]   ;;  %v200_v2 = vsel %vm198_vm0, 4294967295, %v515_v1  ;;  %v498_v3 = vld [vmem:[%s771_s1 + $0x8] sm:$0x3f]   ;;  %v503_v10 = vld [vmem:[%s772_s0 + $0x10] sm:$0xff]   ;;  %vm366_vm3 = vcmask 130048  }
   0x2   :  { %456 = vmatprep.subr.bf16.mxu0 %v497_v0  ;;  %492 = vmatprep.subr.bf16.mxu1 %v497_v0  ;;  %v201_v4 = vsel %vm199_vm1, %v200_v2, 0  ;;  %v499_v5 = vld [vmem:[%s772_s0] sm:$0xff]   ;;  %v501_v8 = vld [vmem:[%s772_s0 + $0x8] sm:$0xff]   ;;  %v504_v11 = vld [vmem:[%s772_s0 + $0x50] sm:$0xff]  }
   0x3   :  { %457 = vmatpush3.bf16.msra.mxu0 %v497_v0  ;;  %494 = vmatpush3.bf16.msra.mxu1 %v497_v0  ;;  %v203_v6 = vand.u32 %v498_v3, %v201_v4  ;;  %v500_v7 = vld [vmem:[%s772_s0 + $0x40] sm:$0xff]   ;;  %v502_v9 = vld [vmem:[%s772_s0 + $0x48] sm:$0xff]   ;;  %v505_v12 = vld [vmem:[%s772_s0 + $0x18] sm:$0xff]  }
   0x4   :  { %460 = vmatprep.mubr.msk.bf16.mxu0 %vm149_vm2, %v499_v5  ;;  %476 = vmatprep.mubr.msk.bf16.mxu1 %vm149_vm2, %v500_v7  ;;  %v506_v13 = vld [vmem:[%s772_s0 + $0x58] sm:$0xff]   ;;  %v507_v14 = vld [vmem:[%s772_s0 + $0x20] sm:$0xff]   ;;  %v509_v16 = vld [vmem:[%s772_s0 + $0x28] sm:$0xff]  }
   0x5   :  { %458 = vmatprep.subr.bf16.mxu0 %v203_v6  ;;  %493 = vmatprep.subr.bf16.mxu1 %v203_v6  ;;  %v508_v15 = vld [vmem:[%s772_s0 + $0x60] sm:$0xff]   ;;  %v510_v17 = vld [vmem:[%s772_s0 + $0x68] sm:$0xff]   ;;  %v511_v18 = vld [vmem:[%s772_s0 + $0x30] sm:$0xff]  }
   0x6   :  { %v512_v19 = vld [vmem:[%s772_s0 + $0x70] sm:$0xff]   ;;  %v513_v20 = vld [vmem:[%s772_s0 + $0x38] sm:$0xff]   ;;  %v609_v22 = vld [vmem:[%s773_s2] ss:$0 sm:$0xff] }
   0x7   :  { %459 = vmatpush3.bf16.msra.mxu0 %v203_v6  ;;  %495 = vmatpush3.bf16.msra.mxu1 %v203_v6  ;;  %v514_v21 = vld [vmem:[%s772_s0 + $0x78] sm:$0xff]  }
   0xa   :  { %461 = vmatmul.mubr.msk.bf16.vlgmr.msra.gmra.mrb[0].mxu0 %vm149_vm2, %v501_v8  ;;  %477 = vmatmul.mubr.msk.bf16.vlgmr.msra.gmra.mrb[0].mxu1 %vm149_vm2, %v502_v9 }
   0xb   :  { %464 = vmatprep.mubr.msk.bf16.mxu0 %vm149_vm2, %v503_v10  ;;  %480 = vmatprep.mubr.msk.bf16.mxu1 %vm149_vm2, %v504_v11 }
  0x12   :  { %465 = vmatmul.mubr.msk.bf16.gmra.mrb[4].mxu0 %vm149_vm2, %v505_v12  ;;  %481 = vmatmul.mubr.msk.bf16.gmra.mrb[4].mxu1 %vm149_vm2, %v506_v13 }
  0x13   :  { %468 = vmatprep.mubr.msk.bf16.mxu0 %vm149_vm2, %v507_v14  ;;  %484 = vmatprep.mubr.msk.bf16.mxu1 %vm149_vm2, %v508_v15 }
  0x1a   :  { %469 = vmatmul.mubr.msk.bf16.gmra.mrb[8].mxu0 %vm149_vm2, %v509_v16  ;;  %485 = vmatmul.mubr.msk.bf16.gmra.mrb[8].mxu1 %vm149_vm2, %v510_v17 }
  0x1b   :  { %472 = vmatprep.mubr.msk.bf16.mxu0 %vm149_vm2, %v511_v18  ;;  %488 = vmatprep.mubr.msk.bf16.mxu1 %vm149_vm2, %v512_v19 }
  0x22   :  { %473 = vmatmul.mubr.msk.bf16.gmra.mrb[12].mxu0 %vm149_vm2, %v513_v20  ;;  %489 = vmatmul.mubr.msk.bf16.gmra.mrb[12].mxu1 %vm149_vm2, %v514_v21 }
  0xdd   :  { %v462_v23 = vpop.f32.mrb[0].mxu0  ;;  %v478_v24 = vpop.f32.mrb[0].mxu1 }
  0xde   :  { %v248_v25 = vadd.f32 %v462_v23, %v609_v22  ;;  %v312_v26 = vadd.f32 %v478_v24, %v609_v22  ;;  %v239_v27 = vpop.f32.mrb[1].mxu0  ;;  %v303_v28 = vpop.f32.mrb[1].mxu1 }
  0xdf   :  { %v240_v29 = vadd.f32 %v609_v22, %v239_v27  ;;  %v304_v30 = vadd.f32 %v609_v22, %v303_v28  ;;  %v463_v31 = vpop.f32.mrb[2].mxu0  ;;  %v479_v32 = vpop.f32.mrb[2].mxu1 }
  0xe0   :  { %369 = vst.msk [vmem:[%s774_s3 + $0x10] sm:$0xff] %vm366_vm3, %v248_v25  ;;  %385 = vst.msk [vmem:[%s774_s3 + $0x90] sm:$0xff] %vm366_vm3, %v312_v26  ;;  %v251_v33 = vadd.f32 %v463_v31, %v609_v22  ;;  %v315_v34 = vadd.f32 %v479_v32, %v609_v22  ;;  %v242_v35 = vpop.f32.mrb[3].mxu0  ;;  %v306_v36 = vpop.f32.mrb[3].mxu1 }
  0xe1   :  { %367 = vst.msk [vmem:[%s774_s3] sm:$0xff] %vm366_vm3, %v240_v29  ;;  %383 = vst.msk [vmem:[%s774_s3 + $0x80] sm:$0xff] %vm366_vm3, %v304_v30  ;;  %v243_v37 = vadd.f32 %v609_v22, %v242_v35  ;;  %v307_v38 = vadd.f32 %v609_v22, %v306_v36 }
  0xe2   :  { %370 = vst.msk [vmem:[%s774_s3 + $0x18] sm:$0xff] %vm366_vm3, %v251_v33  ;;  %386 = vst.msk [vmem:[%s774_s3 + $0x98] sm:$0xff] %vm366_vm3, %v315_v34 }
  0xe3   :  { %368 = vst.msk [vmem:[%s774_s3 + $0x8] sm:$0xff] %vm366_vm3, %v243_v37  ;;  %384 = vst.msk [vmem:[%s774_s3 + $0x88] sm:$0xff] %vm366_vm3, %v307_v38 }
  0xe5   :  { %v466_v39 = vpop.f32.mrb[4].mxu0  ;;  %v482_v40 = vpop.f32.mrb[4].mxu1 }
  0xe6   :  { %v264_v41 = vadd.f32 %v466_v39, %v609_v22  ;;  %v328_v42 = vadd.f32 %v482_v40, %v609_v22  ;;  %v255_v43 = vpop.f32.mrb[5].mxu0  ;;  %v319_v44 = vpop.f32.mrb[5].mxu1 }
  0xe7   :  { %v256_v45 = vadd.f32 %v609_v22, %v255_v43  ;;  %v320_v46 = vadd.f32 %v609_v22, %v319_v44  ;;  %v467_v47 = vpop.f32.mrb[6].mxu0  ;;  %v483_v48 = vpop.f32.mrb[6].mxu1 }
  0xe8   :  { %373 = vst.msk [vmem:[%s774_s3 + $0x30] sm:$0xff] %vm366_vm3, %v264_v41  ;;  %389 = vst.msk [vmem:[%s774_s3 + $0xb0] sm:$0xff] %vm366_vm3, %v328_v42  ;;  %v267_v49 = vadd.f32 %v467_v47, %v609_v22  ;;  %v331_v50 = vadd.f32 %v483_v48, %v609_v22  ;;  %v258_v51 = vpop.f32.mrb[7].mxu0  ;;  %v322_v52 = vpop.f32.mrb[7].mxu1 }
  0xe9   :  { %371 = vst.msk [vmem:[%s774_s3 + $0x20] sm:$0xff] %vm366_vm3, %v256_v45  ;;  %387 = vst.msk [vmem:[%s774_s3 + $0xa0] sm:$0xff] %vm366_vm3, %v320_v46  ;;  %v259_v53 = vadd.f32 %v609_v22, %v258_v51  ;;  %v323_v54 = vadd.f32 %v609_v22, %v322_v52 }
  0xea   :  { %374 = vst.msk [vmem:[%s774_s3 + $0x38] sm:$0xff] %vm366_vm3, %v267_v49  ;;  %390 = vst.msk [vmem:[%s774_s3 + $0xb8] sm:$0xff] %vm366_vm3, %v331_v50 }
  0xeb   :  { %372 = vst.msk [vmem:[%s774_s3 + $0x28] sm:$0xff] %vm366_vm3, %v259_v53  ;;  %388 = vst.msk [vmem:[%s774_s3 + $0xa8] sm:$0xff] %vm366_vm3, %v323_v54 }
  0xed   :  { %v470_v55 = vpop.f32.mrb[8].mxu0  ;;  %v486_v56 = vpop.f32.mrb[8].mxu1 }
  0xee   :  { %v280_v57 = vadd.f32 %v470_v55, %v609_v22  ;;  %v344_v58 = vadd.f32 %v486_v56, %v609_v22  ;;  %v271_v59 = vpop.f32.mrb[9].mxu0  ;;  %v335_v60 = vpop.f32.mrb[9].mxu1 }
  0xef   :  { %v272_v61 = vadd.f32 %v609_v22, %v271_v59  ;;  %v336_v62 = vadd.f32 %v609_v22, %v335_v60  ;;  %v471_v63 = vpop.f32.mrb[10].mxu0  ;;  %v487_v0 = vpop.f32.mrb[10].mxu1 }
  0xf0   :  { %377 = vst.msk [vmem:[%s774_s3 + $0x50] sm:$0xff] %vm366_vm3, %v280_v57  ;;  %393 = vst.msk [vmem:[%s774_s3 + $0xd0] sm:$0xff] %vm366_vm3, %v344_v58  ;;  %v283_v1 = vadd.f32 %v471_v63, %v609_v22  ;;  %v347_v2 = vadd.f32 %v487_v0, %v609_v22  ;;  %v274_v3 = vpop.f32.mrb[11].mxu0  ;;  %v338_v4 = vpop.f32.mrb[11].mxu1 }
  0xf1   :  { %375 = vst.msk [vmem:[%s774_s3 + $0x40] sm:$0xff] %vm366_vm3, %v272_v61  ;;  %391 = vst.msk [vmem:[%s774_s3 + $0xc0] sm:$0xff] %vm366_vm3, %v336_v62  ;;  %v275_v5 = vadd.f32 %v609_v22, %v274_v3  ;;  %v339_v6 = vadd.f32 %v609_v22, %v338_v4 }
  0xf2   :  { %378 = vst.msk [vmem:[%s774_s3 + $0x58] sm:$0xff] %vm366_vm3, %v283_v1  ;;  %394 = vst.msk [vmem:[%s774_s3 + $0xd8] sm:$0xff] %vm366_vm3, %v347_v2 }
  0xf3   :  { %376 = vst.msk [vmem:[%s774_s3 + $0x48] sm:$0xff] %vm366_vm3, %v275_v5  ;;  %392 = vst.msk [vmem:[%s774_s3 + $0xc8] sm:$0xff] %vm366_vm3, %v339_v6 }
  0xf5   :  { %v474_v7 = vpop.f32.mrb[12].mxu0  ;;  %v490_v8 = vpop.f32.mrb[12].mxu1 }
  0xf6   :  { %v296_v9 = vadd.f32 %v474_v7, %v609_v22  ;;  %v360_v10 = vadd.f32 %v490_v8, %v609_v22  ;;  %v287_v11 = vpop.f32.mrb[13].mxu0  ;;  %v351_v12 = vpop.f32.mrb[13].mxu1 }
  0xf7   :  { %v288_v13 = vadd.f32 %v609_v22, %v287_v11  ;;  %v352_v14 = vadd.f32 %v609_v22, %v351_v12  ;;  %v475_v15 = vpop.f32.mrb[14].mxu0  ;;  %v491_v16 = vpop.f32.mrb[14].mxu1 }
  0xf8   :  { %381 = vst.msk [vmem:[%s774_s3 + $0x70] sm:$0xff] %vm366_vm3, %v296_v9  ;;  %397 = vst.msk [vmem:[%s774_s3 + $0xf0] sm:$0xff] %vm366_vm3, %v360_v10  ;;  %v299_v17 = vadd.f32 %v475_v15, %v609_v22  ;;  %v363_v18 = vadd.f32 %v491_v16, %v609_v22  ;;  %v290_v19 = vpop.f32.mrb[15].mxu0  ;;  %v354_v20 = vpop.f32.mrb[15].mxu1 }
  0xf9   :  { %379 = vst.msk [vmem:[%s774_s3 + $0x60] sm:$0xff] %vm366_vm3, %v288_v13  ;;  %395 = vst.msk [vmem:[%s774_s3 + $0xe0] sm:$0xff] %vm366_vm3, %v352_v14  ;;  %v291_v21 = vadd.f32 %v609_v22, %v290_v19  ;;  %v355_v23 = vadd.f32 %v609_v22, %v354_v20 }
  0xfa   :  { %382 = vst.msk [vmem:[%s774_s3 + $0x78] sm:$0xff] %vm366_vm3, %v299_v17  ;;  %398 = vst.msk [vmem:[%s774_s3 + $0xf8] sm:$0xff] %vm366_vm3, %v363_v18 }
  0xfb   :  { %380 = vst.msk [vmem:[%s774_s3 + $0x68] sm:$0xff] %vm366_vm3, %v291_v21  ;;  %396 = vst.msk [vmem:[%s774_s3 + $0xe8] sm:$0xff] %vm366_vm3, %v355_v23 }

// kernel: drn_forward.15
= control target key start
LH: loop header
LB: loop body
LE: loop exit
PB: predicated region body
PF: predicated region fallthrough
CT: control target
= control target key end

     0   :  { %v314_v0 = vmov 0   ;;  %vm138_vm0 = vcmask 130048   ;;  %s425_s1 = inlined_call_operand.vmem [shape: bf16[144,16], index: 1, kind: input, shape index: {}]   ;;  %s426_s0 = inlined_call_operand.vmem [shape: bf16[64,144], index: 0, kind: input, shape index: {}]   ;;  %s427_s2 = inlined_call_operand.vmem [shape: f32[1,16], index: 2, kind: input, shape index: {}]   ;;  %s428_s3 = inlined_call_operand.vmem [shape: f32[64,16], index: 3, kind: output, shape index: {}]  }
   0x1   :  { %151 = vmatprep.subr.bf16.mxu0 %v314_v0  ;;  %274 = vmatprep.subr.bf16.mxu1 %v314_v0  ;;  %v293_v1 = vld [vmem:[%s425_s1] sm:$0xff]   ;;  %v294_v2 = vld [vmem:[%s425_s1 + $0x8] sm:$0xff]   ;;  %v295_v3 = vld [vmem:[%s425_s1 + $0x10] sm:$0xff]  }
   0x2   :  { %152 = vmatpush1.bf16.msra.mxu0 %v293_v1  ;;  %283 = vmatpush1.bf16.msra.mxu1 %v293_v1  ;;  %v296_v4 = vld [vmem:[%s425_s1 + $0x18] sm:$0xff]   ;;  %v304_v5 = vld [vmem:[%s426_s0 + $0x4] ss:$8 sps:$4 sm:$0xff]   ;;  %v299_v9 = vld [vmem:[%s425_s1 + $0x30] sm:$0xff]  }
   0x3   :  { %153 = vmatprep.subr.bf16.mxu0 %v314_v0  ;;  %275 = vmatprep.subr.bf16.mxu1 %v314_v0  ;;  %v307_v6 = vld [vmem:[%s426_s0 + $0x24] ss:$8 sps:$4 sm:$0xff]   ;;  %v300_v10 = vld [vmem:[%s425_s1 + $0x38] sm:$0xff]   ;;  %v302_v12 = vld [vmem:[%s426_s0] ss:$8 sps:$4 sm:$0xff]  }
   0x4   :  { %270 = vmatprep.mubr.msk.bf16.mxu0 %vm138_vm0, %v304_v5  ;;  %272 = vmatprep.mubr.msk.bf16.mxu1 %vm138_vm0, %v307_v6  ;;  %v297_v7 = vld [vmem:[%s425_s1 + $0x20] sm:$0xff]   ;;  %v298_v8 = vld [vmem:[%s425_s1 + $0x28] sm:$0xff]   ;;  %v308_v14 = vld [vmem:[%s426_s0 + $0x14] ss:$8 sps:$4 sm:$0xff]  }
   0x5   :  { %v301_v11 = vld [vmem:[%s425_s1 + $0x40] sm:$0xff]   ;;  %v310_v15 = vld [vmem:[%s426_s0 + $0x34] ss:$8 sps:$4 sm:$0xff]   ;;  %v312_v16 = vld [vmem:[%s426_s0 + $0x10] ss:$8 sps:$4 sm:$0xff]  }
   0x6   :  { %154 = vmatpush1.bf16.msra.mxu0 %v294_v2  ;;  %284 = vmatpush1.bf16.msra.mxu1 %v294_v2  ;;  %v305_v13 = vld [vmem:[%s426_s0 + $0x20] ss:$8 sps:$4 sm:$0xff]   ;;  %v313_v17 = vld [vmem:[%s426_s0 + $0x30] ss:$8 sps:$4 sm:$0xff]  }
   0x7   :  { %155 = vmatprep.subr.bf16.mxu0 %v314_v0  ;;  %276 = vmatprep.subr.bf16.mxu1 %v314_v0  ;;  %v252_v18 = vld [vmem:[%s427_s2] ss:$0 sm:$0xff] }
   0xa   :  { %156 = vmatpush1.bf16.msra.mxu0 %v295_v3  ;;  %285 = vmatpush1.bf16.msra.mxu1 %v295_v3 }
   0xb   :  { %157 = vmatprep.subr.bf16.mxu0 %v314_v0  ;;  %277 = vmatprep.subr.bf16.mxu1 %v314_v0 }
   0xe   :  { %158 = vmatpush1.bf16.msra.mxu0 %v296_v4  ;;  %286 = vmatpush1.bf16.msra.mxu1 %v296_v4 }
   0xf   :  { %159 = vmatprep.subr.bf16.mxu0 %v314_v0  ;;  %278 = vmatprep.subr.bf16.mxu1 %v314_v0 }
  0x12   :  { %160 = vmatpush1.bf16.msra.mxu0 %v297_v7  ;;  %287 = vmatpush1.bf16.msra.mxu1 %v297_v7 }
  0x13   :  { %161 = vmatprep.subr.bf16.mxu0 %v314_v0  ;;  %279 = vmatprep.subr.bf16.mxu1 %v314_v0 }
  0x16   :  { %162 = vmatpush1.bf16.msra.mxu0 %v298_v8  ;;  %288 = vmatpush1.bf16.msra.mxu1 %v298_v8 }
  0x17   :  { %163 = vmatprep.subr.bf16.mxu0 %v314_v0  ;;  %280 = vmatprep.subr.bf16.mxu1 %v314_v0 }
  0x1a   :  { %164 = vmatpush1.bf16.msra.mxu0 %v299_v9  ;;  %289 = vmatpush1.bf16.msra.mxu1 %v299_v9 }
  0x1b   :  { %165 = vmatprep.subr.bf16.mxu0 %v314_v0  ;;  %281 = vmatprep.subr.bf16.mxu1 %v314_v0 }
  0x1e   :  { %166 = vmatpush1.bf16.msra.mxu0 %v300_v10  ;;  %290 = vmatpush1.bf16.msra.mxu1 %v300_v10 }
  0x1f   :  { %167 = vmatprep.subr.bf16.mxu0 %v314_v0  ;;  %282 = vmatprep.subr.bf16.mxu1 %v314_v0 }
  0x22   :  { %168 = vmatpush1.bf16.msra.mxu0 %v301_v11  ;;  %291 = vmatpush1.bf16.msra.mxu1 %v301_v11 }
  0x25   :  { %184 = vmatmul.mubr.bf16.vlgmr.msra.gmra.mrb[0].mxu0 %v302_v12  ;;  %200 = vmatmul.mubr.bf16.vlgmr.msra.gmra.mrb[0].mxu1 %v305_v13 }
  0x26   :  { %271 = vmatprep.mubr.msk.bf16.mxu0 %vm138_vm0, %v308_v14  ;;  %273 = vmatprep.mubr.msk.bf16.mxu1 %vm138_vm0, %v310_v15 }
  0x2d   :  { %192 = vmatmul.mubr.bf16.gmra.mrb[4].mxu0 %v312_v16  ;;  %208 = vmatmul.mubr.bf16.gmra.mrb[4].mxu1 %v313_v17 }
  0xf8   :  { %v185_v19 = vpop.f32.mrb[0].mxu0  ;;  %v201_v20 = vpop.f32.mrb[0].mxu1 }
  0xf9   :  { %v186_v21 = vadd.f32 %v252_v18, %v185_v19  ;;  %v202_v22 = vadd.f32 %v252_v18, %v201_v20  ;;  %v187_v23 = vpop.f32.mrb[1].mxu0  ;;  %v203_v24 = vpop.f32.mrb[1].mxu1 }
  0xfa   :  { %v188_v25 = vpop.f32.mrb[2].mxu0  ;;  %v204_v26 = vpop.f32.mrb[2].mxu1 }
  0xfb   :  { %vm216_vm1 = vcmp.ge.f32.partialorder %v186_v21, 0.0  ;;  %v224_v27 = vmul.f32 0.2, %v186_v21  ;;  %vm220_vm2 = vcmp.ge.f32.partialorder %v202_v22, 0.0  ;;  %v228_v28 = vmul.f32 0.2, %v202_v22 }
  0xfc   :  { %v189_v29 = vadd.f32 %v252_v18, %v188_v25  ;;  %v205_v30 = vadd.f32 %v252_v18, %v204_v26  ;;  %v190_v31 = vpop.f32.mrb[3].mxu0  ;;  %v206_v32 = vpop.f32.mrb[3].mxu1 }
  0xfd   :  { %v232_v33 = vsel %vm216_vm1, %v186_v21, %v224_v27  ;;  %v236_v34 = vsel %vm220_vm2, %v202_v22, %v228_v28 }
  0xfe   :  { %240 = vst.msk [vmem:[%s428_s3] sm:$0xff] %vm138_vm0, %v232_v33  ;;  %244 = vst.msk [vmem:[%s428_s3 + $0x20] sm:$0xff] %vm138_vm0, %v236_v34  ;;  %vm217_vm3 = vcmp.ge.f32.partialorder %v189_v29, 0.0  ;;  %v225_v35 = vmul.f32 0.2, %v189_v29  ;;  %vm221_vm4 = vcmp.ge.f32.partialorder %v205_v30, 0.0 }
  0xff   :  { %v229_v36 = vmul.f32 0.2, %v205_v30 }
 0x100   :  { %v233_v37 = vsel %vm217_vm3, %v189_v29, %v225_v35  ;;  %v193_v39 = vpop.f32.mrb[4].mxu0  ;;  %v209_v40 = vpop.f32.mrb[4].mxu1 }
 0x101   :  { %v237_v38 = vsel %vm221_vm4, %v205_v30, %v229_v36  ;;  %241 = vst.msk [vmem:[%s428_s3 + $0x8] sm:$0xff] %vm138_vm0, %v233_v37  ;;  %v194_v41 = vadd.f32 %v252_v18, %v193_v39  ;;  %v210_v42 = vadd.f32 %v252_v18, %v209_v40  ;;  %v195_v43 = vpop.f32.mrb[5].mxu0  ;;  %v211_v44 = vpop.f32.mrb[5].mxu1 }
 0x102   :  { %245 = vst.msk [vmem:[%s428_s3 + $0x28] sm:$0xff] %vm138_vm0, %v237_v38  ;;  %v196_v45 = vpop.f32.mrb[6].mxu0  ;;  %v212_v46 = vpop.f32.mrb[6].mxu1 }
 0x103   :  { %vm218_vm5 = vcmp.ge.f32.partialorder %v194_v41, 0.0  ;;  %v226_v47 = vmul.f32 0.2, %v194_v41  ;;  %vm222_vm6 = vcmp.ge.f32.partialorder %v210_v42, 0.0  ;;  %v230_v48 = vmul.f32 0.2, %v210_v42 }
 0x104   :  { %v197_v49 = vadd.f32 %v252_v18, %v196_v45  ;;  %v213_v50 = vadd.f32 %v252_v18, %v212_v46  ;;  %v198_v51 = vpop.f32.mrb[7].mxu0  ;;  %v214_v52 = vpop.f32.mrb[7].mxu1 }
 0x105   :  { %v234_v53 = vsel %vm218_vm5, %v194_v41, %v226_v47  ;;  %v238_v54 = vsel %vm222_vm6, %v210_v42, %v230_v48 }
 0x106   :  { %242 = vst.msk [vmem:[%s428_s3 + $0x10] sm:$0xff] %vm138_vm0, %v234_v53  ;;  %246 = vst.msk [vmem:[%s428_s3 + $0x30] sm:$0xff] %vm138_vm0, %v238_v54  ;;  %vm219_vm7 = vcmp.ge.f32.partialorder %v197_v49, 0.0  ;;  %v227_v55 = vmul.f32 0.2, %v197_v49  ;;  %vm223_vm8 = vcmp.ge.f32.partialorder %v213_v50, 0.0 }
 0x107   :  { %v231_v56 = vmul.f32 0.2, %v213_v50 }
 0x108   :  { %v235_v57 = vsel %vm219_vm7, %v197_v49, %v227_v55 }
 0x109   :  { %v239_v58 = vsel %vm223_vm8, %v213_v50, %v231_v56  ;;  %243 = vst.msk [vmem:[%s428_s3 + $0x18] sm:$0xff] %vm138_vm0, %v235_v57 }
 0x10a   :  { %247 = vst.msk [vmem:[%s428_s3 + $0x38] sm:$0xff] %vm138_vm0, %v239_v58 }

// kernel: drn_forward.16
= control target key start
LH: loop header
LB: loop body
LE: loop exit
PB: predicated region body
PF: predicated region fallthrough
CT: control target
= control target key end

     0   :  { %v291_v0 = vmov 0   ;;  %vm138_vm0 = vcmask 130048   ;;  %vm216_vm1 = vcmask 261120   ;;  %s402_s1 = inlined_call_operand.vmem [shape: bf16[144,32], index: 1, kind: input, shape index: {}]   ;;  %s403_s0 = inlined_call_operand.vmem [shape: bf16[64,144], index: 0, kind: input, shape index: {}]   ;;  %s404_s2 = inlined_call_operand.vmem [shape: f32[1,32], index: 2, kind: input, shape index: {}]   ;;  %s405_s3 = inlined_call_operand.vmem [shape: f32[64,32], index: 3, kind: output, shape index: {}]  }
   0x1   :  { %151 = vmatprep.subr.bf16.mxu0 %v291_v0  ;;  %251 = vmatprep.subr.bf16.mxu1 %v291_v0  ;;  %v270_v1 = vld [vmem:[%s402_s1] sm:$0xff]   ;;  %v271_v2 = vld [vmem:[%s402_s1 + $0x8] sm:$0xff]   ;;  %v272_v3 = vld [vmem:[%s402_s1 + $0x10] sm:$0xff]  }
   0x2   :  { %152 = vmatpush1.bf16.msra.mxu0 %v270_v1  ;;  %260 = vmatpush1.bf16.msra.mxu1 %v270_v1  ;;  %v273_v4 = vld [vmem:[%s402_s1 + $0x18] sm:$0xff]   ;;  %v281_v5 = vld [vmem:[%s403_s0 + $0x4] ss:$8 sps:$4 sm:$0xff]   ;;  %v276_v9 = vld [vmem:[%s402_s1 + $0x30] sm:$0xff]  }
   0x3   :  { %153 = vmatprep.subr.bf16.mxu0 %v291_v0  ;;  %252 = vmatprep.subr.bf16.mxu1 %v291_v0  ;;  %v284_v6 = vld [vmem:[%s403_s0 + $0x24] ss:$8 sps:$4 sm:$0xff]   ;;  %v277_v10 = vld [vmem:[%s402_s1 + $0x38] sm:$0xff]   ;;  %v279_v12 = vld [vmem:[%s403_s0] ss:$8 sps:$4 sm:$0xff]  }
   0x4   :  { %247 = vmatprep.mubr.msk.bf16.mxu0 %vm138_vm0, %v281_v5  ;;  %249 = vmatprep.mubr.msk.bf16.mxu1 %vm138_vm0, %v284_v6  ;;  %v274_v7 = vld [vmem:[%s402_s1 + $0x20] sm:$0xff]   ;;  %v275_v8 = vld [vmem:[%s402_s1 + $0x28] sm:$0xff]   ;;  %v285_v14 = vld [vmem:[%s403_s0 + $0x14] ss:$8 sps:$4 sm:$0xff]  }
   0x5   :  { %v278_v11 = vld [vmem:[%s402_s1 + $0x40] sm:$0xff]   ;;  %v287_v15 = vld [vmem:[%s403_s0 + $0x34] ss:$8 sps:$4 sm:$0xff]   ;;  %v289_v16 = vld [vmem:[%s403_s0 + $0x10] ss:$8 sps:$4 sm:$0xff]  }
   0x6   :  { %154 = vmatpush1.bf16.msra.mxu0 %v271_v2  ;;  %261 = vmatpush1.bf16.msra.mxu1 %v271_v2  ;;  %v282_v13 = vld [vmem:[%s403_s0 + $0x20] ss:$8 sps:$4 sm:$0xff]   ;;  %v290_v17 = vld [vmem:[%s403_s0 + $0x30] ss:$8 sps:$4 sm:$0xff]  }
   0x7   :  { %155 = vmatprep.subr.bf16.mxu0 %v291_v0  ;;  %253 = vmatprep.subr.bf16.mxu1 %v291_v0  ;;  %v229_v18 = vld [vmem:[%s404_s2] ss:$0 sm:$0xff] }
   0xa   :  { %156 = vmatpush1.bf16.msra.mxu0 %v272_v3  ;;  %262 = vmatpush1.bf16.msra.mxu1 %v272_v3 }
   0xb   :  { %157 = vmatprep.subr.bf16.mxu0 %v291_v0  ;;  %254 = vmatprep.subr.bf16.mxu1 %v291_v0 }
   0xe   :  { %158 = vmatpush1.bf16.msra.mxu0 %v273_v4  ;;  %263 = vmatpush1.bf16.msra.mxu1 %v273_v4 }
   0xf   :  { %159 = vmatprep.subr.bf16.mxu0 %v291_v0  ;;  %255 = vmatprep.subr.bf16.mxu1 %v291_v0 }
  0x12   :  { %160 = vmatpush1.bf16.msra.mxu0 %v274_v7  ;;  %264 = vmatpush1.bf16.msra.mxu1 %v274_v7 }
  0x13   :  { %161 = vmatprep.subr.bf16.mxu0 %v291_v0  ;;  %256 = vmatprep.subr.bf16.mxu1 %v291_v0 }
  0x16   :  { %162 = vmatpush1.bf16.msra.mxu0 %v275_v8  ;;  %265 = vmatpush1.bf16.msra.mxu1 %v275_v8 }
  0x17   :  { %163 = vmatprep.subr.bf16.mxu0 %v291_v0  ;;  %257 = vmatprep.subr.bf16.mxu1 %v291_v0 }
  0x1a   :  { %164 = vmatpush1.bf16.msra.mxu0 %v276_v9  ;;  %266 = vmatpush1.bf16.msra.mxu1 %v276_v9 }
  0x1b   :  { %165 = vmatprep.subr.bf16.mxu0 %v291_v0  ;;  %258 = vmatprep.subr.bf16.mxu1 %v291_v0 }
  0x1e   :  { %166 = vmatpush1.bf16.msra.mxu0 %v277_v10  ;;  %267 = vmatpush1.bf16.msra.mxu1 %v277_v10 }
  0x1f   :  { %167 = vmatprep.subr.bf16.mxu0 %v291_v0  ;;  %259 = vmatprep.subr.bf16.mxu1 %v291_v0 }
  0x22   :  { %168 = vmatpush1.bf16.msra.mxu0 %v278_v11  ;;  %268 = vmatpush1.bf16.msra.mxu1 %v278_v11 }
  0x25   :  { %184 = vmatmul.mubr.bf16.vlgmr.msra.gmra.mrb[0].mxu0 %v279_v12  ;;  %200 = vmatmul.mubr.bf16.vlgmr.msra.gmra.mrb[0].mxu1 %v282_v13 }
  0x26   :  { %248 = vmatprep.mubr.msk.bf16.mxu0 %vm138_vm0, %v285_v14  ;;  %250 = vmatprep.mubr.msk.bf16.mxu1 %vm138_vm0, %v287_v15 }
  0x2d   :  { %192 = vmatmul.mubr.bf16.gmra.mrb[4].mxu0 %v289_v16  ;;  %208 = vmatmul.mubr.bf16.gmra.mrb[4].mxu1 %v290_v17 }
  0xf8   :  { %v185_v19 = vpop.f32.mrb[0].mxu0  ;;  %v201_v20 = vpop.f32.mrb[0].mxu1 }
  0xf9   :  { %v186_v21 = vadd.f32 %v229_v18, %v185_v19  ;;  %v202_v22 = vadd.f32 %v229_v18, %v201_v20  ;;  %v187_v23 = vpop.f32.mrb[1].mxu0  ;;  %v203_v24 = vpop.f32.mrb[1].mxu1 }
  0xfa   :  { %v188_v25 = vpop.f32.mrb[2].mxu0  ;;  %v204_v26 = vpop.f32.mrb[2].mxu1 }
  0xfb   :  { %217 = vst.msk [vmem:[%s405_s3] sm:$0xff] %vm216_vm1, %v186_v21  ;;  %221 = vst.msk [vmem:[%s405_s3 + $0x20] sm:$0xff] %vm216_vm1, %v202_v22  ;;  %v189_v27 = vadd.f32 %v229_v18, %v188_v25  ;;  %v205_v28 = vadd.f32 %v229_v18, %v204_v26  ;;  %v190_v29 = vpop.f32.mrb[3].mxu0  ;;  %v206_v30 = vpop.f32.mrb[3].mxu1 }
  0xfd   :  { %218 = vst.msk [vmem:[%s405_s3 + $0x8] sm:$0xff] %vm216_vm1, %v189_v27  ;;  %222 = vst.msk [vmem:[%s405_s3 + $0x28] sm:$0xff] %vm216_vm1, %v205_v28 }
 0x100   :  { %v193_v31 = vpop.f32.mrb[4].mxu0  ;;  %v209_v32 = vpop.f32.mrb[4].mxu1 }
 0x101   :  { %v194_v33 = vadd.f32 %v229_v18, %v193_v31  ;;  %v210_v34 = vadd.f32 %v229_v18, %v209_v32  ;;  %v195_v35 = vpop.f32.mrb[5].mxu0  ;;  %v211_v36 = vpop.f32.mrb[5].mxu1 }
 0x102   :  { %v196_v37 = vpop.f32.mrb[6].mxu0  ;;  %v212_v38 = vpop.f32.mrb[6].mxu1 }
 0x103   :  { %219 = vst.msk [vmem:[%s405_s3 + $0x10] sm:$0xff] %vm216_vm1, %v194_v33  ;;  %223 = vst.msk [vmem:[%s405_s3 + $0x30] sm:$0xff] %vm216_vm1, %v210_v34  ;;  %v197_v39 = vadd.f32 %v229_v18, %v196_v37  ;;  %v213_v40 = vadd.f32 %v229_v18, %v212_v38  ;;  %v198_v41 = vpop.f32.mrb[7].mxu0  ;;  %v214_v42 = vpop.f32.mrb[7].mxu1 }
 0x105   :  { %220 = vst.msk [vmem:[%s405_s3 + $0x18] sm:$0xff] %vm216_vm1, %v197_v39  ;;  %224 = vst.msk [vmem:[%s405_s3 + $0x38] sm:$0xff] %vm216_vm1, %v213_v40 }

// kernel: drn_forward.17
= control target key start
LH: loop header
LB: loop body
LE: loop exit
PB: predicated region body
PF: predicated region fallthrough
CT: control target
= control target key end

     0   :  { %vm242_vm0 = vcmask 261120   ;;  %vm385_vm1 = vcmask 23552   ;;  %s690_s1 = inlined_call_operand.vmem [shape: bf16[288,3], index: 1, kind: input, shape index: {}]   ;;  %s691_s0 = inlined_call_operand.vmem [shape: bf16[64,288], index: 0, kind: input, shape index: {}]   ;;  %s692_s2 = inlined_call_operand.vmem [shape: f32[1,3], index: 2, kind: input, shape index: {}]   ;;  %s693_s3 = inlined_call_operand.vmem [shape: f32[64,3], index: 3, kind: output, shape index: {}]  }
   0x1   :  { %v507_v0 = vld [vmem:[%s690_s1 + $0x40] sm:$0xff]   ;;  %v509_v2 = vld [vmem:[%s690_s1 + $0x48] sm:$0xff]   ;;  %v511_v4 = vld [vmem:[%s690_s1 + $0x50] sm:$0xff]  }
   0x2   :  { %v508_v1 = vld [vmem:[%s690_s1] sm:$0xff]   ;;  %433 = vmatprep.subr.bf16.mxu0 %v507_v0  ;;  %491 = vmatprep.subr.bf16.mxu1 %v507_v0  ;;  %v510_v3 = vld [vmem:[%s690_s1 + $0x8] sm:$0xff]   ;;  %v512_v5 = vld [vmem:[%s690_s1 + $0x10] sm:$0xff]  }
   0x3   :  { %434 = vmatpush3.bf16.msra.mxu0 %v508_v1  ;;  %499 = vmatpush3.bf16.msra.mxu1 %v508_v1  ;;  %v513_v6 = vld [vmem:[%s690_s1 + $0x58] sm:$0xff]   ;;  %v515_v8 = vld [vmem:[%s690_s1 + $0x60] sm:$0xff]   ;;  %v517_v10 = vld [vmem:[%s690_s1 + $0x68] sm:$0xff]  }
   0x4   :  { %435 = vmatprep.subr.bf16.mxu0 %v509_v2  ;;  %492 = vmatprep.subr.bf16.mxu1 %v509_v2  ;;  %v514_v7 = vld [vmem:[%s690_s1 + $0x18] sm:$0xff]   ;;  %v516_v9 = vld [vmem:[%s690_s1 + $0x20] sm:$0xff]   ;;  %v518_v13 = vld [vmem:[%s690_s1 + $0x28] sm:$0xff]  }
   0x5   :  { %v525_v11 = vld [vmem:[%s691_s0 + $0x4] ss:$12 sps:$4 sm:$0xff]   ;;  %v528_v12 = vld [vmem:[%s691_s0 + $0x4c] ss:$12 sps:$4 sm:$0xff]   ;;  %v526_v20 = vld [vmem:[%s691_s0 + $0x48] ss:$12 sps:$4 sm:$0xff]  }
   0x6   :  { %v519_v14 = vld [vmem:[%s690_s1 + $0x70] sm:$0xff]   ;;  %287 = vmatprep.mubr.bf16.mxu0 %v525_v11  ;;  %311 = vmatprep.mubr.bf16.mxu1 %v528_v12  ;;  %v521_v16 = vld [vmem:[%s690_s1 + $0x78] sm:$0xff]   ;;  %v529_v18 = vld [vmem:[%s690_s1 + $0x80] sm:$0xff]  }
   0x7   :  { %436 = vmatpush3.bf16.msra.mxu0 %v510_v3  ;;  %500 = vmatpush3.bf16.msra.mxu1 %v510_v3  ;;  %v520_v15 = vld [vmem:[%s690_s1 + $0x30] sm:$0xff]   ;;  %v522_v17 = vld [vmem:[%s690_s1 + $0x38] sm:$0xff]   ;;  %v523_v19 = vld [vmem:[%s691_s0] ss:$12 sps:$4 sm:$0xff]  }
   0x8   :  { %437 = vmatprep.subr.bf16.mxu0 %v511_v4  ;;  %493 = vmatprep.subr.bf16.mxu1 %v511_v4  ;;  %v531_v21 = vld [vmem:[%s691_s0 + $0x1c] ss:$12 sps:$4 sm:$0xff]   ;;  %v534_v24 = vld [vmem:[%s691_s0 + $0x18] ss:$12 sps:$4 sm:$0xff]   ;;  %v535_v25 = vld [vmem:[%s691_s0 + $0x20] ss:$12 sps:$4 sm:$0xff]  }
   0x9   :  { %v530_v22 = vld [vmem:[%s690_s1 + $0x88] sm:$0xff]   ;;  %v536_v26 = vld [vmem:[%s691_s0 + $0x34] ss:$12 sps:$4 sm:$0xff]   ;;  %v538_v27 = vld [vmem:[%s691_s0 + $0x38] ss:$12 sps:$4 sm:$0xff]  }
   0xa   :  { %v533_v23 = vld [vmem:[%s691_s0 + $0x8] ss:$12 sps:$4 sm:$0xff]   ;;  %v539_v28 = vld [vmem:[%s691_s0 + $0x30] ss:$12 sps:$4 sm:$0xff]   ;;  %v398_v42 = vld [vmem:[%s692_s2] ss:$0 sm:$0xff] }
   0xb   :  { %438 = vmatpush3.bf16.msra.mxu0 %v512_v5  ;;  %501 = vmatpush3.bf16.msra.mxu1 %v512_v5  ;;  %v540_v29 = vld [vmem:[%s691_s0 + $0x50] ss:$12 sps:$4 sm:$0xff]  }
   0xc   :  { %439 = vmatprep.subr.bf16.mxu0 %v513_v6  ;;  %494 = vmatprep.subr.bf16.mxu1 %v513_v6 }
   0xf   :  { %440 = vmatpush3.bf16.msra.mxu0 %v514_v7  ;;  %502 = vmatpush3.bf16.msra.mxu1 %v514_v7 }
  0x10   :  { %441 = vmatprep.subr.bf16.mxu0 %v515_v8  ;;  %495 = vmatprep.subr.bf16.mxu1 %v515_v8 }
  0x13   :  { %442 = vmatpush3.bf16.msra.mxu0 %v516_v9  ;;  %503 = vmatpush3.bf16.msra.mxu1 %v516_v9 }
  0x14   :  { %443 = vmatprep.subr.bf16.mxu0 %v517_v10  ;;  %496 = vmatprep.subr.bf16.mxu1 %v517_v10 }
  0x17   :  { %444 = vmatpush3.bf16.msra.mxu0 %v518_v13  ;;  %504 = vmatpush3.bf16.msra.mxu1 %v518_v13 }
  0x18   :  { %445 = vmatprep.subr.bf16.mxu0 %v519_v14  ;;  %497 = vmatprep.subr.bf16.mxu1 %v519_v14 }
  0x1b   :  { %446 = vmatpush3.bf16.msra.mxu0 %v520_v15  ;;  %505 = vmatpush3.bf16.msra.mxu1 %v520_v15 }
  0x1c   :  { %447 = vmatprep.subr.bf16.mxu0 %v521_v16  ;;  %498 = vmatprep.subr.bf16.mxu1 %v521_v16 }
  0x1f   :  { %448 = vmatpush3.bf16.msra.mxu0 %v522_v17  ;;  %506 = vmatpush3.bf16.msra.mxu1 %v522_v17 }
  0x20   :  { %479 = vmatprep.subr.bf16.mxu1 %v529_v18 }
  0x22   :  { %288 = vmatmul.mubr.bf16.vlgmr.msra.gmra.mrb[0].mxu0 %v523_v19  ;;  %312 = vmatmul.mubr.bf16.vlgmr.msra.gmra.mrb[0].mxu1 %v526_v20 }
  0x23   :  { %480 = vmatpush3.bf16.msra.mxu1 %v529_v18  ;;  %295 = vmatprep.mubr.bf16.mxu0 %v531_v21 }
  0x24   :  { %481 = vmatprep.subr.bf16.mxu1 %v530_v22  ;;  %483 = vmatprep.mubr.msk.bf16.mxu1 %vm242_vm0, %v533_v23 }
  0x27   :  { %482 = vmatpush3.bf16.msra.mxu1 %v530_v22 }
  0x2a   :  { %296 = vmatmul.mubr.bf16.gmra.mrb[4].mxu0 %v534_v24  ;;  %484 = vmatmul.mubr.msk.bf16.vlgmr.msra.gmra.mrb[4].mxu1 %vm242_vm0, %v535_v25 }
  0x2b   :  { %303 = vmatprep.mubr.bf16.mxu0 %v536_v26  ;;  %487 = vmatprep.mubr.msk.bf16.mxu1 %vm242_vm0, %v538_v27 }
  0x32   :  { %304 = vmatmul.mubr.bf16.gmra.mrb[8].mxu0 %v539_v28  ;;  %488 = vmatmul.mubr.msk.bf16.gmra.mrb[8].mxu1 %vm242_vm0, %v540_v29 }
  0xf5   :  { %v449_v30 = vpop.f32.mrb[0].mxu0  ;;  %v467_v31 = vpop.f32.mrb[0].mxu1 }
  0xf6   :  { %v450_v32 = vpop.f32.mrb[1].mxu0  ;;  %v468_v33 = vpop.f32.mrb[1].mxu1 }
  0xf7   :  { %v451_v34 = vadd.f32 %v450_v32, %v449_v30  ;;  %v452_v35 = vpop.f32.mrb[2].mxu0  ;;  %v469_v36 = vadd.f32 %v468_v33, %v467_v31  ;;  %v470_v37 = vpop.f32.mrb[2].mxu1 }
  0xf8   :  { %v453_v38 = vpop.f32.mrb[3].mxu0  ;;  %v471_v39 = vpop.f32.mrb[3].mxu1 }
  0xf9   :  { %v454_v40 = vadd.f32 %v453_v38, %v452_v35  ;;  %v472_v41 = vadd.f32 %v471_v39, %v470_v37  ;;  %v290_v45 = vadd.f32 %v451_v34, %v398_v42  ;;  %v314_v60 = vadd.f32 %v469_v36, %v398_v42 }
  0xfb   :  { %v293_v52 = vadd.f32 %v454_v40, %v398_v42  ;;  %v317_v3 = vadd.f32 %v472_v41, %v398_v42 }
  0xfd   :  { %v455_v43 = vpop.f32.mrb[4].mxu0  ;;  %v485_v44 = vpop.f32.mrb[4].mxu1 }
  0xfe   :  { %v456_v46 = vpop.f32.mrb[5].mxu0  ;;  %v354_v47 = vpop.f32.mrb[5].mxu1 }
  0xff   :  { %v457_v48 = vadd.f32 %v456_v46, %v455_v43  ;;  %v355_v49 = vadd.f32 %v354_v47, %v290_v45  ;;  %v458_v50 = vpop.f32.mrb[6].mxu0  ;;  %v486_v51 = vpop.f32.mrb[6].mxu1 }
 0x100   :  { %v459_v53 = vpop.f32.mrb[7].mxu0  ;;  %v357_v54 = vpop.f32.mrb[7].mxu1 }
 0x101   :  { %v298_v55 = vadd.f32 %v457_v48, %v398_v42  ;;  %386 = vst.msk [vmem:[%s693_s3] sm:$0xff] %vm385_vm1, %v355_v49  ;;  %v460_v56 = vadd.f32 %v459_v53, %v458_v50  ;;  %v358_v57 = vadd.f32 %v357_v54, %v293_v52 }
 0x103   :  { %v363_v58 = vadd.f32 %v485_v44, %v298_v55  ;;  %v301_v59 = vadd.f32 %v460_v56, %v398_v42  ;;  %387 = vst.msk [vmem:[%s693_s3 + $0x8] sm:$0xff] %vm385_vm1, %v358_v57 }
 0x105   :  { %388 = vst.msk [vmem:[%s693_s3 + $0x10] sm:$0xff] %vm385_vm1, %v363_v58  ;;  %v366_v61 = vadd.f32 %v486_v51, %v301_v59  ;;  %v461_v62 = vpop.f32.mrb[8].mxu0  ;;  %v489_v63 = vpop.f32.mrb[8].mxu1 }
 0x106   :  { %v379_v0 = vadd.f32 %v489_v63, %v314_v60  ;;  %v462_v1 = vpop.f32.mrb[9].mxu0  ;;  %v370_v2 = vpop.f32.mrb[9].mxu1 }
 0x107   :  { %389 = vst.msk [vmem:[%s693_s3 + $0x18] sm:$0xff] %vm385_vm1, %v366_v61  ;;  %v463_v4 = vadd.f32 %v462_v1, %v461_v62  ;;  %v464_v5 = vpop.f32.mrb[10].mxu0  ;;  %v490_v6 = vpop.f32.mrb[10].mxu1 }
 0x108   :  { %392 = vst.msk [vmem:[%s693_s3 + $0x30] sm:$0xff] %vm385_vm1, %v379_v0  ;;  %v382_v7 = vadd.f32 %v490_v6, %v317_v3  ;;  %v465_v8 = vpop.f32.mrb[11].mxu0  ;;  %v373_v9 = vpop.f32.mrb[11].mxu1 }
 0x109   :  { %v306_v10 = vadd.f32 %v463_v4, %v398_v42  ;;  %v466_v11 = vadd.f32 %v465_v8, %v464_v5 }
 0x10a   :  { %393 = vst.msk [vmem:[%s693_s3 + $0x38] sm:$0xff] %vm385_vm1, %v382_v7 }
 0x10b   :  { %v371_v12 = vadd.f32 %v370_v2, %v306_v10  ;;  %v309_v13 = vadd.f32 %v466_v11, %v398_v42 }
 0x10d   :  { %390 = vst.msk [vmem:[%s693_s3 + $0x20] sm:$0xff] %vm385_vm1, %v371_v12  ;;  %v374_v14 = vadd.f32 %v373_v9, %v309_v13 }
 0x10f   :  { %391 = vst.msk [vmem:[%s693_s3 + $0x28] sm:$0xff] %vm385_vm1, %v374_v14 }

// kernel: drn_forward.18
= control target key start
LH: loop header
LB: loop body
LE: loop exit
PB: predicated region body
PF: predicated region fallthrough
CT: control target
= control target key end

     0   :  { %vm242_vm0 = vcmask 261120   ;;  %s697_s1 = inlined_call_operand.vmem [shape: bf16[288,32], index: 1, kind: input, shape index: {}]   ;;  %s698_s0 = inlined_call_operand.vmem [shape: bf16[64,288], index: 0, kind: input, shape index: {}]   ;;  %s699_s2 = inlined_call_operand.vmem [shape: f32[1,32], index: 2, kind: input, shape index: {}]   ;;  %s700_s3 = inlined_call_operand.vmem [shape: f32[64,32], index: 3, kind: output, shape index: {}]  }
   0x1   :  { %v514_v0 = vld [vmem:[%s697_s1 + $0x40] sm:$0xff]   ;;  %v516_v2 = vld [vmem:[%s697_s1 + $0x48] sm:$0xff]   ;;  %v518_v4 = vld [vmem:[%s697_s1 + $0x50] sm:$0xff]  }
   0x2   :  { %v515_v1 = vld [vmem:[%s697_s1] sm:$0xff]   ;;  %440 = vmatprep.subr.bf16.mxu0 %v514_v0  ;;  %498 = vmatprep.subr.bf16.mxu1 %v514_v0  ;;  %v517_v3 = vld [vmem:[%s697_s1 + $0x8] sm:$0xff]   ;;  %v519_v5 = vld [vmem:[%s697_s1 + $0x10] sm:$0xff]  }
   0x3   :  { %441 = vmatpush3.bf16.msra.mxu0 %v515_v1  ;;  %506 = vmatpush3.bf16.msra.mxu1 %v515_v1  ;;  %v520_v6 = vld [vmem:[%s697_s1 + $0x58] sm:$0xff]   ;;  %v522_v8 = vld [vmem:[%s697_s1 + $0x60] sm:$0xff]   ;;  %v524_v10 = vld [vmem:[%s697_s1 + $0x68] sm:$0xff]  }
   0x4   :  { %442 = vmatprep.subr.bf16.mxu0 %v516_v2  ;;  %499 = vmatprep.subr.bf16.mxu1 %v516_v2  ;;  %v521_v7 = vld [vmem:[%s697_s1 + $0x18] sm:$0xff]   ;;  %v523_v9 = vld [vmem:[%s697_s1 + $0x20] sm:$0xff]   ;;  %v525_v13 = vld [vmem:[%s697_s1 + $0x28] sm:$0xff]  }
   0x5   :  { %v532_v11 = vld [vmem:[%s698_s0 + $0x4] ss:$12 sps:$4 sm:$0xff]   ;;  %v535_v12 = vld [vmem:[%s698_s0 + $0x4c] ss:$12 sps:$4 sm:$0xff]   ;;  %v533_v20 = vld [vmem:[%s698_s0 + $0x48] ss:$12 sps:$4 sm:$0xff]  }
   0x6   :  { %v526_v14 = vld [vmem:[%s697_s1 + $0x70] sm:$0xff]   ;;  %287 = vmatprep.mubr.bf16.mxu0 %v532_v11  ;;  %311 = vmatprep.mubr.bf16.mxu1 %v535_v12  ;;  %v528_v16 = vld [vmem:[%s697_s1 + $0x78] sm:$0xff]   ;;  %v536_v18 = vld [vmem:[%s697_s1 + $0x80] sm:$0xff]  }
   0x7   :  { %443 = vmatpush3.bf16.msra.mxu0 %v517_v3  ;;  %507 = vmatpush3.bf16.msra.mxu1 %v517_v3  ;;  %v527_v15 = vld [vmem:[%s697_s1 + $0x30] sm:$0xff]   ;;  %v529_v17 = vld [vmem:[%s697_s1 + $0x38] sm:$0xff]   ;;  %v530_v19 = vld [vmem:[%s698_s0] ss:$12 sps:$4 sm:$0xff]  }
   0x8   :  { %444 = vmatprep.subr.bf16.mxu0 %v518_v4  ;;  %500 = vmatprep.subr.bf16.mxu1 %v518_v4  ;;  %v538_v21 = vld [vmem:[%s698_s0 + $0x1c] ss:$12 sps:$4 sm:$0xff]   ;;  %v541_v24 = vld [vmem:[%s698_s0 + $0x18] ss:$12 sps:$4 sm:$0xff]   ;;  %v542_v25 = vld [vmem:[%s698_s0 + $0x20] ss:$12 sps:$4 sm:$0xff]  }
   0x9   :  { %v537_v22 = vld [vmem:[%s697_s1 + $0x88] sm:$0xff]   ;;  %v543_v26 = vld [vmem:[%s698_s0 + $0x34] ss:$12 sps:$4 sm:$0xff]   ;;  %v545_v27 = vld [vmem:[%s698_s0 + $0x38] ss:$12 sps:$4 sm:$0xff]  }
   0xa   :  { %v540_v23 = vld [vmem:[%s698_s0 + $0x8] ss:$12 sps:$4 sm:$0xff]   ;;  %v546_v28 = vld [vmem:[%s698_s0 + $0x30] ss:$12 sps:$4 sm:$0xff]   ;;  %v405_v42 = vld [vmem:[%s699_s2] ss:$0 sm:$0xff] }
   0xb   :  { %445 = vmatpush3.bf16.msra.mxu0 %v519_v5  ;;  %508 = vmatpush3.bf16.msra.mxu1 %v519_v5  ;;  %v547_v29 = vld [vmem:[%s698_s0 + $0x50] ss:$12 sps:$4 sm:$0xff]  }
   0xc   :  { %446 = vmatprep.subr.bf16.mxu0 %v520_v6  ;;  %501 = vmatprep.subr.bf16.mxu1 %v520_v6 }
   0xf   :  { %447 = vmatpush3.bf16.msra.mxu0 %v521_v7  ;;  %509 = vmatpush3.bf16.msra.mxu1 %v521_v7 }
  0x10   :  { %448 = vmatprep.subr.bf16.mxu0 %v522_v8  ;;  %502 = vmatprep.subr.bf16.mxu1 %v522_v8 }
  0x13   :  { %449 = vmatpush3.bf16.msra.mxu0 %v523_v9  ;;  %510 = vmatpush3.bf16.msra.mxu1 %v523_v9 }
  0x14   :  { %450 = vmatprep.subr.bf16.mxu0 %v524_v10  ;;  %503 = vmatprep.subr.bf16.mxu1 %v524_v10 }
  0x17   :  { %451 = vmatpush3.bf16.msra.mxu0 %v525_v13  ;;  %511 = vmatpush3.bf16.msra.mxu1 %v525_v13 }
  0x18   :  { %452 = vmatprep.subr.bf16.mxu0 %v526_v14  ;;  %504 = vmatprep.subr.bf16.mxu1 %v526_v14 }
  0x1b   :  { %453 = vmatpush3.bf16.msra.mxu0 %v527_v15  ;;  %512 = vmatpush3.bf16.msra.mxu1 %v527_v15 }
  0x1c   :  { %454 = vmatprep.subr.bf16.mxu0 %v528_v16  ;;  %505 = vmatprep.subr.bf16.mxu1 %v528_v16 }
  0x1f   :  { %455 = vmatpush3.bf16.msra.mxu0 %v529_v17  ;;  %513 = vmatpush3.bf16.msra.mxu1 %v529_v17 }
  0x20   :  { %486 = vmatprep.subr.bf16.mxu1 %v536_v18 }
  0x22   :  { %288 = vmatmul.mubr.bf16.vlgmr.msra.gmra.mrb[0].mxu0 %v530_v19  ;;  %312 = vmatmul.mubr.bf16.vlgmr.msra.gmra.mrb[0].mxu1 %v533_v20 }
  0x23   :  { %487 = vmatpush3.bf16.msra.mxu1 %v536_v18  ;;  %295 = vmatprep.mubr.bf16.mxu0 %v538_v21 }
  0x24   :  { %488 = vmatprep.subr.bf16.mxu1 %v537_v22  ;;  %490 = vmatprep.mubr.msk.bf16.mxu1 %vm242_vm0, %v540_v23 }
  0x27   :  { %489 = vmatpush3.bf16.msra.mxu1 %v537_v22 }
  0x2a   :  { %296 = vmatmul.mubr.bf16.gmra.mrb[4].mxu0 %v541_v24  ;;  %491 = vmatmul.mubr.msk.bf16.vlgmr.msra.gmra.mrb[4].mxu1 %vm242_vm0, %v542_v25 }
  0x2b   :  { %303 = vmatprep.mubr.bf16.mxu0 %v543_v26  ;;  %494 = vmatprep.mubr.msk.bf16.mxu1 %vm242_vm0, %v545_v27 }
  0x32   :  { %304 = vmatmul.mubr.bf16.gmra.mrb[8].mxu0 %v546_v28  ;;  %495 = vmatmul.mubr.msk.bf16.gmra.mrb[8].mxu1 %vm242_vm0, %v547_v29 }
  0xf5   :  { %v456_v30 = vpop.f32.mrb[0].mxu0  ;;  %v474_v31 = vpop.f32.mrb[0].mxu1 }
  0xf6   :  { %v457_v32 = vpop.f32.mrb[1].mxu0  ;;  %v475_v33 = vpop.f32.mrb[1].mxu1 }
  0xf7   :  { %v458_v34 = vadd.f32 %v457_v32, %v456_v30  ;;  %v459_v35 = vpop.f32.mrb[2].mxu0  ;;  %v476_v36 = vadd.f32 %v475_v33, %v474_v31  ;;  %v477_v37 = vpop.f32.mrb[2].mxu1 }
  0xf8   :  { %v460_v38 = vpop.f32.mrb[3].mxu0  ;;  %v478_v39 = vpop.f32.mrb[3].mxu1 }
  0xf9   :  { %v461_v40 = vadd.f32 %v460_v38, %v459_v35  ;;  %v479_v41 = vadd.f32 %v478_v39, %v477_v37  ;;  %v290_v45 = vadd.f32 %v458_v34, %v405_v42  ;;  %v314_v62 = vadd.f32 %v476_v36, %v405_v42 }
  0xfb   :  { %v293_v52 = vadd.f32 %v461_v40, %v405_v42  ;;  %v317_v6 = vadd.f32 %v479_v41, %v405_v42 }
  0xfd   :  { %v462_v43 = vpop.f32.mrb[4].mxu0  ;;  %v492_v44 = vpop.f32.mrb[4].mxu1 }
  0xfe   :  { %v463_v46 = vpop.f32.mrb[5].mxu0  ;;  %v354_v47 = vpop.f32.mrb[5].mxu1 }
  0xff   :  { %v464_v48 = vadd.f32 %v463_v46, %v462_v43  ;;  %v355_v49 = vadd.f32 %v354_v47, %v290_v45  ;;  %v465_v50 = vpop.f32.mrb[6].mxu0  ;;  %v493_v51 = vpop.f32.mrb[6].mxu1 }
 0x100   :  { %v466_v53 = vpop.f32.mrb[7].mxu0  ;;  %v357_v54 = vpop.f32.mrb[7].mxu1 }
 0x101   :  { %v298_v55 = vadd.f32 %v464_v48, %v405_v42  ;;  %v385_v56 = vmax.f32 %v355_v49, 0.0  ;;  %v467_v57 = vadd.f32 %v466_v53, %v465_v50  ;;  %v358_v58 = vadd.f32 %v357_v54, %v293_v52 }
 0x103   :  { %v363_v59 = vadd.f32 %v492_v44, %v298_v55  ;;  %393 = vst.msk [vmem:[%s700_s3] sm:$0xff] %vm242_vm0, %v385_v56  ;;  %v301_v60 = vadd.f32 %v467_v57, %v405_v42  ;;  %v386_v61 = vmax.f32 %v358_v58, 0.0 }
 0x105   :  { %v387_v63 = vmax.f32 %v363_v59, 0.0  ;;  %v366_v0 = vadd.f32 %v493_v51, %v301_v60  ;;  %394 = vst.msk [vmem:[%s700_s3 + $0x8] sm:$0xff] %vm242_vm0, %v386_v61  ;;  %v468_v1 = vpop.f32.mrb[8].mxu0  ;;  %v496_v2 = vpop.f32.mrb[8].mxu1 }
 0x106   :  { %v379_v3 = vadd.f32 %v496_v2, %v314_v62  ;;  %v469_v4 = vpop.f32.mrb[9].mxu0  ;;  %v370_v5 = vpop.f32.mrb[9].mxu1 }
 0x107   :  { %395 = vst.msk [vmem:[%s700_s3 + $0x10] sm:$0xff] %vm242_vm0, %v387_v63  ;;  %v388_v7 = vmax.f32 %v366_v0, 0.0  ;;  %v470_v8 = vadd.f32 %v469_v4, %v468_v1  ;;  %v471_v9 = vpop.f32.mrb[10].mxu0  ;;  %v497_v10 = vpop.f32.mrb[10].mxu1 }
 0x108   :  { %v391_v11 = vmax.f32 %v379_v3, 0.0  ;;  %v382_v12 = vadd.f32 %v497_v10, %v317_v6  ;;  %v472_v13 = vpop.f32.mrb[11].mxu0  ;;  %v373_v14 = vpop.f32.mrb[11].mxu1 }
 0x109   :  { %396 = vst.msk [vmem:[%s700_s3 + $0x18] sm:$0xff] %vm242_vm0, %v388_v7  ;;  %v306_v15 = vadd.f32 %v470_v8, %v405_v42  ;;  %v473_v16 = vadd.f32 %v472_v13, %v471_v9 }
 0x10a   :  { %399 = vst.msk [vmem:[%s700_s3 + $0x30] sm:$0xff] %vm242_vm0, %v391_v11  ;;  %v392_v17 = vmax.f32 %v382_v12, 0.0 }
 0x10b   :  { %v371_v18 = vadd.f32 %v370_v5, %v306_v15  ;;  %v309_v19 = vadd.f32 %v473_v16, %v405_v42 }
 0x10c   :  { %400 = vst.msk [vmem:[%s700_s3 + $0x38] sm:$0xff] %vm242_vm0, %v392_v17 }
 0x10d   :  { %v389_v20 = vmax.f32 %v371_v18, 0.0  ;;  %v374_v21 = vadd.f32 %v373_v14, %v309_v19 }
 0x10f   :  { %397 = vst.msk [vmem:[%s700_s3 + $0x20] sm:$0xff] %vm242_vm0, %v389_v20  ;;  %v390_v22 = vmax.f32 %v374_v21, 0.0 }
 0x111   :  { %398 = vst.msk [vmem:[%s700_s3 + $0x28] sm:$0xff] %vm242_vm0, %v390_v22 }

// kernel: drn_forward.19
= control target key start
LH: loop header
LB: loop body
LE: loop exit
PB: predicated region body
PF: predicated region fallthrough
CT: control target
= control target key end

     0   :  { %vm242_vm0 = vcmask 261120   ;;  %s689_s1 = inlined_call_operand.vmem [shape: bf16[288,32], index: 1, kind: input, shape index: {}]   ;;  %s690_s0 = inlined_call_operand.vmem [shape: bf16[64,288], index: 0, kind: input, shape index: {}]   ;;  %s691_s2 = inlined_call_operand.vmem [shape: f32[1,32], index: 2, kind: input, shape index: {}]   ;;  %s692_s3 = inlined_call_operand.vmem [shape: f32[64,32], index: 3, kind: output, shape index: {}]  }
   0x1   :  { %v506_v0 = vld [vmem:[%s689_s1 + $0x40] sm:$0xff]   ;;  %v508_v2 = vld [vmem:[%s689_s1 + $0x48] sm:$0xff]   ;;  %v510_v4 = vld [vmem:[%s689_s1 + $0x50] sm:$0xff]  }
   0x2   :  { %v507_v1 = vld [vmem:[%s689_s1] sm:$0xff]   ;;  %432 = vmatprep.subr.bf16.mxu0 %v506_v0  ;;  %490 = vmatprep.subr.bf16.mxu1 %v506_v0  ;;  %v509_v3 = vld [vmem:[%s689_s1 + $0x8] sm:$0xff]   ;;  %v511_v5 = vld [vmem:[%s689_s1 + $0x10] sm:$0xff]  }
   0x3   :  { %433 = vmatpush3.bf16.msra.mxu0 %v507_v1  ;;  %498 = vmatpush3.bf16.msra.mxu1 %v507_v1  ;;  %v512_v6 = vld [vmem:[%s689_s1 + $0x58] sm:$0xff]   ;;  %v514_v8 = vld [vmem:[%s689_s1 + $0x60] sm:$0xff]   ;;  %v516_v10 = vld [vmem:[%s689_s1 + $0x68] sm:$0xff]  }
   0x4   :  { %434 = vmatprep.subr.bf16.mxu0 %v508_v2  ;;  %491 = vmatprep.subr.bf16.mxu1 %v508_v2  ;;  %v513_v7 = vld [vmem:[%s689_s1 + $0x18] sm:$0xff]   ;;  %v515_v9 = vld [vmem:[%s689_s1 + $0x20] sm:$0xff]   ;;  %v517_v13 = vld [vmem:[%s689_s1 + $0x28] sm:$0xff]  }
   0x5   :  { %v524_v11 = vld [vmem:[%s690_s0 + $0x4] ss:$12 sps:$4 sm:$0xff]   ;;  %v527_v12 = vld [vmem:[%s690_s0 + $0x4c] ss:$12 sps:$4 sm:$0xff]   ;;  %v525_v20 = vld [vmem:[%s690_s0 + $0x48] ss:$12 sps:$4 sm:$0xff]  }
   0x6   :  { %v518_v14 = vld [vmem:[%s689_s1 + $0x70] sm:$0xff]   ;;  %287 = vmatprep.mubr.bf16.mxu0 %v524_v11  ;;  %311 = vmatprep.mubr.bf16.mxu1 %v527_v12  ;;  %v520_v16 = vld [vmem:[%s689_s1 + $0x78] sm:$0xff]   ;;  %v528_v18 = vld [vmem:[%s689_s1 + $0x80] sm:$0xff]  }
   0x7   :  { %435 = vmatpush3.bf16.msra.mxu0 %v509_v3  ;;  %499 = vmatpush3.bf16.msra.mxu1 %v509_v3  ;;  %v519_v15 = vld [vmem:[%s689_s1 + $0x30] sm:$0xff]   ;;  %v521_v17 = vld [vmem:[%s689_s1 + $0x38] sm:$0xff]   ;;  %v522_v19 = vld [vmem:[%s690_s0] ss:$12 sps:$4 sm:$0xff]  }
   0x8   :  { %436 = vmatprep.subr.bf16.mxu0 %v510_v4  ;;  %492 = vmatprep.subr.bf16.mxu1 %v510_v4  ;;  %v530_v21 = vld [vmem:[%s690_s0 + $0x1c] ss:$12 sps:$4 sm:$0xff]   ;;  %v533_v24 = vld [vmem:[%s690_s0 + $0x18] ss:$12 sps:$4 sm:$0xff]   ;;  %v534_v25 = vld [vmem:[%s690_s0 + $0x20] ss:$12 sps:$4 sm:$0xff]  }
   0x9   :  { %v529_v22 = vld [vmem:[%s689_s1 + $0x88] sm:$0xff]   ;;  %v535_v26 = vld [vmem:[%s690_s0 + $0x34] ss:$12 sps:$4 sm:$0xff]   ;;  %v537_v27 = vld [vmem:[%s690_s0 + $0x38] ss:$12 sps:$4 sm:$0xff]  }
   0xa   :  { %v532_v23 = vld [vmem:[%s690_s0 + $0x8] ss:$12 sps:$4 sm:$0xff]   ;;  %v538_v28 = vld [vmem:[%s690_s0 + $0x30] ss:$12 sps:$4 sm:$0xff]   ;;  %v397_v42 = vld [vmem:[%s691_s2] ss:$0 sm:$0xff] }
   0xb   :  { %437 = vmatpush3.bf16.msra.mxu0 %v511_v5  ;;  %500 = vmatpush3.bf16.msra.mxu1 %v511_v5  ;;  %v539_v29 = vld [vmem:[%s690_s0 + $0x50] ss:$12 sps:$4 sm:$0xff]  }
   0xc   :  { %438 = vmatprep.subr.bf16.mxu0 %v512_v6  ;;  %493 = vmatprep.subr.bf16.mxu1 %v512_v6 }
   0xf   :  { %439 = vmatpush3.bf16.msra.mxu0 %v513_v7  ;;  %501 = vmatpush3.bf16.msra.mxu1 %v513_v7 }
  0x10   :  { %440 = vmatprep.subr.bf16.mxu0 %v514_v8  ;;  %494 = vmatprep.subr.bf16.mxu1 %v514_v8 }
  0x13   :  { %441 = vmatpush3.bf16.msra.mxu0 %v515_v9  ;;  %502 = vmatpush3.bf16.msra.mxu1 %v515_v9 }
  0x14   :  { %442 = vmatprep.subr.bf16.mxu0 %v516_v10  ;;  %495 = vmatprep.subr.bf16.mxu1 %v516_v10 }
  0x17   :  { %443 = vmatpush3.bf16.msra.mxu0 %v517_v13  ;;  %503 = vmatpush3.bf16.msra.mxu1 %v517_v13 }
  0x18   :  { %444 = vmatprep.subr.bf16.mxu0 %v518_v14  ;;  %496 = vmatprep.subr.bf16.mxu1 %v518_v14 }
  0x1b   :  { %445 = vmatpush3.bf16.msra.mxu0 %v519_v15  ;;  %504 = vmatpush3.bf16.msra.mxu1 %v519_v15 }
  0x1c   :  { %446 = vmatprep.subr.bf16.mxu0 %v520_v16  ;;  %497 = vmatprep.subr.bf16.mxu1 %v520_v16 }
  0x1f   :  { %447 = vmatpush3.bf16.msra.mxu0 %v521_v17  ;;  %505 = vmatpush3.bf16.msra.mxu1 %v521_v17 }
  0x20   :  { %478 = vmatprep.subr.bf16.mxu1 %v528_v18 }
  0x22   :  { %288 = vmatmul.mubr.bf16.vlgmr.msra.gmra.mrb[0].mxu0 %v522_v19  ;;  %312 = vmatmul.mubr.bf16.vlgmr.msra.gmra.mrb[0].mxu1 %v525_v20 }
  0x23   :  { %479 = vmatpush3.bf16.msra.mxu1 %v528_v18  ;;  %295 = vmatprep.mubr.bf16.mxu0 %v530_v21 }
  0x24   :  { %480 = vmatprep.subr.bf16.mxu1 %v529_v22  ;;  %482 = vmatprep.mubr.msk.bf16.mxu1 %vm242_vm0, %v532_v23 }
  0x27   :  { %481 = vmatpush3.bf16.msra.mxu1 %v529_v22 }
  0x2a   :  { %296 = vmatmul.mubr.bf16.gmra.mrb[4].mxu0 %v533_v24  ;;  %483 = vmatmul.mubr.msk.bf16.vlgmr.msra.gmra.mrb[4].mxu1 %vm242_vm0, %v534_v25 }
  0x2b   :  { %303 = vmatprep.mubr.bf16.mxu0 %v535_v26  ;;  %486 = vmatprep.mubr.msk.bf16.mxu1 %vm242_vm0, %v537_v27 }
  0x32   :  { %304 = vmatmul.mubr.bf16.gmra.mrb[8].mxu0 %v538_v28  ;;  %487 = vmatmul.mubr.msk.bf16.gmra.mrb[8].mxu1 %vm242_vm0, %v539_v29 }
  0xf5   :  { %v448_v30 = vpop.f32.mrb[0].mxu0  ;;  %v466_v31 = vpop.f32.mrb[0].mxu1 }
  0xf6   :  { %v449_v32 = vpop.f32.mrb[1].mxu0  ;;  %v467_v33 = vpop.f32.mrb[1].mxu1 }
  0xf7   :  { %v450_v34 = vadd.f32 %v449_v32, %v448_v30  ;;  %v451_v35 = vpop.f32.mrb[2].mxu0  ;;  %v468_v36 = vadd.f32 %v467_v33, %v466_v31  ;;  %v469_v37 = vpop.f32.mrb[2].mxu1 }
  0xf8   :  { %v452_v38 = vpop.f32.mrb[3].mxu0  ;;  %v470_v39 = vpop.f32.mrb[3].mxu1 }
  0xf9   :  { %v453_v40 = vadd.f32 %v452_v38, %v451_v35  ;;  %v471_v41 = vadd.f32 %v470_v39, %v469_v37  ;;  %v290_v45 = vadd.f32 %v450_v34, %v397_v42  ;;  %v314_v60 = vadd.f32 %v468_v36, %v397_v42 }
  0xfb   :  { %v293_v52 = vadd.f32 %v453_v40, %v397_v42  ;;  %v317_v3 = vadd.f32 %v471_v41, %v397_v42 }
  0xfd   :  { %v454_v43 = vpop.f32.mrb[4].mxu0  ;;  %v484_v44 = vpop.f32.mrb[4].mxu1 }
  0xfe   :  { %v455_v46 = vpop.f32.mrb[5].mxu0  ;;  %v354_v47 = vpop.f32.mrb[5].mxu1 }
  0xff   :  { %v456_v48 = vadd.f32 %v455_v46, %v454_v43  ;;  %v355_v49 = vadd.f32 %v354_v47, %v290_v45  ;;  %v457_v50 = vpop.f32.mrb[6].mxu0  ;;  %v485_v51 = vpop.f32.mrb[6].mxu1 }
 0x100   :  { %v458_v53 = vpop.f32.mrb[7].mxu0  ;;  %v357_v54 = vpop.f32.mrb[7].mxu1 }
 0x101   :  { %v298_v55 = vadd.f32 %v456_v48, %v397_v42  ;;  %385 = vst.msk [vmem:[%s692_s3] sm:$0xff] %vm242_vm0, %v355_v49  ;;  %v459_v56 = vadd.f32 %v458_v53, %v457_v50  ;;  %v358_v57 = vadd.f32 %v357_v54, %v293_v52 }
 0x103   :  { %v363_v58 = vadd.f32 %v484_v44, %v298_v55  ;;  %v301_v59 = vadd.f32 %v459_v56, %v397_v42  ;;  %386 = vst.msk [vmem:[%s692_s3 + $0x8] sm:$0xff] %vm242_vm0, %v358_v57 }
 0x105   :  { %387 = vst.msk [vmem:[%s692_s3 + $0x10] sm:$0xff] %vm242_vm0, %v363_v58  ;;  %v366_v61 = vadd.f32 %v485_v51, %v301_v59  ;;  %v460_v62 = vpop.f32.mrb[8].mxu0  ;;  %v488_v63 = vpop.f32.mrb[8].mxu1 }
 0x106   :  { %v379_v0 = vadd.f32 %v488_v63, %v314_v60  ;;  %v461_v1 = vpop.f32.mrb[9].mxu0  ;;  %v370_v2 = vpop.f32.mrb[9].mxu1 }
 0x107   :  { %388 = vst.msk [vmem:[%s692_s3 + $0x18] sm:$0xff] %vm242_vm0, %v366_v61  ;;  %v462_v4 = vadd.f32 %v461_v1, %v460_v62  ;;  %v463_v5 = vpop.f32.mrb[10].mxu0  ;;  %v489_v6 = vpop.f32.mrb[10].mxu1 }
 0x108   :  { %391 = vst.msk [vmem:[%s692_s3 + $0x30] sm:$0xff] %vm242_vm0, %v379_v0  ;;  %v382_v7 = vadd.f32 %v489_v6, %v317_v3  ;;  %v464_v8 = vpop.f32.mrb[11].mxu0  ;;  %v373_v9 = vpop.f32.mrb[11].mxu1 }
 0x109   :  { %v306_v10 = vadd.f32 %v462_v4, %v397_v42  ;;  %v465_v11 = vadd.f32 %v464_v8, %v463_v5 }
 0x10a   :  { %392 = vst.msk [vmem:[%s692_s3 + $0x38] sm:$0xff] %vm242_vm0, %v382_v7 }
 0x10b   :  { %v371_v12 = vadd.f32 %v370_v2, %v306_v10  ;;  %v309_v13 = vadd.f32 %v465_v11, %v397_v42 }
 0x10d   :  { %389 = vst.msk [vmem:[%s692_s3 + $0x20] sm:$0xff] %vm242_vm0, %v371_v12  ;;  %v374_v14 = vadd.f32 %v373_v9, %v309_v13 }
 0x10f   :  { %390 = vst.msk [vmem:[%s692_s3 + $0x28] sm:$0xff] %vm242_vm0, %v374_v14 }

// kernel: drn_forward.20
= control target key start
LH: loop header
LB: loop body
LE: loop exit
PB: predicated region body
PF: predicated region fallthrough
CT: control target
= control target key end

     0   :  { %vm242_vm0 = vcmask 261120   ;;  %s681_s1 = inlined_call_operand.vmem [shape: bf16[288,128], index: 1, kind: input, shape index: {}]   ;;  %s682_s0 = inlined_call_operand.vmem [shape: bf16[64,288], index: 0, kind: input, shape index: {}]   ;;  %s683_s2 = inlined_call_operand.vmem [shape: f32[1,128], index: 2, kind: input, shape index: {}]   ;;  %s684_s3 = inlined_call_operand.vmem [shape: f32[64,128], index: 3, kind: output, shape index: {}]  }
   0x1   :  { %v506_v0 = vld [vmem:[%s681_s1 + $0x40] sm:$0xff]   ;;  %v508_v2 = vld [vmem:[%s681_s1 + $0x48] sm:$0xff]   ;;  %v510_v4 = vld [vmem:[%s681_s1 + $0x50] sm:$0xff]  }
   0x2   :  { %v507_v1 = vld [vmem:[%s681_s1] sm:$0xff]   ;;  %432 = vmatprep.subr.bf16.mxu0 %v506_v0  ;;  %490 = vmatprep.subr.bf16.mxu1 %v506_v0  ;;  %v509_v3 = vld [vmem:[%s681_s1 + $0x8] sm:$0xff]   ;;  %v511_v5 = vld [vmem:[%s681_s1 + $0x10] sm:$0xff]  }
   0x3   :  { %433 = vmatpush3.bf16.msra.mxu0 %v507_v1  ;;  %498 = vmatpush3.bf16.msra.mxu1 %v507_v1  ;;  %v512_v6 = vld [vmem:[%s681_s1 + $0x58] sm:$0xff]   ;;  %v514_v8 = vld [vmem:[%s681_s1 + $0x60] sm:$0xff]   ;;  %v516_v10 = vld [vmem:[%s681_s1 + $0x68] sm:$0xff]  }
   0x4   :  { %434 = vmatprep.subr.bf16.mxu0 %v508_v2  ;;  %491 = vmatprep.subr.bf16.mxu1 %v508_v2  ;;  %v513_v7 = vld [vmem:[%s681_s1 + $0x18] sm:$0xff]   ;;  %v515_v9 = vld [vmem:[%s681_s1 + $0x20] sm:$0xff]   ;;  %v517_v13 = vld [vmem:[%s681_s1 + $0x28] sm:$0xff]  }
   0x5   :  { %v524_v11 = vld [vmem:[%s682_s0 + $0x4] ss:$12 sps:$4 sm:$0xff]   ;;  %v527_v12 = vld [vmem:[%s682_s0 + $0x4c] ss:$12 sps:$4 sm:$0xff]   ;;  %v525_v20 = vld [vmem:[%s682_s0 + $0x48] ss:$12 sps:$4 sm:$0xff]  }
   0x6   :  { %v518_v14 = vld [vmem:[%s681_s1 + $0x70] sm:$0xff]   ;;  %287 = vmatprep.mubr.bf16.mxu0 %v524_v11  ;;  %311 = vmatprep.mubr.bf16.mxu1 %v527_v12  ;;  %v520_v16 = vld [vmem:[%s681_s1 + $0x78] sm:$0xff]   ;;  %v528_v18 = vld [vmem:[%s681_s1 + $0x80] sm:$0xff]  }
   0x7   :  { %435 = vmatpush3.bf16.msra.mxu0 %v509_v3  ;;  %499 = vmatpush3.bf16.msra.mxu1 %v509_v3  ;;  %v519_v15 = vld [vmem:[%s681_s1 + $0x30] sm:$0xff]   ;;  %v521_v17 = vld [vmem:[%s681_s1 + $0x38] sm:$0xff]   ;;  %v522_v19 = vld [vmem:[%s682_s0] ss:$12 sps:$4 sm:$0xff]  }
   0x8   :  { %436 = vmatprep.subr.bf16.mxu0 %v510_v4  ;;  %492 = vmatprep.subr.bf16.mxu1 %v510_v4  ;;  %v530_v21 = vld [vmem:[%s682_s0 + $0x1c] ss:$12 sps:$4 sm:$0xff]   ;;  %v533_v24 = vld [vmem:[%s682_s0 + $0x18] ss:$12 sps:$4 sm:$0xff]   ;;  %v534_v25 = vld [vmem:[%s682_s0 + $0x20] ss:$12 sps:$4 sm:$0xff]  }
   0x9   :  { %v529_v22 = vld [vmem:[%s681_s1 + $0x88] sm:$0xff]   ;;  %v535_v26 = vld [vmem:[%s682_s0 + $0x34] ss:$12 sps:$4 sm:$0xff]   ;;  %v537_v27 = vld [vmem:[%s682_s0 + $0x38] ss:$12 sps:$4 sm:$0xff]  }
   0xa   :  { %v532_v23 = vld [vmem:[%s682_s0 + $0x8] ss:$12 sps:$4 sm:$0xff]   ;;  %v538_v28 = vld [vmem:[%s682_s0 + $0x30] ss:$12 sps:$4 sm:$0xff]   ;;  %v397_v42 = vld [vmem:[%s683_s2] ss:$0 sm:$0xff] }
   0xb   :  { %437 = vmatpush3.bf16.msra.mxu0 %v511_v5  ;;  %500 = vmatpush3.bf16.msra.mxu1 %v511_v5  ;;  %v539_v29 = vld [vmem:[%s682_s0 + $0x50] ss:$12 sps:$4 sm:$0xff]  }
   0xc   :  { %438 = vmatprep.subr.bf16.mxu0 %v512_v6  ;;  %493 = vmatprep.subr.bf16.mxu1 %v512_v6 }
   0xf   :  { %439 = vmatpush3.bf16.msra.mxu0 %v513_v7  ;;  %501 = vmatpush3.bf16.msra.mxu1 %v513_v7 }
  0x10   :  { %440 = vmatprep.subr.bf16.mxu0 %v514_v8  ;;  %494 = vmatprep.subr.bf16.mxu1 %v514_v8 }
  0x13   :  { %441 = vmatpush3.bf16.msra.mxu0 %v515_v9  ;;  %502 = vmatpush3.bf16.msra.mxu1 %v515_v9 }
  0x14   :  { %442 = vmatprep.subr.bf16.mxu0 %v516_v10  ;;  %495 = vmatprep.subr.bf16.mxu1 %v516_v10 }
  0x17   :  { %443 = vmatpush3.bf16.msra.mxu0 %v517_v13  ;;  %503 = vmatpush3.bf16.msra.mxu1 %v517_v13 }
  0x18   :  { %444 = vmatprep.subr.bf16.mxu0 %v518_v14  ;;  %496 = vmatprep.subr.bf16.mxu1 %v518_v14 }
  0x1b   :  { %445 = vmatpush3.bf16.msra.mxu0 %v519_v15  ;;  %504 = vmatpush3.bf16.msra.mxu1 %v519_v15 }
  0x1c   :  { %446 = vmatprep.subr.bf16.mxu0 %v520_v16  ;;  %497 = vmatprep.subr.bf16.mxu1 %v520_v16 }
  0x1f   :  { %447 = vmatpush3.bf16.msra.mxu0 %v521_v17  ;;  %505 = vmatpush3.bf16.msra.mxu1 %v521_v17 }
  0x20   :  { %478 = vmatprep.subr.bf16.mxu1 %v528_v18 }
  0x22   :  { %288 = vmatmul.mubr.bf16.vlgmr.msra.gmra.mrb[0].mxu0 %v522_v19  ;;  %312 = vmatmul.mubr.bf16.vlgmr.msra.gmra.mrb[0].mxu1 %v525_v20 }
  0x23   :  { %479 = vmatpush3.bf16.msra.mxu1 %v528_v18  ;;  %295 = vmatprep.mubr.bf16.mxu0 %v530_v21 }
  0x24   :  { %480 = vmatprep.subr.bf16.mxu1 %v529_v22  ;;  %482 = vmatprep.mubr.msk.bf16.mxu1 %vm242_vm0, %v532_v23 }
  0x27   :  { %481 = vmatpush3.bf16.msra.mxu1 %v529_v22 }
  0x2a   :  { %296 = vmatmul.mubr.bf16.gmra.mrb[4].mxu0 %v533_v24  ;;  %483 = vmatmul.mubr.msk.bf16.vlgmr.msra.gmra.mrb[4].mxu1 %vm242_vm0, %v534_v25 }
  0x2b   :  { %303 = vmatprep.mubr.bf16.mxu0 %v535_v26  ;;  %486 = vmatprep.mubr.msk.bf16.mxu1 %vm242_vm0, %v537_v27 }
  0x32   :  { %304 = vmatmul.mubr.bf16.gmra.mrb[8].mxu0 %v538_v28  ;;  %487 = vmatmul.mubr.msk.bf16.gmra.mrb[8].mxu1 %vm242_vm0, %v539_v29 }
  0xf5   :  { %v448_v30 = vpop.f32.mrb[0].mxu0  ;;  %v466_v31 = vpop.f32.mrb[0].mxu1 }
  0xf6   :  { %v449_v32 = vpop.f32.mrb[1].mxu0  ;;  %v467_v33 = vpop.f32.mrb[1].mxu1 }
  0xf7   :  { %v450_v34 = vadd.f32 %v449_v32, %v448_v30  ;;  %v451_v35 = vpop.f32.mrb[2].mxu0  ;;  %v468_v36 = vadd.f32 %v467_v33, %v466_v31  ;;  %v469_v37 = vpop.f32.mrb[2].mxu1 }
  0xf8   :  { %v452_v38 = vpop.f32.mrb[3].mxu0  ;;  %v470_v39 = vpop.f32.mrb[3].mxu1 }
  0xf9   :  { %v453_v40 = vadd.f32 %v452_v38, %v451_v35  ;;  %v471_v41 = vadd.f32 %v470_v39, %v469_v37  ;;  %v290_v45 = vadd.f32 %v450_v34, %v397_v42  ;;  %v314_v60 = vadd.f32 %v468_v36, %v397_v42 }
  0xfb   :  { %v293_v52 = vadd.f32 %v453_v40, %v397_v42  ;;  %v317_v3 = vadd.f32 %v471_v41, %v397_v42 }
  0xfd   :  { %v454_v43 = vpop.f32.mrb[4].mxu0  ;;  %v484_v44 = vpop.f32.mrb[4].mxu1 }
  0xfe   :  { %v455_v46 = vpop.f32.mrb[5].mxu0  ;;  %v354_v47 = vpop.f32.mrb[5].mxu1 }
  0xff   :  { %v456_v48 = vadd.f32 %v455_v46, %v454_v43  ;;  %v355_v49 = vadd.f32 %v354_v47, %v290_v45  ;;  %v457_v50 = vpop.f32.mrb[6].mxu0  ;;  %v485_v51 = vpop.f32.mrb[6].mxu1 }
 0x100   :  { %v458_v53 = vpop.f32.mrb[7].mxu0  ;;  %v357_v54 = vpop.f32.mrb[7].mxu1 }
 0x101   :  { %v298_v55 = vadd.f32 %v456_v48, %v397_v42  ;;  %385 = vst [vmem:[%s684_s3] sm:$0xff] %v355_v49  ;;  %v459_v56 = vadd.f32 %v458_v53, %v457_v50  ;;  %v358_v57 = vadd.f32 %v357_v54, %v293_v52 }
 0x103   :  { %v363_v58 = vadd.f32 %v484_v44, %v298_v55  ;;  %v301_v59 = vadd.f32 %v459_v56, %v397_v42  ;;  %386 = vst [vmem:[%s684_s3 + $0x8] sm:$0xff] %v358_v57 }
 0x105   :  { %387 = vst [vmem:[%s684_s3 + $0x10] sm:$0xff] %v363_v58  ;;  %v366_v61 = vadd.f32 %v485_v51, %v301_v59  ;;  %v460_v62 = vpop.f32.mrb[8].mxu0  ;;  %v488_v63 = vpop.f32.mrb[8].mxu1 }
 0x106   :  { %v379_v0 = vadd.f32 %v488_v63, %v314_v60  ;;  %v461_v1 = vpop.f32.mrb[9].mxu0  ;;  %v370_v2 = vpop.f32.mrb[9].mxu1 }
 0x107   :  { %388 = vst [vmem:[%s684_s3 + $0x18] sm:$0xff] %v366_v61  ;;  %v462_v4 = vadd.f32 %v461_v1, %v460_v62  ;;  %v463_v5 = vpop.f32.mrb[10].mxu0  ;;  %v489_v6 = vpop.f32.mrb[10].mxu1 }
 0x108   :  { %391 = vst [vmem:[%s684_s3 + $0x30] sm:$0xff] %v379_v0  ;;  %v382_v7 = vadd.f32 %v489_v6, %v317_v3  ;;  %v464_v8 = vpop.f32.mrb[11].mxu0  ;;  %v373_v9 = vpop.f32.mrb[11].mxu1 }
 0x109   :  { %v306_v10 = vadd.f32 %v462_v4, %v397_v42  ;;  %v465_v11 = vadd.f32 %v464_v8, %v463_v5 }
 0x10a   :  { %392 = vst [vmem:[%s684_s3 + $0x38] sm:$0xff] %v382_v7 }
 0x10b   :  { %v371_v12 = vadd.f32 %v370_v2, %v306_v10  ;;  %v309_v13 = vadd.f32 %v465_v11, %v397_v42 }
 0x10d   :  { %389 = vst [vmem:[%s684_s3 + $0x20] sm:$0xff] %v371_v12  ;;  %v374_v14 = vadd.f32 %v373_v9, %v309_v13 }
 0x10f   :  { %390 = vst [vmem:[%s684_s3 + $0x28] sm:$0xff] %v374_v14 }

// kernel: drn_forward.21
= control target key start
LH: loop header
LB: loop body
LE: loop exit
PB: predicated region body
PF: predicated region fallthrough
CT: control target
= control target key end

     0   :  { %vm150_vm0 = vcmask 261120   ;;  %vm360_vm1 = vcmask 130048   ;;  %s763_s1 = inlined_call_operand.vmem [shape: bf16[32,16], index: 1, kind: input, shape index: {}]   ;;  %s764_s0 = inlined_call_operand.vmem [shape: bf16[256,32], index: 0, kind: input, shape index: {}]   ;;  %s765_s2 = inlined_call_operand.vmem [shape: f32[1,16], index: 2, kind: input, shape index: {}]   ;;  %s766_s3 = inlined_call_operand.vmem [shape: f32[256,16], index: 3, kind: output, shape index: {}]  }
   0x1   :  { %v490_v0 = vld [vmem:[%s763_s1] sm:$0xff]   ;;  %v491_v1 = vld [vmem:[%s763_s1 + $0x8] sm:$0xff]   ;;  %v496_v6 = vld [vmem:[%s764_s0 + $0x10] sm:$0xff]  }
   0x2   :  { %450 = vmatprep.subr.bf16.mxu0 %v490_v0  ;;  %486 = vmatprep.subr.bf16.mxu1 %v490_v0  ;;  %v492_v2 = vld [vmem:[%s764_s0] sm:$0xff]   ;;  %v494_v4 = vld [vmem:[%s764_s0 + $0x8] sm:$0xff]   ;;  %v497_v7 = vld [vmem:[%s764_s0 + $0x50] sm:$0xff]  }
   0x3   :  { %451 = vmatpush3.bf16.msra.mxu0 %v490_v0  ;;  %488 = vmatpush3.bf16.msra.mxu1 %v490_v0  ;;  %v493_v3 = vld [vmem:[%s764_s0 + $0x40] sm:$0xff]   ;;  %v495_v5 = vld [vmem:[%s764_s0 + $0x48] sm:$0xff]   ;;  %v498_v8 = vld [vmem:[%s764_s0 + $0x18] sm:$0xff]  }
   0x4   :  { %452 = vmatprep.subr.bf16.mxu0 %v491_v1  ;;  %487 = vmatprep.subr.bf16.mxu1 %v491_v1  ;;  %v499_v9 = vld [vmem:[%s764_s0 + $0x58] sm:$0xff]   ;;  %v500_v10 = vld [vmem:[%s764_s0 + $0x20] sm:$0xff]   ;;  %v502_v12 = vld [vmem:[%s764_s0 + $0x28] sm:$0xff]  }
   0x5   :  { %454 = vmatprep.mubr.msk.bf16.mxu0 %vm150_vm0, %v492_v2  ;;  %470 = vmatprep.mubr.msk.bf16.mxu1 %vm150_vm0, %v493_v3  ;;  %v501_v11 = vld [vmem:[%s764_s0 + $0x60] sm:$0xff]   ;;  %v503_v13 = vld [vmem:[%s764_s0 + $0x68] sm:$0xff]   ;;  %v504_v14 = vld [vmem:[%s764_s0 + $0x30] sm:$0xff]  }
   0x6   :  { %v505_v15 = vld [vmem:[%s764_s0 + $0x70] sm:$0xff]   ;;  %v506_v16 = vld [vmem:[%s764_s0 + $0x38] sm:$0xff]   ;;  %v601_v18 = vld [vmem:[%s765_s2] ss:$0 sm:$0xff] }
   0x7   :  { %453 = vmatpush3.bf16.msra.mxu0 %v491_v1  ;;  %489 = vmatpush3.bf16.msra.mxu1 %v491_v1  ;;  %v507_v17 = vld [vmem:[%s764_s0 + $0x78] sm:$0xff]  }
   0xa   :  { %455 = vmatmul.mubr.msk.bf16.vlgmr.msra.gmra.mrb[0].mxu0 %vm150_vm0, %v494_v4  ;;  %471 = vmatmul.mubr.msk.bf16.vlgmr.msra.gmra.mrb[0].mxu1 %vm150_vm0, %v495_v5 }
   0xb   :  { %458 = vmatprep.mubr.msk.bf16.mxu0 %vm150_vm0, %v496_v6  ;;  %474 = vmatprep.mubr.msk.bf16.mxu1 %vm150_vm0, %v497_v7 }
  0x12   :  { %459 = vmatmul.mubr.msk.bf16.gmra.mrb[4].mxu0 %vm150_vm0, %v498_v8  ;;  %475 = vmatmul.mubr.msk.bf16.gmra.mrb[4].mxu1 %vm150_vm0, %v499_v9 }
  0x13   :  { %462 = vmatprep.mubr.msk.bf16.mxu0 %vm150_vm0, %v500_v10  ;;  %478 = vmatprep.mubr.msk.bf16.mxu1 %vm150_vm0, %v501_v11 }
  0x1a   :  { %463 = vmatmul.mubr.msk.bf16.gmra.mrb[8].mxu0 %vm150_vm0, %v502_v12  ;;  %479 = vmatmul.mubr.msk.bf16.gmra.mrb[8].mxu1 %vm150_vm0, %v503_v13 }
  0x1b   :  { %466 = vmatprep.mubr.msk.bf16.mxu0 %vm150_vm0, %v504_v14  ;;  %482 = vmatprep.mubr.msk.bf16.mxu1 %vm150_vm0, %v505_v15 }
  0x22   :  { %467 = vmatmul.mubr.msk.bf16.gmra.mrb[12].mxu0 %vm150_vm0, %v506_v16  ;;  %483 = vmatmul.mubr.msk.bf16.gmra.mrb[12].mxu1 %vm150_vm0, %v507_v17 }
  0xdd   :  { %v456_v19 = vpop.f32.mrb[0].mxu0  ;;  %v472_v20 = vpop.f32.mrb[0].mxu1 }
  0xde   :  { %v242_v21 = vadd.f32 %v456_v19, %v601_v18  ;;  %v306_v22 = vadd.f32 %v472_v20, %v601_v18  ;;  %v233_v23 = vpop.f32.mrb[1].mxu0  ;;  %v297_v24 = vpop.f32.mrb[1].mxu1 }
  0xdf   :  { %v234_v25 = vadd.f32 %v601_v18, %v233_v23  ;;  %v298_v26 = vadd.f32 %v601_v18, %v297_v24  ;;  %v457_v27 = vpop.f32.mrb[2].mxu0  ;;  %v473_v28 = vpop.f32.mrb[2].mxu1 }
  0xe0   :  { %363 = vst.msk [vmem:[%s766_s3 + $0x10] sm:$0xff] %vm360_vm1, %v242_v21  ;;  %379 = vst.msk [vmem:[%s766_s3 + $0x90] sm:$0xff] %vm360_vm1, %v306_v22  ;;  %v245_v29 = vadd.f32 %v457_v27, %v601_v18  ;;  %v309_v30 = vadd.f32 %v473_v28, %v601_v18  ;;  %v236_v31 = vpop.f32.mrb[3].mxu0  ;;  %v300_v32 = vpop.f32.mrb[3].mxu1 }
  0xe1   :  { %361 = vst.msk [vmem:[%s766_s3] sm:$0xff] %vm360_vm1, %v234_v25  ;;  %377 = vst.msk [vmem:[%s766_s3 + $0x80] sm:$0xff] %vm360_vm1, %v298_v26  ;;  %v237_v33 = vadd.f32 %v601_v18, %v236_v31  ;;  %v301_v34 = vadd.f32 %v601_v18, %v300_v32 }
  0xe2   :  { %364 = vst.msk [vmem:[%s766_s3 + $0x18] sm:$0xff] %vm360_vm1, %v245_v29  ;;  %380 = vst.msk [vmem:[%s766_s3 + $0x98] sm:$0xff] %vm360_vm1, %v309_v30 }
  0xe3   :  { %362 = vst.msk [vmem:[%s766_s3 + $0x8] sm:$0xff] %vm360_vm1, %v237_v33  ;;  %378 = vst.msk [vmem:[%s766_s3 + $0x88] sm:$0xff] %vm360_vm1, %v301_v34 }
  0xe5   :  { %v460_v35 = vpop.f32.mrb[4].mxu0  ;;  %v476_v36 = vpop.f32.mrb[4].mxu1 }
  0xe6   :  { %v258_v37 = vadd.f32 %v460_v35, %v601_v18  ;;  %v322_v38 = vadd.f32 %v476_v36, %v601_v18  ;;  %v249_v39 = vpop.f32.mrb[5].mxu0  ;;  %v313_v40 = vpop.f32.mrb[5].mxu1 }
  0xe7   :  { %v250_v41 = vadd.f32 %v601_v18, %v249_v39  ;;  %v314_v42 = vadd.f32 %v601_v18, %v313_v40  ;;  %v461_v43 = vpop.f32.mrb[6].mxu0  ;;  %v477_v44 = vpop.f32.mrb[6].mxu1 }
  0xe8   :  { %367 = vst.msk [vmem:[%s766_s3 + $0x30] sm:$0xff] %vm360_vm1, %v258_v37  ;;  %383 = vst.msk [vmem:[%s766_s3 + $0xb0] sm:$0xff] %vm360_vm1, %v322_v38  ;;  %v261_v45 = vadd.f32 %v461_v43, %v601_v18  ;;  %v325_v46 = vadd.f32 %v477_v44, %v601_v18  ;;  %v252_v47 = vpop.f32.mrb[7].mxu0  ;;  %v316_v48 = vpop.f32.mrb[7].mxu1 }
  0xe9   :  { %365 = vst.msk [vmem:[%s766_s3 + $0x20] sm:$0xff] %vm360_vm1, %v250_v41  ;;  %381 = vst.msk [vmem:[%s766_s3 + $0xa0] sm:$0xff] %vm360_vm1, %v314_v42  ;;  %v253_v49 = vadd.f32 %v601_v18, %v252_v47  ;;  %v317_v50 = vadd.f32 %v601_v18, %v316_v48 }
  0xea   :  { %368 = vst.msk [vmem:[%s766_s3 + $0x38] sm:$0xff] %vm360_vm1, %v261_v45  ;;  %384 = vst.msk [vmem:[%s766_s3 + $0xb8] sm:$0xff] %vm360_vm1, %v325_v46 }
  0xeb   :  { %366 = vst.msk [vmem:[%s766_s3 + $0x28] sm:$0xff] %vm360_vm1, %v253_v49  ;;  %382 = vst.msk [vmem:[%s766_s3 + $0xa8] sm:$0xff] %vm360_vm1, %v317_v50 }
  0xed   :  { %v464_v51 = vpop.f32.mrb[8].mxu0  ;;  %v480_v52 = vpop.f32.mrb[8].mxu1 }
  0xee   :  { %v274_v53 = vadd.f32 %v464_v51, %v601_v18  ;;  %v338_v54 = vadd.f32 %v480_v52, %v601_v18  ;;  %v265_v55 = vpop.f32.mrb[9].mxu0  ;;  %v329_v56 = vpop.f32.mrb[9].mxu1 }
  0xef   :  { %v266_v57 = vadd.f32 %v601_v18, %v265_v55  ;;  %v330_v58 = vadd.f32 %v601_v18, %v329_v56  ;;  %v465_v59 = vpop.f32.mrb[10].mxu0  ;;  %v481_v60 = vpop.f32.mrb[10].mxu1 }
  0xf0   :  { %371 = vst.msk [vmem:[%s766_s3 + $0x50] sm:$0xff] %vm360_vm1, %v274_v53  ;;  %387 = vst.msk [vmem:[%s766_s3 + $0xd0] sm:$0xff] %vm360_vm1, %v338_v54  ;;  %v277_v61 = vadd.f32 %v465_v59, %v601_v18  ;;  %v341_v62 = vadd.f32 %v481_v60, %v601_v18  ;;  %v268_v63 = vpop.f32.mrb[11].mxu0  ;;  %v332_v0 = vpop.f32.mrb[11].mxu1 }
  0xf1   :  { %369 = vst.msk [vmem:[%s766_s3 + $0x40] sm:$0xff] %vm360_vm1, %v266_v57  ;;  %385 = vst.msk [vmem:[%s766_s3 + $0xc0] sm:$0xff] %vm360_vm1, %v330_v58  ;;  %v269_v1 = vadd.f32 %v601_v18, %v268_v63  ;;  %v333_v2 = vadd.f32 %v601_v18, %v332_v0 }
  0xf2   :  { %372 = vst.msk [vmem:[%s766_s3 + $0x58] sm:$0xff] %vm360_vm1, %v277_v61  ;;  %388 = vst.msk [vmem:[%s766_s3 + $0xd8] sm:$0xff] %vm360_vm1, %v341_v62 }
  0xf3   :  { %370 = vst.msk [vmem:[%s766_s3 + $0x48] sm:$0xff] %vm360_vm1, %v269_v1  ;;  %386 = vst.msk [vmem:[%s766_s3 + $0xc8] sm:$0xff] %vm360_vm1, %v333_v2 }
  0xf5   :  { %v468_v3 = vpop.f32.mrb[12].mxu0  ;;  %v484_v4 = vpop.f32.mrb[12].mxu1 }
  0xf6   :  { %v290_v5 = vadd.f32 %v468_v3, %v601_v18  ;;  %v354_v6 = vadd.f32 %v484_v4, %v601_v18  ;;  %v281_v7 = vpop.f32.mrb[13].mxu0  ;;  %v345_v8 = vpop.f32.mrb[13].mxu1 }
  0xf7   :  { %v282_v9 = vadd.f32 %v601_v18, %v281_v7  ;;  %v346_v10 = vadd.f32 %v601_v18, %v345_v8  ;;  %v469_v11 = vpop.f32.mrb[14].mxu0  ;;  %v485_v12 = vpop.f32.mrb[14].mxu1 }
  0xf8   :  { %375 = vst.msk [vmem:[%s766_s3 + $0x70] sm:$0xff] %vm360_vm1, %v290_v5  ;;  %391 = vst.msk [vmem:[%s766_s3 + $0xf0] sm:$0xff] %vm360_vm1, %v354_v6  ;;  %v293_v13 = vadd.f32 %v469_v11, %v601_v18  ;;  %v357_v14 = vadd.f32 %v485_v12, %v601_v18  ;;  %v284_v15 = vpop.f32.mrb[15].mxu0  ;;  %v348_v16 = vpop.f32.mrb[15].mxu1 }
  0xf9   :  { %373 = vst.msk [vmem:[%s766_s3 + $0x60] sm:$0xff] %vm360_vm1, %v282_v9  ;;  %389 = vst.msk [vmem:[%s766_s3 + $0xe0] sm:$0xff] %vm360_vm1, %v346_v10  ;;  %v285_v17 = vadd.f32 %v601_v18, %v284_v15  ;;  %v349_v19 = vadd.f32 %v601_v18, %v348_v16 }
  0xfa   :  { %376 = vst.msk [vmem:[%s766_s3 + $0x78] sm:$0xff] %vm360_vm1, %v293_v13  ;;  %392 = vst.msk [vmem:[%s766_s3 + $0xf8] sm:$0xff] %vm360_vm1, %v357_v14 }
  0xfb   :  { %374 = vst.msk [vmem:[%s766_s3 + $0x68] sm:$0xff] %vm360_vm1, %v285_v17  ;;  %390 = vst.msk [vmem:[%s766_s3 + $0xe8] sm:$0xff] %vm360_vm1, %v349_v19 }

// kernel: drn_forward.22
= control target key start
LH: loop header
LB: loop body
LE: loop exit
PB: predicated region body
PF: predicated region fallthrough
CT: control target
= control target key end

     0   :  { %vm470_vm0 = vcmask 261120   ;;  %vm841_vm1 = vcmask 23552   ;;  %s1654_s1 = inlined_call_operand.vmem [shape: bf16[288,3], index: 1, kind: input, shape index: {}]   ;;  %s1655_s0 = inlined_call_operand.vmem [shape: bf16[256,288], index: 0, kind: input, shape index: {}]   ;;  %s1656_s2 = inlined_call_operand.vmem [shape: f32[1,3], index: 2, kind: input, shape index: {}]   ;;  %s1657_s3 = inlined_call_operand.vmem [shape: f32[256,3], index: 3, kind: output, shape index: {}]  }
   0x1   :  { %v1143_v0 = vld [vmem:[%s1654_s1 + $0x40] sm:$0xff]   ;;  %v1145_v2 = vld [vmem:[%s1654_s1 + $0x48] sm:$0xff]   ;;  %v1147_v4 = vld [vmem:[%s1654_s1 + $0x50] sm:$0xff]  }
   0x2   :  { %v1144_v1 = vld [vmem:[%s1654_s1] sm:$0xff]   ;;  %961 = vmatprep.subr.bf16.mxu0 %v1143_v0  ;;  %1127 = vmatprep.subr.bf16.mxu1 %v1143_v0  ;;  %v1146_v3 = vld [vmem:[%s1654_s1 + $0x8] sm:$0xff]   ;;  %v1148_v5 = vld [vmem:[%s1654_s1 + $0x10] sm:$0xff]  }
   0x3   :  { %962 = vmatpush3.bf16.msra.mxu0 %v1144_v1  ;;  %1135 = vmatpush3.bf16.msra.mxu1 %v1144_v1  ;;  %v1149_v6 = vld [vmem:[%s1654_s1 + $0x58] sm:$0xff]   ;;  %v1151_v8 = vld [vmem:[%s1654_s1 + $0x60] sm:$0xff]   ;;  %v1153_v10 = vld [vmem:[%s1654_s1 + $0x68] sm:$0xff]  }
   0x4   :  { %963 = vmatprep.subr.bf16.mxu0 %v1145_v2  ;;  %1128 = vmatprep.subr.bf16.mxu1 %v1145_v2  ;;  %v1150_v7 = vld [vmem:[%s1654_s1 + $0x18] sm:$0xff]   ;;  %v1152_v9 = vld [vmem:[%s1654_s1 + $0x20] sm:$0xff]   ;;  %v1154_v13 = vld [vmem:[%s1654_s1 + $0x28] sm:$0xff]  }
   0x5   :  { %v1161_v11 = vld [vmem:[%s1655_s0 + $0x4] ss:$12 sps:$4 sm:$0xff]   ;;  %v1157_v16 = vld [vmem:[%s1654_s1 + $0x78] sm:$0xff]   ;;  %v1159_v19 = vld [vmem:[%s1655_s0] ss:$12 sps:$4 sm:$0xff]  }
   0x6   :  { %v1164_v12 = vld [vmem:[%s1655_s0 + $0x124] ss:$12 sps:$4 sm:$0xff]   ;;  %551 = vmatprep.mubr.bf16.mxu0 %v1161_v11  ;;  %v1158_v17 = vld [vmem:[%s1654_s1 + $0x38] sm:$0xff]   ;;  %v1162_v20 = vld [vmem:[%s1655_s0 + $0x120] ss:$12 sps:$4 sm:$0xff]  }
   0x7   :  { %964 = vmatpush3.bf16.msra.mxu0 %v1146_v3  ;;  %1136 = vmatpush3.bf16.msra.mxu1 %v1146_v3  ;;  %v1155_v14 = vld [vmem:[%s1654_s1 + $0x70] sm:$0xff]   ;;  %v1165_v18 = vld [vmem:[%s1654_s1 + $0x80] sm:$0xff]   ;;  %v1166_v21 = vld [vmem:[%s1655_s0 + $0x1c] ss:$12 sps:$4 sm:$0xff]  }
   0x8   :  { %965 = vmatprep.subr.bf16.mxu0 %v1147_v4  ;;  %1129 = vmatprep.subr.bf16.mxu1 %v1147_v4  ;;  %v1156_v15 = vld [vmem:[%s1654_s1 + $0x30] sm:$0xff]   ;;  %v1168_v22 = vld [vmem:[%s1655_s0 + $0x13c] ss:$12 sps:$4 sm:$0xff]   ;;  %v1170_v24 = vld [vmem:[%s1655_s0 + $0x18] ss:$12 sps:$4 sm:$0xff]  }
   0x9   :  { %647 = vmatprep.mubr.bf16.mxu1 %v1164_v12  ;;  %v1178_v23 = vld [vmem:[%s1654_s1 + $0x88] sm:$0xff]   ;;  %v1171_v25 = vld [vmem:[%s1655_s0 + $0x138] ss:$12 sps:$4 sm:$0xff]   ;;  %v1172_v26 = vld [vmem:[%s1655_s0 + $0x34] ss:$12 sps:$4 sm:$0xff]  }
   0xa   :  { %v1174_v27 = vld [vmem:[%s1655_s0 + $0x154] ss:$12 sps:$4 sm:$0xff]   ;;  %v1176_v28 = vld [vmem:[%s1655_s0 + $0x30] ss:$12 sps:$4 sm:$0xff]   ;;  %v1179_v30 = vld [vmem:[%s1655_s0 + $0x4c] ss:$12 sps:$4 sm:$0xff]  }
   0xb   :  { %966 = vmatpush3.bf16.msra.mxu0 %v1148_v5  ;;  %1137 = vmatpush3.bf16.msra.mxu1 %v1148_v5  ;;  %v1177_v29 = vld [vmem:[%s1655_s0 + $0x150] ss:$12 sps:$4 sm:$0xff]   ;;  %v1181_v31 = vld [vmem:[%s1655_s0 + $0x16c] ss:$12 sps:$4 sm:$0xff]   ;;  %v1183_v32 = vld [vmem:[%s1655_s0 + $0x48] ss:$12 sps:$4 sm:$0xff]  }
   0xc   :  { %967 = vmatprep.subr.bf16.mxu0 %v1149_v6  ;;  %1130 = vmatprep.subr.bf16.mxu1 %v1149_v6  ;;  %v1184_v33 = vld [vmem:[%s1655_s0 + $0x168] ss:$12 sps:$4 sm:$0xff]   ;;  %v1185_v34 = vld [vmem:[%s1655_s0 + $0x64] ss:$12 sps:$4 sm:$0xff]   ;;  %v1188_v36 = vld [vmem:[%s1655_s0 + $0x60] ss:$12 sps:$4 sm:$0xff]  }
   0xd   :  { %v1187_v35 = vld [vmem:[%s1655_s0 + $0x8] ss:$12 sps:$4 sm:$0xff]   ;;  %v1189_v37 = vld [vmem:[%s1655_s0 + $0x20] ss:$12 sps:$4 sm:$0xff]   ;;  %v1192_v39 = vld [vmem:[%s1655_s0 + $0x38] ss:$12 sps:$4 sm:$0xff]  }
   0xe   :  { %v1190_v38 = vld [vmem:[%s1655_s0 + $0x7c] ss:$12 sps:$4 sm:$0xff]   ;;  %v1193_v40 = vld [vmem:[%s1655_s0 + $0x78] ss:$12 sps:$4 sm:$0xff]   ;;  %v1195_v42 = vld [vmem:[%s1655_s0 + $0x94] ss:$12 sps:$4 sm:$0xff]  }
   0xf   :  { %968 = vmatpush3.bf16.msra.mxu0 %v1150_v7  ;;  %1138 = vmatpush3.bf16.msra.mxu1 %v1150_v7  ;;  %v1194_v41 = vld [vmem:[%s1655_s0 + $0x50] ss:$12 sps:$4 sm:$0xff]   ;;  %v1197_v43 = vld [vmem:[%s1655_s0 + $0x68] ss:$12 sps:$4 sm:$0xff]   ;;  %v1199_v45 = vld [vmem:[%s1655_s0 + $0x80] ss:$12 sps:$4 sm:$0xff]  }
  0x10   :  { %969 = vmatprep.subr.bf16.mxu0 %v1151_v8  ;;  %1131 = vmatprep.subr.bf16.mxu1 %v1151_v8  ;;  %v1198_v44 = vld [vmem:[%s1655_s0 + $0x90] ss:$12 sps:$4 sm:$0xff]   ;;  %v1200_v46 = vld [vmem:[%s1655_s0 + $0xac] ss:$12 sps:$4 sm:$0xff]   ;;  %v1203_v48 = vld [vmem:[%s1655_s0 + $0xa8] ss:$12 sps:$4 sm:$0xff]  }
  0x11   :  { %v1202_v47 = vld [vmem:[%s1655_s0 + $0x98] ss:$12 sps:$4 sm:$0xff]   ;;  %v1204_v49 = vld [vmem:[%s1655_s0 + $0xb0] ss:$12 sps:$4 sm:$0xff]   ;;  %v1207_v51 = vld [vmem:[%s1655_s0 + $0xc8] ss:$12 sps:$4 sm:$0xff]  }
  0x12   :  { %v1205_v50 = vld [vmem:[%s1655_s0 + $0xc4] ss:$12 sps:$4 sm:$0xff]   ;;  %v1208_v52 = vld [vmem:[%s1655_s0 + $0xc0] ss:$12 sps:$4 sm:$0xff]   ;;  %v1210_v54 = vld [vmem:[%s1655_s0 + $0xdc] ss:$12 sps:$4 sm:$0xff]  }
  0x13   :  { %970 = vmatpush3.bf16.msra.mxu0 %v1152_v9  ;;  %1139 = vmatpush3.bf16.msra.mxu1 %v1152_v9  ;;  %v1209_v53 = vld [vmem:[%s1655_s0 + $0xe0] ss:$12 sps:$4 sm:$0xff]   ;;  %v1212_v55 = vld [vmem:[%s1655_s0 + $0xf8] ss:$12 sps:$4 sm:$0xff]   ;;  %v1214_v57 = vld [vmem:[%s1655_s0 + $0x110] ss:$12 sps:$4 sm:$0xff]  }
  0x14   :  { %971 = vmatprep.subr.bf16.mxu0 %v1153_v10  ;;  %1132 = vmatprep.subr.bf16.mxu1 %v1153_v10  ;;  %v1213_v56 = vld [vmem:[%s1655_s0 + $0xd8] ss:$12 sps:$4 sm:$0xff]   ;;  %v1215_v58 = vld [vmem:[%s1655_s0 + $0xf4] ss:$12 sps:$4 sm:$0xff]   ;;  %v1218_v60 = vld [vmem:[%s1655_s0 + $0xf0] ss:$12 sps:$4 sm:$0xff]  }
  0x15   :  { %v1217_v59 = vld [vmem:[%s1655_s0 + $0x128] ss:$12 sps:$4 sm:$0xff]   ;;  %v1219_v61 = vld [vmem:[%s1655_s0 + $0x140] ss:$12 sps:$4 sm:$0xff]   ;;  %v1222_v63 = vld [vmem:[%s1655_s0 + $0x158] ss:$12 sps:$4 sm:$0xff]  }
  0x16   :  { %v1220_v62 = vld [vmem:[%s1655_s0 + $0x10c] ss:$12 sps:$4 sm:$0xff]   ;;  %v1223_v0 = vld [vmem:[%s1655_s0 + $0x108] ss:$12 sps:$4 sm:$0xff]   ;;  %v1224_v1 = vld [vmem:[%s1655_s0 + $0x170] ss:$12 sps:$4 sm:$0xff]  }
  0x17   :  { %972 = vmatpush3.bf16.msra.mxu0 %v1154_v13  ;;  %1140 = vmatpush3.bf16.msra.mxu1 %v1154_v13 }
  0x18   :  { %973 = vmatprep.subr.bf16.mxu0 %v1155_v14  ;;  %1133 = vmatprep.subr.bf16.mxu1 %v1155_v14 }
  0x1b   :  { %974 = vmatpush3.bf16.msra.mxu0 %v1156_v15  ;;  %1141 = vmatpush3.bf16.msra.mxu1 %v1156_v15 }
  0x1c   :  { %975 = vmatprep.subr.bf16.mxu0 %v1157_v16  ;;  %1134 = vmatprep.subr.bf16.mxu1 %v1157_v16 }
  0x1f   :  { %976 = vmatpush3.bf16.msra.mxu0 %v1158_v17  ;;  %1142 = vmatpush3.bf16.msra.mxu1 %v1158_v17 }
  0x20   :  { %1091 = vmatprep.subr.bf16.mxu1 %v1165_v18 }
  0x22   :  { %552 = vmatmul.mubr.bf16.vlgmr.msra.gmra.mrb[0].mxu0 %v1159_v19  ;;  %648 = vmatmul.mubr.bf16.vlgmr.msra.gmra.mrb[0].mxu1 %v1162_v20 }
  0x23   :  { %1092 = vmatpush3.bf16.msra.mxu1 %v1165_v18  ;;  %559 = vmatprep.mubr.bf16.mxu0 %v1166_v21 }
  0x24   :  { %655 = vmatprep.mubr.bf16.mxu1 %v1168_v22  ;;  %1093 = vmatprep.subr.bf16.mxu1 %v1178_v23 }
  0x27   :  { %1094 = vmatpush3.bf16.msra.mxu1 %v1178_v23 }
  0x2a   :  { %560 = vmatmul.mubr.bf16.gmra.mrb[4].mxu0 %v1170_v24  ;;  %656 = vmatmul.mubr.bf16.gmra.mrb[4].mxu1 %v1171_v25 }
  0x2b   :  { %567 = vmatprep.mubr.bf16.mxu0 %v1172_v26  ;;  %663 = vmatprep.mubr.bf16.mxu1 %v1174_v27 }
  0x32   :  { %568 = vmatmul.mubr.bf16.gmra.mrb[8].mxu0 %v1176_v28  ;;  %664 = vmatmul.mubr.bf16.gmra.mrb[8].mxu1 %v1177_v29 }
  0x33   :  { %575 = vmatprep.mubr.bf16.mxu0 %v1179_v30  ;;  %671 = vmatprep.mubr.bf16.mxu1 %v1181_v31 }
  0x3a   :  { %576 = vmatmul.mubr.bf16.gmra.mrb[12].mxu0 %v1183_v32  ;;  %672 = vmatmul.mubr.bf16.gmra.mrb[12].mxu1 %v1184_v33 }
  0x3b   :  { %583 = vmatprep.mubr.bf16.mxu0 %v1185_v34  ;;  %1095 = vmatprep.mubr.msk.bf16.mxu1 %vm470_vm0, %v1187_v35 }
  0x42   :  { %584 = vmatmul.mubr.bf16.gmra.mrb[16].mxu0 %v1188_v36  ;;  %1096 = vmatmul.mubr.msk.bf16.vlgmr.msra.gmra.mrb[16].mxu1 %vm470_vm0, %v1189_v37 }
  0x43   :  { %591 = vmatprep.mubr.bf16.mxu0 %v1190_v38  ;;  %1099 = vmatprep.mubr.msk.bf16.mxu1 %vm470_vm0, %v1192_v39 }
  0x4a   :  { %592 = vmatmul.mubr.bf16.gmra.mrb[20].mxu0 %v1193_v40  ;;  %1100 = vmatmul.mubr.msk.bf16.gmra.mrb[20].mxu1 %vm470_vm0, %v1194_v41 }
  0x4b   :  { %599 = vmatprep.mubr.bf16.mxu0 %v1195_v42  ;;  %1103 = vmatprep.mubr.msk.bf16.mxu1 %vm470_vm0, %v1197_v43 }
  0x52   :  { %600 = vmatmul.mubr.bf16.gmra.mrb[24].mxu0 %v1198_v44  ;;  %1104 = vmatmul.mubr.msk.bf16.gmra.mrb[24].mxu1 %vm470_vm0, %v1199_v45 }
  0x53   :  { %607 = vmatprep.mubr.bf16.mxu0 %v1200_v46  ;;  %1107 = vmatprep.mubr.msk.bf16.mxu1 %vm470_vm0, %v1202_v47 }
  0x5a   :  { %608 = vmatmul.mubr.bf16.gmra.mrb[28].mxu0 %v1203_v48  ;;  %1108 = vmatmul.mubr.msk.bf16.gmra.mrb[28].mxu1 %vm470_vm0, %v1204_v49 }
  0x5b   :  { %615 = vmatprep.mubr.bf16.mxu0 %v1205_v50  ;;  %1111 = vmatprep.mubr.msk.bf16.mxu1 %vm470_vm0, %v1207_v51  ;;  %v1478_v50 = vld [vmem:[%s1656_s2] ss:$0 sm:$0xff] }
  0x62   :  { %616 = vmatmul.mubr.bf16.gmra.mrb[32].mxu0 %v1208_v52  ;;  %1112 = vmatmul.mubr.msk.bf16.gmra.mrb[32].mxu1 %vm470_vm0, %v1209_v53 }
  0x63   :  { %623 = vmatprep.mubr.bf16.mxu0 %v1210_v54  ;;  %1115 = vmatprep.mubr.msk.bf16.mxu1 %vm470_vm0, %v1212_v55 }
  0x6a   :  { %624 = vmatmul.mubr.bf16.gmra.mrb[36].mxu0 %v1213_v56  ;;  %1116 = vmatmul.mubr.msk.bf16.gmra.mrb[36].mxu1 %vm470_vm0, %v1214_v57 }
  0x6b   :  { %631 = vmatprep.mubr.bf16.mxu0 %v1215_v58  ;;  %1119 = vmatprep.mubr.msk.bf16.mxu1 %vm470_vm0, %v1217_v59 }
  0x72   :  { %632 = vmatmul.mubr.bf16.gmra.mrb[40].mxu0 %v1218_v60  ;;  %1120 = vmatmul.mubr.msk.bf16.gmra.mrb[40].mxu1 %vm470_vm0, %v1219_v61 }
  0x73   :  { %639 = vmatprep.mubr.bf16.mxu0 %v1220_v62  ;;  %1123 = vmatprep.mubr.msk.bf16.mxu1 %vm470_vm0, %v1222_v63 }
  0x7a   :  { %640 = vmatmul.mubr.bf16.gmra.mrb[44].mxu0 %v1223_v0  ;;  %1124 = vmatmul.mubr.msk.bf16.gmra.mrb[44].mxu1 %vm470_vm0, %v1224_v1 }
  0xf5   :  { %v977_v2 = vpop.f32.mrb[0].mxu0  ;;  %v1049_v3 = vpop.f32.mrb[0].mxu1 }
  0xf6   :  { %v978_v4 = vpop.f32.mrb[1].mxu0  ;;  %v1050_v5 = vpop.f32.mrb[1].mxu1 }
  0xf7   :  { %v979_v6 = vadd.f32 %v978_v4, %v977_v2  ;;  %v980_v7 = vpop.f32.mrb[2].mxu0  ;;  %v1459_v8 = vadd.f32 %v1050_v5, %v1049_v3  ;;  %v1052_v9 = vpop.f32.mrb[2].mxu1 }
  0xf8   :  { %v981_v10 = vpop.f32.mrb[3].mxu0  ;;  %v1053_v11 = vpop.f32.mrb[3].mxu1 }
  0xf9   :  { %v982_v12 = vadd.f32 %v981_v10, %v980_v7  ;;  %v1461_v13 = vadd.f32 %v1053_v11, %v1052_v9  ;;  %v554_v54 = vadd.f32 %v979_v6, %v1478_v50 }
  0xfb   :  { %v557_v63 = vadd.f32 %v982_v12, %v1478_v50 }
  0xfd   :  { %v983_v14 = vpop.f32.mrb[4].mxu0  ;;  %v1055_v15 = vpop.f32.mrb[4].mxu1 }
  0xfe   :  { %v984_v16 = vpop.f32.mrb[5].mxu0  ;;  %v1056_v17 = vpop.f32.mrb[5].mxu1 }
  0xff   :  { %v985_v18 = vadd.f32 %v984_v16, %v983_v14  ;;  %v986_v19 = vpop.f32.mrb[6].mxu0  ;;  %v1463_v20 = vadd.f32 %v1056_v17, %v1055_v15  ;;  %v1058_v21 = vpop.f32.mrb[6].mxu1 }
 0x100   :  { %v987_v22 = vpop.f32.mrb[7].mxu0  ;;  %v1059_v23 = vpop.f32.mrb[7].mxu1 }
 0x101   :  { %v988_v24 = vadd.f32 %v987_v22, %v986_v19  ;;  %v1465_v25 = vadd.f32 %v1059_v23, %v1058_v21  ;;  %v562_v51 = vadd.f32 %v985_v18, %v1478_v50 }
 0x103   :  { %v565_v58 = vadd.f32 %v988_v24, %v1478_v50 }
 0x105   :  { %v989_v26 = vpop.f32.mrb[8].mxu0  ;;  %v1061_v27 = vpop.f32.mrb[8].mxu1 }
 0x106   :  { %v990_v28 = vpop.f32.mrb[9].mxu0  ;;  %v1062_v29 = vpop.f32.mrb[9].mxu1 }
 0x107   :  { %v991_v30 = vadd.f32 %v990_v28, %v989_v26  ;;  %v992_v31 = vpop.f32.mrb[10].mxu0  ;;  %v1467_v32 = vadd.f32 %v1062_v29, %v1061_v27  ;;  %v1064_v33 = vpop.f32.mrb[10].mxu1 }
 0x108   :  { %v993_v34 = vpop.f32.mrb[11].mxu0  ;;  %v1065_v35 = vpop.f32.mrb[11].mxu1 }
 0x109   :  { %v994_v36 = vadd.f32 %v993_v34, %v992_v31  ;;  %v1469_v37 = vadd.f32 %v1065_v35, %v1064_v33  ;;  %v570_v9 = vadd.f32 %v991_v30, %v1478_v50 }
 0x10b   :  { %v573_v19 = vadd.f32 %v994_v36, %v1478_v50 }
 0x10d   :  { %v995_v38 = vpop.f32.mrb[12].mxu0  ;;  %v1067_v39 = vpop.f32.mrb[12].mxu1 }
 0x10e   :  { %v996_v40 = vpop.f32.mrb[13].mxu0  ;;  %v1068_v41 = vpop.f32.mrb[13].mxu1 }
 0x10f   :  { %v997_v42 = vadd.f32 %v996_v40, %v995_v38  ;;  %v998_v43 = vpop.f32.mrb[14].mxu0  ;;  %v1471_v44 = vadd.f32 %v1068_v41, %v1067_v39  ;;  %v1070_v45 = vpop.f32.mrb[14].mxu1 }
 0x110   :  { %v999_v46 = vpop.f32.mrb[15].mxu0  ;;  %v1071_v47 = vpop.f32.mrb[15].mxu1 }
 0x111   :  { %v1000_v48 = vadd.f32 %v999_v46, %v998_v43  ;;  %v1473_v49 = vadd.f32 %v1071_v47, %v1070_v45  ;;  %v578_v5 = vadd.f32 %v997_v42, %v1478_v50 }
 0x113   :  { %v581_v14 = vadd.f32 %v1000_v48, %v1478_v50 }
 0x115   :  { %v1001_v52 = vpop.f32.mrb[16].mxu0  ;;  %v1097_v53 = vpop.f32.mrb[16].mxu1 }
 0x116   :  { %v723_v55 = vadd.f32 %v1097_v53, %v562_v51  ;;  %v1002_v56 = vpop.f32.mrb[17].mxu0  ;;  %v714_v57 = vpop.f32.mrb[17].mxu1 }
 0x117   :  { %v1003_v59 = vadd.f32 %v1002_v56, %v1001_v52  ;;  %v715_v60 = vadd.f32 %v714_v57, %v554_v54  ;;  %v1004_v61 = vpop.f32.mrb[18].mxu0  ;;  %v1098_v62 = vpop.f32.mrb[18].mxu1 }
 0x118   :  { %844 = vst.msk [vmem:[%s1657_s3 + $0x10] sm:$0xff] %vm841_vm1, %v723_v55  ;;  %v726_v0 = vadd.f32 %v1098_v62, %v565_v58  ;;  %v1005_v1 = vpop.f32.mrb[19].mxu0  ;;  %v717_v2 = vpop.f32.mrb[19].mxu1 }
 0x119   :  { %842 = vst.msk [vmem:[%s1657_s3] sm:$0xff] %vm841_vm1, %v715_v60  ;;  %v1006_v3 = vadd.f32 %v1005_v1, %v1004_v61  ;;  %v718_v4 = vadd.f32 %v717_v2, %v557_v63  ;;  %v586_v30 = vadd.f32 %v1003_v59, %v1478_v50 }
 0x11a   :  { %845 = vst.msk [vmem:[%s1657_s3 + $0x18] sm:$0xff] %vm841_vm1, %v726_v0 }
 0x11b   :  { %843 = vst.msk [vmem:[%s1657_s3 + $0x8] sm:$0xff] %vm841_vm1, %v718_v4  ;;  %v589_v41 = vadd.f32 %v1006_v3, %v1478_v50 }
 0x11d   :  { %v1007_v6 = vpop.f32.mrb[20].mxu0  ;;  %v1101_v7 = vpop.f32.mrb[20].mxu1 }
 0x11e   :  { %v739_v10 = vadd.f32 %v1101_v7, %v578_v5  ;;  %v1008_v11 = vpop.f32.mrb[21].mxu0  ;;  %v730_v12 = vpop.f32.mrb[21].mxu1 }
 0x11f   :  { %v1009_v15 = vadd.f32 %v1008_v11, %v1007_v6  ;;  %v731_v16 = vadd.f32 %v730_v12, %v570_v9  ;;  %v1010_v17 = vpop.f32.mrb[22].mxu0  ;;  %v1102_v18 = vpop.f32.mrb[22].mxu1 }
 0x120   :  { %848 = vst.msk [vmem:[%s1657_s3 + $0x30] sm:$0xff] %vm841_vm1, %v739_v10  ;;  %v742_v21 = vadd.f32 %v1102_v18, %v581_v14  ;;  %v1011_v22 = vpop.f32.mrb[23].mxu0  ;;  %v733_v23 = vpop.f32.mrb[23].mxu1 }
 0x121   :  { %846 = vst.msk [vmem:[%s1657_s3 + $0x20] sm:$0xff] %vm841_vm1, %v731_v16  ;;  %v1012_v24 = vadd.f32 %v1011_v22, %v1010_v17  ;;  %v734_v26 = vadd.f32 %v733_v23, %v573_v19  ;;  %v594_v27 = vadd.f32 %v1009_v15, %v1478_v50 }
 0x122   :  { %849 = vst.msk [vmem:[%s1657_s3 + $0x38] sm:$0xff] %vm841_vm1, %v742_v21 }
 0x123   :  { %847 = vst.msk [vmem:[%s1657_s3 + $0x28] sm:$0xff] %vm841_vm1, %v734_v26  ;;  %v597_v35 = vadd.f32 %v1012_v24, %v1478_v50 }
 0x125   :  { %v1013_v28 = vpop.f32.mrb[24].mxu0  ;;  %v1105_v29 = vpop.f32.mrb[24].mxu1 }
 0x126   :  { %v755_v31 = vadd.f32 %v1105_v29, %v594_v27  ;;  %v1014_v33 = vpop.f32.mrb[25].mxu0  ;;  %v746_v34 = vpop.f32.mrb[25].mxu1 }
 0x127   :  { %v1015_v36 = vadd.f32 %v1014_v33, %v1013_v28  ;;  %v747_v38 = vadd.f32 %v746_v34, %v586_v30  ;;  %v1016_v39 = vpop.f32.mrb[26].mxu0  ;;  %v1106_v40 = vpop.f32.mrb[26].mxu1 }
 0x128   :  { %852 = vst.msk [vmem:[%s1657_s3 + $0x50] sm:$0xff] %vm841_vm1, %v755_v31  ;;  %v758_v42 = vadd.f32 %v1106_v40, %v597_v35  ;;  %v1017_v43 = vpop.f32.mrb[27].mxu0  ;;  %v749_v45 = vpop.f32.mrb[27].mxu1 }
 0x129   :  { %850 = vst.msk [vmem:[%s1657_s3 + $0x40] sm:$0xff] %vm841_vm1, %v747_v38  ;;  %v1018_v46 = vadd.f32 %v1017_v43, %v1016_v39  ;;  %v750_v47 = vadd.f32 %v749_v45, %v589_v41  ;;  %v602_v52 = vadd.f32 %v1015_v36, %v1478_v50  ;;  %v658_v36 = vadd.f32 %v1463_v20, %v1478_v50 }
 0x12a   :  { %853 = vst.msk [vmem:[%s1657_s3 + $0x58] sm:$0xff] %vm841_vm1, %v758_v42  ;;  %v650_v41 = vadd.f32 %v1459_v8, %v1478_v50 }
 0x12b   :  { %851 = vst.msk [vmem:[%s1657_s3 + $0x48] sm:$0xff] %vm841_vm1, %v750_v47  ;;  %v605_v59 = vadd.f32 %v1018_v46, %v1478_v50  ;;  %v661_v46 = vadd.f32 %v1465_v25, %v1478_v50 }
 0x12d   :  { %v1019_v48 = vpop.f32.mrb[28].mxu0  ;;  %v1109_v51 = vpop.f32.mrb[28].mxu1 }
 0x12e   :  { %v1020_v53 = vpop.f32.mrb[29].mxu0  ;;  %v762_v54 = vpop.f32.mrb[29].mxu1 }
 0x12f   :  { %v1021_v55 = vadd.f32 %v1020_v53, %v1019_v48  ;;  %v763_v56 = vadd.f32 %v762_v54, %v602_v52  ;;  %v1022_v57 = vpop.f32.mrb[30].mxu0  ;;  %v1110_v58 = vpop.f32.mrb[30].mxu1  ;;  %v653_v52 = vadd.f32 %v1461_v13, %v1478_v50 }
 0x130   :  { %v1023_v60 = vpop.f32.mrb[31].mxu0  ;;  %v765_v61 = vpop.f32.mrb[31].mxu1 }
 0x131   :  { %v610_v62 = vadd.f32 %v1021_v55, %v1478_v50  ;;  %854 = vst.msk [vmem:[%s1657_s3 + $0x60] sm:$0xff] %vm841_vm1, %v763_v56  ;;  %v1024_v63 = vadd.f32 %v1023_v60, %v1022_v57  ;;  %v766_v0 = vadd.f32 %v765_v61, %v605_v59 }
 0x133   :  { %v771_v1 = vadd.f32 %v1109_v51, %v610_v62  ;;  %v613_v2 = vadd.f32 %v1024_v63, %v1478_v50  ;;  %855 = vst.msk [vmem:[%s1657_s3 + $0x68] sm:$0xff] %vm841_vm1, %v766_v0  ;;  %v666_v62 = vadd.f32 %v1467_v32, %v1478_v50 }
 0x135   :  { %856 = vst.msk [vmem:[%s1657_s3 + $0x70] sm:$0xff] %vm841_vm1, %v771_v1  ;;  %v774_v3 = vadd.f32 %v1110_v58, %v613_v2  ;;  %v1025_v4 = vpop.f32.mrb[32].mxu0  ;;  %v1113_v5 = vpop.f32.mrb[32].mxu1  ;;  %v674_v58 = vadd.f32 %v1471_v44, %v1478_v50  ;;  %v677_v2 = vadd.f32 %v1473_v49, %v1478_v50 }
 0x136   :  { %v1026_v6 = vpop.f32.mrb[33].mxu0  ;;  %v778_v7 = vpop.f32.mrb[33].mxu1 }
 0x137   :  { %857 = vst.msk [vmem:[%s1657_s3 + $0x78] sm:$0xff] %vm841_vm1, %v774_v3  ;;  %v1027_v9 = vadd.f32 %v1026_v6, %v1025_v4  ;;  %v1028_v10 = vpop.f32.mrb[34].mxu0  ;;  %v1114_v11 = vpop.f32.mrb[34].mxu1  ;;  %v669_v6 = vadd.f32 %v1469_v37, %v1478_v50 }
 0x138   :  { %v1029_v12 = vpop.f32.mrb[35].mxu0  ;;  %v781_v14 = vpop.f32.mrb[35].mxu1 }
 0x139   :  { %v618_v15 = vadd.f32 %v1027_v9, %v1478_v50  ;;  %v1030_v16 = vadd.f32 %v1029_v12, %v1028_v10 }
 0x13b   :  { %v779_v17 = vadd.f32 %v778_v7, %v618_v15  ;;  %v621_v18 = vadd.f32 %v1030_v16, %v1478_v50 }
 0x13d   :  { %858 = vst.msk [vmem:[%s1657_s3 + $0x80] sm:$0xff] %vm841_vm1, %v779_v17  ;;  %v782_v19 = vadd.f32 %v781_v14, %v621_v18  ;;  %v1031_v21 = vpop.f32.mrb[36].mxu0  ;;  %v1566_v22 = vpop.f32.mrb[36].mxu1 }
 0x13e   :  { %v1032_v23 = vpop.f32.mrb[37].mxu0  ;;  %v794_v24 = vpop.f32.mrb[37].mxu1 }
 0x13f   :  { %859 = vst.msk [vmem:[%s1657_s3 + $0x88] sm:$0xff] %vm841_vm1, %v782_v19  ;;  %v1033_v26 = vadd.f32 %v1032_v23, %v1031_v21  ;;  %v1034_v27 = vpop.f32.mrb[38].mxu0  ;;  %v1572_v28 = vpop.f32.mrb[38].mxu1 }
 0x140   :  { %v1035_v29 = vpop.f32.mrb[39].mxu0  ;;  %v797_v30 = vpop.f32.mrb[39].mxu1 }
 0x141   :  { %v626_v31 = vadd.f32 %v1033_v26, %v1478_v50  ;;  %v1036_v33 = vadd.f32 %v1035_v29, %v1034_v27 }
 0x143   :  { %v787_v34 = vadd.f32 %v1113_v5, %v626_v31  ;;  %v629_v35 = vadd.f32 %v1036_v33, %v1478_v50 }
 0x145   :  { %860 = vst.msk [vmem:[%s1657_s3 + $0x90] sm:$0xff] %vm841_vm1, %v787_v34  ;;  %v790_v38 = vadd.f32 %v1114_v11, %v629_v35  ;;  %v1037_v39 = vpop.f32.mrb[40].mxu0  ;;  %v1121_v40 = vpop.f32.mrb[40].mxu1 }
 0x146   :  { %v819_v42 = vadd.f32 %v1121_v40, %v658_v36  ;;  %v1038_v43 = vpop.f32.mrb[41].mxu0  ;;  %v810_v45 = vpop.f32.mrb[41].mxu1 }
 0x147   :  { %861 = vst.msk [vmem:[%s1657_s3 + $0x98] sm:$0xff] %vm841_vm1, %v790_v38  ;;  %v1039_v20 = vadd.f32 %v1038_v43, %v1037_v39  ;;  %v811_v47 = vadd.f32 %v810_v45, %v650_v41  ;;  %v1040_v48 = vpop.f32.mrb[42].mxu0  ;;  %v1122_v51 = vpop.f32.mrb[42].mxu1 }
 0x148   :  { %868 = vst.msk [vmem:[%s1657_s3 + $0xd0] sm:$0xff] %vm841_vm1, %v819_v42  ;;  %v822_v8 = vadd.f32 %v1122_v51, %v661_v46  ;;  %v1041_v53 = vpop.f32.mrb[43].mxu0  ;;  %v813_v25 = vpop.f32.mrb[43].mxu1 }
 0x149   :  { %v634_v54 = vadd.f32 %v1039_v20, %v1478_v50  ;;  %866 = vst.msk [vmem:[%s1657_s3 + $0xc0] sm:$0xff] %vm841_vm1, %v811_v47  ;;  %v1042_v55 = vadd.f32 %v1041_v53, %v1040_v48  ;;  %v814_v56 = vadd.f32 %v813_v25, %v653_v52 }
 0x14a   :  { %869 = vst.msk [vmem:[%s1657_s3 + $0xd8] sm:$0xff] %vm841_vm1, %v822_v8 }
 0x14b   :  { %v795_v13 = vadd.f32 %v794_v24, %v634_v54  ;;  %v637_v57 = vadd.f32 %v1042_v55, %v1478_v50  ;;  %867 = vst.msk [vmem:[%s1657_s3 + $0xc8] sm:$0xff] %vm841_vm1, %v814_v56 }
 0x14d   :  { %862 = vst.msk [vmem:[%s1657_s3 + $0xa0] sm:$0xff] %vm841_vm1, %v795_v13  ;;  %v798_v59 = vadd.f32 %v797_v30, %v637_v57  ;;  %v1043_v60 = vpop.f32.mrb[44].mxu0  ;;  %v1125_v61 = vpop.f32.mrb[44].mxu1 }
 0x14e   :  { %v835_v63 = vadd.f32 %v1125_v61, %v674_v58  ;;  %v1044_v0 = vpop.f32.mrb[45].mxu0  ;;  %v826_v1 = vpop.f32.mrb[45].mxu1 }
 0x14f   :  { %863 = vst.msk [vmem:[%s1657_s3 + $0xa8] sm:$0xff] %vm841_vm1, %v798_v59  ;;  %v1045_v44 = vadd.f32 %v1044_v0, %v1043_v60  ;;  %v827_v3 = vadd.f32 %v826_v1, %v666_v62  ;;  %v1046_v4 = vpop.f32.mrb[46].mxu0  ;;  %v1126_v5 = vpop.f32.mrb[46].mxu1 }
 0x150   :  { %872 = vst.msk [vmem:[%s1657_s3 + $0xf0] sm:$0xff] %vm841_vm1, %v835_v63  ;;  %v838_v32 = vadd.f32 %v1126_v5, %v677_v2  ;;  %v1047_v7 = vpop.f32.mrb[47].mxu0  ;;  %v829_v49 = vpop.f32.mrb[47].mxu1 }
 0x151   :  { %v642_v9 = vadd.f32 %v1045_v44, %v1478_v50  ;;  %870 = vst.msk [vmem:[%s1657_s3 + $0xe0] sm:$0xff] %vm841_vm1, %v827_v3  ;;  %v1048_v10 = vadd.f32 %v1047_v7, %v1046_v4  ;;  %v830_v11 = vadd.f32 %v829_v49, %v669_v6 }
 0x152   :  { %873 = vst.msk [vmem:[%s1657_s3 + $0xf8] sm:$0xff] %vm841_vm1, %v838_v32 }
 0x153   :  { %v803_v37 = vadd.f32 %v1566_v22, %v642_v9  ;;  %v645_v12 = vadd.f32 %v1048_v10, %v1478_v50  ;;  %871 = vst.msk [vmem:[%s1657_s3 + $0xe8] sm:$0xff] %vm841_vm1, %v830_v11 }
 0x155   :  { %864 = vst.msk [vmem:[%s1657_s3 + $0xb0] sm:$0xff] %vm841_vm1, %v803_v37  ;;  %v806_v14 = vadd.f32 %v1572_v28, %v645_v12 }
 0x157   :  { %865 = vst.msk [vmem:[%s1657_s3 + $0xb8] sm:$0xff] %vm841_vm1, %v806_v14 }

// kernel: drn_forward.23
= control target key start
LH: loop header
LB: loop body
LE: loop exit
PB: predicated region body
PF: predicated region fallthrough
CT: control target
= control target key end

     0   :  { %s4582_s21 = smov 0   ;;  %s4584_s22 = smov 0   ;;  %s7922_s0 = inlined_call_operand.vmem [shape: f32[4,3,256], index: 0, kind: input, shape index: {}]   ;;  %s7923_s1 = inlined_call_operand.vmem [shape: bf16[1,288,256], index: 1, kind: input, shape index: {}]   ;;  %s7924_s2 = inlined_call_operand.vmem [shape: f32[256,3], index: 2, kind: input, shape index: {}]   ;;  %s7925_s3 = inlined_call_operand.vmem [shape: f32[256,1], index: 3, kind: input, shape index: {}]   ;;  %s7926_s4 = inlined_call_operand.vmem [shape: bf16[864,256], index: 4, kind: input, shape index: {}]   ;;  %s7927_s5 = inlined_call_operand.vmem [shape: f32[864,1], index: 5, kind: input, shape index: {}]   ;;  %s7928_s6 = inlined_call_operand.vmem [shape: f32[1,4,3,256], index: 6, kind: output, shape index: {}]  }
   0x1   :  { %s4586_s23 = smov 0  }
   0x2 LB: > { %s31_s24 = sadd.s32 1, %s4538_s22  ;;  %p4168_p0 = scmp.ge.s32.totalorder %s4542_s23, 1  ;;  %s4542_s23 = sphi %s4586_s23, %s16_s23   ;;  %s4538_s22 = sphi %s4584_s22, %s8605_s22   ;;  %s4534_s21 = sphi %s4582_s21, %s8604_s21  }
   0x3   : > { %p33_p1 = scmp.ge.s32.totalorder %s31_s24, 4  ;;  %p259_p2 = scmp.lt.s32.totalorder %s4542_s23, 5 }
   0x5   : > { %s8607_s24 = smov (%p33_p1, %s31_s24), 0  ;;  %p260_p3 = pnand %p4168_p0, %p259_p2 }
   0x7   : > { %263 = sbr.rel (%p260_p3) target bundleno = 870 (0x366), region = 44 }
   0xe   : > { %v4605_v0 = vld [vmem:[%s7924_s2 + $0x10] sm:$0xff]  ;;  %v4610_v1 = vld [vmem:[%s7924_s2] sm:$0xff]  ;;  %v7929_v2 = vmov 0   ;;  %v4619_v3 = vld [vmem:[%s7924_s2 + $0x18] sm:$0xff]  ;;  %p311_p4 = scmp.lt.s32.totalorder %s4534_s21, 3  ;;  %vm4025_vm0 = vcmask 1040384  }
   0xf   : > { %4345 = vset.pattern.permute.xlu1 %v7929_v2  ;;  %4344 = vset.pattern.permute.xlu0 %v7929_v2  ;;  %v4624_v4 = vld [vmem:[%s7924_s2 + $0x8] sm:$0xff]  ;;  %v4636_v6 = vld [vmem:[%s7924_s2 + $0x20] sm:$0xff]  ;;  %v4643_v7 = vld [vmem:[%s7924_s2 + $0x38] sm:$0xff]  ;;  %v7936_v2 = vmov 2   ;;  %vm4028_vm1 = vcmask 1041408  }
  0x10   : > { %421 = vperm.xlu1 %4345, %v4605_v0   ;;  %411 = vperm.xlu0 %4344, %v4610_v1   ;;  %v4631_v5 = vld [vmem:[%s7924_s2 + $0x28] sm:$0xff]  ;;  %v4648_v8 = vld [vmem:[%s7924_s2 + $0x30] sm:$0xff]  ;;  %v4660_v10 = vld [vmem:[%s7924_s2 + $0x40] sm:$0xff]  ;;  %s8609_s21 = smov (!%p311_p4, %s4534_s21), 3 }
  0x11   : > { %v4655_v9 = vld [vmem:[%s7924_s2 + $0x48] sm:$0xff]  ;;  %v4667_v11 = vld [vmem:[%s7924_s2 + $0x58] sm:$0xff]  ;;  %v4672_v12 = vld [vmem:[%s7924_s2 + $0x50] sm:$0xff]  ;;  %s4283_s9 = sshll.u32 %s8609_s21, 3 }
  0x12   : > { %v4677_v13 = vld [vmem:[%s7924_s2 + $0x68] sm:$0xff]  ;;  %v4682_v14 = vld [vmem:[%s7924_s2 + $0x60] sm:$0xff]  ;;  %v4689_v15 = vld [vmem:[%s7924_s2 + $0x78] sm:$0xff]  ;;  %s318_s12 = scalar_lea.vmem %s7922_s0, %s4283_s9  ;;  %s342_s29 = scalar_lea.vmem %s7928_s6, %s4283_s9 }
  0x13   : > { %v4694_v16 = vld [vmem:[%s7924_s2 + $0x70] sm:$0xff]  ;;  %v4701_v17 = vld [vmem:[%s7924_s2 + $0x88] sm:$0xff]  ;;  %v4706_v18 = vld [vmem:[%s7924_s2 + $0x80] sm:$0xff] }
  0x14   : > { %426 = vperm.xlu1 %4345, %v4619_v3   ;;  %416 = vperm.xlu0 %4344, %v4624_v4   ;;  %v4713_v19 = vld [vmem:[%s7924_s2 + $0x98] sm:$0xff]  ;;  %v4718_v20 = vld [vmem:[%s7924_s2 + $0x90] sm:$0xff]  ;;  %v4725_v21 = vld [vmem:[%s7924_s2 + $0xa8] sm:$0xff] }
  0x15   : > { %v4730_v22 = vld [vmem:[%s7924_s2 + $0xa0] sm:$0xff]  ;;  %v4737_v23 = vld [vmem:[%s7924_s2 + $0xb8] sm:$0xff]  ;;  %v4742_v24 = vld [vmem:[%s7924_s2 + $0xb0] sm:$0xff] }
  0x16   : > { %v4749_v25 = vld [vmem:[%s7924_s2 + $0xc8] sm:$0xff]  ;;  %v4754_v26 = vld [vmem:[%s7924_s2 + $0xc0] sm:$0xff]  ;;  %v4761_v27 = vld [vmem:[%s7924_s2 + $0xd8] sm:$0xff] }
  0x17   : > { %v4766_v28 = vld [vmem:[%s7924_s2 + $0xd0] sm:$0xff]  ;;  %v4773_v29 = vld [vmem:[%s7924_s2 + $0xe8] sm:$0xff]  ;;  %v4778_v30 = vld [vmem:[%s7924_s2 + $0xe0] sm:$0xff] }
  0x18   : > { %436 = vperm.xlu1 %4345, %v4631_v5   ;;  %431 = vperm.xlu0 %4344, %v4636_v6   ;;  %v4787_v31 = vld [vmem:[%s7924_s2 + $0xf8] sm:$0xff]  ;;  %v4792_v32 = vld [vmem:[%s7924_s2 + $0xf0] sm:$0xff]  ;;  %v378_v33 = vld [vmem:[%s7925_s3 + $0x8] sm:$0xff] }
  0x19   : > { %v377_v34 = vld [vmem:[%s7925_s3] sm:$0xff]  ;;  %v380_v35 = vld [vmem:[%s7925_s3 + $0x18] sm:$0xff]  ;;  %v379_v36 = vld [vmem:[%s7925_s3 + $0x10] sm:$0xff] }
  0x1a   : > { %v382_v37 = vld [vmem:[%s7925_s3 + $0x28] sm:$0xff]  ;;  %v381_v38 = vld [vmem:[%s7925_s3 + $0x20] sm:$0xff]  ;;  %v384_v39 = vld [vmem:[%s7925_s3 + $0x38] sm:$0xff] }
  0x1b   : > { %v383_v40 = vld [vmem:[%s7925_s3 + $0x30] sm:$0xff]  ;;  %v386_v41 = vld [vmem:[%s7925_s3 + $0x48] sm:$0xff]  ;;  %v385_v42 = vld [vmem:[%s7925_s3 + $0x40] sm:$0xff] }
  0x1c   : > { %446 = vperm.xlu1 %4345, %v4643_v7   ;;  %441 = vperm.xlu0 %4344, %v4648_v8   ;;  %v388_v43 = vld [vmem:[%s7925_s3 + $0x58] sm:$0xff]  ;;  %v387_v44 = vld [vmem:[%s7925_s3 + $0x50] sm:$0xff]  ;;  %v390_v45 = vld [vmem:[%s7925_s3 + $0x68] sm:$0xff] }
  0x1d   : > { %v389_v46 = vld [vmem:[%s7925_s3 + $0x60] sm:$0xff]  ;;  %v392_v47 = vld [vmem:[%s7925_s3 + $0x78] sm:$0xff]  ;;  %v391_v48 = vld [vmem:[%s7925_s3 + $0x70] sm:$0xff] }
  0x1e   : > { %v394_v49 = vld [vmem:[%s7925_s3 + $0x88] sm:$0xff]  ;;  %v393_v50 = vld [vmem:[%s7925_s3 + $0x80] sm:$0xff]  ;;  %v396_v51 = vld [vmem:[%s7925_s3 + $0x98] sm:$0xff] }
  0x1f   : > { %v395_v52 = vld [vmem:[%s7925_s3 + $0x90] sm:$0xff]  ;;  %v398_v53 = vld [vmem:[%s7925_s3 + $0xa8] sm:$0xff]  ;;  %v397_v54 = vld [vmem:[%s7925_s3 + $0xa0] sm:$0xff] }
  0x20   : > { %456 = vperm.xlu1 %4345, %v4655_v9   ;;  %451 = vperm.xlu0 %4344, %v4660_v10   ;;  %v400_v55 = vld [vmem:[%s7925_s3 + $0xb8] sm:$0xff]  ;;  %v399_v56 = vld [vmem:[%s7925_s3 + $0xb0] sm:$0xff]  ;;  %v402_v57 = vld [vmem:[%s7925_s3 + $0xc8] sm:$0xff] }
  0x21   : > { %v401_v58 = vld [vmem:[%s7925_s3 + $0xc0] sm:$0xff]  ;;  %v404_v59 = vld [vmem:[%s7925_s3 + $0xd8] sm:$0xff]  ;;  %v403_v60 = vld [vmem:[%s7925_s3 + $0xd0] sm:$0xff] }
  0x22   : > { %v406_v61 = vld [vmem:[%s7925_s3 + $0xe8] sm:$0xff]  ;;  %v405_v62 = vld [vmem:[%s7925_s3 + $0xe0] sm:$0xff]  ;;  %v408_v63 = vld [vmem:[%s7925_s3 + $0xf8] sm:$0xff] }
  0x24   : > { %466 = vperm.xlu1 %4345, %v4667_v11   ;;  %461 = vperm.xlu0 %4344, %v4672_v12  }
  0x28   : > { %476 = vperm.xlu1 %4345, %v4677_v13   ;;  %471 = vperm.xlu0 %4344, %v4682_v14  }
  0x2c   : > { %486 = vperm.xlu1 %4345, %v4689_v15   ;;  %481 = vperm.xlu0 %4344, %v4694_v16  }
  0x30   : > { %496 = vperm.xlu1 %4345, %v4701_v17   ;;  %491 = vperm.xlu0 %4344, %v4706_v18  }
  0x34   : > { %506 = vperm.xlu1 %4345, %v4713_v19   ;;  %501 = vperm.xlu0 %4344, %v4718_v20  }
  0x38   : > { %516 = vperm.xlu1 %4345, %v4725_v21   ;;  %511 = vperm.xlu0 %4344, %v4730_v22  }
  0x3c   : > { %526 = vperm.xlu1 %4345, %v4737_v23   ;;  %521 = vperm.xlu0 %4344, %v4742_v24  }
  0x40   : > { %536 = vperm.xlu1 %4345, %v4749_v25   ;;  %531 = vperm.xlu0 %4344, %v4754_v26  }
  0x44   : > { %546 = vperm.xlu1 %4345, %v4761_v27   ;;  %541 = vperm.xlu0 %4344, %v4766_v28  }
  0x48   : > { %556 = vperm.xlu1 %4345, %v4773_v29   ;;  %551 = vperm.xlu0 %4344, %v4778_v30  }
  0x4c   : > { %566 = vperm.xlu1 %4345, %v4787_v31   ;;  %561 = vperm.xlu0 %4344, %v4792_v32  }
  0x50   : > { %659 = vperm.xlu1 %4345, %v378_v33   ;;  %654 = vperm.xlu0 %4344, %v377_v34   ;;  %v407_v33 = vld [vmem:[%s7925_s3 + $0xf0] sm:$0xff] }
  0x54   : > { %669 = vperm.xlu1 %4345, %v380_v35   ;;  %664 = vperm.xlu0 %4344, %v379_v36   ;;  %v7931_v36 = vmov 1  }
  0x58   : > { %679 = vperm.xlu1 %4345, %v382_v37   ;;  %674 = vperm.xlu0 %4344, %v381_v38  }
  0x5c   : > { %689 = vperm.xlu1 %4345, %v384_v39   ;;  %684 = vperm.xlu0 %4344, %v383_v40  }
  0x60   : > { %699 = vperm.xlu1 %4345, %v386_v41   ;;  %694 = vperm.xlu0 %4344, %v385_v42  }
  0x64   : > { %709 = vperm.xlu1 %4345, %v388_v43   ;;  %704 = vperm.xlu0 %4344, %v387_v44  }
  0x68   : > { %719 = vperm.xlu1 %4345, %v390_v45   ;;  %714 = vperm.xlu0 %4344, %v389_v46  }
  0x6c   : > { %729 = vperm.xlu1 %4345, %v392_v47   ;;  %724 = vperm.xlu0 %4344, %v391_v48  }
  0x70   : > { %739 = vperm.xlu1 %4345, %v394_v49   ;;  %734 = vperm.xlu0 %4344, %v393_v50  }
  0x74   : > { %749 = vperm.xlu1 %4345, %v396_v51   ;;  %744 = vperm.xlu0 %4344, %v395_v52  }
  0x78   : > { %759 = vperm.xlu1 %4345, %v398_v53   ;;  %754 = vperm.xlu0 %4344, %v397_v54  }
  0x7c   : > { %769 = vperm.xlu1 %4345, %v400_v55   ;;  %764 = vperm.xlu0 %4344, %v399_v56  }
  0x80   : > { %779 = vperm.xlu1 %4345, %v402_v57   ;;  %774 = vperm.xlu0 %4344, %v401_v58  }
  0x84   : > { %789 = vperm.xlu1 %4345, %v404_v59   ;;  %784 = vperm.xlu0 %4344, %v403_v60  }
  0x88   : > { %799 = vperm.xlu1 %4345, %v406_v61   ;;  %794 = vperm.xlu0 %4344, %v405_v62  }
  0x8c   : > { %809 = vperm.xlu1 %4345, %v408_v63   ;;  %804 = vperm.xlu0 %4344, %v407_v33  }
  0x8f   : > { %v4892_v34 = vpop.permute.xlu1 %421  ;;  %v4894_v35 = vpop.permute.xlu0 %411 }
  0x90   : > { %4347 = vset.pattern.permute.xlu1 %v7931_v36  ;;  %4346 = vset.pattern.permute.xlu0 %v7931_v36 }
  0x91   : > { %881 = vperm.xlu1 %4347, %v4624_v4   ;;  %877 = vperm.xlu0 %4346, %v4610_v1  }
  0x93   : > { %v4900_v37 = vpop.permute.xlu1 %426  ;;  %v4902_v38 = vpop.permute.xlu0 %416 }
  0x95   : > { %885 = vperm.xlu1 %4347, %v4605_v0   ;;  %889 = vperm.xlu0 %4346, %v4619_v3  }
  0x97   : > { %v4906_v39 = vpop.permute.xlu1 %436  ;;  %v4908_v40 = vpop.permute.xlu0 %431 }
  0x99   : > { %893 = vperm.xlu1 %4347, %v4636_v6   ;;  %897 = vperm.xlu0 %4346, %v4631_v5  }
  0x9b   : > { %v4912_v41 = vpop.permute.xlu1 %446  ;;  %v4914_v42 = vpop.permute.xlu0 %441 }
  0x9d   : > { %901 = vperm.xlu1 %4347, %v4648_v8   ;;  %905 = vperm.xlu0 %4346, %v4643_v7  }
  0x9f   : > { %v4918_v43 = vpop.permute.xlu1 %456  ;;  %v4920_v44 = vpop.permute.xlu0 %451 }
  0xa1   : > { %909 = vperm.xlu1 %4347, %v4660_v10   ;;  %913 = vperm.xlu0 %4346, %v4655_v9  }
  0xa3   : > { %v4924_v45 = vpop.permute.xlu1 %466  ;;  %v4926_v46 = vpop.permute.xlu0 %461 }
  0xa5   : > { %917 = vperm.xlu1 %4347, %v4672_v12   ;;  %921 = vperm.xlu0 %4346, %v4667_v11  }
  0xa7   : > { %v4930_v47 = vpop.permute.xlu1 %476  ;;  %v4932_v48 = vpop.permute.xlu0 %471 }
  0xa9   : > { %925 = vperm.xlu1 %4347, %v4682_v14   ;;  %929 = vperm.xlu0 %4346, %v4677_v13  }
  0xab   : > { %v4936_v49 = vpop.permute.xlu1 %486  ;;  %v4938_v50 = vpop.permute.xlu0 %481 }
  0xad   : > { %933 = vperm.xlu1 %4347, %v4694_v16   ;;  %937 = vperm.xlu0 %4346, %v4689_v15  }
  0xaf   : > { %v4942_v51 = vpop.permute.xlu1 %496  ;;  %v4944_v52 = vpop.permute.xlu0 %491 }
  0xb1   : > { %941 = vperm.xlu1 %4347, %v4706_v18   ;;  %945 = vperm.xlu0 %4346, %v4701_v17  }
  0xb3   : > { %v4948_v53 = vpop.permute.xlu1 %506  ;;  %v4950_v54 = vpop.permute.xlu0 %501 }
  0xb5   : > { %949 = vperm.xlu1 %4347, %v4718_v20   ;;  %953 = vperm.xlu0 %4346, %v4713_v19  }
  0xb7   : > { %v4954_v55 = vpop.permute.xlu1 %516  ;;  %v4956_v56 = vpop.permute.xlu0 %511 }
  0xb9   : > { %957 = vperm.xlu1 %4347, %v4730_v22   ;;  %961 = vperm.xlu0 %4346, %v4725_v21  }
  0xbb   : > { %v4960_v57 = vpop.permute.xlu1 %526  ;;  %v4962_v58 = vpop.permute.xlu0 %521 }
  0xbd   : > { %965 = vperm.xlu1 %4347, %v4742_v24   ;;  %969 = vperm.xlu0 %4346, %v4737_v23  }
  0xbf   : > { %v4966_v59 = vpop.permute.xlu1 %536  ;;  %v4968_v60 = vpop.permute.xlu0 %531 }
  0xc1   : > { %973 = vperm.xlu1 %4347, %v4754_v26   ;;  %977 = vperm.xlu0 %4346, %v4749_v25  }
  0xc3   : > { %v4972_v61 = vpop.permute.xlu1 %546  ;;  %v4974_v62 = vpop.permute.xlu0 %541 }
  0xc4   : > { %8144 = vst [vmem:[#allocation2_spill] sm:$0xff] %v4974_v62 }
  0xc5   : > { %981 = vperm.xlu1 %4347, %v4766_v28   ;;  %989 = vperm.xlu0 %4346, %v4778_v30  }
  0xc7   : > { %v4978_v63 = vpop.permute.xlu1 %556  ;;  %v4980_v33 = vpop.permute.xlu0 %551 }
  0xc8   : > { %8145 = vst [vmem:[#allocation3_spill] sm:$0xff] %v4978_v63  ;;  %8146 = vst [vmem:[#allocation4_spill] sm:$0xff] %v4980_v33 }
  0xc9   : > { %4348 = vset.pattern.permute.xlu1 %v7936_v2  ;;  %4351 = vset.pattern.permute.xlu0 %v7936_v2 }
  0xca   : > { %1155 = vperm.xlu1 %4348, %v4624_v4   ;;  %1151 = vperm.xlu0 %4351, %v4610_v1  }
  0xcb   : > { %v4986_v36 = vpop.permute.xlu1 %566  ;;  %v4988_v62 = vpop.permute.xlu0 %561 }
  0xcc   : > { %8147 = vst [vmem:[#allocation5_spill] sm:$0xff] %v4986_v36  ;;  %8148 = vst [vmem:[#allocation6_spill] sm:$0xff] %v4988_v62  ;;  %v8165_v36 = vmov 2  }
  0xce   : > { %1159 = vperm.xlu1 %4348, %v4605_v0   ;;  %1163 = vperm.xlu0 %4351, %v4619_v3  }
  0xcf   : > { %v4992_v63 = vpop.permute.xlu1 %659  ;;  %v4994_v33 = vpop.permute.xlu0 %654 }
  0xd2   : > { %1167 = vperm.xlu1 %4348, %v4636_v6   ;;  %1171 = vperm.xlu0 %4351, %v4631_v5  }
  0xd3   : > { %v4998_v2 = vpop.permute.xlu1 %669  ;;  %v5000_v4 = vpop.permute.xlu0 %664 }
  0xd6   : > { %1175 = vperm.xlu1 %4348, %v4648_v8   ;;  %1179 = vperm.xlu0 %4351, %v4643_v7  }
  0xd7   : > { %v5004_v1 = vpop.permute.xlu1 %679  ;;  %v5006_v0 = vpop.permute.xlu0 %674 }
  0xda   : > { %1183 = vperm.xlu1 %4348, %v4660_v10   ;;  %1187 = vperm.xlu0 %4351, %v4655_v9  }
  0xdb   : > { %v5010_v3 = vpop.permute.xlu1 %689  ;;  %v5012_v6 = vpop.permute.xlu0 %684 }
  0xde   : > { %1191 = vperm.xlu1 %4348, %v4672_v12   ;;  %1195 = vperm.xlu0 %4351, %v4667_v11  }
  0xdf   : > { %v5016_v5 = vpop.permute.xlu1 %699  ;;  %v5018_v8 = vpop.permute.xlu0 %694 }
  0xe2   : > { %1199 = vperm.xlu1 %4348, %v4682_v14   ;;  %1203 = vperm.xlu0 %4351, %v4677_v13  }
  0xe3   : > { %v5022_v7 = vpop.permute.xlu1 %709  ;;  %v5024_v10 = vpop.permute.xlu0 %704 }
  0xe6   : > { %1207 = vperm.xlu1 %4348, %v4694_v16   ;;  %1211 = vperm.xlu0 %4351, %v4689_v15  }
  0xe7   : > { %v5028_v9 = vpop.permute.xlu1 %719  ;;  %v5030_v12 = vpop.permute.xlu0 %714 }
  0xe8   : > { %8149 = vst [vmem:[#allocation7_spill] sm:$0xff] %v5028_v9  ;;  %8150 = vst [vmem:[#allocation8_spill] sm:$0xff] %v5030_v12 }
  0xea   : > { %1215 = vperm.xlu1 %4348, %v4706_v18   ;;  %1219 = vperm.xlu0 %4351, %v4701_v17  }
  0xeb   : > { %v5034_v11 = vpop.permute.xlu1 %729  ;;  %v5036_v14 = vpop.permute.xlu0 %724 }
  0xec   : > { %8151 = vst [vmem:[#allocation9_spill] sm:$0xff] %v5034_v11  ;;  %8152 = vst [vmem:[#allocation10_spill] sm:$0xff] %v5036_v14 }
  0xee   : > { %1223 = vperm.xlu1 %4348, %v4718_v20   ;;  %1227 = vperm.xlu0 %4351, %v4713_v19  }
  0xef   : > { %v5040_v13 = vpop.permute.xlu1 %739  ;;  %v5042_v15 = vpop.permute.xlu0 %734 }
  0xf0   : > { %8153 = vst [vmem:[#allocation11_spill] sm:$0xff] %v5040_v13  ;;  %8154 = vst [vmem:[#allocation12_spill] sm:$0xff] %v5042_v15 }
  0xf2   : > { %1231 = vperm.xlu1 %4348, %v4730_v22   ;;  %1235 = vperm.xlu0 %4351, %v4725_v21   ;;  %v8161_v22 = vmov 1  }
  0xf3   : > { %v5046_v16 = vpop.permute.xlu1 %749  ;;  %v5048_v17 = vpop.permute.xlu0 %744 }
  0xf4   : > { %8155 = vst [vmem:[#allocation13_spill] sm:$0xff] %v5046_v16  ;;  %8156 = vst [vmem:[#allocation14_spill] sm:$0xff] %v5048_v17  ;;  %v1669_v17 = vld [vmem:[%s7927_s5 + $0x28] sm:$0xff] }
  0xf6   : > { %1239 = vperm.xlu1 %4348, %v4742_v24   ;;  %1243 = vperm.xlu0 %4351, %v4737_v23  }
  0xf7   : > { %v5052_v18 = vpop.permute.xlu1 %759  ;;  %v5054_v19 = vpop.permute.xlu0 %754 }
  0xf8   : > { %8157 = vst [vmem:[#allocation15_spill] sm:$0xff] %v5052_v18  ;;  %8158 = vst [vmem:[#allocation16_spill] sm:$0xff] %v5054_v19 }
  0xfa   : > { %1247 = vperm.xlu1 %4348, %v4754_v26   ;;  %1251 = vperm.xlu0 %4351, %v4749_v25   ;;  %v570_v25 = vlaneseq }
  0xfb   : > { %v5058_v20 = vpop.permute.xlu1 %769  ;;  %v5060_v21 = vpop.permute.xlu0 %764 }
  0xfc   : > { %8159 = vst [vmem:[#allocation17_spill] sm:$0xff] %v5058_v20  ;;  %8160 = vst [vmem:[#allocation18_spill] sm:$0xff] %v5060_v21  ;;  %v8171_v21 = vmov 0  }
  0xfe   : > { %4349 = vset.pattern.permute.xlu1 %v8161_v22  ;;  %1255 = vperm.xlu0 %4351, %v4766_v28   ;;  %v5081_v28 = vshrl.u32 %v570_v25, 7 }
  0xff   : > { %v5065_v24 = vpop.permute.xlu1 %779  ;;  %985 = vperm.xlu1 %4349, %v4761_v27   ;;  %v5068_v23 = vpop.permute.xlu0 %774 }
 0x100   : > { %8162 = vst [vmem:[#allocation19_spill] sm:$0xff] %v5065_v24  ;;  %8163 = vst [vmem:[#allocation20_spill] sm:$0xff] %v5068_v23  ;;  %v572_v25 = vsub.s32 0, %v5081_v28  ;;  %v1006_v18 = vsub.s32 1, %v5081_v28 }
 0x102   : > { %1267 = vperm.xlu0 %4351, %v4773_v29  }
 0x103   : > { %v5074_v26 = vpop.permute.xlu1 %789  ;;  %4350 = vset.pattern.permute.xlu1 %v8165_v36  ;;  %v5077_v62 = vpop.permute.xlu0 %784 }
 0x104   : > { %8164 = vst [vmem:[#allocation21_spill] sm:$0xff] %v5074_v26  ;;  %8166 = vst [vmem:[#allocation22_spill] sm:$0xff] %v5077_v62  ;;  %1259 = vperm.xlu1 %4350, %v4761_v27   ;;  %v1664_v27 = vld [vmem:[%s7927_s5] sm:$0xff]  ;;  %v576_v26 = vsub.s32 4, %v5081_v28 }
 0x106   : > { %1271 = vperm.xlu0 %4351, %v4792_v32  }
 0x107   : > { %v5084_v23 = vpop.permute.xlu1 %799  ;;  %v5086_v24 = vpop.permute.xlu0 %794 }
 0x108   : > { %8167 = vst [vmem:[#allocation23_spill] sm:$0xff] %v5084_v23  ;;  %8168 = vst [vmem:[#allocation24_spill] sm:$0xff] %v5086_v24  ;;  %4352 = vset.pattern.permute.xlu1 %v8161_v22  ;;  %v5100_v23 = vld [vmem:[%s318_s12] sm:$0x77] }
 0x109   : > { %993 = vperm.xlu1 %4352, %v4773_v29   ;;  %v1667_v29 = vld [vmem:[%s7927_s5 + $0x18] sm:$0xff]  ;;  %v573_v20 = vrot.slane %v5100_v23, %v572_v25  ;;  %v577_v19 = vrot.slane %v5100_v23, %v576_v26  ;;  %v1007_v26 = vrot.slane %v5100_v23, %v1006_v18 }
 0x10a   : > { %4356 = vset.pattern.permute.xlu0 %v8171_v21 }
 0x10b   : > { %v5102_v24 = vpop.permute.xlu1 %809  ;;  %v5104_v62 = vpop.permute.xlu0 %804  ;;  %1702 = vperm.xlu0 %4356, %v1664_v27   ;;  %v5123_v16 = vrot.slane %v573_v20, %v572_v25  ;;  %v1671_v20 = vld [vmem:[%s7927_s5 + $0x38] sm:$0xff] }
 0x10c   : > { %8169 = vst [vmem:[#allocation25_spill] sm:$0xff] %v5102_v24  ;;  %8170 = vst [vmem:[#allocation26_spill] sm:$0xff] %v5104_v62  ;;  %v1010_v24 = vsub.s32 5, %v5081_v28 }
 0x10d   : > { %4353 = vset.pattern.permute.xlu1 %v8165_v36  ;;  %8174 = vst [vmem:[#allocation29_spill] sm:$0xff] %v5123_v16  ;;  %v5252_v11 = vmul.f32 %v5123_v16, %v4930_v47  ;;  %v5273_v12 = vmul.f32 %v5123_v16, %v4936_v49 }
 0x10e   : > { %1263 = vperm.xlu1 %4353, %v4778_v30   ;;  %v5126_v30 = vrot.slane %v577_v19, %v572_v25  ;;  %v1011_v15 = vrot.slane %v5100_v23, %v1010_v24  ;;  %v5154_v24 = vrot.slane %v1007_v26, %v1006_v18  ;;  %v5159_v25 = vmul.f32 %v5123_v16, %v4900_v37 }
 0x10f   : > { %1717 = vperm.xlu0 %4356, %v1667_v29   ;;  %8187 = vst [vmem:[#allocation42_spill] sm:$0xff] %v5273_v12  ;;  %v1284_v12 = vsub.s32 6, %v5081_v28 }
 0x110   : > { %v5116_v62 = vpop.permute.xlu1 %881  ;;  %v5118_v27 = vpop.permute.xlu0 %877  ;;  %8175 = vst [vmem:[#allocation30_spill] sm:$0xff] %v5126_v30  ;;  %v5144_v19 = vmul.f32 %v5126_v30, %v4892_v34  ;;  %8178 = vst [vmem:[#allocation33_spill] sm:$0xff] %v5154_v24  ;;  %v5175_v26 = vmul.f32 %v5126_v30, %v4902_v38  ;;  %v5187_v24 = vmul.f32 %v5123_v16, %v4908_v40 }
 0x111   : > { %8172 = vst [vmem:[#allocation27_spill] sm:$0xff] %v5116_v62  ;;  %8173 = vst [vmem:[#allocation28_spill] sm:$0xff] %v5118_v27  ;;  %v5179_v27 = vmul.f32 %v5123_v16, %v4906_v39  ;;  %v5229_v13 = vmul.f32 %v5126_v30, %v4920_v44  ;;  %v5237_v14 = vmul.f32 %v5126_v30, %v4924_v45 }
 0x112   : > { %4354 = vset.pattern.permute.xlu1 %v8161_v22  ;;  %v5140_v22 = vmul.f32 %v5123_v16, %v4892_v34  ;;  %v5163_v34 = vmul.f32 %v5126_v30, %v4900_v37  ;;  %v5183_v37 = vmul.f32 %v5126_v30, %v4906_v39  ;;  %v5204_v39 = vmul.f32 %v5126_v30, %v4912_v41 }
 0x113   : > { %997 = vperm.xlu1 %4354, %v4792_v32   ;;  %1727 = vperm.xlu0 %4356, %v1669_v17   ;;  %v5148_v32 = vmul.f32 %v5123_v16, %v4894_v35  ;;  %v5152_v17 = vmul.f32 %v5126_v30, %v4894_v35  ;;  %v5298_v9 = vmul.f32 %v5126_v30, %v4942_v51 }
 0x114   : > { %v5131_v62 = vpop.permute.xlu1 %885  ;;  %v5133_v29 = vpop.permute.xlu0 %889 }
 0x115   : > { %8176 = vst [vmem:[#allocation31_spill] sm:$0xff] %v5131_v62  ;;  %8177 = vst [vmem:[#allocation32_spill] sm:$0xff] %v5133_v29  ;;  %v5167_v29 = vmul.f32 %v5123_v16, %v4902_v38  ;;  %v5169_v62 = vrot.slane %v1011_v15, %v1006_v18  ;;  %v1673_v18 = vld [vmem:[%s7927_s5 + $0x48] sm:$0xff]  ;;  %v5196_v38 = vmul.f32 %v5126_v30, %v4908_v40 }
 0x116   : > { %v5216_v40 = vmul.f32 %v5123_v16, %v4918_v43 }
 0x117   : > { %1001 = vperm.xlu1 %4354, %v4787_v31   ;;  %8179 = vst [vmem:[#allocation34_spill] sm:$0xff] %v5169_v62  ;;  %1737 = vperm.xlu0 %4356, %v1671_v20   ;;  %v5200_v20 = vmul.f32 %v5123_v16, %v4912_v41  ;;  %v5220_v62 = vmul.f32 %v5126_v30, %v4918_v43 }
 0x118   : > { %v5171_v35 = vpop.permute.xlu1 %893  ;;  %v5189_v15 = vpop.permute.xlu0 %897  ;;  %v5224_v41 = vmul.f32 %v5123_v16, %v4920_v44  ;;  %v5248_v44 = vmul.f32 %v5126_v30, %v4926_v46 }
 0x119   : > { %8180 = vst [vmem:[#allocation35_spill] sm:$0xff] %v5171_v35  ;;  %8181 = vst [vmem:[#allocation36_spill] sm:$0xff] %v5189_v15  ;;  %v5208_v35 = vmul.f32 %v5123_v16, %v4914_v42  ;;  %v5212_v15 = vmul.f32 %v5126_v30, %v4914_v42  ;;  %v5233_v42 = vmul.f32 %v5123_v16, %v4924_v45 }
 0x11a   : > { %v5256_v45 = vmul.f32 %v5126_v30, %v4930_v47  ;;  %v1665_v47 = vld [vmem:[%s7927_s5 + $0x8] sm:$0xff] }
 0x11b   : > { %4355 = vset.pattern.permute.xlu1 %v8165_v36  ;;  %1747 = vperm.xlu0 %4356, %v1673_v18   ;;  %v5244_v36 = vmul.f32 %v5123_v16, %v4926_v46  ;;  %v1675_v18 = vld [vmem:[%s7927_s5 + $0x58] sm:$0xff]  ;;  %v5269_v46 = vmul.f32 %v5126_v30, %v4932_v48 }
 0x11c   : > { %1275 = vperm.xlu1 %4355, %v4787_v31   ;;  %v5240_v43 = vpop.permute.xlu1 %901  ;;  %8183 = vst [vmem:[#allocation38_spill] sm:$0xff] %v5256_v45  ;;  %v5258_v31 = vpop.permute.xlu0 %905  ;;  %v5281_v45 = vmul.f32 %v5126_v30, %v4936_v49  ;;  %v5302_v49 = vmul.f32 %v5123_v16, %v4944_v52 }
 0x11d   : > { %8182 = vst [vmem:[#allocation37_spill] sm:$0xff] %v5240_v43  ;;  %8184 = vst [vmem:[#allocation39_spill] sm:$0xff] %v5258_v31  ;;  %v5265_v43 = vmul.f32 %v5123_v16, %v4932_v48  ;;  %v1280_v31 = vsub.s32 2, %v5081_v28  ;;  %v5289_v48 = vmul.f32 %v5126_v30, %v4938_v50  ;;  %v5313_v28 = vmul.f32 %v5123_v16, %v4948_v53 }
 0x11e   : > { %8186 = vst [vmem:[#allocation41_spill] sm:$0xff] %v5269_v46  ;;  %8188 = vst [vmem:[#allocation43_spill] sm:$0xff] %v5281_v45  ;;  %v5294_v46 = vmul.f32 %v5123_v16, %v4942_v51  ;;  %v5317_v51 = vmul.f32 %v5126_v30, %v4948_v53  ;;  %v5338_v53 = vmul.f32 %v5126_v30, %v4954_v55 }
 0x11f   : > { %8185 = vst [vmem:[#allocation40_spill] sm:$0xff] %v5265_v43  ;;  %v5285_v43 = vmul.f32 %v5123_v16, %v4938_v50  ;;  %8189 = vst [vmem:[#allocation44_spill] sm:$0xff] %v5302_v49  ;;  %1757 = vperm.xlu0 %4356, %v1675_v18   ;;  %v5309_v50 = vmul.f32 %v5126_v30, %v4944_v52  ;;  %v5321_v49 = vmul.f32 %v5123_v16, %v4950_v54  ;;  %v1677_v52 = vld [vmem:[%s7927_s5 + $0x68] sm:$0xff] }
 0x120   : > { %v5304_v45 = vpop.permute.xlu1 %909  ;;  %4357 = vset.pattern.permute.xlu1 %v8171_v21  ;;  %v5330_v21 = vmul.f32 %v5126_v30, %v4950_v54  ;;  %v5334_v18 = vmul.f32 %v5123_v16, %v4954_v55  ;;  %8195 = vst [vmem:[#allocation50_spill] sm:$0xff] %v5338_v53  ;;  %v5350_v54 = vmul.f32 %v5126_v30, %v4956_v56 }
 0x121   : > { %8190 = vst [vmem:[#allocation45_spill] sm:$0xff] %v5304_v45  ;;  %8191 = vst [vmem:[#allocation46_spill] sm:$0xff] %v5321_v49  ;;  %v5323_v45 = vpop.permute.xlu0 %913  ;;  %1707 = vperm.xlu1 %4357, %v1665_v47   ;;  %v1666_v47 = vld [vmem:[%s7927_s5 + $0x10] sm:$0xff]  ;;  %v5346_v49 = vmul.f32 %v5123_v16, %v4956_v56  ;;  %v1285_v55 = vrot.slane %v5100_v23, %v1284_v12  ;;  %v5359_v53 = vmul.f32 %v5126_v30, %v4960_v57 }
 0x122   : > { %8192 = vst [vmem:[#allocation47_spill] sm:$0xff] %v5323_v45  ;;  %8193 = vst [vmem:[#allocation48_spill] sm:$0xff] %v5330_v21  ;;  %v1281_v45 = vrot.slane %v5100_v23, %v1280_v31  ;;  %v5363_v21 = vmul.f32 %v5123_v16, %v4962_v58  ;;  %v5371_v56 = vmul.f32 %v5123_v16, %v4966_v59 }
 0x123   : > { %8194 = vst [vmem:[#allocation49_spill] sm:$0xff] %v5334_v18  ;;  %8196 = vst [vmem:[#allocation51_spill] sm:$0xff] %v5346_v49  ;;  %v5354_v18 = vmul.f32 %v5123_v16, %v4960_v57  ;;  %v5367_v49 = vmul.f32 %v5126_v30, %v4962_v58  ;;  %1767 = vperm.xlu0 %4356, %v1677_v52   ;;  %v5377_v12 = vmul.f32 %v5126_v30, %v4966_v59  ;;  %v1679_v59 = vld [vmem:[%s7927_s5 + $0x78] sm:$0xff] }
 0x124   : > { %8197 = vst [vmem:[#allocation52_spill] sm:$0xff] %v5350_v54  ;;  %8198 = vst [vmem:[#allocation53_spill] sm:$0xff] %v5371_v56  ;;  %v5373_v54 = vpop.permute.xlu1 %917  ;;  %v5381_v57 = vmul.f32 %v5123_v16, %v4968_v60  ;;  %v5385_v23 = vmul.f32 %v5126_v30, %v4968_v60  ;;  %v5389_v58 = vmul.f32 %v5123_v16, %v4972_v61 }
 0x125   : > { %8199 = vst [vmem:[#allocation54_spill] sm:$0xff] %v5373_v54  ;;  %v5391_v56 = vpop.permute.xlu0 %921  ;;  %1712 = vperm.xlu1 %4357, %v1666_v47   ;;  %v5398_v52 = vmul.f32 %v5126_v30, %v4972_v61  ;;  %v8204_v54 = vld [vmem:[#allocation2_spill] sm:$0xff]  ;;  %v5418_v61 = vadd.f32 %v4992_v63, %v5167_v29  ;;  %v5439_v29 = vadd.f32 %v4998_v2, %v5159_v25 }
 0x126   : > { %8200 = vst [vmem:[#allocation55_spill] sm:$0xff] %v5381_v57  ;;  %8201 = vst [vmem:[#allocation56_spill] sm:$0xff] %v5389_v58  ;;  %v5402_v57 = vmul.f32 %v5123_v16, %v8204_v54  ;;  %v5406_v60 = vmul.f32 %v5126_v30, %v8204_v54  ;;  %v1668_v47 = vld [vmem:[%s7927_s5 + $0x20] sm:$0xff]  ;;  %v5411_v58 = vrot.slane %v1281_v45, %v1280_v31  ;;  %v4363_v45 = vld [vmem:[%s7926_s4 + $0x94] ss:$8 sps:$4 sm:$0xff]  }
 0x127   : > { %8202 = vst [vmem:[#allocation57_spill] sm:$0xff] %v5391_v56  ;;  %8203 = vst [vmem:[#allocation58_spill] sm:$0xff] %v5398_v52  ;;  %v4360_v56 = vld [vmem:[%s7926_s4 + $0x4] ss:$8 sps:$4 sm:$0xff]   ;;  %v5422_v16 = vadd.f32 %v4992_v63, %v5175_v26  ;;  %v5426_v54 = vadd.f32 %v4994_v33, %v5148_v32  ;;  %v5428_v30 = vrot.slane %v1285_v55, %v1280_v31  ;;  %1777 = vperm.xlu0 %4356, %v1679_v59   ;;  %v8215_v31 = vld [vmem:[#allocation9_spill] sm:$0xff] }
 0x128   : > { %8205 = vst [vmem:[#allocation2_spill] sm:$0xff] %v5402_v57  ;;  %8206 = vst [vmem:[#allocation59_spill] sm:$0xff] %v5406_v60  ;;  %v5435_v52 = vadd.f32 %v4994_v33, %v5152_v17  ;;  %v5443_v63 = vadd.f32 %v4998_v2, %v5163_v34  ;;  %v5445_v32 = vpop.permute.xlu1 %925  ;;  %2092 = vmatprep.mubr.bf16.mxu0 %v4360_v56  ;;  %v5449_v26 = vadd.f32 %v5000_v4, %v5140_v22  ;;  %v1681_v2 = vld [vmem:[%s7927_s5 + $0x88] sm:$0xff]  ;;  %v1670_v34 = vld [vmem:[%s7927_s5 + $0x30] sm:$0xff] }
 0x129   : > { %8207 = vst [vmem:[#allocation60_spill] sm:$0xff] %v5411_v58  ;;  %8208 = vst [vmem:[#allocation61_spill] sm:$0xff] %v5428_v30  ;;  %v5453_v33 = vadd.f32 %v5000_v4, %v5144_v19  ;;  %v5457_v17 = vadd.f32 %v5004_v1, %v5179_v27  ;;  %v5459_v25 = vpop.permute.xlu0 %929  ;;  %1722 = vperm.xlu1 %4357, %v1668_v47   ;;  %2182 = vmatprep.mubr.bf16.mxu1 %v4363_v45  ;;  %v1672_v56 = vld [vmem:[%s7927_s5 + $0x40] sm:$0xff]  ;;  %v8216_v59 = vld [vmem:[#allocation43_spill] sm:$0xff] }
 0x12a   : > { %v5466_v22 = vadd.f32 %v5004_v1, %v5183_v37  ;;  %v5470_v4 = vadd.f32 %v5006_v0, %v5187_v24  ;;  %v5474_v27 = vadd.f32 %v5006_v0, %v5196_v38  ;;  %v5478_v19 = vadd.f32 %v5010_v3, %v5200_v20  ;;  %v8217_v45 = vld [vmem:[#allocation10_spill] sm:$0xff]  ;;  %v8239_v30 = vld [vmem:[#allocation16_spill] sm:$0xff] }
 0x12b   : > { %v5485_v1 = vadd.f32 %v5010_v3, %v5204_v39  ;;  %v5489_v24 = vadd.f32 %v5012_v6, %v5208_v35  ;;  %v5493_v0 = vadd.f32 %v5012_v6, %v5212_v15  ;;  %v5497_v37 = vadd.f32 %v5016_v5, %v5216_v40  ;;  %1787 = vperm.xlu0 %4356, %v1681_v2  }
 0x12c   : > { %v5501_v38 = vadd.f32 %v5016_v5, %v5220_v62  ;;  %v5505_v3 = vadd.f32 %v5018_v8, %v5224_v41  ;;  %v5509_v35 = vadd.f32 %v5018_v8, %v5229_v13  ;;  %v5513_v6 = vadd.f32 %v5022_v7, %v5233_v42  ;;  %v5515_v15 = vpop.permute.xlu1 %933  ;;  %v8209_v8 = vld [vmem:[#allocation7_spill] sm:$0xff]  ;;  %v8211_v41 = vld [vmem:[#allocation40_spill] sm:$0xff] }
 0x12d   : > { %v5519_v20 = vadd.f32 %v5022_v7, %v5237_v14  ;;  %v5523_v62 = vadd.f32 %v5024_v10, %v5244_v36  ;;  %v5527_v5 = vadd.f32 %v5024_v10, %v5248_v44  ;;  %v5531_v13 = vadd.f32 %v8209_v8, %v5252_v11  ;;  %v5533_v39 = vpop.permute.xlu0 %937  ;;  %1732 = vperm.xlu1 %4357, %v1670_v34   ;;  %v1683_v7 = vld [vmem:[%s7927_s5 + $0x98] sm:$0xff]  ;;  %v8210_v14 = vld [vmem:[#allocation38_spill] sm:$0xff]  ;;  %v8212_v42 = vld [vmem:[#allocation8_spill] sm:$0xff] }
 0x12e   : > { %v5540_v40 = vadd.f32 %v8209_v8, %v8210_v14  ;;  %v5544_v36 = vadd.f32 %v8212_v42, %v8211_v41  ;;  %v8213_v10 = vld [vmem:[#allocation41_spill] sm:$0xff]  ;;  %v8214_v11 = vld [vmem:[#allocation42_spill] sm:$0xff]  ;;  %v5559_v47 = vadd.f32 %v8215_v31, %v8216_v59  ;;  %v5563_v2 = vadd.f32 %v8217_v45, %v5285_v43  ;;  %v8218_v8 = vld [vmem:[#allocation11_spill] sm:$0xff] }
 0x12f   : > { %v5548_v44 = vadd.f32 %v8212_v42, %v8213_v10  ;;  %v5552_v55 = vadd.f32 %v8215_v31, %v8214_v11  ;;  %v5567_v34 = vadd.f32 %v8217_v45, %v5289_v48  ;;  %v5571_v14 = vadd.f32 %v8218_v8, %v5294_v46  ;;  %v8221_v42 = vld [vmem:[#allocation44_spill] sm:$0xff]  ;;  %v8225_v31 = vld [vmem:[#allocation13_spill] sm:$0xff]  ;;  %1797 = vperm.xlu0 %4356, %v1683_v7   ;;  %v8229_v45 = vld [vmem:[#allocation14_spill] sm:$0xff] }
 0x130   : > { %v5575_v41 = vadd.f32 %v8218_v8, %v5298_v9  ;;  %v8222_v10 = vld [vmem:[#allocation12_spill] sm:$0xff]  ;;  %v5587_v48 = vadd.f32 %v8225_v31, %v5313_v28  ;;  %v5589_v59 = vpop.permute.xlu1 %941  ;;  %v5593_v46 = vadd.f32 %v8225_v31, %v5317_v51  ;;  %v8228_v9 = vld [vmem:[#allocation46_spill] sm:$0xff]  ;;  %v1685_v51 = vld [vmem:[%s7927_s5 + $0xa8] sm:$0xff] }
 0x131   : > { %8219 = vst [vmem:[#allocation7_spill] sm:$0xff] %v5571_v14  ;;  %v5579_v11 = vadd.f32 %v8222_v10, %v8221_v42  ;;  %v5583_v43 = vadd.f32 %v8222_v10, %v5309_v50  ;;  %v5597_v8 = vadd.f32 %v8229_v45, %v8228_v9  ;;  %v8231_v42 = vld [vmem:[#allocation48_spill] sm:$0xff]  ;;  %v8233_v50 = vld [vmem:[#allocation49_spill] sm:$0xff]  ;;  %v8234_v10 = vld [vmem:[#allocation15_spill] sm:$0xff]  ;;  %v5607_v28 = vpop.permute.xlu0 %945  ;;  %1742 = vperm.xlu1 %4357, %v1672_v56  }
 0x132   : > { %8220 = vst [vmem:[#allocation38_spill] sm:$0xff] %v5575_v41  ;;  %8226 = vst [vmem:[#allocation41_spill] sm:$0xff] %v5587_v48  ;;  %v5601_v60 = vadd.f32 %v8229_v45, %v8231_v42  ;;  %v5605_v57 = vadd.f32 %v8234_v10, %v8233_v50  ;;  %v8236_v7 = vld [vmem:[#allocation50_spill] sm:$0xff]  ;;  %v8238_v9 = vld [vmem:[#allocation51_spill] sm:$0xff] }
 0x133   : > { %8223 = vst [vmem:[#allocation40_spill] sm:$0xff] %v5579_v11  ;;  %8224 = vst [vmem:[#allocation8_spill] sm:$0xff] %v5583_v43  ;;  %v5614_v31 = vadd.f32 %v8234_v10, %v8236_v7  ;;  %v5618_v58 = vadd.f32 %v8239_v30, %v8238_v9  ;;  %v8241_v45 = vld [vmem:[#allocation52_spill] sm:$0xff]  ;;  %v8243_v50 = vld [vmem:[#allocation17_spill] sm:$0xff]  ;;  %1807 = vperm.xlu0 %4356, %v1685_v51  }
 0x134   : > { %8227 = vst [vmem:[#allocation42_spill] sm:$0xff] %v5593_v46  ;;  %8230 = vst [vmem:[#allocation9_spill] sm:$0xff] %v5597_v8  ;;  %v5622_v42 = vadd.f32 %v8239_v30, %v8241_v45  ;;  %v1674_v56 = vld [vmem:[%s7927_s5 + $0x50] sm:$0xff]  ;;  %v5633_v10 = vadd.f32 %v8243_v50, %v5359_v53  ;;  %v8246_v7 = vld [vmem:[#allocation18_spill] sm:$0xff] }
 0x135   : > { %8232 = vst [vmem:[#allocation43_spill] sm:$0xff] %v5601_v60  ;;  %8235 = vst [vmem:[#allocation10_spill] sm:$0xff] %v5605_v57  ;;  %v5626_v57 = vadd.f32 %v8243_v50, %v5354_v18  ;;  %v5637_v9 = vadd.f32 %v8246_v7, %v5363_v21  ;;  %v5641_v30 = vadd.f32 %v8246_v7, %v5367_v49  ;;  %v8249_v45 = vld [vmem:[#allocation27_spill] sm:$0xff]  ;;  %v8254_v49 = vld [vmem:[#allocation53_spill] sm:$0xff]  ;;  %1752 = vperm.xlu1 %4357, %v1674_v56  }
 0x136   : > { %8237 = vst [vmem:[#allocation11_spill] sm:$0xff] %v5614_v31  ;;  %8240 = vst [vmem:[#allocation44_spill] sm:$0xff] %v5618_v58  ;;  %v8250_v31 = vld [vmem:[#allocation33_spill] sm:$0xff]  ;;  %v8252_v58 = vld [vmem:[#allocation28_spill] sm:$0xff] }
 0x137   : > { %8242 = vst [vmem:[#allocation12_spill] sm:$0xff] %v5622_v42  ;;  %8244 = vst [vmem:[#allocation13_spill] sm:$0xff] %v5626_v57  ;;  %v1024_v18 = vmul.f32 %v8250_v31, %v8249_v45  ;;  %v8251_v57 = vld [vmem:[#allocation34_spill] sm:$0xff]  ;;  %v1022_v46 = vmul.f32 %v8250_v31, %v8252_v58  ;;  %v8253_v50 = vld [vmem:[#allocation31_spill] sm:$0xff] }
 0x138   : > { %8245 = vst [vmem:[#allocation46_spill] sm:$0xff] %v5633_v10  ;;  %8247 = vst [vmem:[#allocation14_spill] sm:$0xff] %v5637_v9  ;;  %v1025_v42 = vmul.f32 %v8251_v57, %v8249_v45  ;;  %v1023_v53 = vmul.f32 %v8251_v57, %v8252_v58  ;;  %v1026_v21 = vmul.f32 %v8250_v31, %v8253_v50  ;;  %v5653_v10 = vpop.permute.xlu1 %949  ;;  %v8255_v7 = vld [vmem:[#allocation19_spill] sm:$0xff]  ;;  %v8257_v45 = vld [vmem:[#allocation32_spill] sm:$0xff]  ;;  %v5665_v58 = vpop.permute.xlu0 %953 }
 0x139   : > { %8248 = vst [vmem:[#allocation48_spill] sm:$0xff] %v5641_v30  ;;  %v5657_v30 = vadd.f32 %v8255_v7, %v8254_v49  ;;  %v1027_v9 = vmul.f32 %v8251_v57, %v8253_v50  ;;  %v1028_v48 = vmul.f32 %v8250_v31, %v8257_v45  ;;  %v1029_v60 = vmul.f32 %v8251_v57, %v8257_v45  ;;  %v1687_v51 = vld [vmem:[%s7927_s5 + $0xb8] sm:$0xff]  ;;  %v8260_v8 = vld [vmem:[#allocation20_spill] sm:$0xff]  ;;  %v8262_v41 = vld [vmem:[#allocation35_spill] sm:$0xff] }
 0x13a   : > { %v5672_v49 = vadd.f32 %v8255_v7, %v5377_v12  ;;  %v1030_v14 = vmul.f32 %v8250_v31, %v8262_v41  ;;  %v1031_v45 = vmul.f32 %v8251_v57, %v8262_v41  ;;  %v1676_v56 = vld [vmem:[%s7927_s5 + $0x60] sm:$0xff]  ;;  %v5687_v43 = vadd.f32 %v8260_v8, %v5385_v23  ;;  %v8264_v7 = vld [vmem:[#allocation36_spill] sm:$0xff]  ;;  %1817 = vperm.xlu0 %4356, %v1687_v51   ;;  %v8268_v51 = vld [vmem:[#allocation47_spill] sm:$0xff] }
 0x13b   : > { %8256 = vst [vmem:[#allocation49_spill] sm:$0xff] %v5657_v30  ;;  %v8259_v30 = vld [vmem:[#allocation55_spill] sm:$0xff]  ;;  %v5690_v12 = vadd.f32 %v1024_v18, %v5418_v61  ;;  %v5700_v41 = vadd.f32 %v1022_v46, %v5426_v54  ;;  %v5703_v11 = vadd.f32 %v1023_v53, %v5435_v52  ;;  %v5706_v23 = vadd.f32 %v1026_v21, %v5449_v26  ;;  %v8265_v54 = vld [vmem:[#allocation37_spill] sm:$0xff] }
 0x13c   : > { %8258 = vst [vmem:[#allocation15_spill] sm:$0xff] %v5672_v49  ;;  %v5676_v50 = vadd.f32 %v8260_v8, %v8259_v30  ;;  %8263 = vst [vmem:[#allocation51_spill] sm:$0xff] %v5687_v43  ;;  %v1032_v30 = vmul.f32 %v8250_v31, %v8264_v7  ;;  %v1033_v49 = vmul.f32 %v8251_v57, %v8264_v7  ;;  %v5708_v61 = vpop.permute.xlu1 %957  ;;  %v5721_v52 = vpop.permute.xlu0 %961  ;;  %1762 = vperm.xlu1 %4357, %v1676_v56   ;;  %v1689_v26 = vld [vmem:[%s7927_s5 + $0xc8] sm:$0xff] }
 0x13d   : > { %v5711_v8 = vadd.f32 %v1027_v9, %v5453_v33  ;;  %v5714_v18 = vadd.f32 %v1028_v48, %v5439_v29  ;;  %v1034_v46 = vmul.f32 %v8250_v31, %v8265_v54  ;;  %v5730_v33 = vadd.f32 %v1031_v45, %v5474_v27  ;;  %v8266_v29 = vld [vmem:[#allocation39_spill] sm:$0xff]  ;;  %v1678_v48 = vld [vmem:[%s7927_s5 + $0x70] sm:$0xff]  ;;  %v8267_v27 = vld [vmem:[#allocation45_spill] sm:$0xff] }
 0x13e   : > { %8261 = vst [vmem:[#allocation50_spill] sm:$0xff] %v5676_v50  ;;  %v5697_v50 = vadd.f32 %v1025_v42, %v5422_v16  ;;  %v5717_v16 = vadd.f32 %v1029_v60, %v5443_v63  ;;  %v5727_v42 = vadd.f32 %v1030_v14, %v5470_v4  ;;  %v1035_v60 = vmul.f32 %v8251_v57, %v8265_v54  ;;  %v8271_v54 = vld [vmem:[#allocation57_spill] sm:$0xff] }
 0x13f   : > { %v1036_v63 = vmul.f32 %v8250_v31, %v8266_v29  ;;  %v5740_v9 = vadd.f32 %v1032_v30, %v5457_v17  ;;  %v5743_v53 = vadd.f32 %v1033_v49, %v5466_v22  ;;  %v1037_v4 = vmul.f32 %v8251_v57, %v8266_v29  ;;  %v8269_v17 = vld [vmem:[#allocation54_spill] sm:$0xff]  ;;  %1827 = vperm.xlu0 %4356, %v1689_v26  }
 0x140   : > { %v1038_v14 = vmul.f32 %v8250_v31, %v8267_v27  ;;  %v1039_v21 = vmul.f32 %v8251_v57, %v8267_v27  ;;  %v1040_v45 = vmul.f32 %v8250_v31, %v8268_v51  ;;  %v1041_v56 = vmul.f32 %v8251_v57, %v8268_v51  ;;  %v5757_v22 = vpop.permute.xlu1 %965  ;;  %v5768_v43 = vpop.permute.xlu0 %969  ;;  %1772 = vperm.xlu1 %4357, %v1678_v48   ;;  %v1691_v51 = vld [vmem:[%s7927_s5 + $0xd8] sm:$0xff]  ;;  %v1680_v48 = vld [vmem:[%s7927_s5 + $0x80] sm:$0xff] }
 0x141   : > { %v1042_v7 = vmul.f32 %v8250_v31, %v8269_v17  ;;  %v5760_v49 = vadd.f32 %v1034_v46, %v5489_v24  ;;  %v1043_v30 = vmul.f32 %v8251_v57, %v8269_v17  ;;  %v1044_v29 = vmul.f32 %v8250_v31, %v8271_v54 }
 0x142   : > { %v1045_v27 = vmul.f32 %v8251_v57, %v8271_v54  ;;  %v5774_v26 = vadd.f32 %v1035_v60, %v5493_v0  ;;  %v5777_v24 = vadd.f32 %v1036_v63, %v5478_v19  ;;  %v1046_v46 = vmul.f32 %v8250_v31, %v5445_v32 }
 0x143   : > { %8270 = vst [vmem:[#allocation16_spill] sm:$0xff] %v5760_v49  ;;  %v1047_v17 = vmul.f32 %v8251_v57, %v5445_v32  ;;  %v5787_v54 = vadd.f32 %v1037_v4, %v5485_v1  ;;  %v5790_v49 = vadd.f32 %v1038_v14, %v5505_v3  ;;  %v1048_v19 = vmul.f32 %v8250_v31, %v5459_v25 }
 0x144   : > { %v1049_v0 = vmul.f32 %v8251_v57, %v5459_v25  ;;  %v5797_v60 = vadd.f32 %v1039_v21, %v5509_v35  ;;  %v5800_v32 = vadd.f32 %v1040_v45, %v5497_v37  ;;  %v5803_v63 = vadd.f32 %v1041_v56, %v5501_v38  ;;  %v5808_v3 = vpop.permute.xlu1 %973  ;;  %1837 = vperm.xlu0 %4356, %v1691_v51   ;;  %v5821_v38 = vpop.permute.xlu0 %977  ;;  %v1682_v21 = vld [vmem:[%s7927_s5 + $0x90] sm:$0xff] }
 0x145   : > { %v5806_v1 = vadd.f32 %v1042_v7, %v5523_v62  ;;  %v5811_v4 = vadd.f32 %v1043_v30, %v5527_v5  ;;  %v5814_v25 = vadd.f32 %v1044_v29, %v5513_v6  ;;  %v5817_v35 = vadd.f32 %v1045_v27, %v5519_v20  ;;  %1782 = vperm.xlu1 %4357, %v1680_v48   ;;  %v1693_v62 = vld [vmem:[%s7927_s5 + $0xe8] sm:$0xff] }
 0x146   : > { %v1050_v37 = vmul.f32 %v8250_v31, %v5515_v15  ;;  %v5827_v14 = vadd.f32 %v1046_v46, %v5544_v36  ;;  %v5830_v5 = vadd.f32 %v1047_v17, %v5548_v44  ;;  %v1051_v6 = vmul.f32 %v8251_v57, %v5515_v15 }
 0x147   : > { %v1052_v20 = vmul.f32 %v8250_v31, %v5533_v39  ;;  %v5840_v45 = vadd.f32 %v1048_v19, %v5531_v13  ;;  %v5843_v56 = vadd.f32 %v1049_v0, %v5540_v40  ;;  %v1053_v36 = vmul.f32 %v8251_v57, %v5533_v39  ;;  %v8274_v19 = vld [vmem:[#allocation40_spill] sm:$0xff] }
 0x148   : > { %v1054_v44 = vmul.f32 %v8250_v31, %v5589_v59  ;;  %v1055_v15 = vmul.f32 %v8251_v57, %v5589_v59  ;;  %v1056_v7 = vmul.f32 %v8250_v31, %v5607_v28  ;;  %v1057_v30 = vmul.f32 %v8251_v57, %v5607_v28  ;;  %v5857_v40 = vpop.permute.xlu1 %981  ;;  %1847 = vperm.xlu0 %4356, %v1693_v62   ;;  %v5868_v51 = vpop.permute.xlu0 %989  ;;  %v1695_v28 = vld [vmem:[%s7927_s5 + $0xf8] sm:$0xff] }
 0x149   : > { %v1058_v13 = vmul.f32 %v8250_v31, %v5653_v10  ;;  %8272 = vst [vmem:[#allocation52_spill] sm:$0xff] %v5857_v40  ;;  %v5860_v39 = vadd.f32 %v1050_v37, %v5563_v2  ;;  %v1059_v29 = vmul.f32 %v8251_v57, %v5653_v10  ;;  %v1060_v59 = vmul.f32 %v8250_v31, %v5665_v58  ;;  %v8276_v37 = vld [vmem:[#allocation8_spill] sm:$0xff] }
 0x14a   : > { %v1061_v27 = vmul.f32 %v8251_v57, %v5665_v58  ;;  %8273 = vst [vmem:[#allocation17_spill] sm:$0xff] %v5868_v51  ;;  %1792 = vperm.xlu1 %4357, %v1682_v21   ;;  %v5874_v46 = vadd.f32 %v1051_v6, %v5567_v34  ;;  %v5877_v2 = vadd.f32 %v1052_v20, %v5552_v55  ;;  %v1684_v58 = vld [vmem:[%s7927_s5 + $0xa0] sm:$0xff]  ;;  %v8281_v51 = vld [vmem:[#allocation41_spill] sm:$0xff] }
 0x14b   : > { %v1062_v10 = vmul.f32 %v8250_v31, %v5708_v61  ;;  %v1063_v17 = vmul.f32 %v8251_v57, %v5708_v61  ;;  %v5887_v48 = vadd.f32 %v1053_v36, %v5559_v47  ;;  %v5890_v0 = vadd.f32 %v1054_v44, %v8274_v19  ;;  %v8277_v61 = vld [vmem:[#allocation7_spill] sm:$0xff]  ;;  %v8278_v20 = vld [vmem:[#allocation38_spill] sm:$0xff]  ;;  %v8279_v47 = vld [vmem:[#allocation9_spill] sm:$0xff] }
 0x14c   : > { %v1064_v55 = vmul.f32 %v8250_v31, %v5721_v52  ;;  %v1065_v34 = vmul.f32 %v8251_v57, %v5721_v52  ;;  %v5897_v62 = vadd.f32 %v1055_v15, %v8276_v37  ;;  %v5900_v6 = vadd.f32 %v1056_v7, %v8277_v61  ;;  %1857 = vperm.xlu0 %4356, %v1695_v28   ;;  %v8280_v44 = vld [vmem:[#allocation43_spill] sm:$0xff]  ;;  %v8282_v52 = vld [vmem:[#allocation42_spill] sm:$0xff]  ;;  %v1156_v7 = vpop.permute.xlu1 %1155  ;;  %v8289_v61 = vld [vmem:[#allocation61_spill] sm:$0xff] }
 0x14d   : > { %8275 = vst [vmem:[#allocation18_spill] sm:$0xff] %v5890_v0  ;;  %v5903_v21 = vadd.f32 %v1057_v30, %v8278_v20  ;;  %v5906_v36 = vadd.f32 %v1058_v13, %v8279_v47  ;;  %v5909_v19 = vadd.f32 %v1059_v29, %v8280_v44  ;;  %v5912_v40 = vadd.f32 %v1060_v59, %v8281_v51  ;;  %v1697_v30 = vld [vmem:[%s7927_s5 + $0x108] sm:$0xff]  ;;  %v8284_v13 = vld [vmem:[#allocation44_spill] sm:$0xff]  ;;  %v1152_v20 = vpop.permute.xlu0 %1151 }
 0x14e   : > { %v5915_v0 = vadd.f32 %v1061_v27, %v8282_v52  ;;  %v1066_v15 = vmul.f32 %v8250_v31, %v5757_v22  ;;  %1802 = vperm.xlu1 %4357, %v1684_v58   ;;  %v5923_v28 = vadd.f32 %v1062_v10, %v8284_v13  ;;  %v8286_v29 = vld [vmem:[#allocation12_spill] sm:$0xff]  ;;  %v1299_v27 = vmul.f32 %v8289_v61, %v1156_v7  ;;  %v8290_v58 = vld [vmem:[#allocation10_spill] sm:$0xff]  ;;  %v8292_v52 = vld [vmem:[#allocation11_spill] sm:$0xff] }
 0x14f   : > { %v5926_v37 = vadd.f32 %v1063_v17, %v8286_v29  ;;  %v8288_v59 = vld [vmem:[#allocation60_spill] sm:$0xff]  ;;  %v5934_v44 = vadd.f32 %v1064_v55, %v8290_v58  ;;  %v1297_v17 = vmul.f32 %v8289_v61, %v1152_v20  ;;  %v1067_v13 = vmul.f32 %v8251_v57, %v5757_v22  ;;  %v8294_v55 = vld [vmem:[#allocation14_spill] sm:$0xff]  ;;  %v1699_v22 = vld [vmem:[%s7927_s5 + $0x118] sm:$0xff] }
 0x150   : > { %8283 = vst [vmem:[#allocation27_spill] sm:$0xff] %v5915_v0  ;;  %8285 = vst [vmem:[#allocation33_spill] sm:$0xff] %v5923_v28  ;;  %v1298_v51 = vmul.f32 %v8288_v59, %v1156_v7  ;;  %v1686_v47 = vld [vmem:[%s7927_s5 + $0xb0] sm:$0xff]  ;;  %v5937_v0 = vadd.f32 %v1065_v34, %v8292_v52  ;;  %v1296_v10 = vmul.f32 %v8288_v59, %v1152_v20  ;;  %1867 = vperm.xlu0 %4356, %v1697_v30  }
 0x151   : > { %8287 = vst [vmem:[#allocation34_spill] sm:$0xff] %v5926_v37  ;;  %8291 = vst [vmem:[#allocation28_spill] sm:$0xff] %v5934_v44  ;;  %v1068_v7 = vmul.f32 %v8250_v31, %v5768_v43  ;;  %v1363_v37 = vadd.f32 %v1299_v27, %v5697_v50  ;;  %v5948_v58 = vadd.f32 %v1066_v15, %v8294_v55  ;;  %v1164_v30 = vpop.permute.xlu0 %1163 }
 0x152   : > { %8293 = vst [vmem:[#allocation31_spill] sm:$0xff] %v5937_v0  ;;  %v1362_v29 = vadd.f32 %v1298_v51, %v5690_v12  ;;  %v1069_v34 = vmul.f32 %v8251_v57, %v5768_v43  ;;  %v1360_v52 = vadd.f32 %v1296_v10, %v5700_v41  ;;  %v1361_v20 = vadd.f32 %v1297_v17, %v5703_v11  ;;  %v1160_v0 = vpop.permute.xlu1 %1159  ;;  %v1688_v43 = vld [vmem:[%s7927_s5 + $0xc0] sm:$0xff]  ;;  %v8296_v10 = vld [vmem:[#allocation48_spill] sm:$0xff] }
 0x153   : > { %8295 = vst [vmem:[#allocation53_spill] sm:$0xff] %v5948_v58  ;;  %1812 = vperm.xlu1 %4357, %v1686_v47   ;;  %v1427_v51 = vmax.f32 %v1363_v37, 0.0  ;;  %v1300_v50 = vmul.f32 %v8288_v59, %v1160_v0  ;;  %v1301_v15 = vmul.f32 %v8289_v61, %v1160_v0  ;;  %v1302_v11 = vmul.f32 %v8288_v59, %v1164_v30 }
 0x154   : > { %v1426_v12 = vmax.f32 %v1362_v29, 0.0  ;;  %v1424_v41 = vmax.f32 %v1360_v52, 0.0  ;;  %v1425_v27 = vmax.f32 %v1361_v20, 0.0  ;;  %v1303_v47 = vmul.f32 %v8289_v61, %v1164_v30  ;;  %v8297_v29 = vld [vmem:[#allocation13_spill] sm:$0xff]  ;;  %1877 = vperm.xlu0 %4356, %v1699_v22  }
 0x155   : > { %v5965_v17 = vadd.f32 %v1067_v13, %v8296_v10  ;;  %v5968_v37 = vadd.f32 %v1068_v7, %v8297_v29  ;;  %v1364_v55 = vadd.f32 %v1300_v50, %v5706_v23  ;;  %v1365_v0 = vadd.f32 %v1301_v15, %v5711_v8  ;;  %v1172_v23 = vpop.permute.xlu0 %1171  ;;  %v1690_v8 = vld [vmem:[%s7927_s5 + $0xd0] sm:$0xff]  ;;  %v8298_v50 = vld [vmem:[#allocation46_spill] sm:$0xff] }
 0x156   : > { %v1366_v58 = vadd.f32 %v1302_v11, %v5714_v18  ;;  %v1367_v52 = vadd.f32 %v1303_v47, %v5717_v16  ;;  %v1168_v20 = vpop.permute.xlu1 %1167  ;;  %v5974_v44 = vpack.c.bf16 %v1427_v51, %v1425_v27  ;;  %v5976_v28 = vpack.c.bf16 %v1426_v12, %v1424_v41  ;;  %v2464_v12 = vld [vmem:[%s7927_s5 + $0x128] sm:$0xff] }
 0x157   : > { %1822 = vperm.xlu1 %4357, %v1688_v43   ;;  %v1428_v13 = vmax.f32 %v1364_v55, 0.0  ;;  %v1429_v30 = vmax.f32 %v1365_v0, 0.0  ;;  %v1304_v7 = vmul.f32 %v8288_v59, %v1168_v20  ;;  %v1305_v10 = vmul.f32 %v8289_v61, %v1168_v20 }
 0x158   : > { %v1430_v18 = vmax.f32 %v1366_v58, 0.0  ;;  %v1431_v22 = vmax.f32 %v1367_v52, 0.0  ;;  %v1306_v16 = vmul.f32 %v8288_v59, %v1172_v23  ;;  %v1307_v51 = vmul.f32 %v8289_v61, %v1172_v23  ;;  %2060 = vmatprep.subr.bf16.mxu0 %v5974_v44  ;;  %4285 = vmatprep.subr.bf16.mxu1 %v5974_v44  ;;  %v1692_v52 = vld [vmem:[%s7927_s5 + $0xe0] sm:$0xff] }
 0x159   : > { %v5991_v15 = vadd.f32 %v1069_v34, %v8298_v50  ;;  %v1368_v43 = vadd.f32 %v1304_v7, %v5727_v42  ;;  %v1369_v58 = vadd.f32 %v1305_v10, %v5730_v33  ;;  %2061 = vmatpush1.bf16.msra.mxu0 %v5976_v28  ;;  %4301 = vmatpush1.bf16.msra.mxu1 %v5976_v28  ;;  %v1180_v0 = vpop.permute.xlu0 %1179  ;;  %v8299_v10 = vld [vmem:[#allocation16_spill] sm:$0xff] }
 0x15a   : > { %v1370_v41 = vadd.f32 %v1306_v16, %v5740_v9  ;;  %v1371_v27 = vadd.f32 %v1307_v51, %v5743_v53  ;;  %v1176_v11 = vpop.permute.xlu1 %1175  ;;  %v5999_v47 = vpack.c.bf16 %v1431_v22, %v1429_v30  ;;  %v6001_v29 = vpack.c.bf16 %v1430_v18, %v1428_v13  ;;  %2506 = vperm.xlu0 %4356, %v2464_v12   ;;  %v2466_v30 = vld [vmem:[%s7927_s5 + $0x138] sm:$0xff] }
 0x15b   : > { %1832 = vperm.xlu1 %4357, %v1690_v8   ;;  %v1432_v34 = vmax.f32 %v1368_v43, 0.0  ;;  %v1433_v55 = vmax.f32 %v1369_v58, 0.0  ;;  %v1308_v42 = vmul.f32 %v8288_v59, %v1176_v11  ;;  %v1309_v33 = vmul.f32 %v8289_v61, %v1176_v11 }
 0x15c   : > { %v1434_v9 = vmax.f32 %v1370_v41, 0.0  ;;  %v1435_v53 = vmax.f32 %v1371_v27, 0.0  ;;  %v1310_v20 = vmul.f32 %v8288_v59, %v1180_v0  ;;  %v1311_v13 = vmul.f32 %v8289_v61, %v1180_v0  ;;  %2062 = vmatprep.subr.bf16.mxu0 %v5999_v47  ;;  %4286 = vmatprep.subr.bf16.mxu1 %v5999_v47  ;;  %v1694_v27 = vld [vmem:[%s7927_s5 + $0xf0] sm:$0xff] }
 0x15d   : > { %v6017_v7 = vmul.f32 %v8250_v31, %v5808_v3  ;;  %v1372_v23 = vadd.f32 %v1308_v42, %v8299_v10  ;;  %v1373_v8 = vadd.f32 %v1309_v33, %v5774_v26  ;;  %2063 = vmatpush1.bf16.msra.mxu0 %v6001_v29  ;;  %4302 = vmatpush1.bf16.msra.mxu1 %v6001_v29  ;;  %v1188_v41 = vpop.permute.xlu0 %1187 }
 0x15e   : > { %v1374_v18 = vadd.f32 %v1310_v20, %v5777_v24  ;;  %v1375_v22 = vadd.f32 %v1311_v13, %v5787_v54  ;;  %v1184_v16 = vpop.permute.xlu1 %1183  ;;  %v6025_v51 = vpack.c.bf16 %v1435_v53, %v1433_v55  ;;  %v6027_v12 = vpack.c.bf16 %v1434_v9, %v1432_v34  ;;  %2516 = vperm.xlu0 %4356, %v2466_v30   ;;  %v2468_v55 = vld [vmem:[%s7927_s5 + $0x148] sm:$0xff] }
 0x15f   : > { %1842 = vperm.xlu1 %4357, %v1692_v52   ;;  %v1436_v50 = vmax.f32 %v1372_v23, 0.0  ;;  %v1437_v43 = vmax.f32 %v1373_v8, 0.0  ;;  %v1312_v58 = vmul.f32 %v8288_v59, %v1184_v16  ;;  %v1313_v26 = vmul.f32 %v8289_v61, %v1184_v16  ;;  %v1696_v23 = vld [vmem:[%s7927_s5 + $0x100] sm:$0xff] }
 0x160   : > { %v1438_v24 = vmax.f32 %v1374_v18, 0.0  ;;  %v1439_v54 = vmax.f32 %v1375_v22, 0.0  ;;  %v1314_v11 = vmul.f32 %v8288_v59, %v1188_v41  ;;  %v1315_v34 = vmul.f32 %v8289_v61, %v1188_v41  ;;  %2064 = vmatprep.subr.bf16.mxu0 %v6025_v51  ;;  %4287 = vmatprep.subr.bf16.mxu1 %v6025_v51  ;;  %v2470_v22 = vld [vmem:[%s7927_s5 + $0x158] sm:$0xff] }
 0x161   : > { %v6043_v42 = vmul.f32 %v8251_v57, %v5808_v3  ;;  %v1376_v33 = vadd.f32 %v1312_v58, %v5790_v49  ;;  %v1377_v0 = vadd.f32 %v1313_v26, %v5797_v60  ;;  %2065 = vmatpush1.bf16.msra.mxu0 %v6027_v12  ;;  %4303 = vmatpush1.bf16.msra.mxu1 %v6027_v12  ;;  %v1196_v10 = vpop.permute.xlu0 %1195 }
 0x162   : > { %v1378_v52 = vadd.f32 %v1314_v11, %v5800_v32  ;;  %v1379_v9 = vadd.f32 %v1315_v34, %v5803_v63  ;;  %v1192_v53 = vpop.permute.xlu1 %1191  ;;  %v6051_v20 = vpack.c.bf16 %v1439_v54, %v1437_v43  ;;  %v6053_v13 = vpack.c.bf16 %v1438_v24, %v1436_v50  ;;  %2526 = vperm.xlu0 %4356, %v2468_v55   ;;  %v1698_v55 = vld [vmem:[%s7927_s5 + $0x110] sm:$0xff] }
 0x163   : > { %1852 = vperm.xlu1 %4357, %v1694_v27   ;;  %v1440_v3 = vmax.f32 %v1376_v33, 0.0  ;;  %v1441_v30 = vmax.f32 %v1377_v0, 0.0  ;;  %v1316_v49 = vmul.f32 %v8288_v59, %v1192_v53  ;;  %v1317_v60 = vmul.f32 %v8289_v61, %v1192_v53 }
 0x164   : > { %v1442_v32 = vmax.f32 %v1378_v52, 0.0  ;;  %v1443_v63 = vmax.f32 %v1379_v9, 0.0  ;;  %v1318_v8 = vmul.f32 %v8288_v59, %v1196_v10  ;;  %v1319_v18 = vmul.f32 %v8289_v61, %v1196_v10  ;;  %2066 = vmatprep.subr.bf16.mxu0 %v6051_v20  ;;  %4288 = vmatprep.subr.bf16.mxu1 %v6051_v20  ;;  %v2472_v52 = vld [vmem:[%s7927_s5 + $0x168] sm:$0xff] }
 0x165   : > { %v6069_v16 = vmul.f32 %v8250_v31, %v5821_v38  ;;  %v1380_v50 = vadd.f32 %v1316_v49, %v5806_v1  ;;  %v1381_v43 = vadd.f32 %v1317_v60, %v5811_v4  ;;  %2067 = vmatpush1.bf16.msra.mxu0 %v6053_v13  ;;  %4304 = vmatpush1.bf16.msra.mxu1 %v6053_v13  ;;  %v1204_v34 = vpop.permute.xlu0 %1203 }
 0x166   : > { %v1382_v58 = vadd.f32 %v1318_v8, %v5814_v25  ;;  %v1383_v26 = vadd.f32 %v1319_v18, %v5817_v35  ;;  %v1200_v41 = vpop.permute.xlu1 %1199  ;;  %v6077_v27 = vpack.c.bf16 %v1443_v63, %v1441_v30  ;;  %v6079_v24 = vpack.c.bf16 %v1442_v32, %v1440_v3  ;;  %2536 = vperm.xlu0 %4356, %v2470_v22   ;;  %v2463_v8 = vld [vmem:[%s7927_s5 + $0x120] sm:$0xff] }
 0x167   : > { %1862 = vperm.xlu1 %4357, %v1696_v23   ;;  %v1444_v54 = vmax.f32 %v1380_v50, 0.0  ;;  %v1445_v11 = vmax.f32 %v1381_v43, 0.0  ;;  %v1320_v1 = vmul.f32 %v8288_v59, %v1200_v41  ;;  %v1321_v4 = vmul.f32 %v8289_v61, %v1200_v41  ;;  %v2474_v50 = vld [vmem:[%s7927_s5 + $0x178] sm:$0xff]  ;;  %v8300_v43 = vld [vmem:[#allocation50_spill] sm:$0xff] }
 0x168   : > { %v1446_v25 = vmax.f32 %v1382_v58, 0.0  ;;  %v1447_v35 = vmax.f32 %v1383_v26, 0.0  ;;  %v1322_v33 = vmul.f32 %v8288_v59, %v1204_v34  ;;  %v1323_v0 = vmul.f32 %v8289_v61, %v1204_v34  ;;  %2068 = vmatprep.subr.bf16.mxu0 %v6077_v27  ;;  %4289 = vmatprep.subr.bf16.mxu1 %v6077_v27 }
 0x169   : > { %v6095_v9 = vmul.f32 %v8251_v57, %v5821_v38  ;;  %v1384_v53 = vadd.f32 %v1320_v1, %v5827_v14  ;;  %v1385_v3 = vadd.f32 %v1321_v4, %v5830_v5  ;;  %2069 = vmatpush1.bf16.msra.mxu0 %v6079_v24  ;;  %4305 = vmatpush1.bf16.msra.mxu1 %v6079_v24  ;;  %v1212_v63 = vpop.permute.xlu0 %1211 }
 0x16a   : > { %v1386_v30 = vadd.f32 %v1322_v33, %v5840_v45  ;;  %v1387_v49 = vadd.f32 %v1323_v0, %v5843_v56  ;;  %v1208_v60 = vpop.permute.xlu1 %1207  ;;  %v6103_v10 = vpack.c.bf16 %v1447_v35, %v1445_v11  ;;  %v6105_v23 = vpack.c.bf16 %v1446_v25, %v1444_v54  ;;  %2546 = vperm.xlu0 %4356, %v2472_v52   ;;  %v2465_v35 = vld [vmem:[%s7927_s5 + $0x130] sm:$0xff]  ;;  %v2476_v52 = vld [vmem:[%s7927_s5 + $0x188] sm:$0xff] }
 0x16b   : > { %1872 = vperm.xlu1 %4357, %v1698_v55   ;;  %v1448_v38 = vmax.f32 %v1384_v53, 0.0  ;;  %v1449_v32 = vmax.f32 %v1385_v3, 0.0  ;;  %v1324_v14 = vmul.f32 %v8288_v59, %v1208_v60  ;;  %v1325_v5 = vmul.f32 %v8289_v61, %v1208_v60  ;;  %v8301_v53 = vld [vmem:[#allocation51_spill] sm:$0xff] }
 0x16c   : > { %v1450_v45 = vmax.f32 %v1386_v30, 0.0  ;;  %v1451_v56 = vmax.f32 %v1387_v49, 0.0  ;;  %v1326_v18 = vmul.f32 %v8288_v59, %v1212_v63  ;;  %v1327_v22 = vmul.f32 %v8289_v61, %v1212_v63  ;;  %2070 = vmatprep.subr.bf16.mxu0 %v6103_v10  ;;  %4290 = vmatprep.subr.bf16.mxu1 %v6103_v10  ;;  %v8302_v30 = vld [vmem:[#allocation18_spill] sm:$0xff] }
 0x16d   : > { %v6121_v58 = vadd.f32 %v6017_v7, %v8300_v43  ;;  %v1388_v26 = vadd.f32 %v1324_v14, %v5860_v39  ;;  %v1389_v41 = vadd.f32 %v1325_v5, %v5874_v46  ;;  %2071 = vmatpush1.bf16.msra.mxu0 %v6105_v23  ;;  %4306 = vmatpush1.bf16.msra.mxu1 %v6105_v23  ;;  %v1220_v25 = vpop.permute.xlu0 %1219  ;;  %v2478_v43 = vld [vmem:[%s7927_s5 + $0x198] sm:$0xff] }
 0x16e   : > { %v1390_v54 = vadd.f32 %v1326_v18, %v5877_v2  ;;  %v1391_v11 = vadd.f32 %v1327_v22, %v5887_v48  ;;  %v1216_v1 = vpop.permute.xlu1 %1215  ;;  %v6129_v4 = vpack.c.bf16 %v1451_v56, %v1449_v32  ;;  %v6131_v34 = vpack.c.bf16 %v1450_v45, %v1448_v38  ;;  %2556 = vperm.xlu0 %4356, %v2474_v50   ;;  %v2467_v18 = vld [vmem:[%s7927_s5 + $0x140] sm:$0xff] }
 0x16f   : > { %2501 = vperm.xlu1 %4357, %v2463_v8   ;;  %v1452_v7 = vmax.f32 %v1388_v26, 0.0  ;;  %v1453_v55 = vmax.f32 %v1389_v41, 0.0  ;;  %v1328_v39 = vmul.f32 %v8288_v59, %v1216_v1  ;;  %v1329_v46 = vmul.f32 %v8289_v61, %v1216_v1  ;;  %v8303_v26 = vld [vmem:[#allocation49_spill] sm:$0xff] }
 0x170   : > { %v1454_v2 = vmax.f32 %v1390_v54, 0.0  ;;  %v1455_v48 = vmax.f32 %v1391_v11, 0.0  ;;  %v1330_v33 = vmul.f32 %v8288_v59, %v1220_v25  ;;  %v1331_v0 = vmul.f32 %v8289_v61, %v1220_v25  ;;  %2072 = vmatprep.subr.bf16.mxu0 %v6129_v4  ;;  %4291 = vmatprep.subr.bf16.mxu1 %v6129_v4 }
 0x171   : > { %v6147_v3 = vadd.f32 %v6043_v42, %v8301_v53  ;;  %v1392_v49 = vadd.f32 %v1328_v39, %v8302_v30  ;;  %v1393_v60 = vadd.f32 %v1329_v46, %v5897_v62  ;;  %2073 = vmatpush1.bf16.msra.mxu0 %v6131_v34  ;;  %4307 = vmatpush1.bf16.msra.mxu1 %v6131_v34  ;;  %v1228_v56 = vpop.permute.xlu0 %1227  ;;  %v2480_v53 = vld [vmem:[%s7927_s5 + $0x1a8] sm:$0xff] }
 0x172   : > { %v1394_v38 = vadd.f32 %v1330_v33, %v5900_v6  ;;  %v1395_v32 = vadd.f32 %v1331_v0, %v5903_v21  ;;  %v1224_v14 = vpop.permute.xlu1 %1223  ;;  %v6155_v5 = vpack.c.bf16 %v1455_v48, %v1453_v55  ;;  %v6157_v63 = vpack.c.bf16 %v1454_v2, %v1452_v7  ;;  %2566 = vperm.xlu0 %4356, %v2476_v52   ;;  %v8304_v7 = vld [vmem:[#allocation27_spill] sm:$0xff]  ;;  %v2469_v48 = vld [vmem:[%s7927_s5 + $0x150] sm:$0xff] }
 0x173   : > { %2511 = vperm.xlu1 %4357, %v2465_v35   ;;  %v1456_v42 = vmax.f32 %v1392_v49, 0.0  ;;  %v1457_v8 = vmax.f32 %v1393_v60, 0.0  ;;  %v1332_v45 = vmul.f32 %v8288_v59, %v1224_v14  ;;  %v1333_v62 = vmul.f32 %v8289_v61, %v1224_v14  ;;  %v8305_v30 = vld [vmem:[#allocation15_spill] sm:$0xff]  ;;  %v8306_v60 = vld [vmem:[#allocation33_spill] sm:$0xff] }
 0x174   : > { %v1458_v6 = vmax.f32 %v1394_v38, 0.0  ;;  %v1459_v21 = vmax.f32 %v1395_v32, 0.0  ;;  %v1334_v22 = vmul.f32 %v8288_v59, %v1228_v56  ;;  %v1335_v50 = vmul.f32 %v8289_v61, %v1228_v56  ;;  %2074 = vmatprep.subr.bf16.mxu0 %v6155_v5  ;;  %4292 = vmatprep.subr.bf16.mxu1 %v6155_v5  ;;  %v8307_v32 = vld [vmem:[#allocation34_spill] sm:$0xff] }
 0x175   : > { %v6173_v41 = vadd.f32 %v6069_v16, %v8303_v26  ;;  %v1396_v54 = vadd.f32 %v1332_v45, %v5906_v36  ;;  %v1397_v11 = vadd.f32 %v1333_v62, %v5909_v19  ;;  %2075 = vmatpush1.bf16.msra.mxu0 %v6157_v63  ;;  %4308 = vmatpush1.bf16.msra.mxu1 %v6157_v63  ;;  %v1236_v2 = vpop.permute.xlu0 %1235  ;;  %v8309_v45 = vld [vmem:[#allocation31_spill] sm:$0xff]  ;;  %v2471_v26 = vld [vmem:[%s7927_s5 + $0x160] sm:$0xff] }
 0x176   : > { %v1398_v1 = vadd.f32 %v1334_v22, %v5912_v40  ;;  %v1399_v55 = vadd.f32 %v1335_v50, %v8304_v7  ;;  %v1232_v39 = vpop.permute.xlu1 %1231  ;;  %v6181_v46 = vpack.c.bf16 %v1459_v21, %v1457_v8  ;;  %v6183_v25 = vpack.c.bf16 %v1458_v6, %v1456_v42  ;;  %2576 = vperm.xlu0 %4356, %v2478_v43   ;;  %v8308_v42 = vld [vmem:[#allocation28_spill] sm:$0xff] }
 0x177   : > { %2521 = vperm.xlu1 %4357, %v2467_v18   ;;  %v1460_v16 = vmax.f32 %v1396_v54, 0.0  ;;  %v1461_v35 = vmax.f32 %v1397_v11, 0.0  ;;  %v1336_v36 = vmul.f32 %v8288_v59, %v1232_v39  ;;  %v1337_v19 = vmul.f32 %v8289_v61, %v1232_v39  ;;  %v8310_v39 = vld [vmem:[#allocation52_spill] sm:$0xff] }
 0x178   : > { %v1462_v40 = vmax.f32 %v1398_v1, 0.0  ;;  %v1463_v33 = vmax.f32 %v1399_v55, 0.0  ;;  %v1338_v0 = vmul.f32 %v8288_v59, %v1236_v2  ;;  %v1339_v52 = vmul.f32 %v8289_v61, %v1236_v2  ;;  %2076 = vmatprep.subr.bf16.mxu0 %v6181_v46  ;;  %4293 = vmatprep.subr.bf16.mxu1 %v6181_v46  ;;  %v2482_v55 = vld [vmem:[%s7927_s5 + $0x1b8] sm:$0xff] }
 0x179   : > { %v1137_v49 = vadd.f32 %v6095_v9, %v8305_v30  ;;  %v1400_v38 = vadd.f32 %v1336_v36, %v8306_v60  ;;  %v1401_v14 = vadd.f32 %v1337_v19, %v8307_v32  ;;  %2077 = vmatpush1.bf16.msra.mxu0 %v6183_v25  ;;  %4309 = vmatpush1.bf16.msra.mxu1 %v6183_v25  ;;  %v1244_v43 = vpop.permute.xlu0 %1243 }
 0x17a   : > { %v1402_v8 = vadd.f32 %v1338_v0, %v8308_v42  ;;  %v1403_v62 = vadd.f32 %v1339_v52, %v8309_v45  ;;  %v1240_v56 = vpop.permute.xlu1 %1239  ;;  %v6205_v18 = vpack.c.bf16 %v1463_v33, %v1461_v35  ;;  %v6207_v6 = vpack.c.bf16 %v1462_v40, %v1460_v16  ;;  %2586 = vperm.xlu0 %4356, %v2480_v53   ;;  %v8311_v35 = vld [vmem:[#allocation53_spill] sm:$0xff]  ;;  %v2484_v42 = vld [vmem:[%s7927_s5 + $0x1c8] sm:$0xff] }
 0x17b   : > { %2531 = vperm.xlu1 %4357, %v2469_v48   ;;  %v1464_v21 = vmax.f32 %v1400_v38, 0.0  ;;  %v1465_v9 = vmax.f32 %v1401_v14, 0.0  ;;  %v1340_v22 = vmul.f32 %v8288_v59, %v1240_v56  ;;  %v1341_v50 = vmul.f32 %v8289_v61, %v1240_v56  ;;  %v2473_v38 = vld [vmem:[%s7927_s5 + $0x170] sm:$0xff] }
 0x17c   : > { %v1466_v54 = vmax.f32 %v1402_v8, 0.0  ;;  %v1467_v11 = vmax.f32 %v1403_v62, 0.0  ;;  %v1342_v1 = vmul.f32 %v8288_v59, %v1244_v43  ;;  %v1343_v7 = vmul.f32 %v8289_v61, %v1244_v43  ;;  %2078 = vmatprep.subr.bf16.mxu0 %v6205_v18  ;;  %4294 = vmatprep.subr.bf16.mxu1 %v6205_v18  ;;  %v8313_v43 = vld [vmem:[#allocation22_spill] sm:$0xff] }
 0x17d   : > { %v1074_v16 = vmul.f32 %v8250_v31, %v8310_v39  ;;  %v1404_v36 = vadd.f32 %v1340_v22, %v8311_v35  ;;  %v1405_v19 = vadd.f32 %v1341_v50, %v5965_v17  ;;  %2079 = vmatpush1.bf16.msra.mxu0 %v6207_v6  ;;  %4310 = vmatpush1.bf16.msra.mxu1 %v6207_v6  ;;  %v1252_v60 = vpop.permute.xlu0 %1251  ;;  %v8312_v50 = vld [vmem:[#allocation2_spill] sm:$0xff] }
 0x17e   : > { %v1406_v2 = vadd.f32 %v1342_v1, %v5968_v37  ;;  %v1407_v48 = vadd.f32 %v1343_v7, %v5991_v15  ;;  %v1248_v40 = vpop.permute.xlu1 %1247  ;;  %v6229_v33 = vpack.c.bf16 %v1467_v11, %v1465_v9  ;;  %v6231_v0 = vpack.c.bf16 %v1466_v54, %v1464_v21  ;;  %2596 = vperm.xlu0 %4356, %v2482_v55   ;;  %v8314_v54 = vld [vmem:[#allocation59_spill] sm:$0xff] }
 0x17f   : > { %2541 = vperm.xlu1 %4357, %v2471_v26   ;;  %v1468_v52 = vmax.f32 %v1404_v36, 0.0  ;;  %v1469_v53 = vmax.f32 %v1405_v19, 0.0  ;;  %v1344_v30 = vmul.f32 %v8288_v59, %v1248_v40  ;;  %v1345_v17 = vmul.f32 %v8289_v61, %v1248_v40  ;;  %v2486_v36 = vld [vmem:[%s7927_s5 + $0x1d8] sm:$0xff]  ;;  %v8315_v19 = vld [vmem:[#allocation56_spill] sm:$0xff] }
 0x180   : > { %v1470_v37 = vmax.f32 %v1406_v2, 0.0  ;;  %v1471_v15 = vmax.f32 %v1407_v48, 0.0  ;;  %v1346_v32 = vmul.f32 %v8288_v59, %v1252_v60  ;;  %v1347_v14 = vmul.f32 %v8289_v61, %v1252_v60  ;;  %2080 = vmatprep.subr.bf16.mxu0 %v6229_v33  ;;  %4295 = vmatprep.subr.bf16.mxu1 %v6229_v33  ;;  %v8316_v2 = vld [vmem:[#allocation21_spill] sm:$0xff] }
 0x181   : > { %v1075_v8 = vmul.f32 %v8251_v57, %v8310_v39  ;;  %v1408_v45 = vadd.f32 %v1344_v30, %v6121_v58  ;;  %v1409_v62 = vadd.f32 %v1345_v17, %v6147_v3  ;;  %2081 = vmatpush1.bf16.msra.mxu0 %v6231_v0  ;;  %4311 = vmatpush1.bf16.msra.mxu1 %v6231_v0  ;;  %v1256_v1 = vpop.permute.xlu0 %1255 }
 0x182   : > { %v1410_v56 = vadd.f32 %v1346_v32, %v6173_v41  ;;  %v1411_v21 = vadd.f32 %v1347_v14, %v1137_v49  ;;  %v6252_v9 = vpack.c.bf16 %v1471_v15, %v1469_v53  ;;  %v6254_v22 = vpack.c.bf16 %v1470_v37, %v1468_v52  ;;  %v986_v7 = vpop.permute.xlu1 %985  ;;  %v2475_v41 = vld [vmem:[%s7927_s5 + $0x180] sm:$0xff]  ;;  %2606 = vperm.xlu0 %4356, %v2484_v42   ;;  %v2477_v15 = vld [vmem:[%s7927_s5 + $0x190] sm:$0xff] }
 0x183   : > { %2551 = vperm.xlu1 %4357, %v2473_v38   ;;  %v864_v26 = vadd.f32 %v8313_v43, %v8312_v50  ;;  %v865_v58 = vadd.f32 %v8313_v43, %v8314_v54  ;;  %v1472_v11 = vmax.f32 %v1408_v45, 0.0  ;;  %v1473_v3 = vmax.f32 %v1409_v62, 0.0  ;;  %v8317_v38 = vld [vmem:[#allocation58_spill] sm:$0xff]  ;;  %v8319_v50 = vld [vmem:[#allocation29_spill] sm:$0xff] }
 0x184   : > { %v1474_v49 = vmax.f32 %v1410_v56, 0.0  ;;  %v1475_v55 = vmax.f32 %v1411_v21, 0.0  ;;  %v1348_v39 = vmul.f32 %v8288_v59, %v1256_v1  ;;  %v1349_v35 = vmul.f32 %v8289_v61, %v1256_v1  ;;  %2082 = vmatprep.subr.bf16.mxu0 %v6252_v9  ;;  %4296 = vmatprep.subr.bf16.mxu1 %v6252_v9  ;;  %v8318_v21 = vld [vmem:[#allocation3_spill] sm:$0xff]  ;;  %v8321_v1 = vld [vmem:[#allocation4_spill] sm:$0xff] }
 0x185   : > { %v866_v48 = vadd.f32 %v8316_v2, %v8315_v19  ;;  %v1076_v40 = vmul.f32 %v8250_v31, %v986_v7  ;;  %v1077_v52 = vmul.f32 %v8251_v57, %v986_v7  ;;  %2083 = vmatpush1.bf16.msra.mxu0 %v6254_v22  ;;  %4312 = vmatpush1.bf16.msra.mxu1 %v6254_v22 }
 0x186   : > { %v1138_v53 = vadd.f32 %v1074_v16, %v864_v26  ;;  %v1139_v30 = vadd.f32 %v1075_v8, %v865_v58  ;;  %v6276_v17 = vpack.c.bf16 %v1475_v55, %v1473_v3  ;;  %v6278_v60 = vpack.c.bf16 %v1474_v49, %v1472_v11  ;;  %2616 = vperm.xlu0 %4356, %v2486_v36   ;;  %v1260_v16 = vpop.permute.xlu1 %1259  ;;  %v2488_v8 = vld [vmem:[%s7927_s5 + $0x1e8] sm:$0xff]  ;;  %v8320_v26 = vld [vmem:[#allocation30_spill] sm:$0xff] }
 0x187   : > { %2561 = vperm.xlu1 %4357, %v2475_v41   ;;  %v867_v37 = vadd.f32 %v8316_v2, %v8317_v38  ;;  %v1140_v42 = vadd.f32 %v1076_v40, %v866_v48  ;;  %v1350_v62 = vmul.f32 %v8288_v59, %v1260_v16  ;;  %v1351_v56 = vmul.f32 %v8289_v61, %v1260_v16  ;;  %v2479_v3 = vld [vmem:[%s7927_s5 + $0x1a0] sm:$0xff]  ;;  %v8322_v49 = vld [vmem:[#allocation23_spill] sm:$0xff]  ;;  %v1268_v2 = vpop.permute.xlu0 %1267 }
 0x188   : > { %v1412_v32 = vadd.f32 %v1348_v39, %v1138_v53  ;;  %v1413_v14 = vadd.f32 %v1349_v35, %v1139_v30  ;;  %2084 = vmatprep.subr.bf16.mxu0 %v6276_v17  ;;  %4297 = vmatprep.subr.bf16.mxu1 %v6276_v17  ;;  %v646_v43 = vmul.f32 %v8319_v50, %v8318_v21  ;;  %v2490_v35 = vld [vmem:[%s7927_s5 + $0x1f8] sm:$0xff] }
 0x189   : > { %v1141_v45 = vadd.f32 %v1077_v52, %v867_v37  ;;  %2085 = vmatpush1.bf16.msra.mxu0 %v6278_v60  ;;  %4313 = vmatpush1.bf16.msra.mxu1 %v6278_v60  ;;  %v647_v54 = vmul.f32 %v8320_v26, %v8318_v21  ;;  %v1414_v58 = vadd.f32 %v1350_v62, %v1140_v42  ;;  %v8323_v53 = vld [vmem:[#allocation17_spill] sm:$0xff]  ;;  %v8324_v42 = vld [vmem:[#allocation24_spill] sm:$0xff] }
 0x18a   : > { %2626 = vperm.xlu0 %4356, %v2488_v8   ;;  %v644_v7 = vmul.f32 %v8319_v50, %v8321_v1  ;;  %v645_v41 = vmul.f32 %v8320_v26, %v8321_v1  ;;  %v870_v55 = vadd.f32 %v8322_v49, %v646_v43  ;;  %v1476_v36 = vmax.f32 %v1412_v32, 0.0  ;;  %v994_v52 = vpop.permute.xlu1 %993  ;;  %v2481_v21 = vld [vmem:[%s7927_s5 + $0x1b0] sm:$0xff]  ;;  %v2492_v43 = vld [vmem:[%s7927_s5 + $0x208] sm:$0xff] }
 0x18b   : > { %2571 = vperm.xlu1 %4357, %v2477_v15   ;;  %v1415_v11 = vadd.f32 %v1351_v56, %v1141_v45  ;;  %v871_v39 = vadd.f32 %v8322_v49, %v647_v54  ;;  %v1477_v19 = vmax.f32 %v1413_v14, 0.0  ;;  %v1478_v48 = vmax.f32 %v1414_v58, 0.0 }
 0x18c   : > { %v1078_v30 = vmul.f32 %v8250_v31, %v8323_v53  ;;  %v1079_v38 = vmul.f32 %v8251_v57, %v8323_v53  ;;  %v1080_v37 = vmul.f32 %v8250_v31, %v994_v52  ;;  %v1081_v15 = vmul.f32 %v8251_v57, %v994_v52  ;;  %v8325_v53 = vld [vmem:[#allocation6_spill] sm:$0xff] }
 0x18d   : > { %v1479_v40 = vmax.f32 %v1415_v11, 0.0  ;;  %v868_v16 = vadd.f32 %v8324_v42, %v644_v7  ;;  %v6319_v32 = vpack.c.bf16 %v1478_v48, %v1476_v36  ;;  %v869_v14 = vadd.f32 %v8324_v42, %v645_v41 }
 0x18e   : > { %2636 = vperm.xlu0 %4356, %v2490_v35   ;;  %v1354_v45 = vmul.f32 %v8288_v59, %v1268_v2  ;;  %v1144_v62 = vadd.f32 %v1080_v37, %v870_v55  ;;  %v1145_v56 = vadd.f32 %v1081_v15, %v871_v39  ;;  %v1355_v54 = vmul.f32 %v8289_v61, %v1268_v2  ;;  %v1264_v1 = vpop.permute.xlu1 %1263  ;;  %v2483_v55 = vld [vmem:[%s7927_s5 + $0x1c0] sm:$0xff]  ;;  %v2494_v39 = vld [vmem:[%s7927_s5 + $0x218] sm:$0xff] }
 0x18f   : > { %2581 = vperm.xlu1 %4357, %v2479_v3   ;;  %v6317_v8 = vpack.c.bf16 %v1479_v40, %v1477_v19  ;;  %v1142_v58 = vadd.f32 %v1078_v30, %v868_v16  ;;  %v1143_v11 = vadd.f32 %v1079_v38, %v869_v14  ;;  %v1352_v41 = vmul.f32 %v8288_v59, %v1264_v1  ;;  %v8326_v14 = vld [vmem:[#allocation26_spill] sm:$0xff] }
 0x190   : > { %v1418_v3 = vadd.f32 %v1354_v45, %v1144_v62  ;;  %v1419_v7 = vadd.f32 %v1355_v54, %v1145_v56  ;;  %v1353_v49 = vmul.f32 %v8289_v61, %v1264_v1  ;;  %v648_v30 = vmul.f32 %v8319_v50, %v8325_v53  ;;  %v2485_v56 = vld [vmem:[%s7927_s5 + $0x1d0] sm:$0xff]  ;;  %v2496_v54 = vld [vmem:[%s7927_s5 + $0x228] sm:$0xff] }
 0x191   : > { %2086 = vmatprep.subr.bf16.mxu0 %v6317_v8  ;;  %4298 = vmatprep.subr.bf16.mxu1 %v6317_v8  ;;  %v1416_v35 = vadd.f32 %v1352_v41, %v1142_v58  ;;  %v649_v38 = vmul.f32 %v8320_v26, %v8325_v53  ;;  %v8327_v58 = vld [vmem:[#allocation5_spill] sm:$0xff] }
 0x192   : > { %2087 = vmatpush1.bf16.msra.mxu0 %v6319_v32  ;;  %4314 = vmatpush1.bf16.msra.mxu1 %v6319_v32  ;;  %v1417_v36 = vadd.f32 %v1353_v49, %v1143_v11  ;;  %v1482_v19 = vmax.f32 %v1418_v3, 0.0  ;;  %v1483_v2 = vmax.f32 %v1419_v7, 0.0  ;;  %v998_v52 = vpop.permute.xlu1 %997  ;;  %v872_v45 = vadd.f32 %v8326_v14, %v648_v30  ;;  %v2489_v30 = vld [vmem:[%s7927_s5 + $0x1f0] sm:$0xff] }
 0x193   : > { %2591 = vperm.xlu1 %4357, %v2481_v21   ;;  %2646 = vperm.xlu0 %4356, %v2492_v43   ;;  %v1480_v48 = vmax.f32 %v1416_v35, 0.0  ;;  %v1082_v37 = vmul.f32 %v8250_v31, %v998_v52  ;;  %v1083_v15 = vmul.f32 %v8251_v57, %v998_v52  ;;  %v873_v62 = vadd.f32 %v8326_v14, %v649_v38  ;;  %v1272_v21 = vpop.permute.xlu0 %1271  ;;  %v8328_v35 = vld [vmem:[#allocation25_spill] sm:$0xff] }
 0x194   : > { %v1481_v40 = vmax.f32 %v1417_v36, 0.0  ;;  %v650_v11 = vmul.f32 %v8319_v50, %v8327_v58  ;;  %v651_v7 = vmul.f32 %v8320_v26, %v8327_v58  ;;  %v2487_v50 = vld [vmem:[%s7927_s5 + $0x1e0] sm:$0xff]  ;;  %v3267_v58 = vld [vmem:[%s7927_s5 + $0x268] sm:$0xff] }
 0x195   : > { %v6350_v16 = vpack.c.bf16 %v1482_v19, %v1480_v48  ;;  %v1146_v3 = vadd.f32 %v1082_v37, %v872_v45  ;;  %v1147_v1 = vadd.f32 %v1083_v15, %v873_v62  ;;  %v3265_v15 = vld [vmem:[%s7927_s5 + $0x258] sm:$0xff] }
 0x196   : > { %v6348_v42 = vpack.c.bf16 %v1483_v2, %v1481_v40  ;;  %v1002_v43 = vpop.permute.xlu1 %1001  ;;  %v874_v36 = vadd.f32 %v8328_v35, %v650_v11  ;;  %v875_v26 = vadd.f32 %v8328_v35, %v651_v7  ;;  %v4364_v11 = vld [vmem:[%s7926_s4 + $0x14] ss:$8 sps:$4 sm:$0xff]   ;;  %v2495_v7 = vld [vmem:[%s7927_s5 + $0x220] sm:$0xff] }
 0x197   : > { %2601 = vperm.xlu1 %4357, %v2483_v55   ;;  %2656 = vperm.xlu0 %4356, %v2494_v39   ;;  %v1084_v41 = vmul.f32 %v8250_v31, %v1002_v43  ;;  %v1085_v49 = vmul.f32 %v8251_v57, %v1002_v43  ;;  %v1356_v55 = vmul.f32 %v8288_v59, %v1272_v21  ;;  %v3263_v57 = vld [vmem:[%s7927_s5 + $0x248] sm:$0xff]  ;;  %v4361_v43 = vld [vmem:[%s7926_s4 + $0x90] ss:$8 sps:$4 sm:$0xff]  }
 0x198   : > { %2088 = vmatprep.subr.bf16.mxu0 %v6348_v42  ;;  %4299 = vmatprep.subr.bf16.mxu1 %v6348_v42  ;;  %v1357_v39 = vmul.f32 %v8289_v61, %v1272_v21  ;;  %v4358_v21 = vld [vmem:[%s7926_s4] ss:$8 sps:$4 sm:$0xff]   ;;  %v4378_v35 = vld [vmem:[%s7926_s4 + $0xc4] ss:$8 sps:$4 sm:$0xff]  }
 0x199   : > { %2089 = vmatpush1.bf16.msra.mxu0 %v6350_v16  ;;  %4315 = vmatpush1.bf16.msra.mxu1 %v6350_v16  ;;  %v1420_v31 = vadd.f32 %v1356_v55, %v1146_v3  ;;  %v1148_v48 = vadd.f32 %v1084_v41, %v874_v36  ;;  %v1149_v40 = vadd.f32 %v1085_v49, %v875_v26  ;;  %v2493_v3 = vld [vmem:[%s7927_s5 + $0x210] sm:$0xff]  ;;  %v3262_v49 = vld [vmem:[%s7927_s5 + $0x240] sm:$0xff] }
 0x19a   : > { %v1421_v19 = vadd.f32 %v1357_v39, %v1147_v1  ;;  %v4366_v1 = vld [vmem:[%s7926_s4 + $0xa4] ss:$8 sps:$4 sm:$0xff]   ;;  %v4368_v41 = vld [vmem:[%s7926_s4 + $0x10] ss:$8 sps:$4 sm:$0xff]   ;;  %v4372_v55 = vld [vmem:[%s7926_s4 + $0xb4] ss:$8 sps:$4 sm:$0xff]  }
 0x19b   : > { %2611 = vperm.xlu1 %4357, %v2485_v56   ;;  %2666 = vperm.xlu0 %4356, %v2496_v54   ;;  %v1276_v2 = vpop.permute.xlu1 %1275  ;;  %v1484_v14 = vmax.f32 %v1420_v31, 0.0  ;;  %v2491_v54 = vld [vmem:[%s7927_s5 + $0x200] sm:$0xff]  ;;  %v4380_v36 = vld [vmem:[%s7926_s4 + $0x30] ss:$8 sps:$4 sm:$0xff]  }
 0x19c   : > { %v1358_v52 = vmul.f32 %v8288_v59, %v1276_v2  ;;  %v1359_v53 = vmul.f32 %v8289_v61, %v1276_v2  ;;  %v1485_v45 = vmax.f32 %v1421_v19, 0.0  ;;  %v4374_v39 = vld [vmem:[%s7926_s4 + $0x20] ss:$8 sps:$4 sm:$0xff]   ;;  %v4390_v2 = vld [vmem:[%s7926_s4 + $0xe4] ss:$8 sps:$4 sm:$0xff]  }
 0x19d   : > { %v3270_v26 = vld [vmem:[%s7927_s5 + $0x280] sm:$0xff] }
 0x19e   : > { %v1422_v38 = vadd.f32 %v1358_v52, %v1148_v48  ;;  %v1423_v37 = vadd.f32 %v1359_v53, %v1149_v40  ;;  %v4386_v31 = vld [vmem:[%s7926_s4 + $0x40] ss:$8 sps:$4 sm:$0xff]   ;;  %v4392_v48 = vld [vmem:[%s7926_s4 + $0x50] ss:$8 sps:$4 sm:$0xff]   ;;  %v4394_v52 = vld [vmem:[%s7926_s4 + $0x64] ss:$8 sps:$4 sm:$0xff]  }
 0x19f   : > { %2621 = vperm.xlu1 %4357, %v2487_v50   ;;  %3305 = vperm.xlu0 %4356, %v3263_v57   ;;  %v3266_v50 = vld [vmem:[%s7927_s5 + $0x260] sm:$0xff]  ;;  %v4384_v57 = vld [vmem:[%s7926_s4 + $0xd4] ss:$8 sps:$4 sm:$0xff]   ;;  %v3279_v40 = vld [vmem:[%s7927_s5 + $0x2c8] sm:$0xff] }
 0x1a0   : > { %v1486_v62 = vmax.f32 %v1422_v38, 0.0  ;;  %v1487_v56 = vmax.f32 %v1423_v37, 0.0  ;;  %v3274_v19 = vld [vmem:[%s7927_s5 + $0x2a0] sm:$0xff]  ;;  %v6590_v38 = vpop.permute.xlu1 %1707  ;;  %v6592_v37 = vpop.permute.xlu0 %1702 }
 0x1a1   : > { %v4398_v53 = vld [vmem:[%s7926_s4 + $0x60] ss:$8 sps:$4 sm:$0xff]  }
 0x1a2   : > { %v6388_v59 = vpack.c.bf16 %v1487_v56, %v1485_v45  ;;  %v6390_v61 = vpack.c.bf16 %v1486_v62, %v1484_v14  ;;  %v3284_v14 = vld [vmem:[%s7927_s5 + $0x2f0] sm:$0xff] }
 0x1a3   : > { %2631 = vperm.xlu1 %4357, %v2489_v30   ;;  %3315 = vperm.xlu0 %4356, %v3265_v15   ;;  %v3282_v30 = vld [vmem:[%s7927_s5 + $0x2e0] sm:$0xff]  ;;  %v4404_v45 = vld [vmem:[%s7926_s4 + $0x70] ss:$8 sps:$4 sm:$0xff]  }
 0x1a4   : > { %2090 = vmatprep.subr.bf16.mxu0 %v6388_v59  ;;  %4300 = vmatprep.subr.bf16.mxu1 %v6388_v59  ;;  %v4402_v15 = vld [vmem:[%s7926_s4 + $0x104] ss:$8 sps:$4 sm:$0xff]   ;;  %v6621_v62 = vpop.permute.xlu1 %1712  ;;  %v6623_v56 = vpop.permute.xlu0 %1717 }
 0x1a5   : > { %2091 = vmatpush1.bf16.msra.mxu0 %v6390_v61  ;;  %4316 = vmatpush1.bf16.msra.mxu1 %v6390_v61 }
 0x1a6   : > { %2859 = vmatprep.subr.bf16.mxu1 %v5974_v44  ;;  %3658 = vmatprep.subr.bf16.mxu0 %v5974_v44  ;;  %v3269_v44 = vld [vmem:[%s7927_s5 + $0x278] sm:$0xff] }
 0x1a7   : > { %2641 = vperm.xlu1 %4357, %v2491_v54   ;;  %3325 = vperm.xlu0 %4356, %v3267_v58   ;;  %v3288_v54 = vld [vmem:[%s7927_s5 + $0x310] sm:$0xff] }
 0x1a8   : > { %2093 = vmatmul.mubr.bf16.vlgmr.msra.gmra.mrb[0].mxu0 %v4358_v21  ;;  %2183 = vmatmul.mubr.bf16.vlgmr.msra.gmra.mrb[0].mxu1 %v4361_v43  ;;  %v3286_v21 = vld [vmem:[%s7927_s5 + $0x300] sm:$0xff]  ;;  %v6646_v58 = vpop.permute.xlu1 %1722 }
 0x1a9   : > { %2860 = vmatpush1.bf16.msra.mxu1 %v5976_v28  ;;  %3659 = vmatpush1.bf16.msra.mxu0 %v5976_v28  ;;  %v4369_v28 = vld [vmem:[%s7926_s4 + $0xa0] ss:$8 sps:$4 sm:$0xff]   ;;  %v4406_v43 = vld [vmem:[%s7926_s4 + $0x84] ss:$8 sps:$4 sm:$0xff]  }
 0x1aa   : > { %2861 = vmatprep.subr.bf16.mxu1 %v5999_v47  ;;  %3660 = vmatprep.subr.bf16.mxu0 %v5999_v47  ;;  %v4370_v47 = vld [vmem:[%s7926_s4 + $0x24] ss:$8 sps:$4 sm:$0xff]  }
 0x1ab   : > { %2651 = vperm.xlu1 %4357, %v2493_v3   ;;  %2102 = vmatprep.mubr.bf16.mxu0 %v4364_v11  ;;  %v6648_v11 = vpop.permute.xlu0 %1727  ;;  %v3289_v3 = vld [vmem:[%s7927_s5 + $0x318] sm:$0xff] }
 0x1ac   : > { %2192 = vmatprep.mubr.bf16.mxu1 %v4366_v1  ;;  %3335 = vperm.xlu0 %4356, %v3269_v44   ;;  %v4414_v1 = vld [vmem:[%s7926_s4 + $0x124] ss:$8 sps:$4 sm:$0xff]  }
 0x1ad   : > { %2862 = vmatpush1.bf16.msra.mxu1 %v6001_v29  ;;  %3661 = vmatpush1.bf16.msra.mxu0 %v6001_v29  ;;  %v3271_v29 = vld [vmem:[%s7927_s5 + $0x288] sm:$0xff] }
 0x1ae   : > { %2863 = vmatprep.subr.bf16.mxu1 %v6025_v51  ;;  %3662 = vmatprep.subr.bf16.mxu0 %v6025_v51  ;;  %v3264_v51 = vld [vmem:[%s7927_s5 + $0x250] sm:$0xff]  ;;  %v4417_v44 = vld [vmem:[%s7926_s4 + $0x244] ss:$8 sps:$4 sm:$0xff]  }
 0x1af   : > { %2661 = vperm.xlu1 %4357, %v2495_v7   ;;  %v3290_v7 = vld [vmem:[%s7927_s5 + $0x320] sm:$0xff] }
 0x1b0   : > { %2103 = vmatmul.mubr.bf16.gmra.mrb[4].mxu0 %v4368_v41  ;;  %2193 = vmatmul.mubr.bf16.gmra.mrb[4].mxu1 %v4369_v28  ;;  %v6673_v41 = vpop.permute.xlu1 %1732  ;;  %v6675_v28 = vpop.permute.xlu0 %1737 }
 0x1b1   : > { %2864 = vmatpush1.bf16.msra.mxu1 %v6027_v12  ;;  %3663 = vmatpush1.bf16.msra.mxu0 %v6027_v12  ;;  %v4375_v12 = vld [vmem:[%s7926_s4 + $0xb0] ss:$8 sps:$4 sm:$0xff]  }
 0x1b2   : > { %2865 = vmatprep.subr.bf16.mxu1 %v6051_v20  ;;  %3664 = vmatprep.subr.bf16.mxu0 %v6051_v20  ;;  %v4376_v20 = vld [vmem:[%s7926_s4 + $0x34] ss:$8 sps:$4 sm:$0xff]  }
 0x1b3   : > { %3300 = vperm.xlu1 %4357, %v3262_v49   ;;  %2112 = vmatprep.mubr.bf16.mxu0 %v4370_v47  ;;  %v4412_v47 = vld [vmem:[%s7926_s4 + $0x120] ss:$8 sps:$4 sm:$0xff]  }
 0x1b4   : > { %2202 = vmatprep.mubr.bf16.mxu1 %v4372_v55  ;;  %3345 = vperm.xlu0 %4356, %v3271_v29   ;;  %v4415_v49 = vld [vmem:[%s7926_s4 + $0x240] ss:$8 sps:$4 sm:$0xff]   ;;  %v3292_v55 = vld [vmem:[%s7927_s5 + $0x330] sm:$0xff]  ;;  %v3293_v29 = vld [vmem:[%s7927_s5 + $0x338] sm:$0xff] }
 0x1b5   : > { %2866 = vmatpush1.bf16.msra.mxu1 %v6053_v13  ;;  %3665 = vmatpush1.bf16.msra.mxu0 %v6053_v13  ;;  %v3273_v13 = vld [vmem:[%s7927_s5 + $0x298] sm:$0xff] }
 0x1b6   : > { %2867 = vmatprep.subr.bf16.mxu1 %v6077_v27  ;;  %3666 = vmatprep.subr.bf16.mxu0 %v6077_v27  ;;  %v3268_v27 = vld [vmem:[%s7927_s5 + $0x270] sm:$0xff] }
 0x1b7   : > { %3310 = vperm.xlu1 %4357, %v3264_v51   ;;  %v4418_v51 = vld [vmem:[%s7926_s4 + $0x134] ss:$8 sps:$4 sm:$0xff]  }
 0x1b8   : > { %2113 = vmatmul.mubr.bf16.gmra.mrb[8].mxu0 %v4374_v39  ;;  %2203 = vmatmul.mubr.bf16.gmra.mrb[8].mxu1 %v4375_v12  ;;  %v4420_v39 = vld [vmem:[%s7926_s4 + $0x254] ss:$8 sps:$4 sm:$0xff]   ;;  %v6695_v12 = vpop.permute.xlu1 %1742 }
 0x1b9   : > { %2868 = vmatpush1.bf16.msra.mxu1 %v6079_v24  ;;  %3667 = vmatpush1.bf16.msra.mxu0 %v6079_v24  ;;  %v4381_v24 = vld [vmem:[%s7926_s4 + $0xc0] ss:$8 sps:$4 sm:$0xff]  }
 0x1ba   : > { %2869 = vmatprep.subr.bf16.mxu1 %v6103_v10  ;;  %3668 = vmatprep.subr.bf16.mxu0 %v6103_v10  ;;  %v4382_v10 = vld [vmem:[%s7926_s4 + $0x44] ss:$8 sps:$4 sm:$0xff]  }
 0x1bb   : > { %3320 = vperm.xlu1 %4357, %v3266_v50   ;;  %2122 = vmatprep.mubr.bf16.mxu0 %v4376_v20  ;;  %v6697_v20 = vpop.permute.xlu0 %1747  ;;  %v3294_v50 = vld [vmem:[%s7927_s5 + $0x340] sm:$0xff] }
 0x1bc   : > { %2212 = vmatprep.mubr.bf16.mxu1 %v4378_v35  ;;  %3355 = vperm.xlu0 %4356, %v3273_v13   ;;  %v3295_v35 = vld [vmem:[%s7927_s5 + $0x348] sm:$0xff]  ;;  %v2497_v13 = vld [vmem:[%s7927_s5 + $0x230] sm:$0xff] }
 0x1bd   : > { %2870 = vmatpush1.bf16.msra.mxu1 %v6105_v23  ;;  %3669 = vmatpush1.bf16.msra.mxu0 %v6105_v23  ;;  %v3275_v23 = vld [vmem:[%s7927_s5 + $0x2a8] sm:$0xff] }
 0x1be   : > { %2871 = vmatprep.subr.bf16.mxu1 %v6129_v4  ;;  %3670 = vmatprep.subr.bf16.mxu0 %v6129_v4  ;;  %v3272_v4 = vld [vmem:[%s7927_s5 + $0x290] sm:$0xff] }
 0x1bf   : > { %3330 = vperm.xlu1 %4357, %v3268_v27   ;;  %v4422_v27 = vld [vmem:[%s7926_s4 + $0x130] ss:$8 sps:$4 sm:$0xff]  }
 0x1c0   : > { %2123 = vmatmul.mubr.bf16.gmra.mrb[12].mxu0 %v4380_v36  ;;  %2213 = vmatmul.mubr.bf16.gmra.mrb[12].mxu1 %v4381_v24  ;;  %v4423_v36 = vld [vmem:[%s7926_s4 + $0x250] ss:$8 sps:$4 sm:$0xff]  }
 0x1c1   : > { %2872 = vmatpush1.bf16.msra.mxu1 %v6131_v34  ;;  %3671 = vmatpush1.bf16.msra.mxu0 %v6131_v34  ;;  %v4387_v34 = vld [vmem:[%s7926_s4 + $0xd0] ss:$8 sps:$4 sm:$0xff]  }
 0x1c2   : > { %2873 = vmatprep.subr.bf16.mxu1 %v6155_v5  ;;  %3672 = vmatprep.subr.bf16.mxu0 %v6155_v5  ;;  %v4388_v5 = vld [vmem:[%s7926_s4 + $0x54] ss:$8 sps:$4 sm:$0xff]  }
 0x1c3   : > { %3340 = vperm.xlu1 %4357, %v3270_v26   ;;  %2132 = vmatprep.mubr.bf16.mxu0 %v4382_v10  ;;  %v3296_v24 = vld [vmem:[%s7927_s5 + $0x350] sm:$0xff]  ;;  %v4424_v10 = vld [vmem:[%s7926_s4 + $0x144] ss:$8 sps:$4 sm:$0xff]  }
 0x1c4   : > { %2222 = vmatprep.mubr.bf16.mxu1 %v4384_v57  ;;  %3365 = vperm.xlu0 %4356, %v3275_v23   ;;  %v4426_v26 = vld [vmem:[%s7926_s4 + $0x264] ss:$8 sps:$4 sm:$0xff]   ;;  %v6723_v57 = vpop.permute.xlu1 %1752  ;;  %v6725_v23 = vpop.permute.xlu0 %1757 }
 0x1c5   : > { %2874 = vmatpush1.bf16.msra.mxu1 %v6157_v63  ;;  %3673 = vmatpush1.bf16.msra.mxu0 %v6157_v63  ;;  %v3277_v63 = vld [vmem:[%s7927_s5 + $0x2b8] sm:$0xff] }
 0x1c6   : > { %2875 = vmatprep.subr.bf16.mxu1 %v6181_v46  ;;  %3674 = vmatprep.subr.bf16.mxu0 %v6181_v46  ;;  %v3276_v46 = vld [vmem:[%s7927_s5 + $0x2b0] sm:$0xff] }
 0x1c7   : > { %3350 = vperm.xlu1 %4357, %v3272_v4   ;;  %v2498_v4 = vld [vmem:[%s7927_s5 + $0x238] sm:$0xff] }
 0x1c8   : > { %2133 = vmatmul.mubr.bf16.gmra.mrb[16].mxu0 %v4386_v31  ;;  %2223 = vmatmul.mubr.bf16.gmra.mrb[16].mxu1 %v4387_v34  ;;  %v3297_v31 = vld [vmem:[%s7927_s5 + $0x358] sm:$0xff]  ;;  %v6733_v34 = vpop.permute.xlu1 %1762 }
 0x1c9   : > { %2876 = vmatpush1.bf16.msra.mxu1 %v6183_v25  ;;  %3675 = vmatpush1.bf16.msra.mxu0 %v6183_v25  ;;  %v4393_v25 = vld [vmem:[%s7926_s4 + $0xe0] ss:$8 sps:$4 sm:$0xff]  }
 0x1ca   : > { %2877 = vmatprep.subr.bf16.mxu1 %v6205_v18  ;;  %3676 = vmatprep.subr.bf16.mxu0 %v6205_v18  ;;  %v3278_v18 = vld [vmem:[%s7927_s5 + $0x2c0] sm:$0xff] }
 0x1cb   : > { %3360 = vperm.xlu1 %4357, %v3274_v19   ;;  %2142 = vmatprep.mubr.bf16.mxu0 %v4388_v5  ;;  %v6735_v5 = vpop.permute.xlu0 %1767  ;;  %v4428_v19 = vld [vmem:[%s7926_s4 + $0x140] ss:$8 sps:$4 sm:$0xff]  }
 0x1cc   : > { %2232 = vmatprep.mubr.bf16.mxu1 %v4390_v2  ;;  %3375 = vperm.xlu0 %4356, %v3277_v63   ;;  %v4429_v2 = vld [vmem:[%s7926_s4 + $0x260] ss:$8 sps:$4 sm:$0xff]   ;;  %v4430_v63 = vld [vmem:[%s7926_s4 + $0x154] ss:$8 sps:$4 sm:$0xff]  }
 0x1cd   : > { %2878 = vmatpush1.bf16.msra.mxu1 %v6207_v6  ;;  %3677 = vmatpush1.bf16.msra.mxu0 %v6207_v6  ;;  %v4396_v6 = vld [vmem:[%s7926_s4 + $0xf4] ss:$8 sps:$4 sm:$0xff]  }
 0x1ce   : > { %2879 = vmatprep.subr.bf16.mxu1 %v6229_v33  ;;  %3678 = vmatprep.subr.bf16.mxu0 %v6229_v33  ;;  %v3280_v33 = vld [vmem:[%s7927_s5 + $0x2d0] sm:$0xff] }
 0x1cf   : > { %3370 = vperm.xlu1 %4357, %v3276_v46   ;;  %v4432_v46 = vld [vmem:[%s7926_s4 + $0x274] ss:$8 sps:$4 sm:$0xff]  }
 0x1d0   : > { %2143 = vmatmul.mubr.bf16.gmra.mrb[20].mxu0 %v4392_v48  ;;  %2233 = vmatmul.mubr.bf16.gmra.mrb[20].mxu1 %v4393_v25  ;;  %v6749_v48 = vpop.permute.xlu1 %1772  ;;  %v6751_v25 = vpop.permute.xlu0 %1777 }
 0x1d1   : > { %2880 = vmatpush1.bf16.msra.mxu1 %v6231_v0  ;;  %3679 = vmatpush1.bf16.msra.mxu0 %v6231_v0  ;;  %v4399_v0 = vld [vmem:[%s7926_s4 + $0xf0] ss:$8 sps:$4 sm:$0xff]   ;;  %8329 = vst [vmem:[#allocation19_spill] sm:$0xff] %v6749_v48  ;;  %8330 = vst [vmem:[#allocation32_spill] sm:$0xff] %v6751_v25 }
 0x1d2   : > { %2881 = vmatprep.subr.bf16.mxu1 %v6252_v9  ;;  %3680 = vmatprep.subr.bf16.mxu0 %v6252_v9  ;;  %v3281_v9 = vld [vmem:[%s7927_s5 + $0x2d8] sm:$0xff] }
 0x1d3   : > { %3380 = vperm.xlu1 %4357, %v3278_v18   ;;  %3385 = vperm.xlu0 %4356, %v3279_v40   ;;  %v4434_v18 = vld [vmem:[%s7926_s4 + $0x150] ss:$8 sps:$4 sm:$0xff]  }
 0x1d4   : > { %2152 = vmatprep.mubr.bf16.mxu0 %v4394_v52  ;;  %2242 = vmatprep.mubr.bf16.mxu1 %v4396_v6  ;;  %v4435_v40 = vld [vmem:[%s7926_s4 + $0x270] ss:$8 sps:$4 sm:$0xff]   ;;  %v4436_v52 = vld [vmem:[%s7926_s4 + $0x164] ss:$8 sps:$4 sm:$0xff]  }
 0x1d5   : > { %2882 = vmatpush1.bf16.msra.mxu1 %v6254_v22  ;;  %3681 = vmatpush1.bf16.msra.mxu0 %v6254_v22  ;;  %v3283_v22 = vld [vmem:[%s7927_s5 + $0x2e8] sm:$0xff] }
 0x1d6   : > { %2883 = vmatprep.subr.bf16.mxu1 %v6276_v17  ;;  %3682 = vmatprep.subr.bf16.mxu0 %v6276_v17  ;;  %v4400_v17 = vld [vmem:[%s7926_s4 + $0x74] ss:$8 sps:$4 sm:$0xff]   ;;  %v4438_v6 = vld [vmem:[%s7926_s4 + $0x284] ss:$8 sps:$4 sm:$0xff]  }
 0x1d7   : > { %3390 = vperm.xlu1 %4357, %v3280_v33   ;;  %3395 = vperm.xlu0 %4356, %v3281_v9   ;;  %v6765_v33 = vpop.permute.xlu1 %1782  ;;  %v4441_v9 = vld [vmem:[%s7926_s4 + $0x280] ss:$8 sps:$4 sm:$0xff]  }
 0x1d8   : > { %2153 = vmatmul.mubr.bf16.gmra.mrb[24].mxu0 %v4398_v53  ;;  %2243 = vmatmul.mubr.bf16.gmra.mrb[24].mxu1 %v4399_v0  ;;  %8331 = vst [vmem:[#allocation55_spill] sm:$0xff] %v6765_v33  ;;  %v6767_v53 = vpop.permute.xlu0 %1787  ;;  %v4440_v0 = vld [vmem:[%s7926_s4 + $0x160] ss:$8 sps:$4 sm:$0xff]  }
 0x1d9   : > { %2884 = vmatpush1.bf16.msra.mxu1 %v6278_v60  ;;  %3683 = vmatpush1.bf16.msra.mxu0 %v6278_v60  ;;  %v4405_v60 = vld [vmem:[%s7926_s4 + $0x100] ss:$8 sps:$4 sm:$0xff]   ;;  %8332 = vst [vmem:[#allocation20_spill] sm:$0xff] %v6767_v53 }
 0x1da   : > { %2885 = vmatprep.subr.bf16.mxu1 %v6317_v8  ;;  %3684 = vmatprep.subr.bf16.mxu0 %v6317_v8  ;;  %v3285_v8 = vld [vmem:[%s7927_s5 + $0x2f8] sm:$0xff] }
 0x1db   : > { %3400 = vperm.xlu1 %4357, %v3282_v30   ;;  %3405 = vperm.xlu0 %4356, %v3283_v22   ;;  %v4442_v30 = vld [vmem:[%s7926_s4 + $0x174] ss:$8 sps:$4 sm:$0xff]  }
 0x1dc   : > { %2162 = vmatprep.mubr.bf16.mxu0 %v4400_v17  ;;  %2252 = vmatprep.mubr.bf16.mxu1 %v4402_v15  ;;  %v4444_v22 = vld [vmem:[%s7926_s4 + $0x294] ss:$8 sps:$4 sm:$0xff]   ;;  %v6781_v17 = vpop.permute.xlu1 %1792  ;;  %v6783_v15 = vpop.permute.xlu0 %1797 }
 0x1dd   : > { %2886 = vmatpush1.bf16.msra.mxu1 %v6319_v32  ;;  %3685 = vmatpush1.bf16.msra.mxu0 %v6319_v32  ;;  %v3287_v32 = vld [vmem:[%s7927_s5 + $0x308] sm:$0xff] }
 0x1de   : > { %2887 = vmatprep.subr.bf16.mxu1 %v6348_v42  ;;  %3686 = vmatprep.subr.bf16.mxu0 %v6348_v42  ;;  %v4408_v42 = vld [vmem:[%s7926_s4 + $0x114] ss:$8 sps:$4 sm:$0xff]  }
 0x1df   : > { %3410 = vperm.xlu1 %4357, %v3284_v14   ;;  %3415 = vperm.xlu0 %4356, %v3285_v8   ;;  %v4447_v8 = vld [vmem:[%s7926_s4 + $0x290] ss:$8 sps:$4 sm:$0xff]  }
 0x1e0   : > { %2163 = vmatmul.mubr.bf16.gmra.mrb[28].mxu0 %v4404_v45  ;;  %2253 = vmatmul.mubr.bf16.gmra.mrb[28].mxu1 %v4405_v60  ;;  %v6785_v14 = vpop.permute.xlu1 %1802  ;;  %v6787_v45 = vpop.permute.xlu0 %1807  ;;  %v4446_v60 = vld [vmem:[%s7926_s4 + $0x170] ss:$8 sps:$4 sm:$0xff]  }
 0x1e1   : > { %2888 = vmatpush1.bf16.msra.mxu1 %v6350_v16  ;;  %3687 = vmatpush1.bf16.msra.mxu0 %v6350_v16  ;;  %v4410_v16 = vld [vmem:[%s7926_s4 + $0x80] ss:$8 sps:$4 sm:$0xff]  }
 0x1e2   : > { %2889 = vmatprep.subr.bf16.mxu1 %v6388_v59  ;;  %3688 = vmatprep.subr.bf16.mxu0 %v6388_v59  ;;  %v4411_v59 = vld [vmem:[%s7926_s4 + $0x110] ss:$8 sps:$4 sm:$0xff]  }
 0x1e3   : > { %3420 = vperm.xlu1 %4357, %v3286_v21   ;;  %3425 = vperm.xlu0 %4356, %v3287_v32   ;;  %v4448_v21 = vld [vmem:[%s7926_s4 + $0x184] ss:$8 sps:$4 sm:$0xff]  }
 0x1e4   : > { %2172 = vmatprep.mubr.bf16.mxu0 %v4406_v43  ;;  %2262 = vmatprep.mubr.bf16.mxu1 %v4408_v42  ;;  %v4450_v32 = vld [vmem:[%s7926_s4 + $0x2a4] ss:$8 sps:$4 sm:$0xff]   ;;  %v6801_v43 = vpop.permute.xlu1 %1812  ;;  %v6803_v42 = vpop.permute.xlu0 %1817 }
 0x1e5   : > { %2890 = vmatpush1.bf16.msra.mxu1 %v6390_v61  ;;  %3689 = vmatpush1.bf16.msra.mxu0 %v6390_v61  ;;  %v3291_v61 = vld [vmem:[%s7927_s5 + $0x328] sm:$0xff] }
 0x1e7   : > { %3430 = vperm.xlu1 %4357, %v3288_v54   ;;  %3435 = vperm.xlu0 %4356, %v3289_v3   ;;  %v4452_v54 = vld [vmem:[%s7926_s4 + $0x180] ss:$8 sps:$4 sm:$0xff]   ;;  %v4456_v3 = vld [vmem:[%s7926_s4 + $0x2b4] ss:$8 sps:$4 sm:$0xff]  }
 0x1e8   : > { %2173 = vmatmul.mubr.bf16.gmra.mrb[32].mxu0 %v4410_v16  ;;  %2263 = vmatmul.mubr.bf16.gmra.mrb[32].mxu1 %v4411_v59  ;;  %v4453_v16 = vld [vmem:[%s7926_s4 + $0x2a0] ss:$8 sps:$4 sm:$0xff]   ;;  %v4454_v59 = vld [vmem:[%s7926_s4 + $0x194] ss:$8 sps:$4 sm:$0xff]  }
 0x1e9   : > { %2891 = vmatprep.mubr.bf16.mxu1 %v4414_v1  ;;  %3690 = vmatprep.mubr.bf16.mxu0 %v4417_v44  ;;  %v6817_v1 = vpop.permute.xlu1 %1822  ;;  %v6819_v44 = vpop.permute.xlu0 %1827 }
 0x1ea   : > { %8333 = vst [vmem:[#allocation35_spill] sm:$0xff] %v6819_v44 }
 0x1eb   : > { %3440 = vperm.xlu1 %4357, %v3290_v7   ;;  %3445 = vperm.xlu0 %4356, %v3291_v61   ;;  %v4458_v7 = vld [vmem:[%s7926_s4 + $0x190] ss:$8 sps:$4 sm:$0xff]  }
 0x1ec   : > { %v4459_v61 = vld [vmem:[%s7926_s4 + $0x2b0] ss:$8 sps:$4 sm:$0xff]  }
 0x1ef   : > { %3450 = vperm.xlu1 %4357, %v3292_v55   ;;  %3455 = vperm.xlu0 %4356, %v3293_v29   ;;  %v6833_v55 = vpop.permute.xlu1 %1832  ;;  %v6835_v29 = vpop.permute.xlu0 %1837 }
 0x1f0   : > { %2892 = vmatmul.mubr.bf16.vlgmr.msra.gmra.mrb[36].mxu1 %v4412_v47  ;;  %3691 = vmatmul.mubr.bf16.vlgmr.msra.gmra.mrb[36].mxu0 %v4415_v49  ;;  %v4460_v47 = vld [vmem:[%s7926_s4 + $0x1a4] ss:$8 sps:$4 sm:$0xff]   ;;  %8334 = vst [vmem:[#allocation36_spill] sm:$0xff] %v6833_v55  ;;  %8335 = vst [vmem:[#allocation37_spill] sm:$0xff] %v6835_v29 }
 0x1f1   : > { %2901 = vmatprep.mubr.bf16.mxu1 %v4418_v51  ;;  %3700 = vmatprep.mubr.bf16.mxu0 %v4420_v39  ;;  %v4462_v49 = vld [vmem:[%s7926_s4 + $0x2c4] ss:$8 sps:$4 sm:$0xff]  }
 0x1f3   : > { %3460 = vperm.xlu1 %4357, %v3294_v50   ;;  %3465 = vperm.xlu0 %4356, %v3295_v35   ;;  %v6837_v51 = vpop.permute.xlu1 %1842  ;;  %v6839_v39 = vpop.permute.xlu0 %1847  ;;  %v4464_v50 = vld [vmem:[%s7926_s4 + $0x1a0] ss:$8 sps:$4 sm:$0xff]  }
 0x1f4   : > { %8336 = vst [vmem:[#allocation39_spill] sm:$0xff] %v6837_v51  ;;  %8337 = vst [vmem:[#allocation45_spill] sm:$0xff] %v6839_v39  ;;  %v4465_v35 = vld [vmem:[%s7926_s4 + $0x2c0] ss:$8 sps:$4 sm:$0xff]  }
 0x1f5   : > { %v1545_v39 = vld [vmem:[%s7923_s1 + $0xc8] sm:$0xff] }
 0x1f6   : > { %v7211_v29 = vunpack.c.h.bf16 %v1545_v39 }
 0x1f7   : > { %2671 = vperm.xlu1 %4357, %v2497_v13   ;;  %3470 = vperm.xlu0 %4356, %v3296_v24   ;;  %v4466_v13 = vld [vmem:[%s7926_s4 + $0x1b4] ss:$8 sps:$4 sm:$0xff]   ;;  %v6855_v24 = vpop.permute.xlu0 %1857 }
 0x1f8   : > { %2902 = vmatmul.mubr.bf16.gmra.mrb[40].mxu1 %v4422_v27  ;;  %3701 = vmatmul.mubr.bf16.gmra.mrb[40].mxu0 %v4423_v36  ;;  %v4468_v27 = vld [vmem:[%s7926_s4 + $0x2d4] ss:$8 sps:$4 sm:$0xff]   ;;  %v6853_v36 = vpop.permute.xlu1 %1852  ;;  %8339 = vst [vmem:[#allocation54_spill] sm:$0xff] %v6855_v24  ;;  %8407 = vst [vmem:[#allocation80_spill] sm:$0xff] %v7211_v29 }
 0x1f9   : > { %2911 = vmatprep.mubr.bf16.mxu1 %v4424_v10  ;;  %3710 = vmatprep.mubr.bf16.mxu0 %v4426_v26  ;;  %8338 = vst [vmem:[#allocation47_spill] sm:$0xff] %v6853_v36  ;;  %v4470_v10 = vld [vmem:[%s7926_s4 + $0x1b0] ss:$8 sps:$4 sm:$0xff]  }
 0x1fa   : > { %v4471_v26 = vld [vmem:[%s7926_s4 + $0x2d0] ss:$8 sps:$4 sm:$0xff]  }
 0x1fb   : > { %2676 = vperm.xlu1 %4357, %v2498_v4   ;;  %3475 = vperm.xlu0 %4356, %v3297_v31   ;;  %v4472_v4 = vld [vmem:[%s7926_s4 + $0x1c4] ss:$8 sps:$4 sm:$0xff]  }
 0x1fc   : > { %v4474_v31 = vld [vmem:[%s7926_s4 + $0x2e4] ss:$8 sps:$4 sm:$0xff]  }
 0x200   : > { %2912 = vmatmul.mubr.bf16.gmra.mrb[44].mxu1 %v4428_v19  ;;  %3711 = vmatmul.mubr.bf16.gmra.mrb[44].mxu0 %v4429_v2  ;;  %v6869_v19 = vpop.permute.xlu1 %1862  ;;  %v6871_v2 = vpop.permute.xlu0 %1867 }
 0x201   : > { %2921 = vmatprep.mubr.bf16.mxu1 %v4430_v63  ;;  %3720 = vmatprep.mubr.bf16.mxu0 %v4432_v46  ;;  %8340 = vst [vmem:[#allocation57_spill] sm:$0xff] %v6869_v19  ;;  %8341 = vst [vmem:[#allocation40_spill] sm:$0xff] %v6871_v2  ;;  %v4476_v63 = vld [vmem:[%s7926_s4 + $0x1c0] ss:$8 sps:$4 sm:$0xff]  }
 0x202   : > { %v4477_v46 = vld [vmem:[%s7926_s4 + $0x2e0] ss:$8 sps:$4 sm:$0xff]  }
 0x208   : > { %2922 = vmatmul.mubr.bf16.gmra.mrb[48].mxu1 %v4434_v18  ;;  %3721 = vmatmul.mubr.bf16.gmra.mrb[48].mxu0 %v4435_v40  ;;  %v4478_v18 = vld [vmem:[%s7926_s4 + $0x1d4] ss:$8 sps:$4 sm:$0xff]  }
 0x209   : > { %2931 = vmatprep.mubr.bf16.mxu1 %v4436_v52  ;;  %3730 = vmatprep.mubr.bf16.mxu0 %v4438_v6  ;;  %v4480_v40 = vld [vmem:[%s7926_s4 + $0x2f4] ss:$8 sps:$4 sm:$0xff]   ;;  %v6885_v52 = vpop.permute.xlu1 %1872  ;;  %v6887_v6 = vpop.permute.xlu0 %1877 }
 0x20a   : > { %8342 = vst [vmem:[#allocation8_spill] sm:$0xff] %v6885_v52  ;;  %8343 = vst [vmem:[#allocation7_spill] sm:$0xff] %v6887_v6 }
 0x210   : > { %2932 = vmatmul.mubr.bf16.gmra.mrb[52].mxu1 %v4440_v0  ;;  %3731 = vmatmul.mubr.bf16.gmra.mrb[52].mxu0 %v4441_v9  ;;  %v6889_v0 = vpop.permute.xlu1 %2501  ;;  %v6891_v9 = vpop.permute.xlu0 %2506 }
 0x211   : > { %2941 = vmatprep.mubr.bf16.mxu1 %v4442_v30  ;;  %3740 = vmatprep.mubr.bf16.mxu0 %v4444_v22  ;;  %8344 = vst [vmem:[#allocation38_spill] sm:$0xff] %v6889_v0  ;;  %8345 = vst [vmem:[#allocation9_spill] sm:$0xff] %v6891_v9  ;;  %v4482_v30 = vld [vmem:[%s7926_s4 + $0x1d0] ss:$8 sps:$4 sm:$0xff]  }
 0x212   : > { %v4483_v22 = vld [vmem:[%s7926_s4 + $0x2f0] ss:$8 sps:$4 sm:$0xff]  }
 0x218   : > { %2942 = vmatmul.mubr.bf16.gmra.mrb[56].mxu1 %v4446_v60  ;;  %3741 = vmatmul.mubr.bf16.gmra.mrb[56].mxu0 %v4447_v8  ;;  %v4484_v60 = vld [vmem:[%s7926_s4 + $0x1e4] ss:$8 sps:$4 sm:$0xff]  }
 0x219   : > { %2951 = vmatprep.mubr.bf16.mxu1 %v4448_v21  ;;  %3750 = vmatprep.mubr.bf16.mxu0 %v4450_v32  ;;  %v4486_v8 = vld [vmem:[%s7926_s4 + $0x304] ss:$8 sps:$4 sm:$0xff]   ;;  %v6905_v21 = vpop.permute.xlu1 %2511  ;;  %v6907_v32 = vpop.permute.xlu0 %2516 }
 0x21a   : > { %8346 = vst [vmem:[#allocation43_spill] sm:$0xff] %v6905_v21  ;;  %8347 = vst [vmem:[#allocation41_spill] sm:$0xff] %v6907_v32 }
 0x220   : > { %2952 = vmatmul.mubr.bf16.gmra.mrb[60].mxu1 %v4452_v54  ;;  %3751 = vmatmul.mubr.bf16.gmra.mrb[60].mxu0 %v4453_v16  ;;  %v4488_v54 = vld [vmem:[%s7926_s4 + $0x1e0] ss:$8 sps:$4 sm:$0xff]  }
 0x221   : > { %2961 = vmatprep.mubr.bf16.mxu1 %v4454_v59  ;;  %3760 = vmatprep.mubr.bf16.mxu0 %v4456_v3  ;;  %v4489_v16 = vld [vmem:[%s7926_s4 + $0x300] ss:$8 sps:$4 sm:$0xff]   ;;  %v4490_v59 = vld [vmem:[%s7926_s4 + $0x1f4] ss:$8 sps:$4 sm:$0xff]  }
 0x222   : > { %v4492_v3 = vld [vmem:[%s7926_s4 + $0x314] ss:$8 sps:$4 sm:$0xff]  }
 0x228   : > { %2962 = vmatmul.mubr.bf16.gmra.mrb[64].mxu1 %v4458_v7  ;;  %3761 = vmatmul.mubr.bf16.gmra.mrb[64].mxu0 %v4459_v61  ;;  %v6921_v7 = vpop.permute.xlu1 %2521  ;;  %v6923_v61 = vpop.permute.xlu0 %2526 }
 0x229   : > { %2971 = vmatprep.mubr.bf16.mxu1 %v4460_v47  ;;  %3770 = vmatprep.mubr.bf16.mxu0 %v4462_v49  ;;  %8348 = vst [vmem:[#allocation42_spill] sm:$0xff] %v6921_v7  ;;  %8349 = vst [vmem:[#allocation44_spill] sm:$0xff] %v6923_v61  ;;  %v4494_v47 = vld [vmem:[%s7926_s4 + $0x1f0] ss:$8 sps:$4 sm:$0xff]  }
 0x22a   : > { %v4495_v49 = vld [vmem:[%s7926_s4 + $0x310] ss:$8 sps:$4 sm:$0xff]  }
 0x230   : > { %2972 = vmatmul.mubr.bf16.gmra.mrb[68].mxu1 %v4464_v50  ;;  %3771 = vmatmul.mubr.bf16.gmra.mrb[68].mxu0 %v4465_v35  ;;  %v4496_v50 = vld [vmem:[%s7926_s4 + $0x204] ss:$8 sps:$4 sm:$0xff]  }
 0x231   : > { %2981 = vmatprep.mubr.bf16.mxu1 %v4466_v13  ;;  %3780 = vmatprep.mubr.bf16.mxu0 %v4468_v27  ;;  %v4498_v35 = vld [vmem:[%s7926_s4 + $0x324] ss:$8 sps:$4 sm:$0xff]   ;;  %v6937_v13 = vpop.permute.xlu1 %2531  ;;  %v6939_v27 = vpop.permute.xlu0 %2536 }
 0x232   : > { %8350 = vst [vmem:[#allocation12_spill] sm:$0xff] %v6937_v13  ;;  %8351 = vst [vmem:[#allocation60_spill] sm:$0xff] %v6939_v27 }
 0x238   : > { %2982 = vmatmul.mubr.bf16.gmra.mrb[72].mxu1 %v4470_v10  ;;  %3781 = vmatmul.mubr.bf16.gmra.mrb[72].mxu0 %v4471_v26  ;;  %v6941_v10 = vpop.permute.xlu1 %2541  ;;  %v6943_v26 = vpop.permute.xlu0 %2546 }
 0x239   : > { %2991 = vmatprep.mubr.bf16.mxu1 %v4472_v4  ;;  %3790 = vmatprep.mubr.bf16.mxu0 %v4474_v31  ;;  %8352 = vst [vmem:[#allocation61_spill] sm:$0xff] %v6941_v10  ;;  %8353 = vst [vmem:[#allocation10_spill] sm:$0xff] %v6943_v26  ;;  %v4500_v4 = vld [vmem:[%s7926_s4 + $0x200] ss:$8 sps:$4 sm:$0xff]  }
 0x23a   : > { %v4501_v31 = vld [vmem:[%s7926_s4 + $0x320] ss:$8 sps:$4 sm:$0xff]  }
 0x240   : > { %2992 = vmatmul.mubr.bf16.gmra.mrb[76].mxu1 %v4476_v63  ;;  %3791 = vmatmul.mubr.bf16.gmra.mrb[76].mxu0 %v4477_v46  ;;  %v4502_v63 = vld [vmem:[%s7926_s4 + $0x214] ss:$8 sps:$4 sm:$0xff]  }
 0x241   : > { %3001 = vmatprep.mubr.bf16.mxu1 %v4478_v18  ;;  %3800 = vmatprep.mubr.bf16.mxu0 %v4480_v40  ;;  %v4504_v46 = vld [vmem:[%s7926_s4 + $0x334] ss:$8 sps:$4 sm:$0xff]   ;;  %v6957_v18 = vpop.permute.xlu1 %2551  ;;  %v6959_v40 = vpop.permute.xlu0 %2556 }
 0x242   : > { %8354 = vst [vmem:[#allocation11_spill] sm:$0xff] %v6957_v18  ;;  %8355 = vst [vmem:[#allocation14_spill] sm:$0xff] %v6959_v40  ;;  %v1522_v18 = vld [vmem:[%s7923_s1 + $0x10] sm:$0xff] }
 0x248   : > { %3002 = vmatmul.mubr.bf16.gmra.mrb[80].mxu1 %v4482_v30  ;;  %3801 = vmatmul.mubr.bf16.gmra.mrb[80].mxu0 %v4483_v22  ;;  %v4506_v30 = vld [vmem:[%s7926_s4 + $0x210] ss:$8 sps:$4 sm:$0xff]  }
 0x249   : > { %3011 = vmatprep.mubr.bf16.mxu1 %v4484_v60  ;;  %3810 = vmatprep.mubr.bf16.mxu0 %v4486_v8  ;;  %v4507_v22 = vld [vmem:[%s7926_s4 + $0x330] ss:$8 sps:$4 sm:$0xff]   ;;  %v4508_v60 = vld [vmem:[%s7926_s4 + $0x224] ss:$8 sps:$4 sm:$0xff]  }
 0x24a   : > { %v4510_v8 = vld [vmem:[%s7926_s4 + $0x344] ss:$8 sps:$4 sm:$0xff]  }
 0x250   : > { %3012 = vmatmul.mubr.bf16.gmra.mrb[84].mxu1 %v4488_v54  ;;  %3811 = vmatmul.mubr.bf16.gmra.mrb[84].mxu0 %v4489_v16  ;;  %v6973_v54 = vpop.permute.xlu1 %2561  ;;  %v6975_v16 = vpop.permute.xlu0 %2566 }
 0x251   : > { %3021 = vmatprep.mubr.bf16.mxu1 %v4490_v59  ;;  %3820 = vmatprep.mubr.bf16.mxu0 %v4492_v3  ;;  %8356 = vst [vmem:[#allocation48_spill] sm:$0xff] %v6973_v54  ;;  %8357 = vst [vmem:[#allocation13_spill] sm:$0xff] %v6975_v16  ;;  %v4512_v59 = vld [vmem:[%s7926_s4 + $0x220] ss:$8 sps:$4 sm:$0xff]  }
 0x252   : > { %v4513_v3 = vld [vmem:[%s7926_s4 + $0x340] ss:$8 sps:$4 sm:$0xff]  }
 0x258   : > { %3022 = vmatmul.mubr.bf16.gmra.mrb[88].mxu1 %v4494_v47  ;;  %3821 = vmatmul.mubr.bf16.gmra.mrb[88].mxu0 %v4495_v49  ;;  %v4514_v47 = vld [vmem:[%s7926_s4 + $0x234] ss:$8 sps:$4 sm:$0xff]  }
 0x259   : > { %3031 = vmatprep.mubr.bf16.mxu1 %v4496_v50  ;;  %3830 = vmatprep.mubr.bf16.mxu0 %v4498_v35  ;;  %v4516_v49 = vld [vmem:[%s7926_s4 + $0x354] ss:$8 sps:$4 sm:$0xff]   ;;  %v6989_v50 = vpop.permute.xlu1 %2571  ;;  %v6991_v35 = vpop.permute.xlu0 %2576 }
 0x25a   : > { %8358 = vst [vmem:[#allocation46_spill] sm:$0xff] %v6989_v50  ;;  %8359 = vst [vmem:[#allocation16_spill] sm:$0xff] %v6991_v35 }
 0x260   : > { %3032 = vmatmul.mubr.bf16.gmra.mrb[92].mxu1 %v4500_v4  ;;  %3831 = vmatmul.mubr.bf16.gmra.mrb[92].mxu0 %v4501_v31  ;;  %v6993_v4 = vpop.permute.xlu1 %2581  ;;  %v6995_v31 = vpop.permute.xlu0 %2586 }
 0x261   : > { %3041 = vmatprep.mubr.bf16.mxu1 %v4502_v63  ;;  %3840 = vmatprep.mubr.bf16.mxu0 %v4504_v46  ;;  %8360 = vst [vmem:[#allocation50_spill] sm:$0xff] %v6993_v4  ;;  %8361 = vst [vmem:[#allocation51_spill] sm:$0xff] %v6995_v31  ;;  %v4518_v63 = vld [vmem:[%s7926_s4 + $0x230] ss:$8 sps:$4 sm:$0xff]  }
 0x262   : > { %v4519_v46 = vld [vmem:[%s7926_s4 + $0x350] ss:$8 sps:$4 sm:$0xff]  }
 0x268   : > { %3042 = vmatmul.mubr.bf16.gmra.mrb[96].mxu1 %v4506_v30  ;;  %3841 = vmatmul.mubr.bf16.gmra.mrb[96].mxu0 %v4507_v22  ;;  %v1520_v30 = vld [vmem:[%s7923_s1] sm:$0xff]  ;;  %v1521_v22 = vld [vmem:[%s7923_s1 + $0x8] sm:$0xff] }
 0x269   : > { %3051 = vmatprep.mubr.bf16.mxu1 %v4508_v60  ;;  %3850 = vmatprep.mubr.bf16.mxu0 %v4510_v8  ;;  %v7009_v60 = vpop.permute.xlu1 %2591  ;;  %v7011_v8 = vpop.permute.xlu0 %2596  ;;  %v7020_v31 = vunpack.c.l.bf16 %v1521_v22  ;;  %v7022_v4 = vunpack.c.h.bf16 %v1520_v30 }
 0x26a   : > { %8362 = vst [vmem:[#allocation18_spill] sm:$0xff] %v7009_v60  ;;  %8363 = vst [vmem:[#allocation49_spill] sm:$0xff] %v7011_v8  ;;  %v7027_v8 = vunpack.c.h.bf16 %v1521_v22 }
 0x26b   : > { %8365 = vst [vmem:[#allocation15_spill] sm:$0xff] %v7020_v31  ;;  %8366 = vst [vmem:[#allocation33_spill] sm:$0xff] %v7022_v4 }
 0x26c   : > { %8367 = vst [vmem:[#allocation34_spill] sm:$0xff] %v7027_v8 }
 0x26d   : > { %v7043_v26 = vpop.permute.xlu1 %2601  ;;  %v7045_v10 = vpop.permute.xlu0 %2606 }
 0x26e   : > { %8368 = vst [vmem:[#allocation28_spill] sm:$0xff] %v7043_v26  ;;  %8369 = vst [vmem:[#allocation31_spill] sm:$0xff] %v7045_v10 }
 0x270   : > { %3052 = vmatmul.mubr.bf16.gmra.mrb[100].mxu1 %v4512_v59  ;;  %3851 = vmatmul.mubr.bf16.gmra.mrb[100].mxu0 %v4513_v3 }
 0x271   : > { %3061 = vmatprep.mubr.bf16.mxu1 %v4514_v47  ;;  %3860 = vmatprep.mubr.bf16.mxu0 %v4516_v49  ;;  %v7015_v47 = vunpack.c.l.bf16 %v1520_v30 }
 0x273   : > { %8364 = vst [vmem:[#allocation27_spill] sm:$0xff] %v7015_v47 }
 0x278   : > { %3062 = vmatmul.mubr.bf16.gmra.mrb[104].mxu1 %v4518_v63  ;;  %3861 = vmatmul.mubr.bf16.gmra.mrb[104].mxu0 %v4519_v46 }
 0x27b   : > { %v2094_v59 = vpop.f32.mrb[0].mxu0  ;;  %v7013_v3 = vpop.f32.mrb[0].mxu1 }
 0x27c   : > { %v2095_v49 = vadd.f32 %v2094_v59, %v6592_v37  ;;  %v2096_v63 = vpop.f32.mrb[1].mxu0  ;;  %v7018_v46 = vpop.f32.mrb[1].mxu1 }
 0x27d   : > { %v2097_v35 = vadd.f32 %v2096_v63, %v6592_v37  ;;  %v2098_v50 = vpop.f32.mrb[2].mxu0  ;;  %v7025_v60 = vpop.f32.mrb[2].mxu1 }
 0x27e   : > { %v2099_v16 = vadd.f32 %v2098_v50, %v6590_v38  ;;  %v2100_v54 = vpop.f32.mrb[3].mxu0  ;;  %v7030_v40 = vpop.f32.mrb[3].mxu1  ;;  %v2273_v30 = vmul.f32 %v2095_v49, %v7015_v47  ;;  %v1523_v50 = vld [vmem:[%s7923_s1 + $0x18] sm:$0xff] }
 0x27f   : > { %v2101_v59 = vadd.f32 %v2100_v54, %v6590_v38  ;;  %v2274_v63 = vmul.f32 %v2097_v35, %v7022_v4  ;;  %v7047_v54 = vunpack.c.l.bf16 %v1522_v18  ;;  %v7056_v7 = vunpack.c.l.bf16 %v1523_v50 }
 0x280   : > { %v2275_v37 = vmul.f32 %v2099_v16, %v7020_v31  ;;  %v7051_v16 = vunpack.c.h.bf16 %v1522_v18 }
 0x281   : > { %v2276_v22 = vmul.f32 %v2101_v59, %v7027_v8  ;;  %8370 = vst [vmem:[#allocation52_spill] sm:$0xff] %v7047_v54  ;;  %8372 = vst [vmem:[#allocation2_spill] sm:$0xff] %v7056_v7 }
 0x282   : > { %v2345_v38 = vadd.f32 %v2275_v37, %v2273_v30  ;;  %8371 = vst [vmem:[#allocation53_spill] sm:$0xff] %v7051_v16  ;;  %v7061_v30 = vunpack.c.h.bf16 %v1523_v50 }
 0x283   : > { %v2386_v27 = vadd.f32 %v2276_v22, %v2274_v63  ;;  %v2104_v13 = vpop.f32.mrb[4].mxu0  ;;  %v7049_v49 = vpop.f32.mrb[4].mxu1 }
 0x284   : > { %v2105_v35 = vadd.f32 %v2104_v13, %v6621_v62  ;;  %v2106_v59 = vpop.f32.mrb[5].mxu0  ;;  %v7054_v61 = vpop.f32.mrb[5].mxu1  ;;  %8373 = vst [vmem:[#allocation22_spill] sm:$0xff] %v7061_v30 }
 0x285   : > { %v2107_v26 = vadd.f32 %v2106_v59, %v6621_v62  ;;  %v2108_v32 = vpop.f32.mrb[6].mxu0  ;;  %v7059_v10 = vpop.f32.mrb[6].mxu1  ;;  %v1524_v62 = vld [vmem:[%s7923_s1 + $0x20] sm:$0xff] }
 0x286   : > { %v2277_v37 = vmul.f32 %v2105_v35, %v7047_v54  ;;  %v2109_v63 = vadd.f32 %v2108_v32, %v6623_v56  ;;  %v2110_v18 = vpop.f32.mrb[7].mxu0  ;;  %v7065_v22 = vpop.f32.mrb[7].mxu1  ;;  %v1525_v32 = vld [vmem:[%s7923_s1 + $0x28] sm:$0xff] }
 0x287   : > { %v2278_v13 = vmul.f32 %v2107_v26, %v7051_v16  ;;  %v2111_v21 = vadd.f32 %v2110_v18, %v6623_v56  ;;  %v7077_v35 = vpop.permute.xlu1 %2611  ;;  %v7079_v54 = vpop.permute.xlu0 %2616  ;;  %v7081_v56 = vunpack.c.l.bf16 %v1524_v62 }
 0x288   : > { %v2346_v59 = vadd.f32 %v2345_v38, %v2277_v37  ;;  %v2279_v6 = vmul.f32 %v2109_v63, %v7056_v7  ;;  %8374 = vst [vmem:[#allocation59_spill] sm:$0xff] %v7077_v35  ;;  %8375 = vst [vmem:[#allocation56_spill] sm:$0xff] %v7079_v54  ;;  %v7085_v38 = vunpack.c.h.bf16 %v1524_v62  ;;  %v7090_v63 = vunpack.c.l.bf16 %v1525_v32 }
 0x289   : > { %v2387_v50 = vadd.f32 %v2386_v27, %v2278_v13  ;;  %v2280_v8 = vmul.f32 %v2111_v21, %v7061_v30  ;;  %8376 = vst [vmem:[#allocation21_spill] sm:$0xff] %v7081_v56 }
 0x28a   : > { %v2347_v26 = vadd.f32 %v2346_v59, %v2279_v6  ;;  %8377 = vst [vmem:[#allocation58_spill] sm:$0xff] %v7085_v38  ;;  %8378 = vst [vmem:[#allocation3_spill] sm:$0xff] %v7090_v63  ;;  %v7095_v6 = vunpack.c.h.bf16 %v1525_v32  ;;  %v1538_v32 = vld [vmem:[%s7923_s1 + $0x90] sm:$0xff] }
 0x28b   : > { %v2388_v18 = vadd.f32 %v2387_v50, %v2280_v8  ;;  %v2114_v16 = vpop.f32.mrb[8].mxu0  ;;  %v7083_v4 = vpop.f32.mrb[8].mxu1 }
 0x28c   : > { %v2115_v27 = vadd.f32 %v2114_v16, %v6646_v58  ;;  %v2116_v21 = vpop.f32.mrb[9].mxu0  ;;  %v7088_v37 = vpop.f32.mrb[9].mxu1  ;;  %8379 = vst [vmem:[#allocation29_spill] sm:$0xff] %v7095_v6 }
 0x28d   : > { %v2117_v13 = vadd.f32 %v2116_v21, %v6646_v58  ;;  %v2118_v35 = vpop.f32.mrb[10].mxu0  ;;  %v7093_v54 = vpop.f32.mrb[10].mxu1  ;;  %v1526_v58 = vld [vmem:[%s7923_s1 + $0x30] sm:$0xff] }
 0x28e   : > { %v2281_v8 = vmul.f32 %v2115_v27, %v7081_v56  ;;  %v2119_v59 = vadd.f32 %v2118_v35, %v6648_v11  ;;  %v2120_v62 = vpop.f32.mrb[11].mxu0  ;;  %v7099_v50 = vpop.f32.mrb[11].mxu1 }
 0x28f   : > { %v2282_v16 = vmul.f32 %v2117_v13, %v7085_v38  ;;  %v2121_v30 = vadd.f32 %v2120_v62, %v6648_v11  ;;  %v1527_v13 = vld [vmem:[%s7923_s1 + $0x38] sm:$0xff]  ;;  %v7114_v38 = vpop.permute.xlu1 %2621  ;;  %v7116_v11 = vpop.permute.xlu0 %2626 }
 0x290   : > { %v2348_v21 = vadd.f32 %v2347_v26, %v2281_v8  ;;  %v2283_v7 = vmul.f32 %v2119_v59, %v7090_v63  ;;  %8380 = vst [vmem:[#allocation30_spill] sm:$0xff] %v7114_v38  ;;  %8381 = vst [vmem:[#allocation4_spill] sm:$0xff] %v7116_v11  ;;  %v1539_v26 = vld [vmem:[%s7923_s1 + $0x98] sm:$0xff]  ;;  %v7121_v59 = vunpack.c.l.bf16 %v1526_v58  ;;  %v7130_v38 = vunpack.c.l.bf16 %v1538_v32 }
 0x291   : > { %v2389_v27 = vadd.f32 %v2388_v18, %v2282_v16  ;;  %v2284_v35 = vmul.f32 %v2121_v30, %v7095_v6  ;;  %v1540_v18 = vld [vmem:[%s7923_s1 + $0xa0] sm:$0xff]  ;;  %v7128_v6 = vunpack.c.h.bf16 %v1526_v58  ;;  %v7132_v11 = vunpack.c.h.bf16 %v1538_v32  ;;  %v1542_v58 = vld [vmem:[%s7923_s1 + $0xb0] sm:$0xff] }
 0x292   : > { %v2349_v8 = vadd.f32 %v2348_v21, %v2283_v7  ;;  %8382 = vst [vmem:[#allocation23_spill] sm:$0xff] %v7121_v59  ;;  %8384 = vst [vmem:[#allocation24_spill] sm:$0xff] %v7130_v38  ;;  %v1541_v7 = vld [vmem:[%s7923_s1 + $0xa8] sm:$0xff]  ;;  %v7140_v31 = vunpack.c.l.bf16 %v1527_v13  ;;  %v7152_v52 = vunpack.c.h.bf16 %v1527_v13  ;;  %v7156_v0 = vunpack.c.h.bf16 %v1540_v18  ;;  %v1544_v13 = vld [vmem:[%s7923_s1 + $0xc0] sm:$0xff] }
 0x293   : > { %v2390_v30 = vadd.f32 %v2389_v27, %v2284_v35  ;;  %v2124_v62 = vpop.f32.mrb[12].mxu0  ;;  %v7126_v16 = vpop.f32.mrb[12].mxu1  ;;  %8383 = vst [vmem:[#allocation17_spill] sm:$0xff] %v7128_v6  ;;  %8385 = vst [vmem:[#allocation6_spill] sm:$0xff] %v7132_v11  ;;  %v7142_v27 = vunpack.c.l.bf16 %v1539_v26  ;;  %v7144_v35 = vunpack.c.h.bf16 %v1539_v26  ;;  %v1543_v26 = vld [vmem:[%s7923_s1 + $0xb8] sm:$0xff] }
 0x294   : > { %v2125_v21 = vadd.f32 %v2124_v62, %v6673_v41  ;;  %v2126_v63 = vpop.f32.mrb[13].mxu0  ;;  %v7138_v56 = vpop.f32.mrb[13].mxu1  ;;  %8387 = vst [vmem:[#allocation5_spill] sm:$0xff] %v7140_v31  ;;  %8391 = vst [vmem:[#allocation64_spill] sm:$0xff] %v7152_v52  ;;  %v7154_v62 = vunpack.c.l.bf16 %v1540_v18  ;;  %v7185_v51 = vunpack.c.l.bf16 %v1543_v26 }
 0x295   : > { %8386 = vst [vmem:[#allocation26_spill] sm:$0xff] %v7138_v56  ;;  %8388 = vst [vmem:[#allocation25_spill] sm:$0xff] %v7142_v27  ;;  %v2127_v32 = vadd.f32 %v2126_v63, %v6673_v41  ;;  %v2128_v47 = vpop.f32.mrb[14].mxu0  ;;  %v7150_v9 = vpop.f32.mrb[14].mxu1  ;;  %v7165_v41 = vunpack.c.l.bf16 %v1541_v7  ;;  %v7167_v63 = vunpack.c.h.bf16 %v1541_v7 }
 0x296   : > { %8389 = vst [vmem:[#allocation62_spill] sm:$0xff] %v7144_v35  ;;  %8390 = vst [vmem:[#allocation63_spill] sm:$0xff] %v7150_v9  ;;  %v2285_v2 = vmul.f32 %v2125_v21, %v7121_v59  ;;  %v2129_v19 = vadd.f32 %v2128_v47, %v6675_v28  ;;  %v2130_v53 = vpop.f32.mrb[15].mxu0  ;;  %v7163_v24 = vpop.f32.mrb[15].mxu1  ;;  %v1528_v21 = vld [vmem:[%s7923_s1 + $0x40] sm:$0xff]  ;;  %v7177_v47 = vunpack.c.l.bf16 %v1542_v58  ;;  %v7179_v59 = vunpack.c.h.bf16 %v1542_v58 }
 0x297   : > { %8392 = vst [vmem:[#allocation65_spill] sm:$0xff] %v7154_v62  ;;  %8393 = vst [vmem:[#allocation66_spill] sm:$0xff] %v7156_v0  ;;  %v2286_v18 = vmul.f32 %v2127_v32, %v7128_v6  ;;  %v2131_v36 = vadd.f32 %v2130_v53, %v6675_v28  ;;  %v7187_v32 = vunpack.c.h.bf16 %v1543_v26  ;;  %v1546_v6 = vld [vmem:[%s7923_s1 + $0xd0] sm:$0xff]  ;;  %v7200_v58 = vunpack.c.l.bf16 %v1544_v13 }
 0x298   : > { %8394 = vst [vmem:[#allocation67_spill] sm:$0xff] %v7163_v24  ;;  %8395 = vst [vmem:[#allocation68_spill] sm:$0xff] %v7165_v41  ;;  %v2350_v33 = vadd.f32 %v2349_v8, %v2285_v2  ;;  %v2287_v7 = vmul.f32 %v2129_v19, %v7140_v31  ;;  %v1529_v2 = vld [vmem:[%s7923_s1 + $0x48] sm:$0xff]  ;;  %v7196_v19 = vpop.permute.xlu1 %2631  ;;  %v7198_v8 = vpop.permute.xlu0 %2636  ;;  %v7202_v31 = vunpack.c.h.bf16 %v1544_v13  ;;  %v1548_v13 = vld [vmem:[%s7923_s1 + $0xe0] sm:$0xff] }
 0x299   : > { %8396 = vst [vmem:[#allocation69_spill] sm:$0xff] %v7167_v63  ;;  %8397 = vst [vmem:[#allocation70_spill] sm:$0xff] %v7177_v47  ;;  %v2391_v28 = vadd.f32 %v2390_v30, %v2286_v18  ;;  %v2288_v53 = vmul.f32 %v2131_v36, %v7152_v52  ;;  %v7204_v30 = vunpack.c.l.bf16 %v1528_v21  ;;  %v1547_v36 = vld [vmem:[%s7923_s1 + $0xd8] sm:$0xff]  ;;  %v7209_v18 = vunpack.c.l.bf16 %v1545_v39 }
 0x29a   : > { %8398 = vst [vmem:[#allocation71_spill] sm:$0xff] %v7179_v59  ;;  %8399 = vst [vmem:[#allocation72_spill] sm:$0xff] %v7185_v51  ;;  %v2351_v26 = vadd.f32 %v2350_v33, %v2287_v7  ;;  %v1530_v33 = vld [vmem:[%s7923_s1 + $0x50] sm:$0xff]  ;;  %v7226_v39 = vunpack.c.h.bf16 %v1546_v6  ;;  %v7230_v29 = vunpack.c.l.bf16 %v1529_v2  ;;  %v7237_v55 = vunpack.c.h.bf16 %v1529_v2 }
 0x29b   : > { %8400 = vst [vmem:[#allocation73_spill] sm:$0xff] %v7187_v32  ;;  %8401 = vst [vmem:[#allocation74_spill] sm:$0xff] %v7196_v19  ;;  %v2392_v52 = vadd.f32 %v2391_v28, %v2288_v53  ;;  %v2134_v25 = vpop.f32.mrb[16].mxu0  ;;  %v7213_v19 = vpop.f32.mrb[16].mxu1  ;;  %v7239_v24 = vunpack.c.h.bf16 %v1547_v36  ;;  %v7253_v2 = vunpack.c.l.bf16 %v1548_v13 }
 0x29c   : > { %8402 = vst [vmem:[#allocation75_spill] sm:$0xff] %v7198_v8  ;;  %8403 = vst [vmem:[#allocation76_spill] sm:$0xff] %v7200_v58  ;;  %v7215_v8 = vunpack.c.h.bf16 %v1528_v21  ;;  %v2135_v7 = vadd.f32 %v2134_v25, %v6695_v12  ;;  %v2136_v28 = vpop.f32.mrb[17].mxu0  ;;  %v7228_v53 = vpop.f32.mrb[17].mxu1  ;;  %v7233_v58 = vunpack.c.l.bf16 %v1547_v36  ;;  %v1531_v25 = vld [vmem:[%s7923_s1 + $0x58] sm:$0xff] }
 0x29d   : > { %8404 = vst [vmem:[#allocation77_spill] sm:$0xff] %v7202_v31  ;;  %8405 = vst [vmem:[#allocation78_spill] sm:$0xff] %v7204_v30  ;;  %v7224_v31 = vunpack.c.l.bf16 %v1546_v6  ;;  %v2137_v21 = vadd.f32 %v2136_v28, %v6695_v12  ;;  %v1549_v6 = vld [vmem:[%s7923_s1 + $0xe8] sm:$0xff] }
 0x29e   : > { %8406 = vst [vmem:[#allocation79_spill] sm:$0xff] %v7209_v18  ;;  %8408 = vst [vmem:[#allocation81_spill] sm:$0xff] %v7213_v19  ;;  %v2138_v18 = vpop.f32.mrb[18].mxu0  ;;  %v7235_v19 = vpop.f32.mrb[18].mxu1 }
 0x29f   : > { %8409 = vst [vmem:[#allocation82_spill] sm:$0xff] %v7215_v8  ;;  %8410 = vst [vmem:[#allocation83_spill] sm:$0xff] %v7224_v31  ;;  %v2139_v12 = vadd.f32 %v2138_v18, %v6697_v20  ;;  %v2140_v28 = vpop.f32.mrb[19].mxu0  ;;  %v7251_v31 = vunpack.c.l.bf16 %v1530_v33  ;;  %v2290_v36 = vmul.f32 %v2137_v21, %v7215_v8  ;;  %v1550_v18 = vld [vmem:[%s7923_s1 + $0xf0] sm:$0xff]  ;;  %v7270_v21 = vunpack.c.l.bf16 %v1549_v6 }
 0x2a0   : > { %8411 = vst [vmem:[#allocation84_spill] sm:$0xff] %v7226_v39  ;;  %8412 = vst [vmem:[#allocation85_spill] sm:$0xff] %v7228_v53  ;;  %v2289_v39 = vmul.f32 %v2135_v7, %v7204_v30  ;;  %v7259_v53 = vunpack.c.h.bf16 %v1548_v13  ;;  %v1532_v7 = vld [vmem:[%s7923_s1 + $0x60] sm:$0xff]  ;;  %v7279_v8 = vunpack.c.h.bf16 %v1531_v25  ;;  %v7292_v9 = vunpack.c.l.bf16 %v1550_v18 }
 0x2a1   : > { %8413 = vst [vmem:[#allocation86_spill] sm:$0xff] %v7230_v29  ;;  %8414 = vst [vmem:[#allocation87_spill] sm:$0xff] %v7233_v58  ;;  %v7249_v58 = vpop.f32.mrb[19].mxu1  ;;  %v2393_v13 = vadd.f32 %v2392_v52, %v2290_v36  ;;  %v7294_v52 = vunpack.c.h.bf16 %v1532_v7 }
 0x2a2   : > { %8415 = vst [vmem:[#allocation88_spill] sm:$0xff] %v7235_v19  ;;  %8416 = vst [vmem:[#allocation89_spill] sm:$0xff] %v7237_v55  ;;  %v7257_v19 = vunpack.c.h.bf16 %v1530_v33  ;;  %v2352_v30 = vadd.f32 %v2351_v26, %v2289_v39  ;;  %v1551_v33 = vld [vmem:[%s7923_s1 + $0xf8] sm:$0xff]  ;;  %v7281_v26 = vunpack.c.h.bf16 %v1549_v6  ;;  %v1534_v39 = vld [vmem:[%s7923_s1 + $0x70] sm:$0xff] }
 0x2a3   : > { %8417 = vst [vmem:[#allocation90_spill] sm:$0xff] %v7239_v24  ;;  %8418 = vst [vmem:[#allocation91_spill] sm:$0xff] %v7249_v58  ;;  %v2141_v24 = vadd.f32 %v2140_v28, %v6697_v20  ;;  %v2291_v58 = vmul.f32 %v2139_v12, %v7230_v29  ;;  %v1533_v20 = vld [vmem:[%s7923_s1 + $0x68] sm:$0xff]  ;;  %v7286_v12 = vpop.permute.xlu1 %2641  ;;  %v7288_v29 = vpop.permute.xlu0 %2646  ;;  %v7327_v56 = vunpack.c.h.bf16 %v1534_v39 }
 0x2a4   : > { %8419 = vst [vmem:[#allocation92_spill] sm:$0xff] %v7251_v31  ;;  %8420 = vst [vmem:[#allocation93_spill] sm:$0xff] %v7253_v2  ;;  %v7268_v2 = vunpack.c.l.bf16 %v1531_v25  ;;  %v2144_v6 = vpop.f32.mrb[20].mxu0  ;;  %v7299_v36 = vpop.f32.mrb[20].mxu1 }
 0x2a5   : > { %8421 = vst [vmem:[#allocation94_spill] sm:$0xff] %v7257_v19  ;;  %8422 = vst [vmem:[#allocation95_spill] sm:$0xff] %v7259_v53  ;;  %v2292_v28 = vmul.f32 %v2141_v24, %v7237_v55  ;;  %v7290_v53 = vunpack.c.l.bf16 %v1532_v7  ;;  %v1552_v24 = vld [vmem:[%s7923_s1 + $0x100] sm:$0xff]  ;;  %v7301_v55 = vunpack.c.h.bf16 %v1550_v18  ;;  %v2145_v7 = vadd.f32 %v2144_v6, %v6723_v57 }
 0x2a6   : > { %8423 = vst [vmem:[#allocation96_spill] sm:$0xff] %v7268_v2  ;;  %8424 = vst [vmem:[#allocation97_spill] sm:$0xff] %v7270_v21  ;;  %v2353_v21 = vadd.f32 %v2352_v30, %v2291_v58  ;;  %v1535_v58 = vld [vmem:[%s7923_s1 + $0x78] sm:$0xff]  ;;  %v1553_v30 = vld [vmem:[%s7923_s1 + $0x108] sm:$0xff]  ;;  %v7318_v18 = vunpack.c.h.bf16 %v1551_v33  ;;  %v7325_v44 = vunpack.c.l.bf16 %v1552_v24  ;;  %v7329_v48 = vunpack.c.h.bf16 %v1552_v24 }
 0x2a7   : > { %8425 = vst [vmem:[#allocation98_spill] sm:$0xff] %v7279_v8  ;;  %8426 = vst [vmem:[#allocation99_spill] sm:$0xff] %v7281_v26  ;;  %v2394_v25 = vadd.f32 %v2393_v13, %v2292_v28  ;;  %v2146_v13 = vpop.f32.mrb[21].mxu0  ;;  %v7314_v28 = vpop.f32.mrb[21].mxu1  ;;  %v2293_v6 = vmul.f32 %v2145_v7, %v7251_v31  ;;  %v1537_v31 = vld [vmem:[%s7923_s1 + $0x88] sm:$0xff] }
 0x2a8   : > { %8427 = vst [vmem:[#allocation100_spill] sm:$0xff] %v7286_v12  ;;  %8428 = vst [vmem:[#allocation101_spill] sm:$0xff] %v7288_v29  ;;  %v7303_v12 = vunpack.c.l.bf16 %v1533_v20  ;;  %v7305_v29 = vunpack.c.l.bf16 %v1551_v33  ;;  %v2148_v26 = vpop.f32.mrb[22].mxu0 }
 0x2a9   : > { %8429 = vst [vmem:[#allocation102_spill] sm:$0xff] %v7290_v53  ;;  %8430 = vst [vmem:[#allocation103_spill] sm:$0xff] %v7292_v9  ;;  %v7316_v9 = vunpack.c.h.bf16 %v1533_v20  ;;  %v2149_v20 = vadd.f32 %v2148_v26, %v6725_v23  ;;  %v7347_v26 = vunpack.c.h.bf16 %v1535_v58 }
 0x2aa   : > { %8431 = vst [vmem:[#allocation104_spill] sm:$0xff] %v7294_v52  ;;  %8432 = vst [vmem:[#allocation105_spill] sm:$0xff] %v7299_v36  ;;  %v7323_v36 = vpop.f32.mrb[22].mxu1 }
 0x2ab   : > { %8433 = vst [vmem:[#allocation106_spill] sm:$0xff] %v7301_v55  ;;  %8434 = vst [vmem:[#allocation107_spill] sm:$0xff] %v7303_v12  ;;  %v7320_v55 = vunpack.c.l.bf16 %v1534_v39  ;;  %v7333_v33 = vpop.f32.mrb[23].mxu1  ;;  %v1554_v39 = vld [vmem:[%s7923_s1 + $0x110] sm:$0xff] }
 0x2ac   : > { %8435 = vst [vmem:[#allocation108_spill] sm:$0xff] %v7305_v29  ;;  %8436 = vst [vmem:[#allocation109_spill] sm:$0xff] %v7314_v28  ;;  %v2147_v29 = vadd.f32 %v2146_v13, %v6723_v57  ;;  %v2150_v28 = vpop.f32.mrb[23].mxu0  ;;  %v1536_v57 = vld [vmem:[%s7923_s1 + $0x80] sm:$0xff]  ;;  %v7349_v13 = vunpack.c.h.bf16 %v1553_v30 }
 0x2ad   : > { %8437 = vst [vmem:[#allocation110_spill] sm:$0xff] %v7316_v9  ;;  %8438 = vst [vmem:[#allocation111_spill] sm:$0xff] %v7318_v18  ;;  %v7335_v18 = vunpack.c.l.bf16 %v1535_v58  ;;  %v2151_v7 = vadd.f32 %v2150_v28, %v6725_v23  ;;  %v1555_v23 = vld [vmem:[%s7923_s1 + $0x118] sm:$0xff]  ;;  %v7365_v28 = vunpack.c.l.bf16 %v1554_v39 }
 0x2ae   : > { %8439 = vst [vmem:[#allocation112_spill] sm:$0xff] %v7320_v55  ;;  %8440 = vst [vmem:[#allocation113_spill] sm:$0xff] %v7325_v44  ;;  %v7337_v55 = vunpack.c.l.bf16 %v1553_v30  ;;  %v2294_v24 = vmul.f32 %v2147_v29, %v7257_v19  ;;  %v2354_v44 = vadd.f32 %v2353_v21, %v2293_v6  ;;  %v7363_v30 = vunpack.c.l.bf16 %v1536_v57  ;;  %v7367_v19 = vpop.permute.xlu1 %2651 }
 0x2af   : > { %8441 = vst [vmem:[#allocation114_spill] sm:$0xff] %v7327_v56  ;;  %8442 = vst [vmem:[#allocation115_spill] sm:$0xff] %v7329_v48  ;;  %v2187_v48 = vadd.f32 %v7018_v46, %v6781_v17  ;;  %v2296_v58 = vmul.f32 %v2151_v7, %v7279_v8  ;;  %v7373_v46 = vunpack.c.h.bf16 %v1554_v39  ;;  %v7375_v21 = vunpack.c.l.bf16 %v1537_v31 }
 0x2b0   : > { %8443 = vst [vmem:[#allocation116_spill] sm:$0xff] %v7333_v33  ;;  %8444 = vst [vmem:[#allocation117_spill] sm:$0xff] %v7335_v18  ;;  %v2295_v33 = vmul.f32 %v2149_v20, %v7268_v2  ;;  %v2395_v29 = vadd.f32 %v2394_v25, %v2294_v24  ;;  %v2154_v20 = vpop.f32.mrb[24].mxu0  ;;  %v7377_v25 = vpop.f32.mrb[24].mxu1  ;;  %v7379_v24 = vunpack.c.l.bf16 %v1555_v23  ;;  %v7381_v7 = vunpack.c.h.bf16 %v1537_v31  ;;  %v8489_v2 = vld [vmem:[#allocation97_spill] sm:$0xff] }
 0x2b1   : > { %8445 = vst [vmem:[#allocation118_spill] sm:$0xff] %v7337_v55  ;;  %8446 = vst [vmem:[#allocation119_spill] sm:$0xff] %v7347_v26  ;;  %v2185_v55 = vadd.f32 %v7013_v3, %v6781_v17  ;;  %v7369_v3 = vpop.permute.xlu0 %2656  ;;  %v7371_v17 = vunpack.c.h.bf16 %v1536_v57  ;;  %v7383_v8 = vunpack.c.h.bf16 %v1555_v23  ;;  %v2155_v57 = vadd.f32 %v2154_v20, %v6733_v34  ;;  %v2156_v39 = vpop.f32.mrb[25].mxu0 }
 0x2b2   : > { %8447 = vst [vmem:[#allocation120_spill] sm:$0xff] %v7349_v13  ;;  %8448 = vst [vmem:[#allocation121_spill] sm:$0xff] %v7363_v30  ;;  %v2355_v13 = vadd.f32 %v2354_v44, %v2295_v33  ;;  %v2396_v6 = vadd.f32 %v2395_v29, %v2296_v58  ;;  %v7389_v44 = vmul.f32 %v2187_v48, %v7132_v11  ;;  %v7394_v29 = vpop.f32.mrb[25].mxu1  ;;  %v2158_v58 = vpop.f32.mrb[26].mxu0 }
 0x2b3   : > { %8449 = vst [vmem:[#allocation122_spill] sm:$0xff] %v7367_v19  ;;  %8450 = vst [vmem:[#allocation123_spill] sm:$0xff] %v7369_v3  ;;  %v7386_v19 = vmul.f32 %v2185_v55, %v7130_v38  ;;  %v2189_v33 = vadd.f32 %v7025_v60, %v6783_v15  ;;  %v2191_v31 = vadd.f32 %v7030_v40, %v6783_v15  ;;  %v7403_v3 = vpop.f32.mrb[26].mxu1  ;;  %v2160_v40 = vpop.f32.mrb[27].mxu0  ;;  %v8470_v38 = vld [vmem:[#allocation105_spill] sm:$0xff] }
 0x2b4   : > { %8451 = vst [vmem:[#allocation124_spill] sm:$0xff] %v7379_v24  ;;  %8452 = vst [vmem:[#allocation125_spill] sm:$0xff] %v7381_v7  ;;  %v2195_v23 = vadd.f32 %v7049_v49, %v6785_v14  ;;  %v2197_v55 = vadd.f32 %v7054_v61, %v6785_v14  ;;  %v2157_v48 = vadd.f32 %v2156_v39, %v6733_v34  ;;  %v7411_v49 = vpop.f32.mrb[27].mxu1 }
 0x2b5   : > { %8453 = vst [vmem:[#allocation126_spill] sm:$0xff] %v7383_v8  ;;  %v2199_v60 = vadd.f32 %v7059_v10, %v6787_v45  ;;  %v2201_v20 = vadd.f32 %v7065_v22, %v6787_v45  ;;  %v2297_v11 = vmul.f32 %v2155_v57, %v7290_v53  ;;  %v2159_v15 = vadd.f32 %v2158_v58, %v6735_v5  ;;  %v8488_v53 = vld [vmem:[#allocation57_spill] sm:$0xff]  ;;  %v8490_v8 = vld [vmem:[#allocation40_spill] sm:$0xff] }
 0x2b6   : > { %v2205_v14 = vadd.f32 %v7083_v4, %v6801_v43  ;;  %v2207_v34 = vadd.f32 %v7088_v37, %v6801_v43  ;;  %v2298_v61 = vmul.f32 %v2157_v48, %v7294_v52  ;;  %v2161_v10 = vadd.f32 %v2160_v40, %v6735_v5  ;;  %v7431_v48 = vpop.permute.xlu1 %2661  ;;  %v7433_v5 = vpop.permute.xlu0 %2666 }
 0x2b7   : > { %v2209_v45 = vadd.f32 %v7093_v54, %v6803_v42  ;;  %v2211_v22 = vadd.f32 %v7099_v50, %v6803_v42  ;;  %v2356_v57 = vadd.f32 %v2355_v13, %v2297_v11  ;;  %v2299_v39 = vmul.f32 %v2159_v15, %v7303_v12  ;;  %8454 = vst [vmem:[#allocation127_spill] sm:$0xff] %v7431_v48  ;;  %v2164_v15 = vpop.f32.mrb[28].mxu0 }
 0x2b8   : > { %v7425_v58 = vmul.f32 %v2189_v33, %v7142_v27  ;;  %v7428_v4 = vmul.f32 %v2191_v31, %v7144_v35  ;;  %v2397_v43 = vadd.f32 %v2396_v6, %v2298_v61  ;;  %v2300_v37 = vmul.f32 %v2161_v10, %v7316_v9  ;;  %8455 = vst [vmem:[#allocation128_spill] sm:$0xff] %v7433_v5  ;;  %v2166_v10 = vpop.f32.mrb[29].mxu0  ;;  %v8460_v5 = vld [vmem:[#allocation67_spill] sm:$0xff]  ;;  %v8467_v35 = vld [vmem:[#allocation88_spill] sm:$0xff] }
 0x2b9   : > { %v7436_v54 = vmul.f32 %v2195_v23, %v7154_v62  ;;  %v7439_v42 = vmul.f32 %v2197_v55, %v7156_v0  ;;  %v7442_v50 = vmul.f32 %v2199_v60, %v7165_v41  ;;  %v2357_v11 = vadd.f32 %v2356_v57, %v2299_v39  ;;  %v2254_v23 = vpop.f32.mrb[28].mxu1  ;;  %v8457_v57 = vld [vmem:[#allocation26_spill] sm:$0xff]  ;;  %v8458_v39 = vld [vmem:[#allocation35_spill] sm:$0xff]  ;;  %v8465_v0 = vld [vmem:[#allocation32_spill] sm:$0xff] }
 0x2ba   : > { %v7445_v13 = vmul.f32 %v2201_v20, %v7167_v63  ;;  %v7448_v6 = vmul.f32 %v2205_v14, %v7177_v47  ;;  %v7451_v33 = vmul.f32 %v2207_v34, %v7179_v59  ;;  %v2398_v31 = vadd.f32 %v2397_v43, %v2300_v37  ;;  %v8456_v20 = vld [vmem:[#allocation19_spill] sm:$0xff]  ;;  %v2256_v14 = vpop.f32.mrb[29].mxu1  ;;  %v8462_v59 = vld [vmem:[#allocation81_spill] sm:$0xff]  ;;  %v8464_v63 = vld [vmem:[#allocation112_spill] sm:$0xff] }
 0x2bb   : > { %v7454_v40 = vmul.f32 %v2209_v45, %v7185_v51  ;;  %v7457_v55 = vmul.f32 %v2211_v22, %v7187_v32  ;;  %v2215_v60 = vadd.f32 %v7126_v16, %v6817_v1  ;;  %v2165_v61 = vadd.f32 %v2164_v15, %v8456_v20  ;;  %v8459_v43 = vld [vmem:[#allocation63_spill] sm:$0xff]  ;;  %v2168_v22 = vpop.f32.mrb[30].mxu0  ;;  %v2258_v32 = vpop.f32.mrb[30].mxu1  ;;  %v8461_v51 = vld [vmem:[#allocation36_spill] sm:$0xff]  ;;  %v8463_v15 = vld [vmem:[#allocation85_spill] sm:$0xff] }
 0x2bc   : > { %v2217_v34 = vadd.f32 %v8457_v57, %v6817_v1  ;;  %v2219_v37 = vadd.f32 %v8459_v43, %v8458_v39  ;;  %v2221_v45 = vadd.f32 %v8460_v5, %v8458_v39  ;;  %v2167_v48 = vadd.f32 %v2166_v10, %v8456_v20  ;;  %v2170_v57 = vpop.f32.mrb[31].mxu0  ;;  %v2260_v62 = vpop.f32.mrb[31].mxu1  ;;  %v8466_v43 = vld [vmem:[#allocation37_spill] sm:$0xff]  ;;  %v8468_v5 = vld [vmem:[#allocation91_spill] sm:$0xff] }
 0x2bd   : > { %v2225_v16 = vadd.f32 %v8462_v59, %v8461_v51  ;;  %v2227_v47 = vadd.f32 %v8463_v15, %v8461_v51  ;;  %v2301_v41 = vmul.f32 %v2165_v61, %v8464_v63  ;;  %v2169_v1 = vadd.f32 %v2168_v22, %v8465_v0  ;;  %v8469_v59 = vld [vmem:[#allocation39_spill] sm:$0xff]  ;;  %v8471_v51 = vld [vmem:[#allocation109_spill] sm:$0xff]  ;;  %v8472_v63 = vld [vmem:[#allocation76_spill] sm:$0xff] }
 0x2be   : > { %v2229_v27 = vadd.f32 %v8467_v35, %v8466_v43  ;;  %v2231_v20 = vadd.f32 %v8468_v5, %v8466_v43  ;;  %v2302_v10 = vmul.f32 %v2167_v48, %v7327_v56  ;;  %v2171_v39 = vadd.f32 %v2170_v57, %v8465_v0  ;;  %v8473_v35 = vld [vmem:[#allocation77_spill] sm:$0xff]  ;;  %v7493_v5 = vpop.permute.xlu1 %3300  ;;  %v7495_v0 = vpop.permute.xlu0 %3305 }
 0x2bf   : > { %v2235_v9 = vadd.f32 %v8470_v38, %v8469_v59  ;;  %v2237_v61 = vadd.f32 %v8471_v51, %v8469_v59  ;;  %v2358_v15 = vadd.f32 %v2357_v11, %v2301_v41  ;;  %v2303_v22 = vmul.f32 %v2169_v1, %v7335_v18  ;;  %v8474_v38 = vld [vmem:[#allocation79_spill] sm:$0xff]  ;;  %v8475_v59 = vld [vmem:[#allocation80_spill] sm:$0xff] }
 0x2c0   : > { %v7487_v12 = vmul.f32 %v2215_v60, %v8472_v63  ;;  %v7490_v52 = vmul.f32 %v2217_v34, %v8473_v35  ;;  %v2399_v43 = vadd.f32 %v2398_v31, %v2302_v10  ;;  %v2304_v48 = vmul.f32 %v2171_v39, %v7347_v26  ;;  %v8476_v11 = vld [vmem:[#allocation83_spill] sm:$0xff]  ;;  %v8477_v51 = vld [vmem:[#allocation84_spill] sm:$0xff]  ;;  %v8479_v39 = vld [vmem:[#allocation90_spill] sm:$0xff]  ;;  %v2174_v26 = vpop.f32.mrb[32].mxu0 }
 0x2c1   : > { %v7498_v57 = vmul.f32 %v2219_v37, %v8474_v38  ;;  %v7501_v41 = vmul.f32 %v2221_v45, %v8475_v59  ;;  %v7504_v1 = vmul.f32 %v2225_v16, %v8476_v11  ;;  %v2359_v60 = vadd.f32 %v2358_v15, %v2303_v22  ;;  %v8478_v31 = vld [vmem:[#allocation87_spill] sm:$0xff]  ;;  %v2264_v37 = vpop.f32.mrb[32].mxu1  ;;  %v8480_v38 = vld [vmem:[#allocation93_spill] sm:$0xff] }
 0x2c2   : > { %v7507_v34 = vmul.f32 %v2227_v47, %v8477_v51  ;;  %v7510_v10 = vmul.f32 %v2229_v27, %v8478_v31  ;;  %v7513_v35 = vmul.f32 %v2231_v20, %v8479_v39  ;;  %v2400_v63 = vadd.f32 %v2399_v43, %v2304_v48  ;;  %v8481_v45 = vld [vmem:[#allocation95_spill] sm:$0xff]  ;;  %v8482_v16 = vld [vmem:[#allocation45_spill] sm:$0xff]  ;;  %v2176_v51 = vpop.f32.mrb[33].mxu0  ;;  %v2266_v27 = vpop.f32.mrb[33].mxu1  ;;  %v8484_v31 = vld [vmem:[#allocation116_spill] sm:$0xff] }
 0x2c3   : > { %v7516_v18 = vmul.f32 %v2235_v9, %v8480_v38  ;;  %v7519_v59 = vmul.f32 %v2237_v61, %v8481_v45  ;;  %v2239_v15 = vadd.f32 %v7323_v36, %v8482_v16  ;;  %v8483_v47 = vld [vmem:[#allocation55_spill] sm:$0xff]  ;;  %v2241_v20 = vadd.f32 %v8484_v31, %v8482_v16  ;;  %v2178_v61 = vpop.f32.mrb[34].mxu0  ;;  %v7531_v45 = vpop.f32.mrb[34].mxu1  ;;  %v8486_v38 = vld [vmem:[#allocation54_spill] sm:$0xff]  ;;  %v8487_v31 = vld [vmem:[#allocation20_spill] sm:$0xff] }
 0x2c4   : > { %v2175_v22 = vadd.f32 %v2174_v26, %v8483_v47  ;;  %v8485_v39 = vld [vmem:[#allocation47_spill] sm:$0xff]  ;;  %v2177_v48 = vadd.f32 %v2176_v51, %v8483_v47  ;;  %v2249_v36 = vadd.f32 %v7403_v3, %v8486_v38  ;;  %v2251_v26 = vadd.f32 %v7411_v49, %v8486_v38  ;;  %v2180_v56 = vpop.f32.mrb[35].mxu0 }
 0x2c5   : > { %v2245_v43 = vadd.f32 %v7377_v25, %v8485_v39  ;;  %v2247_v9 = vadd.f32 %v7394_v29, %v8485_v39  ;;  %v2179_v16 = vadd.f32 %v2178_v61, %v8487_v31  ;;  %v7539_v25 = vpop.f32.mrb[35].mxu1  ;;  %v2255_v29 = vadd.f32 %v2254_v23, %v8488_v53  ;;  %v8491_v61 = vld [vmem:[#allocation99_spill] sm:$0xff] }
 0x2c6   : > { %v2305_v11 = vmul.f32 %v2175_v22, %v7363_v30  ;;  %v2257_v51 = vadd.f32 %v2256_v14, %v8488_v53  ;;  %v2306_v39 = vmul.f32 %v2177_v48, %v7371_v17  ;;  %v2181_v47 = vadd.f32 %v2180_v56, %v8487_v31  ;;  %v7555_v14 = vpop.permute.xlu1 %3310  ;;  %v7557_v48 = vpop.permute.xlu0 %3315  ;;  %v8492_v56 = vld [vmem:[#allocation103_spill] sm:$0xff]  ;;  %v8493_v31 = vld [vmem:[#allocation106_spill] sm:$0xff] }
 0x2c7   : > { %v7546_v3 = vmul.f32 %v2239_v15, %v8489_v2  ;;  %v2259_v49 = vadd.f32 %v2258_v32, %v8490_v8  ;;  %v2307_v22 = vmul.f32 %v2179_v16, %v7375_v21  ;;  %v7551_v30 = vmul.f32 %v2241_v20, %v8491_v61  ;;  %v8495_v16 = vld [vmem:[#allocation111_spill] sm:$0xff]  ;;  %v2893_v2 = vpop.f32.mrb[36].mxu1 }
 0x2c8   : > { %v2360_v38 = vadd.f32 %v2359_v60, %v2305_v11  ;;  %v2261_v24 = vadd.f32 %v2260_v62, %v8490_v8  ;;  %v2401_v23 = vadd.f32 %v2400_v63, %v2306_v39  ;;  %v2308_v53 = vmul.f32 %v2181_v47, %v7381_v7  ;;  %v8494_v11 = vld [vmem:[#allocation108_spill] sm:$0xff]  ;;  %v8496_v62 = vld [vmem:[#allocation113_spill] sm:$0xff]  ;;  %v8497_v8 = vld [vmem:[#allocation115_spill] sm:$0xff] }
 0x2c9   : > { %v7560_v15 = vmul.f32 %v2245_v43, %v8492_v56  ;;  %v7563_v32 = vmul.f32 %v2247_v9, %v8493_v31  ;;  %v7566_v60 = vmul.f32 %v2249_v36, %v8494_v11  ;;  %v7569_v61 = vmul.f32 %v2251_v26, %v8495_v16  ;;  %v3692_v43 = vpop.f32.mrb[36].mxu0  ;;  %v8498_v56 = vld [vmem:[#allocation118_spill] sm:$0xff]  ;;  %v2895_v26 = vpop.f32.mrb[37].mxu1  ;;  %v8500_v16 = vld [vmem:[#allocation120_spill] sm:$0xff] }
 0x2ca   : > { %v2361_v20 = vadd.f32 %v2360_v38, %v2307_v22  ;;  %v7572_v63 = vmul.f32 %v2255_v29, %v8496_v62  ;;  %v7575_v39 = vmul.f32 %v2257_v51, %v8497_v8  ;;  %v2402_v47 = vadd.f32 %v2401_v23, %v2308_v53  ;;  %v8499_v36 = vld [vmem:[#allocation38_spill] sm:$0xff]  ;;  %v3694_v22 = vpop.f32.mrb[37].mxu0  ;;  %v2897_v8 = vpop.f32.mrb[38].mxu1 }
 0x2cb   : > { %v7578_v7 = vmul.f32 %v2259_v49, %v8498_v56  ;;  %v2894_v11 = vadd.f32 %v2893_v2, %v8499_v36  ;;  %v3693_v38 = vadd.f32 %v3692_v43, %v7493_v5  ;;  %v7584_v29 = vmul.f32 %v2261_v24, %v8500_v16  ;;  %v3696_v49 = vpop.f32.mrb[38].mxu0  ;;  %v8501_v56 = vld [vmem:[#allocation8_spill] sm:$0xff]  ;;  %v2899_v31 = vpop.f32.mrb[39].mxu1 }
 0x2cc   : > { %v2362_v9 = vadd.f32 %v2361_v20, %v7386_v19  ;;  %v2403_v51 = vadd.f32 %v2402_v47, %v7389_v44  ;;  %v2896_v23 = vadd.f32 %v2895_v26, %v8499_v36  ;;  %v3695_v53 = vadd.f32 %v3694_v22, %v7493_v5  ;;  %v8502_v20 = vld [vmem:[#allocation9_spill] sm:$0xff]  ;;  %v3698_v24 = vpop.f32.mrb[39].mxu0  ;;  %v8503_v44 = vld [vmem:[#allocation27_spill] sm:$0xff] }
 0x2cd   : > { %v2265_v62 = vadd.f32 %v2264_v37, %v8501_v56  ;;  %v7591_v19 = vadd.f32 %v2266_v27, %v8501_v56  ;;  %v2898_v43 = vadd.f32 %v2897_v8, %v8502_v20  ;;  %v3072_v47 = vmul.f32 %v2894_v11, %v8503_v44  ;;  %v8504_v37 = vld [vmem:[#allocation15_spill] sm:$0xff]  ;;  %v8505_v8 = vld [vmem:[#allocation33_spill] sm:$0xff] }
 0x2ce   : > { %v2363_v2 = vadd.f32 %v2362_v9, %v7425_v58  ;;  %v2404_v16 = vadd.f32 %v2403_v51, %v7428_v4  ;;  %v3871_v36 = vmul.f32 %v3693_v38, %v8503_v44  ;;  %v3697_v5 = vadd.f32 %v3696_v49, %v7495_v0  ;;  %v7607_v51 = vpop.permute.xlu1 %3320  ;;  %v7609_v38 = vpop.permute.xlu0 %3325 }
 0x2cf   : > { %v3074_v22 = vmul.f32 %v2898_v43, %v8504_v37  ;;  %v2900_v27 = vadd.f32 %v2899_v31, %v8502_v20  ;;  %v3699_v58 = vadd.f32 %v3698_v24, %v7495_v0  ;;  %v3073_v9 = vmul.f32 %v2896_v23, %v8505_v8  ;;  %v2903_v20 = vpop.f32.mrb[40].mxu1  ;;  %v3702_v24 = vpop.f32.mrb[40].mxu0 }
 0x2d0   : > { %v2364_v26 = vadd.f32 %v2363_v2, %v7436_v54  ;;  %v2405_v56 = vadd.f32 %v2404_v16, %v7439_v42  ;;  %v3872_v4 = vmul.f32 %v3695_v53, %v8505_v8  ;;  %v3873_v11 = vmul.f32 %v3697_v5, %v8504_v37  ;;  %v8506_v2 = vld [vmem:[#allocation34_spill] sm:$0xff]  ;;  %v8507_v42 = vld [vmem:[#allocation7_spill] sm:$0xff]  ;;  %v2905_v37 = vpop.f32.mrb[41].mxu1  ;;  %v8509_v8 = vld [vmem:[#allocation52_spill] sm:$0xff] }
 0x2d1   : > { %v3144_v49 = vadd.f32 %v3074_v22, %v3072_v47  ;;  %v3075_v43 = vmul.f32 %v2900_v27, %v8506_v2  ;;  %v3874_v31 = vmul.f32 %v3699_v58, %v8506_v2  ;;  %v7615_v0 = vmul.f32 %v2265_v62, %v7365_v28  ;;  %v8508_v5 = vld [vmem:[#allocation43_spill] sm:$0xff]  ;;  %v3704_v22 = vpop.f32.mrb[41].mxu0 }
 0x2d2   : > { %v2365_v54 = vadd.f32 %v2364_v26, %v7442_v50  ;;  %v7619_v16 = vadd.f32 %v7531_v45, %v8507_v42  ;;  %v2406_v23 = vadd.f32 %v2405_v56, %v7445_v13  ;;  %v3943_v53 = vadd.f32 %v3873_v11, %v3871_v36  ;;  %v2907_v13 = vpop.f32.mrb[42].mxu1  ;;  %v3706_v36 = vpop.f32.mrb[42].mxu0 }
 0x2d3   : > { %v3185_v50 = vadd.f32 %v3075_v43, %v3073_v9  ;;  %v3984_v47 = vadd.f32 %v3874_v31, %v3872_v4  ;;  %v2904_v26 = vadd.f32 %v2903_v20, %v8508_v5  ;;  %v3703_v27 = vadd.f32 %v3702_v24, %v7555_v14  ;;  %v8510_v9 = vld [vmem:[#allocation41_spill] sm:$0xff]  ;;  %v3708_v2 = vpop.f32.mrb[43].mxu0 }
 0x2d4   : > { %v2366_v44 = vadd.f32 %v2365_v54, %v7448_v6  ;;  %v2407_v62 = vadd.f32 %v2406_v23, %v7451_v33  ;;  %v2906_v45 = vadd.f32 %v2905_v37, %v8508_v5  ;;  %v3705_v58 = vadd.f32 %v3704_v22, %v7555_v14  ;;  %v2909_v54 = vpop.f32.mrb[43].mxu1  ;;  %v8511_v31 = vld [vmem:[#allocation53_spill] sm:$0xff] }
 0x2d5   : > { %v3076_v6 = vmul.f32 %v2904_v26, %v8509_v8  ;;  %v2908_v4 = vadd.f32 %v2907_v13, %v8510_v9  ;;  %v3707_v11 = vadd.f32 %v3706_v36, %v7557_v48  ;;  %v3875_v43 = vmul.f32 %v3703_v27, %v8509_v8  ;;  %v7640_v36 = vpop.permute.xlu1 %3330 }
 0x2d6   : > { %v2367_v56 = vadd.f32 %v2366_v44, %v7454_v40  ;;  %v2408_v33 = vadd.f32 %v2407_v62, %v7457_v55  ;;  %v3077_v23 = vmul.f32 %v2906_v45, %v8511_v31  ;;  %v3876_v14 = vmul.f32 %v3705_v58, %v8511_v31  ;;  %v8512_v40 = vld [vmem:[#allocation2_spill] sm:$0xff]  ;;  %v7642_v55 = vpop.permute.xlu0 %3335  ;;  %v3712_v58 = vpop.f32.mrb[44].mxu0  ;;  %v8515_v31 = vld [vmem:[#allocation21_spill] sm:$0xff] }
 0x2d7   : > { %v3145_v24 = vadd.f32 %v3144_v49, %v3076_v6  ;;  %v3078_v44 = vmul.f32 %v2908_v4, %v8512_v40  ;;  %v3877_v5 = vmul.f32 %v3707_v11, %v8512_v40  ;;  %v3944_v37 = vadd.f32 %v3943_v53, %v3875_v43  ;;  %v3714_v11 = vpop.f32.mrb[45].mxu0  ;;  %v8516_v40 = vld [vmem:[#allocation58_spill] sm:$0xff] }
 0x2d8   : > { %v2368_v20 = vadd.f32 %v2367_v56, %v7487_v12  ;;  %v2409_v26 = vadd.f32 %v2408_v33, %v7490_v52  ;;  %v3186_v22 = vadd.f32 %v3185_v50, %v3077_v23  ;;  %v3985_v13 = vadd.f32 %v3984_v47, %v3876_v14  ;;  %v2913_v47 = vpop.f32.mrb[44].mxu1 }
 0x2d9   : > { %v3146_v27 = vadd.f32 %v3145_v24, %v3078_v44  ;;  %v2910_v45 = vadd.f32 %v2909_v54, %v8510_v9  ;;  %v3709_v12 = vadd.f32 %v3708_v2, %v7557_v48  ;;  %v7649_v49 = vmul.f32 %v7591_v19, %v7373_v46  ;;  %v8514_v9 = vld [vmem:[#allocation42_spill] sm:$0xff]  ;;  %v2915_v4 = vpop.f32.mrb[45].mxu1  ;;  %v3716_v2 = vpop.f32.mrb[46].mxu0 }
 0x2da   : > { %v2369_v62 = vadd.f32 %v2368_v20, %v7498_v57  ;;  %v2410_v52 = vadd.f32 %v2409_v26, %v7501_v41  ;;  %v2271_v53 = vadd.f32 %v7539_v25, %v8507_v42  ;;  %v3945_v50 = vadd.f32 %v3944_v37, %v3877_v5  ;;  %v8513_v57 = vld [vmem:[#allocation22_spill] sm:$0xff]  ;;  %v2917_v42 = vpop.f32.mrb[46].mxu1  ;;  %v3718_v20 = vpop.f32.mrb[47].mxu0  ;;  %v8517_v37 = vld [vmem:[#allocation44_spill] sm:$0xff] }
 0x2db   : > { %v3079_v8 = vmul.f32 %v2910_v45, %v8513_v57  ;;  %v3878_v6 = vmul.f32 %v3709_v12, %v8513_v57  ;;  %v2914_v48 = vadd.f32 %v2913_v47, %v8514_v9  ;;  %v3713_v41 = vadd.f32 %v3712_v58, %v7607_v51  ;;  %v2919_v14 = vpop.f32.mrb[47].mxu1  ;;  %v8518_v58 = vld [vmem:[#allocation3_spill] sm:$0xff]  ;;  %v8519_v57 = vld [vmem:[#allocation124_spill] sm:$0xff] }
 0x2dc   : > { %v2370_v56 = vadd.f32 %v2369_v62, %v7504_v1  ;;  %v2411_v19 = vadd.f32 %v2410_v52, %v7507_v34  ;;  %v2916_v54 = vadd.f32 %v2915_v4, %v8514_v9  ;;  %v3715_v25 = vadd.f32 %v3714_v11, %v7607_v51  ;;  %v7672_v52 = vpop.permute.xlu1 %3340  ;;  %v3722_v4 = vpop.f32.mrb[48].mxu0 }
 0x2dd   : > { %v3187_v33 = vadd.f32 %v3186_v22, %v3079_v8  ;;  %v3986_v43 = vadd.f32 %v3985_v13, %v3878_v6  ;;  %v3080_v23 = vmul.f32 %v2914_v48, %v8515_v31  ;;  %v3879_v34 = vmul.f32 %v3713_v41, %v8515_v31  ;;  %v8520_v6 = vld [vmem:[#allocation126_spill] sm:$0xff]  ;;  %v2923_v48 = vpop.f32.mrb[48].mxu1  ;;  %v8521_v41 = vld [vmem:[#allocation29_spill] sm:$0xff] }
 0x2de   : > { %v2371_v1 = vadd.f32 %v2370_v56, %v7510_v10  ;;  %v2412_v24 = vadd.f32 %v2411_v19, %v7513_v35  ;;  %v3081_v44 = vmul.f32 %v2916_v54, %v8516_v40  ;;  %v3880_v5 = vmul.f32 %v3715_v25, %v8516_v40  ;;  %v7674_v35 = vpop.permute.xlu0 %3345  ;;  %v2925_v25 = vpop.f32.mrb[49].mxu1 }
 0x2df   : > { %v3147_v26 = vadd.f32 %v3146_v27, %v3080_v23  ;;  %v2918_v62 = vadd.f32 %v2917_v42, %v8517_v37  ;;  %v3717_v10 = vadd.f32 %v3716_v2, %v7609_v38  ;;  %v3946_v13 = vadd.f32 %v3945_v50, %v3879_v34  ;;  %v3724_v42 = vpop.f32.mrb[49].mxu0  ;;  %v8523_v34 = vld [vmem:[#allocation23_spill] sm:$0xff] }
 0x2e0   : > { %v2372_v51 = vadd.f32 %v2371_v1, %v7516_v18  ;;  %v2413_v22 = vadd.f32 %v2412_v24, %v7519_v59  ;;  %v3188_v45 = vadd.f32 %v3187_v33, %v3081_v44  ;;  %v3987_v12 = vadd.f32 %v3986_v43, %v3880_v5  ;;  %v2927_v33 = vpop.f32.mrb[50].mxu1 }
 0x2e1   : > { %v3082_v56 = vmul.f32 %v2918_v62, %v8518_v58  ;;  %v3881_v18 = vmul.f32 %v3717_v10, %v8518_v58  ;;  %v2920_v27 = vadd.f32 %v2919_v14, %v8517_v37  ;;  %v2343_v8 = vmul.f32 %v7619_v16, %v8519_v57  ;;  %v2929_v14 = vpop.f32.mrb[51].mxu1  ;;  %v8525_v37 = vld [vmem:[#allocation60_spill] sm:$0xff]  ;;  %v8526_v58 = vld [vmem:[#allocation5_spill] sm:$0xff] }
 0x2e2   : > { %v2373_v47 = vadd.f32 %v2372_v51, %v7546_v3  ;;  %v7683_v59 = vmul.f32 %v2271_v53, %v8520_v6  ;;  %v2414_v50 = vadd.f32 %v2413_v22, %v7551_v30  ;;  %v3719_v9 = vadd.f32 %v3718_v20, %v7609_v38  ;;  %v8522_v53 = vld [vmem:[#allocation12_spill] sm:$0xff]  ;;  %v3726_v38 = vpop.f32.mrb[50].mxu0  ;;  %v8524_v51 = vld [vmem:[#allocation17_spill] sm:$0xff] }
 0x2e3   : > { %v3148_v11 = vadd.f32 %v3147_v26, %v3082_v56  ;;  %v3947_v19 = vadd.f32 %v3946_v13, %v3881_v18  ;;  %v3083_v54 = vmul.f32 %v2920_v27, %v8521_v41  ;;  %v2924_v1 = vadd.f32 %v2923_v48, %v8522_v53  ;;  %v3728_v20 = vpop.f32.mrb[51].mxu0 }
 0x2e4   : > { %v2374_v3 = vadd.f32 %v2373_v47, %v7560_v15  ;;  %v2415_v2 = vadd.f32 %v2414_v50, %v7563_v32  ;;  %v3882_v16 = vmul.f32 %v3719_v9, %v8521_v41  ;;  %v3723_v30 = vadd.f32 %v3722_v4, %v7640_v36  ;;  %v2933_v9 = vpop.f32.mrb[52].mxu1  ;;  %v3732_v48 = vpop.f32.mrb[52].mxu0 }
 0x2e5   : > { %v3189_v31 = vadd.f32 %v3188_v45, %v3083_v54  ;;  %v2926_v15 = vadd.f32 %v2925_v25, %v8522_v53  ;;  %v3725_v23 = vadd.f32 %v3724_v42, %v7640_v36  ;;  %v3084_v40 = vmul.f32 %v2924_v1, %v8523_v34  ;;  %v7707_v45 = vpop.permute.xlu0 %3355  ;;  %v2935_v41 = vpop.f32.mrb[53].mxu1  ;;  %v8528_v42 = vld [vmem:[#allocation64_spill] sm:$0xff] }
 0x2e6   : > { %v2375_v43 = vadd.f32 %v2374_v3, %v7566_v60  ;;  %v2416_v24 = vadd.f32 %v2415_v2, %v7569_v61  ;;  %v3988_v32 = vadd.f32 %v3987_v12, %v3882_v16  ;;  %v3883_v44 = vmul.f32 %v3723_v30, %v8523_v34  ;;  %v7705_v61 = vpop.permute.xlu1 %3350  ;;  %v3734_v54 = vpop.f32.mrb[53].mxu0  ;;  %v8529_v30 = vld [vmem:[#allocation78_spill] sm:$0xff] }
 0x2e7   : > { %v3085_v26 = vmul.f32 %v2926_v15, %v8524_v51  ;;  %v3884_v60 = vmul.f32 %v3725_v23, %v8524_v51  ;;  %v2928_v62 = vadd.f32 %v2927_v33, %v8525_v37  ;;  %v3149_v36 = vadd.f32 %v3148_v11, %v3084_v40  ;;  %v8527_v11 = vld [vmem:[#allocation61_spill] sm:$0xff]  ;;  %v2937_v53 = vpop.f32.mrb[54].mxu1  ;;  %v8531_v40 = vld [vmem:[#allocation10_spill] sm:$0xff] }
 0x2e8   : > { %v2376_v5 = vadd.f32 %v2375_v43, %v7572_v63  ;;  %v2417_v10 = vadd.f32 %v2416_v24, %v7575_v39  ;;  %v3948_v22 = vadd.f32 %v3947_v19, %v3883_v44  ;;  %v3727_v13 = vadd.f32 %v3726_v38, %v7642_v55  ;;  %v2939_v43 = vpop.f32.mrb[55].mxu1 }
 0x2e9   : > { %v3190_v47 = vadd.f32 %v3189_v31, %v3085_v26  ;;  %v3989_v63 = vadd.f32 %v3988_v32, %v3884_v60  ;;  %v3086_v56 = vmul.f32 %v2928_v62, %v8526_v58  ;;  %v2930_v39 = vadd.f32 %v2929_v14, %v8525_v37  ;;  %v8530_v32 = vld [vmem:[#allocation82_spill] sm:$0xff]  ;;  %v7734_v26 = vpop.permute.xlu0 %3365 }
 0x2ea   : > { %v2377_v12 = vadd.f32 %v2376_v5, %v7578_v7  ;;  %v2418_v18 = vadd.f32 %v2417_v10, %v7584_v29  ;;  %v3885_v27 = vmul.f32 %v3727_v13, %v8526_v58  ;;  %v3729_v50 = vadd.f32 %v3728_v20, %v7642_v55  ;;  %v3736_v55 = vpop.f32.mrb[54].mxu0  ;;  %v3361_v51 = vpop.permute.xlu1 %3360  ;;  %v8534_v58 = vld [vmem:[#allocation11_spill] sm:$0xff] }
 0x2eb   : > { %v3150_v3 = vadd.f32 %v3149_v36, %v3086_v56  ;;  %v2934_v19 = vadd.f32 %v2933_v9, %v8527_v11  ;;  %v3733_v7 = vadd.f32 %v3732_v48, %v7672_v52  ;;  %v3087_v2 = vmul.f32 %v2930_v39, %v8528_v42  ;;  %v3738_v31 = vpop.f32.mrb[55].mxu0 }
 0x2ec   : > { %v2378_v4 = vadd.f32 %v2377_v12, %v7615_v0  ;;  %v2419_v25 = vadd.f32 %v2418_v18, %v7649_v49  ;;  %v3949_v29 = vadd.f32 %v3948_v22, %v3885_v27  ;;  %v3886_v16 = vmul.f32 %v3729_v50, %v8528_v42  ;;  %v2943_v22 = vpop.f32.mrb[56].mxu1  ;;  %v3742_v13 = vpop.f32.mrb[56].mxu0  ;;  %v8533_v12 = vld [vmem:[#allocation89_spill] sm:$0xff] }
 0x2ed   : > { %v3088_v0 = vmul.f32 %v2934_v19, %v8529_v30  ;;  %v3887_v33 = vmul.f32 %v3733_v7, %v8529_v30  ;;  %v2936_v38 = vadd.f32 %v2935_v41, %v8527_v11  ;;  %v3191_v49 = vadd.f32 %v3190_v47, %v3087_v2  ;;  %v2945_v18 = vpop.f32.mrb[57].mxu1  ;;  %v3744_v27 = vpop.f32.mrb[57].mxu0  ;;  %v8535_v11 = vld [vmem:[#allocation92_spill] sm:$0xff]  ;;  %v8536_v2 = vld [vmem:[#allocation14_spill] sm:$0xff] }
 0x2ee   : > { %v7721_v1 = vadd.f32 %v2378_v4, %v2343_v8  ;;  %v7727_v15 = vadd.f32 %v2419_v25, %v7683_v59  ;;  %v3990_v23 = vadd.f32 %v3989_v63, %v3886_v16  ;;  %v3735_v14 = vadd.f32 %v3734_v54, %v7672_v52  ;;  %v8532_v52 = vld [vmem:[#allocation86_spill] sm:$0xff]  ;;  %v3746_v48 = vpop.f32.mrb[58].mxu0 }
 0x2ef   : > { %v3151_v20 = vadd.f32 %v3150_v3, %v3088_v0  ;;  %v3950_v24 = vadd.f32 %v3949_v29, %v3887_v33  ;;  %v3089_v8 = vmul.f32 %v2936_v38, %v8530_v32  ;;  %v2938_v44 = vadd.f32 %v2937_v53, %v8531_v40  ;;  %v3748_v41 = vpop.f32.mrb[59].mxu0  ;;  %v8537_v30 = vld [vmem:[#allocation94_spill] sm:$0xff]  ;;  %v3371_v38 = vpop.permute.xlu1 %3370 }
 0x2f0   : > { %v3888_v34 = vmul.f32 %v3735_v14, %v8530_v32  ;;  %v3737_v5 = vadd.f32 %v3736_v55, %v7674_v35  ;;  %v2940_v59 = vadd.f32 %v2939_v43, %v8531_v40  ;;  %v3739_v37 = vadd.f32 %v3738_v31, %v7674_v35  ;;  %v2947_v35 = vpop.f32.mrb[58].mxu1  ;;  %v7752_v43 = vpop.permute.xlu0 %3375  ;;  %v8538_v31 = vld [vmem:[#allocation96_spill] sm:$0xff] }
 0x2f1   : > { %v3192_v60 = vadd.f32 %v3191_v49, %v3089_v8  ;;  %v3090_v10 = vmul.f32 %v2938_v44, %v8532_v52  ;;  %v2944_v56 = vadd.f32 %v2943_v22, %v8534_v58  ;;  %v3743_v9 = vadd.f32 %v3742_v13, %v7705_v61  ;;  %v2949_v7 = vpop.f32.mrb[59].mxu1  ;;  %v8539_v44 = vld [vmem:[#allocation98_spill] sm:$0xff] }
 0x2f2   : > { %v3991_v62 = vadd.f32 %v3990_v23, %v3888_v34  ;;  %v3889_v36 = vmul.f32 %v3737_v5, %v8532_v52  ;;  %v3091_v47 = vmul.f32 %v2940_v59, %v8533_v12  ;;  %v3890_v63 = vmul.f32 %v3739_v37, %v8533_v12 }
 0x2f3   : > { %v3152_v39 = vadd.f32 %v3151_v20, %v3090_v10  ;;  %v3092_v19 = vmul.f32 %v2944_v56, %v8535_v11  ;;  %v3891_v54 = vmul.f32 %v3743_v9, %v8535_v11  ;;  %v2946_v25 = vadd.f32 %v2945_v18, %v8534_v58  ;;  %v2953_v32 = vpop.f32.mrb[60].mxu1  ;;  %v3752_v8 = vpop.f32.mrb[60].mxu0  ;;  %v8542_v58 = vld [vmem:[#allocation13_spill] sm:$0xff] }
 0x2f4   : > { %v3951_v50 = vadd.f32 %v3950_v24, %v3889_v36  ;;  %v3193_v4 = vadd.f32 %v3192_v60, %v3091_v47  ;;  %v3992_v3 = vadd.f32 %v3991_v62, %v3890_v63  ;;  %v3745_v29 = vadd.f32 %v3744_v27, %v7705_v61  ;;  %v8540_v60 = vld [vmem:[#allocation48_spill] sm:$0xff]  ;;  %v2955_v37 = vpop.f32.mrb[61].mxu1  ;;  %v3754_v62 = vpop.f32.mrb[61].mxu0 }
 0x2f5   : > { %v3153_v42 = vadd.f32 %v3152_v39, %v3092_v19  ;;  %v2948_v16 = vadd.f32 %v2947_v35, %v8536_v2  ;;  %v3747_v53 = vadd.f32 %v3746_v48, %v7707_v45  ;;  %v3093_v0 = vmul.f32 %v2946_v25, %v8537_v30  ;;  %v2957_v13 = vpop.f32.mrb[62].mxu1  ;;  %v3756_v12 = vpop.f32.mrb[62].mxu0  ;;  %v8543_v35 = vld [vmem:[#allocation104_spill] sm:$0xff] }
 0x2f6   : > { %v3952_v55 = vadd.f32 %v3951_v50, %v3891_v54  ;;  %v3892_v33 = vmul.f32 %v3745_v29, %v8537_v30  ;;  %v2950_v14 = vadd.f32 %v2949_v7, %v8536_v2  ;;  %v3749_v24 = vadd.f32 %v3748_v41, %v7707_v45  ;;  %v8541_v45 = vld [vmem:[#allocation102_spill] sm:$0xff]  ;;  %v2959_v27 = vpop.f32.mrb[63].mxu1  ;;  %v3758_v39 = vpop.f32.mrb[63].mxu0 }
 0x2f7   : > { %v3094_v49 = vmul.f32 %v2948_v16, %v8538_v31  ;;  %v3893_v23 = vmul.f32 %v3747_v53, %v8538_v31  ;;  %v3194_v61 = vadd.f32 %v3193_v4, %v3093_v0  ;;  %v2954_v59 = vadd.f32 %v2953_v32, %v8540_v60  ;;  %v3386_v2 = vpop.permute.xlu0 %3385  ;;  %v8545_v53 = vld [vmem:[#allocation110_spill] sm:$0xff] }
 0x2f8   : > { %v3993_v20 = vadd.f32 %v3992_v3, %v3892_v33  ;;  %v3095_v5 = vmul.f32 %v2950_v14, %v8539_v44  ;;  %v3894_v52 = vmul.f32 %v3749_v24, %v8539_v44  ;;  %v3753_v10 = vadd.f32 %v3752_v8, %v3361_v51  ;;  %v8547_v44 = vld [vmem:[#allocation112_spill] sm:$0xff] }
 0x2f9   : > { %v3154_v34 = vadd.f32 %v3153_v42, %v3094_v49  ;;  %v3953_v40 = vadd.f32 %v3952_v55, %v3893_v23  ;;  %v2956_v36 = vadd.f32 %v2955_v37, %v8540_v60  ;;  %v3755_v22 = vadd.f32 %v3754_v62, %v3361_v51  ;;  %v8544_v51 = vld [vmem:[#allocation107_spill] sm:$0xff]  ;;  %v3381_v42 = vpop.permute.xlu1 %3380  ;;  %v8546_v23 = vld [vmem:[#allocation46_spill] sm:$0xff] }
 0x2fa   : > { %v3195_v47 = vadd.f32 %v3194_v61, %v3095_v5  ;;  %v3096_v63 = vmul.f32 %v2954_v59, %v8541_v45  ;;  %v2958_v56 = vadd.f32 %v2957_v13, %v8542_v58  ;;  %v3757_v18 = vadd.f32 %v3756_v12, %v7734_v26  ;;  %v8548_v59 = vld [vmem:[#allocation16_spill] sm:$0xff] }
 0x2fb   : > { %v3994_v50 = vadd.f32 %v3993_v20, %v3894_v52  ;;  %v3895_v9 = vmul.f32 %v3753_v10, %v8541_v45  ;;  %v3097_v48 = vmul.f32 %v2956_v36, %v8543_v35  ;;  %v3896_v4 = vmul.f32 %v3755_v22, %v8543_v35  ;;  %v2963_v33 = vpop.f32.mrb[64].mxu1  ;;  %v3762_v31 = vpop.f32.mrb[64].mxu0  ;;  %v8549_v36 = vld [vmem:[#allocation114_spill] sm:$0xff] }
 0x2fc   : > { %v3155_v3 = vadd.f32 %v3154_v34, %v3096_v63  ;;  %v3098_v11 = vmul.f32 %v2958_v56, %v8544_v51  ;;  %v3897_v19 = vmul.f32 %v3757_v18, %v8544_v51  ;;  %v2960_v7 = vadd.f32 %v2959_v27, %v8542_v58  ;;  %v2965_v20 = vpop.f32.mrb[65].mxu1  ;;  %v3764_v24 = vpop.f32.mrb[65].mxu0  ;;  %v8550_v63 = vld [vmem:[#allocation117_spill] sm:$0xff] }
 0x2fd   : > { %v3954_v41 = vadd.f32 %v3953_v40, %v3895_v9  ;;  %v3196_v54 = vadd.f32 %v3195_v47, %v3097_v48  ;;  %v3995_v25 = vadd.f32 %v3994_v50, %v3896_v4  ;;  %v3759_v29 = vadd.f32 %v3758_v39, %v7734_v26  ;;  %v2967_v34 = vpop.f32.mrb[66].mxu1  ;;  %v3766_v40 = vpop.f32.mrb[66].mxu0  ;;  %v8551_v39 = vld [vmem:[#allocation119_spill] sm:$0xff] }
 0x2fe   : > { %v3156_v16 = vadd.f32 %v3155_v3, %v3098_v11  ;;  %v3099_v55 = vmul.f32 %v2960_v7, %v8545_v53  ;;  %v2964_v14 = vadd.f32 %v2963_v33, %v8546_v23  ;;  %v3763_v61 = vadd.f32 %v3762_v31, %v3371_v38  ;;  %v2969_v52 = vpop.f32.mrb[67].mxu1  ;;  %v3768_v10 = vpop.f32.mrb[67].mxu0  ;;  %v8552_v7 = vld [vmem:[#allocation50_spill] sm:$0xff] }
 0x2ff   : > { %v3955_v30 = vadd.f32 %v3954_v41, %v3897_v19  ;;  %v3898_v0 = vmul.f32 %v3759_v29, %v8545_v53  ;;  %v2966_v8 = vadd.f32 %v2965_v20, %v8546_v23  ;;  %v3765_v26 = vadd.f32 %v3764_v24, %v3371_v38  ;;  %v3391_v35 = vpop.permute.xlu1 %3390  ;;  %v3396_v48 = vpop.permute.xlu0 %3395 }
 0x300   : > { %v3197_v49 = vadd.f32 %v3196_v54, %v3099_v55  ;;  %v3100_v5 = vmul.f32 %v2964_v14, %v8547_v44  ;;  %v3899_v60 = vmul.f32 %v3763_v61, %v8547_v44  ;;  %v2968_v37 = vadd.f32 %v2967_v34, %v8548_v59 }
 0x301   : > { %v3996_v32 = vadd.f32 %v3995_v25, %v3898_v0  ;;  %v3767_v62 = vadd.f32 %v3766_v40, %v7752_v43  ;;  %v3101_v22 = vmul.f32 %v2966_v8, %v8549_v36  ;;  %v3900_v13 = vmul.f32 %v3765_v26, %v8549_v36  ;;  %v8553_v0 = vld [vmem:[#allocation121_spill] sm:$0xff] }
 0x302   : > { %v2970_v12 = vadd.f32 %v2969_v52, %v8548_v59  ;;  %v3769_v38 = vadd.f32 %v3768_v10, %v7752_v43  ;;  %v3157_v47 = vadd.f32 %v3156_v16, %v3100_v5  ;;  %v3956_v45 = vadd.f32 %v3955_v30, %v3899_v60  ;;  %v8555_v59 = vld [vmem:[#allocation125_spill] sm:$0xff] }
 0x303   : > { %v3102_v58 = vmul.f32 %v2968_v37, %v8550_v63  ;;  %v3901_v56 = vmul.f32 %v3767_v62, %v8550_v63  ;;  %v3198_v18 = vadd.f32 %v3197_v49, %v3101_v22  ;;  %v3997_v27 = vadd.f32 %v3996_v32, %v3900_v13  ;;  %v2973_v19 = vpop.f32.mrb[68].mxu1  ;;  %v3772_v43 = vpop.f32.mrb[68].mxu0  ;;  %v8554_v49 = vld [vmem:[#allocation51_spill] sm:$0xff] }
 0x304   : > { %v3103_v50 = vmul.f32 %v2970_v12, %v8551_v39  ;;  %v3902_v9 = vmul.f32 %v3769_v38, %v8551_v39  ;;  %v2974_v41 = vadd.f32 %v2973_v19, %v8552_v7  ;;  %v3773_v54 = vadd.f32 %v3772_v43, %v3381_v42  ;;  %v2975_v25 = vpop.f32.mrb[69].mxu1  ;;  %v3774_v29 = vpop.f32.mrb[69].mxu0  ;;  %v8556_v38 = vld [vmem:[#allocation18_spill] sm:$0xff]  ;;  %v8557_v39 = vld [vmem:[#allocation24_spill] sm:$0xff] }
 0x305   : > { %v3158_v4 = vadd.f32 %v3157_v47, %v3102_v58  ;;  %v3957_v3 = vadd.f32 %v3956_v45, %v3901_v56  ;;  %v2976_v16 = vadd.f32 %v2975_v25, %v8552_v7  ;;  %v3775_v53 = vadd.f32 %v3774_v29, %v3381_v42  ;;  %v2977_v55 = vpop.f32.mrb[70].mxu1  ;;  %v3776_v30 = vpop.f32.mrb[70].mxu0  ;;  %v8559_v43 = vld [vmem:[#allocation6_spill] sm:$0xff] }
 0x306   : > { %v3199_v51 = vadd.f32 %v3198_v18, %v3103_v50  ;;  %v3998_v11 = vadd.f32 %v3997_v27, %v3902_v9  ;;  %v3104_v33 = vmul.f32 %v2974_v41, %v8553_v0  ;;  %v3903_v31 = vmul.f32 %v3773_v54, %v8553_v0  ;;  %v2979_v61 = vpop.f32.mrb[71].mxu1  ;;  %v3778_v20 = vpop.f32.mrb[71].mxu0 }
 0x307   : > { %v2978_v23 = vadd.f32 %v2977_v55, %v8554_v49  ;;  %v3777_v14 = vadd.f32 %v3776_v30, %v3386_v2  ;;  %v3105_v24 = vmul.f32 %v2976_v16, %v7371_v17  ;;  %v3904_v32 = vmul.f32 %v3775_v53, %v7371_v17  ;;  %v3401_v52 = vpop.permute.xlu1 %3400  ;;  %v3406_v10 = vpop.permute.xlu0 %3405  ;;  %v8560_v16 = vld [vmem:[#allocation25_spill] sm:$0xff] }
 0x308   : > { %v2980_v8 = vadd.f32 %v2979_v61, %v8554_v49  ;;  %v3779_v26 = vadd.f32 %v3778_v20, %v3386_v2  ;;  %v3159_v34 = vadd.f32 %v3158_v4, %v3104_v33  ;;  %v3958_v42 = vadd.f32 %v3957_v3, %v3903_v31  ;;  %v8558_v4 = vld [vmem:[#allocation49_spill] sm:$0xff]  ;;  %v8561_v33 = vld [vmem:[#allocation62_spill] sm:$0xff] }
 0x309   : > { %v3106_v40 = vmul.f32 %v2978_v23, %v7375_v21  ;;  %v3905_v44 = vmul.f32 %v3777_v14, %v7375_v21  ;;  %v3200_v5 = vadd.f32 %v3199_v51, %v3105_v24  ;;  %v3999_v60 = vadd.f32 %v3998_v11, %v3904_v32 }
 0x30a   : > { %v3107_v37 = vmul.f32 %v2980_v8, %v8555_v59  ;;  %v3906_v62 = vmul.f32 %v3779_v26, %v8555_v59  ;;  %v8562_v26 = vld [vmem:[#allocation28_spill] sm:$0xff] }
 0x30b   : > { %v3160_v36 = vadd.f32 %v3159_v34, %v3106_v40  ;;  %v3959_v22 = vadd.f32 %v3958_v42, %v3905_v44  ;;  %v2983_v12 = vpop.f32.mrb[72].mxu1  ;;  %v3782_v2 = vpop.f32.mrb[72].mxu0 }
 0x30c   : > { %v3201_v17 = vadd.f32 %v3200_v5, %v3107_v37  ;;  %v4000_v13 = vadd.f32 %v3999_v60, %v3906_v62  ;;  %v2984_v47 = vadd.f32 %v2983_v12, %v8556_v38  ;;  %v3783_v45 = vadd.f32 %v3782_v2, %v3391_v35  ;;  %v2985_v63 = vpop.f32.mrb[73].mxu1  ;;  %v3784_v58 = vpop.f32.mrb[73].mxu0  ;;  %v8563_v62 = vld [vmem:[#allocation65_spill] sm:$0xff] }
 0x30d   : > { %v2986_v21 = vadd.f32 %v2985_v63, %v8556_v38  ;;  %v3785_v56 = vadd.f32 %v3784_v58, %v3391_v35  ;;  %v2987_v18 = vpop.f32.mrb[74].mxu1  ;;  %v3786_v27 = vpop.f32.mrb[74].mxu0 }
 0x30e   : > { %v3108_v50 = vmul.f32 %v2984_v47, %v8557_v39  ;;  %v3907_v9 = vmul.f32 %v3783_v45, %v8557_v39  ;;  %v2988_v3 = vadd.f32 %v2987_v18, %v8558_v4  ;;  %v3787_v51 = vadd.f32 %v3786_v27, %v3396_v48  ;;  %v2989_v11 = vpop.f32.mrb[75].mxu1  ;;  %v3788_v19 = vpop.f32.mrb[75].mxu0  ;;  %v8565_v47 = vld [vmem:[#allocation66_spill] sm:$0xff]  ;;  %v8566_v18 = vld [vmem:[#allocation68_spill] sm:$0xff] }
 0x30f   : > { %v3109_v7 = vmul.f32 %v2986_v21, %v8559_v43  ;;  %v3908_v41 = vmul.f32 %v3785_v56, %v8559_v43  ;;  %v2990_v54 = vadd.f32 %v2989_v11, %v8558_v4  ;;  %v3789_v25 = vadd.f32 %v3788_v19, %v3396_v48  ;;  %v3411_v23 = vpop.permute.xlu1 %3410  ;;  %v3416_v14 = vpop.permute.xlu0 %3415  ;;  %v8567_v4 = vld [vmem:[#allocation69_spill] sm:$0xff] }
 0x310   : > { %v3161_v29 = vadd.f32 %v3160_v36, %v3108_v50  ;;  %v3960_v35 = vadd.f32 %v3959_v22, %v3907_v9  ;;  %v3110_v53 = vmul.f32 %v2988_v3, %v8560_v16  ;;  %v3909_v55 = vmul.f32 %v3787_v51, %v8560_v16 }
 0x311   : > { %v3202_v30 = vadd.f32 %v3201_v17, %v3109_v7  ;;  %v4001_v0 = vadd.f32 %v4000_v13, %v3908_v41  ;;  %v3111_v31 = vmul.f32 %v2990_v54, %v8561_v33  ;;  %v3910_v49 = vmul.f32 %v3789_v25, %v8561_v33  ;;  %v8564_v17 = vld [vmem:[#allocation31_spill] sm:$0xff] }
 0x312   : > { %v3162_v61 = vadd.f32 %v3161_v29, %v3110_v53  ;;  %v3961_v20 = vadd.f32 %v3960_v35, %v3909_v55  ;;  %v8568_v29 = vld [vmem:[#allocation59_spill] sm:$0xff] }
 0x313   : > { %v3203_v24 = vadd.f32 %v3202_v30, %v3111_v31  ;;  %v4002_v32 = vadd.f32 %v4001_v0, %v3910_v49  ;;  %v2993_v8 = vpop.f32.mrb[76].mxu1  ;;  %v3792_v48 = vpop.f32.mrb[76].mxu0  ;;  %v8569_v49 = vld [vmem:[#allocation70_spill] sm:$0xff] }
 0x314   : > { %v2994_v34 = vadd.f32 %v2993_v8, %v8562_v26  ;;  %v3793_v42 = vadd.f32 %v3792_v48, %v3401_v52  ;;  %v2995_v40 = vpop.f32.mrb[77].mxu1  ;;  %v3794_v44 = vpop.f32.mrb[77].mxu0 }
 0x315   : > { %v2996_v5 = vadd.f32 %v2995_v40, %v8562_v26  ;;  %v3795_v60 = vadd.f32 %v3794_v44, %v3401_v52  ;;  %v2997_v59 = vpop.f32.mrb[78].mxu1  ;;  %v3796_v37 = vpop.f32.mrb[78].mxu0 }
 0x316   : > { %v3112_v36 = vmul.f32 %v2994_v34, %v8563_v62  ;;  %v3911_v22 = vmul.f32 %v3793_v42, %v8563_v62  ;;  %v2998_v13 = vadd.f32 %v2997_v59, %v8564_v17  ;;  %v3797_v12 = vadd.f32 %v3796_v37, %v3406_v10  ;;  %v2999_v2 = vpop.f32.mrb[79].mxu1  ;;  %v3798_v38 = vpop.f32.mrb[79].mxu0  ;;  %v8571_v34 = vld [vmem:[#allocation71_spill] sm:$0xff]  ;;  %v8572_v59 = vld [vmem:[#allocation72_spill] sm:$0xff] }
 0x317   : > { %v3113_v45 = vmul.f32 %v2996_v5, %v8565_v47  ;;  %v3912_v63 = vmul.f32 %v3795_v60, %v8565_v47  ;;  %v3000_v58 = vadd.f32 %v2999_v2, %v8564_v17  ;;  %v3799_v21 = vadd.f32 %v3798_v38, %v3406_v10  ;;  %v3421_v11 = vpop.permute.xlu1 %3420  ;;  %v3426_v19 = vpop.permute.xlu0 %3425  ;;  %v8573_v17 = vld [vmem:[#allocation73_spill] sm:$0xff] }
 0x318   : > { %v3163_v56 = vadd.f32 %v3162_v61, %v3112_v36  ;;  %v3962_v52 = vadd.f32 %v3961_v20, %v3911_v22  ;;  %v3114_v27 = vmul.f32 %v2998_v13, %v8566_v18  ;;  %v3913_v39 = vmul.f32 %v3797_v12, %v8566_v18 }
 0x319   : > { %v3204_v50 = vadd.f32 %v3203_v24, %v3113_v45  ;;  %v4003_v9 = vadd.f32 %v4002_v32, %v3912_v63  ;;  %v3115_v3 = vmul.f32 %v3000_v58, %v8567_v4  ;;  %v3914_v51 = vmul.f32 %v3799_v21, %v8567_v4  ;;  %v8570_v24 = vld [vmem:[#allocation56_spill] sm:$0xff] }
 0x31a   : > { %v3164_v43 = vadd.f32 %v3163_v56, %v3114_v27  ;;  %v3963_v7 = vadd.f32 %v3962_v52, %v3913_v39  ;;  %v8574_v56 = vld [vmem:[#allocation30_spill] sm:$0xff] }
 0x31b   : > { %v3205_v41 = vadd.f32 %v3204_v50, %v3115_v3  ;;  %v4004_v54 = vadd.f32 %v4003_v9, %v3914_v51  ;;  %v3003_v25 = vpop.f32.mrb[80].mxu1  ;;  %v3802_v10 = vpop.f32.mrb[80].mxu0  ;;  %v8575_v51 = vld [vmem:[#allocation76_spill] sm:$0xff] }
 0x31c   : > { %v3004_v35 = vadd.f32 %v3003_v25, %v8568_v29  ;;  %v3803_v16 = vadd.f32 %v3802_v10, %v3411_v23  ;;  %v3005_v53 = vpop.f32.mrb[81].mxu1  ;;  %v3804_v55 = vpop.f32.mrb[81].mxu0 }
 0x31d   : > { %v3006_v30 = vadd.f32 %v3005_v53, %v8568_v29  ;;  %v3805_v0 = vadd.f32 %v3804_v55, %v3411_v23  ;;  %v3007_v33 = vpop.f32.mrb[82].mxu1  ;;  %v3806_v31 = vpop.f32.mrb[82].mxu0 }
 0x31e   : > { %v3116_v61 = vmul.f32 %v3004_v35, %v8569_v49  ;;  %v3915_v20 = vmul.f32 %v3803_v16, %v8569_v49  ;;  %v3008_v32 = vadd.f32 %v3007_v33, %v8570_v24  ;;  %v3807_v8 = vadd.f32 %v3806_v31, %v3416_v14  ;;  %v3009_v48 = vpop.f32.mrb[83].mxu1  ;;  %v3808_v26 = vpop.f32.mrb[83].mxu0  ;;  %v8577_v35 = vld [vmem:[#allocation77_spill] sm:$0xff]  ;;  %v8578_v33 = vld [vmem:[#allocation79_spill] sm:$0xff] }
 0x31f   : > { %v3117_v42 = vmul.f32 %v3006_v30, %v8571_v34  ;;  %v3916_v40 = vmul.f32 %v3805_v0, %v8571_v34  ;;  %v3010_v44 = vadd.f32 %v3009_v48, %v8570_v24  ;;  %v3809_v5 = vadd.f32 %v3808_v26, %v3416_v14  ;;  %v3431_v2 = vpop.permute.xlu1 %3430  ;;  %v3436_v38 = vpop.permute.xlu0 %3435  ;;  %v8579_v24 = vld [vmem:[#allocation80_spill] sm:$0xff] }
 0x320   : > { %v3165_v60 = vadd.f32 %v3164_v43, %v3116_v61  ;;  %v3964_v23 = vadd.f32 %v3963_v7, %v3915_v20  ;;  %v3118_v37 = vmul.f32 %v3008_v32, %v8572_v59  ;;  %v3917_v62 = vmul.f32 %v3807_v8, %v8572_v59 }
 0x321   : > { %v3206_v36 = vadd.f32 %v3205_v41, %v3117_v42  ;;  %v4005_v22 = vadd.f32 %v4004_v54, %v3916_v40  ;;  %v3119_v13 = vmul.f32 %v3010_v44, %v8573_v17  ;;  %v3918_v12 = vmul.f32 %v3809_v5, %v8573_v17  ;;  %v8576_v41 = vld [vmem:[#allocation4_spill] sm:$0xff] }
 0x322   : > { %v3166_v47 = vadd.f32 %v3165_v60, %v3118_v37  ;;  %v3965_v45 = vadd.f32 %v3964_v23, %v3917_v62  ;;  %v8580_v60 = vld [vmem:[#allocation74_spill] sm:$0xff] }
 0x323   : > { %v3207_v63 = vadd.f32 %v3206_v36, %v3119_v13  ;;  %v4006_v58 = vadd.f32 %v4005_v22, %v3918_v12  ;;  %v3013_v21 = vpop.f32.mrb[84].mxu1  ;;  %v3812_v14 = vpop.f32.mrb[84].mxu0  ;;  %v8581_v12 = vld [vmem:[#allocation83_spill] sm:$0xff] }
 0x324   : > { %v3014_v52 = vadd.f32 %v3013_v21, %v8574_v56  ;;  %v3813_v18 = vadd.f32 %v3812_v14, %v3421_v11  ;;  %v3015_v27 = vpop.f32.mrb[85].mxu1  ;;  %v3814_v39 = vpop.f32.mrb[85].mxu0 }
 0x325   : > { %v3016_v50 = vadd.f32 %v3015_v27, %v8574_v56  ;;  %v3815_v9 = vadd.f32 %v3814_v39, %v3421_v11  ;;  %v3017_v4 = vpop.f32.mrb[86].mxu1  ;;  %v3816_v3 = vpop.f32.mrb[86].mxu0 }
 0x326   : > { %v3120_v43 = vmul.f32 %v3014_v52, %v8575_v51  ;;  %v3919_v7 = vmul.f32 %v3813_v18, %v8575_v51  ;;  %v3018_v54 = vadd.f32 %v3017_v4, %v8576_v41  ;;  %v3817_v25 = vadd.f32 %v3816_v3, %v3426_v19  ;;  %v3019_v10 = vpop.f32.mrb[87].mxu1  ;;  %v3818_v29 = vpop.f32.mrb[87].mxu0  ;;  %v8583_v52 = vld [vmem:[#allocation84_spill] sm:$0xff]  ;;  %v8584_v4 = vld [vmem:[#allocation87_spill] sm:$0xff] }
 0x327   : > { %v3121_v16 = vmul.f32 %v3016_v50, %v8577_v35  ;;  %v3920_v53 = vmul.f32 %v3815_v9, %v8577_v35  ;;  %v3020_v55 = vadd.f32 %v3019_v10, %v8576_v41  ;;  %v3819_v30 = vadd.f32 %v3818_v29, %v3426_v19  ;;  %v3441_v48 = vpop.permute.xlu1 %3440  ;;  %v3446_v26 = vpop.permute.xlu0 %3445  ;;  %v8585_v41 = vld [vmem:[#allocation90_spill] sm:$0xff] }
 0x328   : > { %v3167_v0 = vadd.f32 %v3166_v47, %v3120_v43  ;;  %v3966_v11 = vadd.f32 %v3965_v45, %v3919_v7  ;;  %v3122_v31 = vmul.f32 %v3018_v54, %v8578_v33  ;;  %v3921_v49 = vmul.f32 %v3817_v25, %v8578_v33 }
 0x329   : > { %v3208_v61 = vadd.f32 %v3207_v63, %v3121_v16  ;;  %v4007_v20 = vadd.f32 %v4006_v58, %v3920_v53  ;;  %v3123_v32 = vmul.f32 %v3020_v55, %v8579_v24  ;;  %v3922_v8 = vmul.f32 %v3819_v30, %v8579_v24  ;;  %v8582_v63 = vld [vmem:[#allocation75_spill] sm:$0xff] }
 0x32a   : > { %v3168_v34 = vadd.f32 %v3167_v0, %v3122_v31  ;;  %v3967_v42 = vadd.f32 %v3966_v11, %v3921_v49  ;;  %v8586_v0 = vld [vmem:[#allocation100_spill] sm:$0xff] }
 0x32b   : > { %v3209_v40 = vadd.f32 %v3208_v61, %v3123_v32  ;;  %v4008_v44 = vadd.f32 %v4007_v20, %v3922_v8  ;;  %v3023_v5 = vpop.f32.mrb[88].mxu1  ;;  %v3822_v19 = vpop.f32.mrb[88].mxu0  ;;  %v8587_v8 = vld [vmem:[#allocation93_spill] sm:$0xff] }
 0x32c   : > { %v3024_v23 = vadd.f32 %v3023_v5, %v8580_v60  ;;  %v3823_v59 = vadd.f32 %v3822_v19, %v3431_v2  ;;  %v3025_v37 = vpop.f32.mrb[89].mxu1  ;;  %v3824_v62 = vpop.f32.mrb[89].mxu0 }
 0x32d   : > { %v3026_v36 = vadd.f32 %v3025_v37, %v8580_v60  ;;  %v3825_v22 = vadd.f32 %v3824_v62, %v3431_v2  ;;  %v3027_v17 = vpop.f32.mrb[90].mxu1  ;;  %v3826_v13 = vpop.f32.mrb[90].mxu0 }
 0x32e   : > { %v3124_v47 = vmul.f32 %v3024_v23, %v8581_v12  ;;  %v3923_v45 = vmul.f32 %v3823_v59, %v8581_v12  ;;  %v3028_v58 = vadd.f32 %v3027_v17, %v8582_v63  ;;  %v3827_v21 = vadd.f32 %v3826_v13, %v3436_v38  ;;  %v3029_v14 = vpop.f32.mrb[91].mxu1  ;;  %v3828_v56 = vpop.f32.mrb[91].mxu0  ;;  %v8589_v23 = vld [vmem:[#allocation95_spill] sm:$0xff]  ;;  %v8590_v17 = vld [vmem:[#allocation97_spill] sm:$0xff] }
 0x32f   : > { %v3125_v18 = vmul.f32 %v3026_v36, %v8583_v52  ;;  %v3924_v27 = vmul.f32 %v3825_v22, %v8583_v52  ;;  %v3030_v39 = vadd.f32 %v3029_v14, %v8582_v63  ;;  %v3829_v50 = vadd.f32 %v3828_v56, %v3436_v38  ;;  %v3451_v10 = vpop.permute.xlu1 %3450  ;;  %v3456_v29 = vpop.permute.xlu0 %3455  ;;  %v8591_v63 = vld [vmem:[#allocation99_spill] sm:$0xff] }
 0x330   : > { %v3169_v9 = vadd.f32 %v3168_v34, %v3124_v47  ;;  %v3968_v2 = vadd.f32 %v3967_v42, %v3923_v45  ;;  %v3126_v3 = vmul.f32 %v3028_v58, %v8584_v4  ;;  %v3925_v51 = vmul.f32 %v3827_v21, %v8584_v4 }
 0x331   : > { %v3210_v43 = vadd.f32 %v3209_v40, %v3125_v18  ;;  %v4009_v7 = vadd.f32 %v4008_v44, %v3924_v27  ;;  %v3127_v54 = vmul.f32 %v3030_v39, %v8585_v41  ;;  %v3926_v25 = vmul.f32 %v3829_v50, %v8585_v41  ;;  %v8588_v40 = vld [vmem:[#allocation101_spill] sm:$0xff] }
 0x332   : > { %v3170_v35 = vadd.f32 %v3169_v9, %v3126_v3  ;;  %v3969_v16 = vadd.f32 %v3968_v2, %v3925_v51  ;;  %v8592_v9 = vld [vmem:[#allocation122_spill] sm:$0xff] }
 0x333   : > { %v3211_v53 = vadd.f32 %v3210_v43, %v3127_v54  ;;  %v4010_v55 = vadd.f32 %v4009_v7, %v3926_v25  ;;  %v3033_v30 = vpop.f32.mrb[92].mxu1  ;;  %v3832_v38 = vpop.f32.mrb[92].mxu0  ;;  %v8593_v25 = vld [vmem:[#allocation103_spill] sm:$0xff] }
 0x334   : > { %v3034_v11 = vadd.f32 %v3033_v30, %v8586_v0  ;;  %v3833_v33 = vadd.f32 %v3832_v38, %v3441_v48  ;;  %v3035_v31 = vpop.f32.mrb[93].mxu1  ;;  %v3834_v49 = vpop.f32.mrb[93].mxu0 }
 0x335   : > { %v3036_v61 = vadd.f32 %v3035_v31, %v8586_v0  ;;  %v3835_v20 = vadd.f32 %v3834_v49, %v3441_v48  ;;  %v3037_v24 = vpop.f32.mrb[94].mxu1  ;;  %v3836_v32 = vpop.f32.mrb[94].mxu0 }
 0x336   : > { %v3128_v34 = vmul.f32 %v3034_v11, %v8587_v8  ;;  %v3927_v42 = vmul.f32 %v3833_v33, %v8587_v8  ;;  %v3038_v44 = vadd.f32 %v3037_v24, %v8588_v40  ;;  %v3837_v5 = vadd.f32 %v3836_v32, %v3446_v26  ;;  %v3039_v19 = vpop.f32.mrb[95].mxu1  ;;  %v3838_v60 = vpop.f32.mrb[95].mxu0  ;;  %v8595_v11 = vld [vmem:[#allocation106_spill] sm:$0xff]  ;;  %v8596_v24 = vld [vmem:[#allocation108_spill] sm:$0xff] }
 0x337   : > { %v3129_v59 = vmul.f32 %v3036_v61, %v8589_v23  ;;  %v3928_v37 = vmul.f32 %v3835_v20, %v8589_v23  ;;  %v3040_v62 = vadd.f32 %v3039_v19, %v8588_v40  ;;  %v3839_v36 = vadd.f32 %v3838_v60, %v3446_v26  ;;  %v3461_v14 = vpop.permute.xlu1 %3460  ;;  %v3466_v56 = vpop.permute.xlu0 %3465  ;;  %v8597_v40 = vld [vmem:[#allocation111_spill] sm:$0xff] }
 0x338   : > { %v3171_v22 = vadd.f32 %v3170_v35, %v3128_v34  ;;  %v3970_v48 = vadd.f32 %v3969_v16, %v3927_v42  ;;  %v3130_v13 = vmul.f32 %v3038_v44, %v8590_v17  ;;  %v3929_v12 = vmul.f32 %v3837_v5, %v8590_v17 }
 0x339   : > { %v3212_v47 = vadd.f32 %v3211_v53, %v3129_v59  ;;  %v4011_v45 = vadd.f32 %v4010_v55, %v3928_v37  ;;  %v3131_v58 = vmul.f32 %v3040_v62, %v8591_v63  ;;  %v3930_v21 = vmul.f32 %v3839_v36, %v8591_v63  ;;  %v8594_v53 = vld [vmem:[#allocation123_spill] sm:$0xff] }
 0x33a   : > { %v3172_v52 = vadd.f32 %v3171_v22, %v3130_v13  ;;  %v3971_v18 = vadd.f32 %v3970_v48, %v3929_v12  ;;  %v8598_v22 = vld [vmem:[#allocation127_spill] sm:$0xff] }
 0x33b   : > { %v3213_v27 = vadd.f32 %v3212_v47, %v3131_v58  ;;  %v4012_v39 = vadd.f32 %v4011_v45, %v3930_v21  ;;  %v3043_v50 = vpop.f32.mrb[96].mxu1  ;;  %v3842_v26 = vpop.f32.mrb[96].mxu0  ;;  %v2380_v47 = vrot.slane %v7721_v1, 4  ;;  %v2421_v45 = vrot.slane %v7727_v15, 4 }
 0x33c   : > { %v3044_v2 = vadd.f32 %v3043_v50, %v8592_v9  ;;  %v3843_v4 = vadd.f32 %v3842_v26, %v3451_v10  ;;  %v3045_v3 = vpop.f32.mrb[97].mxu1  ;;  %v3844_v51 = vpop.f32.mrb[97].mxu0  ;;  %v8600_v50 = vld [vmem:[#allocation128_spill] sm:$0xff] }
 0x33d   : > { %v3046_v43 = vadd.f32 %v3045_v3, %v8592_v9  ;;  %v3845_v7 = vadd.f32 %v3844_v51, %v3451_v10  ;;  %v3047_v41 = vpop.f32.mrb[98].mxu1  ;;  %v3846_v54 = vpop.f32.mrb[98].mxu0  ;;  %v8601_v3 = vld [vmem:[#allocation115_spill] sm:$0xff] }
 0x33e   : > { %v3132_v35 = vmul.f32 %v3044_v2, %v8593_v25  ;;  %v3931_v16 = vmul.f32 %v3843_v4, %v8593_v25  ;;  %v3048_v55 = vadd.f32 %v3047_v41, %v8594_v53  ;;  %v3847_v30 = vadd.f32 %v3846_v54, %v3456_v29  ;;  %v3049_v38 = vpop.f32.mrb[99].mxu1  ;;  %v3848_v0 = vpop.f32.mrb[99].mxu0  ;;  %v8602_v25 = vld [vmem:[#allocation118_spill] sm:$0xff] }
 0x33f   : > { %v3133_v33 = vmul.f32 %v3046_v43, %v8595_v11  ;;  %v3932_v31 = vmul.f32 %v3845_v7, %v8595_v11  ;;  %v3050_v49 = vadd.f32 %v3049_v38, %v8594_v53  ;;  %v3849_v61 = vadd.f32 %v3848_v0, %v3456_v29  ;;  %v2672_v19 = vpop.permute.xlu1 %2671  ;;  %v3471_v60 = vpop.permute.xlu0 %3470 }
 0x340   : > { %v3173_v20 = vadd.f32 %v3172_v52, %v3132_v35  ;;  %v3972_v10 = vadd.f32 %v3971_v18, %v3931_v16  ;;  %v3134_v32 = vmul.f32 %v3048_v55, %v8596_v24  ;;  %v3933_v8 = vmul.f32 %v3847_v30, %v8596_v24  ;;  %v8599_v18 = vld [vmem:[#allocation113_spill] sm:$0xff]  ;;  %v8603_v30 = vld [vmem:[#allocation120_spill] sm:$0xff] }
 0x341   : > { %v3214_v34 = vadd.f32 %v3213_v27, %v3133_v33  ;;  %v4013_v42 = vadd.f32 %v4012_v39, %v3932_v31  ;;  %v3135_v44 = vmul.f32 %v3050_v49, %v8597_v40  ;;  %v3934_v5 = vmul.f32 %v3849_v61, %v8597_v40 }
 0x342   : > { %v3174_v23 = vadd.f32 %v3173_v20, %v3134_v32  ;;  %v3973_v59 = vadd.f32 %v3972_v10, %v3933_v8  ;;  %v2422_v40 = vadd.f32 %v2421_v45, %v7727_v15 }
 0x343   : > { %v3215_v37 = vadd.f32 %v3214_v34, %v3135_v44  ;;  %v4014_v62 = vadd.f32 %v4013_v42, %v3934_v5  ;;  %v3053_v36 = vpop.f32.mrb[100].mxu1  ;;  %v3852_v29 = vpop.f32.mrb[100].mxu0  ;;  %v2381_v42 = vadd.f32 %v2380_v47, %v7721_v1 }
 0x344   : > { %v3054_v48 = vadd.f32 %v3053_v36, %v8598_v22  ;;  %v3853_v17 = vadd.f32 %v3852_v29, %v3461_v14  ;;  %v3055_v13 = vpop.f32.mrb[101].mxu1  ;;  %v3854_v12 = vpop.f32.mrb[101].mxu0 }
 0x345   : > { %v3056_v63 = vadd.f32 %v3055_v13, %v8598_v22  ;;  %v3855_v58 = vadd.f32 %v3854_v12, %v3461_v14  ;;  %v3057_v21 = vpop.f32.mrb[102].mxu1  ;;  %v3856_v52 = vpop.f32.mrb[102].mxu0 }
 0x346   : > { %v3136_v27 = vmul.f32 %v3054_v48, %v8599_v18  ;;  %v3935_v39 = vmul.f32 %v3853_v17, %v8599_v18  ;;  %v3058_v26 = vadd.f32 %v3057_v21, %v8600_v50  ;;  %v3857_v9 = vadd.f32 %v3856_v52, %v3466_v56  ;;  %v3059_v2 = vpop.f32.mrb[103].mxu1  ;;  %v3858_v4 = vpop.f32.mrb[103].mxu0 }
 0x347   : > { %v3137_v51 = vmul.f32 %v3056_v63, %v8601_v3  ;;  %v3936_v43 = vmul.f32 %v3855_v58, %v8601_v3  ;;  %v3060_v7 = vadd.f32 %v3059_v2, %v8600_v50  ;;  %v3859_v41 = vadd.f32 %v3858_v4, %v3466_v56  ;;  %v2677_v11 = vpop.permute.xlu1 %2676  ;;  %v3476_v33 = vpop.permute.xlu0 %3475 }
 0x348   : > { %v3175_v54 = vadd.f32 %v3174_v23, %v3136_v27  ;;  %v3974_v14 = vadd.f32 %v3973_v59, %v3935_v39  ;;  %v3138_v35 = vmul.f32 %v3058_v26, %v8602_v25  ;;  %v3937_v16 = vmul.f32 %v3857_v9, %v8602_v25 }
 0x349   : > { %v3216_v53 = vadd.f32 %v3215_v37, %v3137_v51  ;;  %v4015_v55 = vadd.f32 %v4014_v62, %v3936_v43  ;;  %v3139_v38 = vmul.f32 %v3060_v7, %v8603_v30  ;;  %v3938_v0 = vmul.f32 %v3859_v41, %v8603_v30 }
 0x34a   : > { %v3176_v31 = vadd.f32 %v3175_v54, %v3138_v35  ;;  %v3975_v49 = vadd.f32 %v3974_v14, %v3937_v16  ;;  %v2382_v21 = vrot.slane %v2381_v42, 2  ;;  %v2423_v27 = vrot.slane %v2422_v40, 2 }
 0x34b   : > { %v3217_v61 = vadd.f32 %v3216_v53, %v3139_v38  ;;  %v4016_v20 = vadd.f32 %v4015_v55, %v3938_v0  ;;  %v3063_v10 = vpop.f32.mrb[104].mxu1  ;;  %v3862_v56 = vpop.f32.mrb[104].mxu0 }
 0x34c   : > { %v3064_v24 = vadd.f32 %v3063_v10, %v2672_v19  ;;  %v3863_v32 = vadd.f32 %v3862_v56, %v3471_v60  ;;  %v3065_v8 = vpop.f32.mrb[105].mxu1  ;;  %v3864_v34 = vpop.f32.mrb[105].mxu0  ;;  %v2383_v4 = vadd.f32 %v2382_v21, %v2381_v42 }
 0x34d   : > { %v3066_v44 = vadd.f32 %v3065_v8, %v2672_v19  ;;  %v3865_v5 = vadd.f32 %v3864_v34, %v3471_v60  ;;  %v3067_v23 = vpop.f32.mrb[106].mxu1  ;;  %v3866_v59 = vpop.f32.mrb[106].mxu0 }
 0x34e   : > { %v3140_v37 = vmul.f32 %v3064_v24, %v7365_v28  ;;  %v3939_v62 = vmul.f32 %v3863_v32, %v7365_v28  ;;  %v3068_v36 = vadd.f32 %v3067_v23, %v2677_v11  ;;  %v3867_v29 = vadd.f32 %v3866_v59, %v3476_v33  ;;  %v3069_v22 = vpop.f32.mrb[107].mxu1  ;;  %v3868_v48 = vpop.f32.mrb[107].mxu0 }
 0x34f   : > { %v3141_v17 = vmul.f32 %v3066_v44, %v7373_v46  ;;  %v3940_v13 = vmul.f32 %v3865_v5, %v7373_v46  ;;  %v3070_v12 = vadd.f32 %v3069_v22, %v2677_v11  ;;  %v3869_v1 = vadd.f32 %v3868_v48, %v3476_v33 }
 0x350   : > { %v3177_v47 = vadd.f32 %v3176_v31, %v3140_v37  ;;  %v3976_v15 = vadd.f32 %v3975_v49, %v3939_v62  ;;  %v3142_v19 = vmul.f32 %v3068_v36, %v8519_v57  ;;  %v3941_v60 = vmul.f32 %v3867_v29, %v8519_v57 }
 0x351   : > { %v3218_v45 = vadd.f32 %v3217_v61, %v3141_v17  ;;  %v4017_v63 = vadd.f32 %v4016_v20, %v3940_v13  ;;  %v3143_v28 = vmul.f32 %v3070_v12, %v8520_v6  ;;  %v3942_v58 = vmul.f32 %v3869_v1, %v8520_v6 }
 0x352   : > { %v3178_v52 = vadd.f32 %v3177_v47, %v3142_v19  ;;  %v3977_v18 = vadd.f32 %v3976_v15, %v3941_v60  ;;  %v2424_v57 = vadd.f32 %v2423_v27, %v2422_v40  ;;  %v2384_v25 = vrot.slane %v2383_v4, 1 }
 0x353   : > { %v3219_v39 = vadd.f32 %v3218_v45, %v3143_v28  ;;  %v4018_v46 = vadd.f32 %v4017_v63, %v3942_v58 }
 0x354   : > { %v3179_v50 = vrot.slane %v3178_v52, 4  ;;  %v3978_v26 = vrot.slane %v3977_v18, 4  ;;  %v2425_v53 = vrot.slane %v2424_v57, 1  ;;  %v2385_v31 = vadd.f32 %v2384_v25, %v2383_v4 }
 0x355   : > { %v3220_v9 = vrot.slane %v3219_v39, 4  ;;  %v4019_v2 = vrot.slane %v4018_v46, 4 }
 0x356   : > { %v3180_v3 = vadd.f32 %v3179_v50, %v3178_v52  ;;  %v3979_v51 = vadd.f32 %v3978_v26, %v3977_v18  ;;  %v2426_v20 = vadd.f32 %v2425_v53, %v2424_v57 }
 0x357   : > { %v3221_v43 = vadd.f32 %v3220_v9, %v3219_v39  ;;  %v4020_v7 = vadd.f32 %v4019_v2, %v4018_v46 }
 0x358   : > { %v3181_v41 = vrot.slane %v3180_v3, 2  ;;  %v3980_v54 = vrot.slane %v3979_v51, 2 }
 0x359   : > { %v3222_v14 = vrot.slane %v3221_v43, 2  ;;  %v4021_v6 = vrot.slane %v4020_v7, 2 }
 0x35a   : > { %v3182_v35 = vadd.f32 %v3181_v41, %v3180_v3  ;;  %v3981_v16 = vadd.f32 %v3980_v54, %v3979_v51 }
 0x35b   : > { %v3223_v55 = vadd.f32 %v3222_v14, %v3221_v43  ;;  %v4022_v30 = vadd.f32 %v4021_v6, %v4020_v7 }
 0x35c   : > { %v3183_v38 = vrot.slane %v3182_v35, 1  ;;  %v3982_v0 = vrot.slane %v3981_v16, 1 }
 0x35d   : > { %v3224_v11 = vrot.slane %v3223_v55, 1  ;;  %v4023_v33 = vrot.slane %v4022_v30, 1 }
 0x35e   : > { %v3184_v49 = vadd.f32 %v3183_v38, %v3182_v35  ;;  %v3983_v61 = vadd.f32 %v3982_v0, %v3981_v16 }
 0x35f   : > { %v3225_v10 = vadd.f32 %v3224_v11, %v3223_v55  ;;  %v4024_v56 = vadd.f32 %v4023_v33, %v4022_v30 }
 0x360   : > { %v4026_v24 = vsel %vm4025_vm0, %v2385_v31, %v3184_v49 }
 0x361   : > { %v4029_v32 = vsel %vm4028_vm1, %v4026_v24, %v3983_v61  ;;  %v4027_v8 = vsel %vm4025_vm0, %v2426_v20, %v3225_v10 }
 0x362   : > { %v4030_v34 = vsel %vm4028_vm1, %v4027_v8, %v4024_v56 }
 0x363   : > { %v4033_v42 = vcombine.low %v4029_v32, %v4030_v34 }
 0x365   : > { %4035 = vst [vmem:[%s342_s29] sm:$0x77] %v4033_v42 }
 0x366 PF: > { %s16_s23 = sadd.s32 1, %s4542_s23   ;;  %s8604_s21 = smov %s4538_s22 }
 0x367   : > { %p13_p5 = scmp.ge.s32.totalorder %s16_s23, 6   ;;  %s8605_s22 = smov %s8607_s24 }
 0x369   :  { %15 = sbr.rel (!%p13_p5) target bundleno = 2 (0x2), region = 77 }

</bundles_post_ra>
